<compile_context>
chip_gen: v7x
topology: tpu7x:2x2x1
jax: 0.10.0
libtpu: 0.0.40
codegen_flags: <defaults>
</compile_context>

<pallas_src>
import functools

import numpy as np
import jax
import jax.numpy as jnp
from jax import lax
from jax.experimental import pallas as pl
from jax.experimental.pallas import tpu as pltpu

EPS = 1e-5      # nn.InstanceNorm2d default eps (affine=False -> no scale/shift)
SLOPE = 0.2     # LeakyReLU negative slope
STRIDE = 2      # every conv in NetC.forward is stride-2
LANE = 128


def _round_up(x, m):
    return (x + m - 1) // m * m


@functools.lru_cache(maxsize=1)
def _vmem_limit_bytes():
    """Generation-aware scoped-VMEM limit: ~75% of physical, capped at 96 MiB."""
    limit = 64 * 1024 * 1024                     # proven-safe fallback
    try:
        cap = int(pltpu.get_tpu_info().vmem_capacity_bytes)
        limit = min(cap * 3 // 4, 96 * 1024 * 1024)   # 48 MiB on v7x, 96 MiB on v5e/v6e
    except Exception:
        pass
    return int(limit)


# ---------------------------------------------------------------------------
# Layers 1–3: fused im2col-conv (one big-K MXU matmul) + InstanceNorm + LeakyReLU
# ---------------------------------------------------------------------------
def _conv_in_lrelu_kernel(p_ref, w_ref, o_ref, *, do_in):
    """One sample per grid step.

    p_ref: (1, HW, Kp)  bf16 im2col patches (Kp = KH*KW*Cin rounded up to 128)
    w_ref: (Kp, Cp)     bf16 weights, whole array resident in VMEM
    o_ref: (1, HW, Cp)  bf16 (Cp = Cout rounded up to 128 -> lane-dense stores)
    """
    acc = jnp.dot(p_ref[0], w_ref[...], preferred_element_type=jnp.float32)

    if do_in:
        # InstanceNorm2d (affine=False), single-pass statistics.
        inv_hw = 1.0 / acc.shape[0]
        mean = jnp.sum(acc, axis=0, keepdims=True) * inv_hw
        ex2 = jnp.sum(acc * acc, axis=0, keepdims=True) * inv_hw
        var = ex2 - mean * mean
        acc = (acc - mean) * lax.rsqrt(var + EPS)

    acc = jnp.where(acc >= 0, acc, SLOPE * acc)            # LeakyReLU(0.2)
    o_ref[0] = acc.astype(o_ref.dtype)


def _im2col(x, KH, KW, pad):
    """x: (N,H,W,Cin) -> (patches (N, Hout*Wout, KH*KW*Cin), Hout, Wout).

    Pure layout glue (pad + strided tap slicing) done in XLA; the kernel sees a
    single dense, lane-friendly matmul operand.
    """
    N, H, W, Cin = x.shape
    xp = jnp.pad(x, ((0, 0), (pad, pad), (pad, pad), (0, 0)))
    Hp, Wp = H + 2 * pad, W + 2 * pad
    Hout = (Hp - KH) // STRIDE + 1
    Wout = (Wp - KW) // STRIDE + 1

    taps = []
    for kh in range(KH):
        for kw in range(KW):
            taps.append(lax.slice(
                xp,
                (0, kh, kw, 0),
                (N, kh + (Hout - 1) * STRIDE + 1,
                 kw + (Wout - 1) * STRIDE + 1, Cin),
                (1, STRIDE, STRIDE, 1)))                   # (N, Hout, Wout, Cin)
    p = jnp.stack(taps, axis=3)                            # (N, Hout, Wout, KK, Cin)
    return p.reshape(N, Hout * Wout, KH * KW * Cin), Hout, Wout


def conv_in_lrelu(x, w_hwio, *, pad, do_in):
    """x: (N,H,W,Cin), w_hwio: (KH,KW,Cin,Cout). Returns (N,Hout,Wout,Cout) bf16."""
    N, H, W, Cin = x.shape
    KH, KW, _, Cout = w_hwio.shape

    p, Hout, Wout = _im2col(x.astype(jnp.bfloat16), KH, KW, pad)
    HW = Hout * Wout
    K = KH * KW * Cin
    Kp = _round_up(K, LANE)         # lane-dense contraction dim (zero rows are free)
    Cp = _round_up(Cout, LANE)      # lane-dense (unmasked) output stores

    if Kp != K:
        p = jnp.pad(p, ((0, 0), (0, 0), (0, Kp - K)))
    w = w_hwio.reshape(K, Cout).astype(jnp.bfloat16)       # (kh,kw,cin)-major == patch order
    if Kp != K or Cp != Cout:
        w = jnp.pad(w, ((0, Kp - K), (0, Cp - Cout)))

    vmem_limit = _vmem_limit_bytes()
    # Double-buffered patch + output blocks + resident weights, all bf16.
    block_bytes = 2 * (HW * Kp + HW * Cp) * 2 + Kp * Cp * 2
    if block_bytes > vmem_limit:
        # TODO(synk): add an HW grid axis with per-channel sum/sum-sq scratch.
        raise ValueError(
            f"conv block needs ~{block_bytes} B of VMEM (> {vmem_limit}); "
            "input resolution too large for the single-HW-block kernel.")

    flops = 2 * N * HW * Kp * Cp
    bytes_accessed = (N * HW * Kp + Kp * Cp + N * HW * Cp) * 2

    out = pl.pallas_call(
        functools.partial(_conv_in_lrelu_kernel, do_in=do_in),
        out_shape=jax.ShapeDtypeStruct((N, HW, Cp), jnp.bfloat16),
        grid=(N,),
        in_specs=[
            pl.BlockSpec((1, HW, Kp), lambda n: (n, 0, 0)),
            # Whole weight resident in VMEM: fetched once, never re-DMA'd.
            pl.BlockSpec(memory_space=pltpu.MemorySpace.VMEM),
        ],
        out_specs=pl.BlockSpec((1, HW, Cp), lambda n: (n, 0, 0)),
        compiler_params=pltpu.CompilerParams(
            dimension_semantics=("parallel",),
            vmem_limit_bytes=vmem_limit),
        cost_estimate=pl.CostEstimate(
            flops=flops, transcendentals=0, bytes_accessed=bytes_accessed),
    )(p, w)
    return out[:, :, :Cout].reshape(N, Hout, Wout, Cout)


# ---------------------------------------------------------------------------
# Layers 4–6 fused: one pallas_call, batch folded into M, intermediates in VMEM.
# ---------------------------------------------------------------------------
def _tail_kernel(h_ref, w4_ref, w5_ref, w6_ref, o4_ref, o5_ref, o6_ref, *, cfg):
    """Fused convblock4..6 (conv + InstanceNorm + LeakyReLU).

    h_ref : (N, H3, W3, C3)          bf16 layer-3 activation
    wX_ref: (KH*KW, Cin, Cout)       bf16 weights, resident in VMEM
    oX_ref: (N, Hout*Wout, Cout)     bf16 per-layer outputs
    cfg   : static per-layer geometry (KH, KW, pad, Hin, Win, Hout, Wout, Cout)
    """
    h = h_ref[...].astype(jnp.float32)                     # (N, Hin, Win, Cin)
    n = h.shape[0]

    for (KH, KW, pad, Hin, Win, Hout, Wout, Cout), w_ref, o_ref in zip(
            cfg, (w4_ref, w5_ref, w6_ref), (o4_ref, o5_ref, o6_ref)):
        Cin = h.shape[-1]
        HWo = Hout * Wout
        zero = jnp.zeros((n, 1, Cin), jnp.float32)
        acc = jnp.zeros((n * HWo, Cout), jnp.float32)

        # In-kernel im2col: per-tap gather of the tiny spatial grid, then a
        # batch-folded K=Cin MXU matmul per tap (Cin = 4ndf / 8ndf -> lane-full).
        for kh in range(KH):
            for kw in range(KW):
                chunks, valid = [], False
                for ho in range(Hout):
                    for wo in range(Wout):
                        hi = ho * STRIDE - pad + kh
                        wi = wo * STRIDE - pad + kw
                        if 0 <= hi < Hin and 0 <= wi < Win:
                            chunks.append(h[:, hi:hi + 1, wi, :])   # (N, 1, Cin)
                            valid = True
                        else:
                            chunks.append(zero)                     # zero padding tap
                if not valid:
                    continue          # tap lands entirely in the zero padding
                tap = chunks[0] if len(chunks) == 1 else jnp.concatenate(chunks, axis=1)
                tap = tap.astype(jnp.bfloat16).reshape(n * HWo, Cin)
                acc = acc + jnp.dot(tap, w_ref[kh * KW + kw],
                                    preferred_element_type=jnp.float32)

        # InstanceNorm2d (per sample, per channel over HWo) + LeakyReLU.
        a = acc.reshape(n, HWo, Cout)
        inv_hw = 1.0 / HWo
        mean = jnp.sum(a, axis=1, keepdims=True) * inv_hw
        ex2 = jnp.sum(a * a, axis=1, keepdims=True) * inv_hw
        a = (a - mean) * lax.rsqrt(ex2 - mean * mean + EPS)
        a = jnp.where(a >= 0, a, SLOPE * a)

        o_ref[...] = a.astype(o_ref.dtype)
        h = a.reshape(n, Hout, Wout, Cout)                  # feeds the next layer


def fused_tail(h3, w4, w5, w6):
    """convblock4..6 in one kernel. h3: (N, H3, W3, C3) bf16. Returns 3 NHWC maps."""
    N, Hin, Win, _ = h3.shape
    cfg, w_ops, out_shapes = [], [], []
    flops, bytes_accessed = 0, h3.size * 2
    for w_hwio in (w4, w5, w6):
        KH, KW, Cin, Cout = w_hwio.shape
        pad = 1                                             # convblock4/5/6 all use pad=1
        Hout = (Hin + 2 * pad - KH) // STRIDE + 1
        Wout = (Win + 2 * pad - KW) // STRIDE + 1
        cfg.append((KH, KW, pad, Hin, Win, Hout, Wout, Cout))
        w_ops.append(w_hwio.reshape(KH * KW, Cin, Cout).astype(jnp.bfloat16))
        out_shapes.append(jax.ShapeDtypeStruct((N, Hout * Wout, Cout), jnp.bfloat16))
        flops += 2 * N * Hout * Wout * KH * KW * Cin * Cout
        bytes_accessed += KH * KW * Cin * Cout * 2 + N * Hout * Wout * Cout * 2
        Hin, Win = Hout, Wout

    outs = pl.pallas_call(
        functools.partial(_tail_kernel, cfg=tuple(cfg)),
        out_shape=tuple(out_shapes),
        in_specs=[pl.BlockSpec(memory_space=pltpu.MemorySpace.VMEM)] * 4,
        out_specs=tuple([pl.BlockSpec(memory_space=pltpu.MemorySpace.VMEM)] * 3),
        compiler_params=pltpu.CompilerParams(vmem_limit_bytes=_vmem_limit_bytes()),
        cost_estimate=pl.CostEstimate(
            flops=flops, transcendentals=0, bytes_accessed=bytes_accessed),
    )(h3.astype(jnp.bfloat16), *w_ops)

    return [o.reshape(N, c[5], c[6], c[7]) for o, c in zip(outs, cfg)]


# ---------------------------------------------------------------------------
# NetC forward (only convblock1..convblock6 are used by the PyTorch forward).
# ---------------------------------------------------------------------------
_HEAD_CFG = [   # (weight name, pad, instance_norm?)
    ("w1", 3, False),   # Conv2d(1,    ndf,  7, 2, 3) + LeakyReLU
    ("w2", 2, True),    # Conv2d(ndf,  2ndf, 5, 2, 2) + IN + LeakyReLU
    ("w3", 1, True),    # Conv2d(2ndf, 4ndf, 4, 2, 1) + IN + LeakyReLU
]
_SCALES = [1.0, 2.0, 2.0, 2.0, 2.0, 4.0]


def _assemble(x_nchw, outs):
    N = x_nchw.shape[0]

    def flat(t):  # NHWC -> NCHW flatten, matching torch .view(b, -1)
        return jnp.transpose(t.astype(jnp.float32), (0, 3, 1, 2)).reshape(N, -1)

    pieces = [x_nchw.astype(jnp.float32).reshape(N, -1)]
    pieces += [s * flat(o) for s, o in zip(_SCALES, outs)]
    return jnp.concatenate(pieces, axis=1)


def netc_forward(x_nchw, params):
    x = jnp.transpose(x_nchw, (0, 2, 3, 1)).astype(jnp.float32)  # NCHW -> NHWC
    outs = []
    h = x
    for name, pad, do_in in _HEAD_CFG:
        h = conv_in_lrelu(h, params[name], pad=pad, do_in=do_in)
        outs.append(h)
    outs += fused_tail(h, params["w4"], params["w5"], params["w6"])
    return _assemble(x_nchw, outs)


# ---------------------------------------------------------------------------
# Pure-JAX reference (lax.conv, same bf16 operand/activation quantization).
# ---------------------------------------------------------------------------
def _ref_layer(x, w_hwio, *, pad, do_in):
    xq = x.astype(jnp.bfloat16).astype(jnp.float32)
    wq = w_hwio.astype(jnp.bfloat16).astype(jnp.float32)
    y = lax.conv_general_dilated(
        xq, wq, (STRIDE, STRIDE), [(pad, pad), (pad, pad)],
        dimension_numbers=("NHWC", "HWIO", "NHWC"),
        precision=lax.Precision.HIGHEST)
    if do_in:
        mean = jnp.mean(y, axis=(1, 2), keepdims=True)
        var = jnp.mean(jnp.square(y - mean), axis=(1, 2), keepdims=True)
        y = (y - mean) / jnp.sqrt(var + EPS)
    y = jnp.where(y >= 0, y, SLOPE * y)
    # Mirror the kernel's bf16 activation storage so only summation-order noise remains.
    return y.astype(jnp.bfloat16).astype(jnp.float32)


_REF_CFG = [("w1", 3, False), ("w2", 2, True), ("w3", 1, True),
            ("w4", 1, True), ("w5", 1, True), ("w6", 1, True)]


def netc_reference(x_nchw, params):
    x = jnp.transpose(x_nchw, (0, 2, 3, 1)).astype(jnp.float32)
    outs = []
    h = x
    for name, pad, do_in in _REF_CFG:
        h = _ref_layer(h, params[name], pad=pad, do_in=do_in)
        outs.append(h)
    return _assemble(x_nchw, outs)


# ---------------------------------------------------------------------------
# Deterministic parameter init (matches the PyTorch init: N(0, sqrt(2/n)),
# n = kh*kw*out_channels; all convs used in forward are bias-free).
# ---------------------------------------------------------------------------
def init_params(key, ndf):
    shapes = {
        "w1": (7, 7, 1, ndf),
        "w2": (5, 5, ndf, ndf * 2),
        "w3": (4, 4, ndf * 2, ndf * 4),
        "w4": (4, 4, ndf * 4, ndf * 8),
        "w5": (4, 4, ndf * 8, ndf * 8),
        "w6": (3, 3, ndf * 8, ndf * 8),
    }
    params = {}
    for i, (name, shp) in enumerate(shapes.items()):
        kh, kw, _, cout = shp
        std = float(np.sqrt(2.0 / (kh * kw * cout)))
        params[name] = std * jax.random.normal(
            jax.random.fold_in(key, i), shp, dtype=jnp.float32)
    return params


if __name__ == "__main__":
    key = jax.random.PRNGKey(0)
    ndf = 8                      # small, same structure as NetC(ndf=64)
    N, C, H, W = 2, 1, 64, 64    # channel_dim = 1 in the original module

    x = jax.random.normal(jax.random.fold_in(key, 100), (N, C, H, W), jnp.float32)
    params = init_params(jax.random.fold_in(key, 200), ndf)

    out = jax.block_until_ready(jax.jit(netc_forward)(x, params))
    ref = jax.block_until_ready(netc_reference(x, params))

    assert out.shape == ref.shape, (out.shape, ref.shape)
    # Both paths quantize operands and stored activations to bf16 with f32
    # accumulation; remaining differences are summation-order / 1-ulp rounding.
    o_np, r_np = np.asarray(out), np.asarray(ref)
    if not np.allclose(o_np, r_np, atol=3e-2, rtol=3e-2):
        raise AssertionError(
            f"Pallas NetC output mismatch vs JAX reference "
            f"(max abs err {np.max(np.abs(o_np - r_np)):.4f})")

    print("KERNEL_OK")
</pallas_src>

<mosaic_0001>
module attributes {stable_mosaic.version = 11 : i64} {
  func.func @_conv_in_lrelu_kernel(%arg0: i32, %arg1: memref<1x1024x128xbf16, #tpu.memory_space<vmem>>, %arg2: memref<128x128xbf16, #tpu.memory_space<vmem>>, %arg3: memref<1x1024x128xbf16, #tpu.memory_space<vmem>>) attributes {dimension_semantics = [#tpu.dimension_semantics<parallel>], iteration_bounds = array<i64: 2>, scalar_prefetch = 0 : i64, scratch_operands = 0 : i64, tpu.core_type = #tpu.core_type<tc>, window_params = [{transform_indices = @transform_0, window_bounds = array<i64: 1, 1024, 128>}, {pipeline_mode = #tpu.pipeline_mode<synchronous>, transform_indices = @transform_1, window_bounds = array<i64: 128, 128>}, {transform_indices = @transform_2, window_bounds = array<i64: 1, 1024, 128>}]} {
    %c0 = arith.constant 0 : index
    %c0_0 = arith.constant 0 : index
    %c0_1 = arith.constant 0 : index
    %0 = vector.load %arg1[%c0, %c0_0, %c0_1] : memref<1x1024x128xbf16, #tpu.memory_space<vmem>>, vector<1x1024x128xbf16>
    %1 = vector.shape_cast %0 : vector<1x1024x128xbf16> to vector<1024x128xbf16>
    %c0_2 = arith.constant 0 : index
    %c0_3 = arith.constant 0 : index
    %2 = vector.load %arg2[%c0_2, %c0_3] : memref<128x128xbf16, #tpu.memory_space<vmem>>, vector<128x128xbf16>
    %cst = arith.constant dense<0.000000e+00> : vector<1024x128xf32>
    %3 = tpu.matmul %1, %2, %cst {dimension_numbers = #tpu.dot_dimension_numbers<[1], [0], [0], [1], [0, 0, 1, 1], [], []>} : vector<1024x128xbf16>, vector<128x128xbf16>, vector<1024x128xf32> -> vector<1024x128xf32>
    %cst_4 = arith.constant 0.000000e+00 : f32
    %4 = vector.broadcast %cst_4 : f32 to vector<1024x128xf32>
    %5 = arith.cmpf oge, %3, %4 : vector<1024x128xf32>
    %cst_5 = arith.constant 2.000000e-01 : f32
    %6 = vector.broadcast %cst_5 : f32 to vector<1024x128xf32>
    %7 = arith.mulf %6, %3 : vector<1024x128xf32>
    %8 = arith.select %5, %3, %7 : vector<1024x128xi1>, vector<1024x128xf32>
    %9 = arith.truncf %8 : vector<1024x128xf32> to vector<1024x128xbf16>
    %c0_6 = arith.constant 0 : index
    %c0_7 = arith.constant 0 : index
    %c0_8 = arith.constant 0 : index
    %10 = vector.load %arg3[%c0_6, %c0_7, %c0_8] : memref<1x1024x128xbf16, #tpu.memory_space<vmem>>, vector<1x1024x128xbf16>
    %11 = vector.shape_cast %10 : vector<1x1024x128xbf16> to vector<1024x128xbf16>
    %12 = vector.shape_cast %9 : vector<1024x128xbf16> to vector<1x1024x128xbf16>
    tpu.vector_store %arg3[%c0_6, %c0_7, %c0_8], %12 {strides = array<i32>} : memref<1x1024x128xbf16, #tpu.memory_space<vmem>>, vector<1x1024x128xbf16>,
    return
  }
  func.func @transform_0(%arg0: i32) -> (i32, i32, i32) {
    %c0_i32 = arith.constant 0 : i32
    %c0_i32_0 = arith.constant 0 : i32
    %c0_i32_1 = arith.constant 0 : i32
    return %arg0, %c0_i32, %c0_i32_0 : i32, i32, i32
  }
  func.func @transform_1(%arg0: i32) -> (i32, i32) {
    %c0_i32 = arith.constant 0 : i32
    %c0_i32_0 = arith.constant 0 : i32
    %c0_i32_1 = arith.constant 0 : i32
    return %c0_i32, %c0_i32_0 : i32, i32
  }
  func.func @transform_2(%arg0: i32) -> (i32, i32, i32) {
    %c0_i32 = arith.constant 0 : i32
    %c0_i32_0 = arith.constant 0 : i32
    %c0_i32_1 = arith.constant 0 : i32
    return %arg0, %c0_i32, %c0_i32_0 : i32, i32, i32
  }
}

module attributes {stable_mosaic.version = 11 : i64} {
  func.func @_conv_in_lrelu_kernel(%arg0: i32, %arg1: memref<1x256x256xbf16, #tpu.memory_space<vmem>>, %arg2: memref<256x128xbf16, #tpu.memory_space<vmem>>, %arg3: memref<1x256x128xbf16, #tpu.memory_space<vmem>>) attributes {dimension_semantics = [#tpu.dimension_semantics<parallel>], iteration_bounds = array<i64: 2>, scalar_prefetch = 0 : i64, scratch_operands = 0 : i64, tpu.core_type = #tpu.core_type<tc>, window_params = [{transform_indices = @transform_0, window_bounds = array<i64: 1, 256, 256>}, {pipeline_mode = #tpu.pipeline_mode<synchronous>, transform_indices = @transform_1, window_bounds = array<i64: 256, 128>}, {transform_indices = @transform_2, window_bounds = array<i64: 1, 256, 128>}]} {
    %c0 = arith.constant 0 : index
    %c0_0 = arith.constant 0 : index
    %c0_1 = arith.constant 0 : index
    %0 = vector.load %arg1[%c0, %c0_0, %c0_1] : memref<1x256x256xbf16, #tpu.memory_space<vmem>>, vector<1x256x256xbf16>
    %1 = vector.shape_cast %0 : vector<1x256x256xbf16> to vector<256x256xbf16>
    %c0_2 = arith.constant 0 : index
    %c0_3 = arith.constant 0 : index
    %2 = vector.load %arg2[%c0_2, %c0_3] : memref<256x128xbf16, #tpu.memory_space<vmem>>, vector<256x128xbf16>
    %cst = arith.constant dense<0.000000e+00> : vector<256x128xf32>
    %3 = tpu.matmul %1, %2, %cst {dimension_numbers = #tpu.dot_dimension_numbers<[1], [0], [0], [1], [0, 0, 1, 1], [], []>} : vector<256x256xbf16>, vector<256x128xbf16>, vector<256x128xf32> -> vector<256x128xf32>
    %cst_4 = arith.constant dense<0.000000e+00> : vector<128xf32>
    %4 = vector.multi_reduction <add>, %3, %cst_4 [0] : vector<256x128xf32> to vector<128xf32>
    %5 = vector.shape_cast %4 : vector<128xf32> to vector<1x128xf32>
    %cst_5 = arith.constant 3.906250e-03 : f32
    %6 = vector.broadcast %cst_5 : f32 to vector<1x128xf32>
    %7 = arith.mulf %5, %6 : vector<1x128xf32>
    %8 = arith.mulf %3, %3 : vector<256x128xf32>
    %cst_6 = arith.constant dense<0.000000e+00> : vector<128xf32>
    %9 = vector.multi_reduction <add>, %8, %cst_6 [0] : vector<256x128xf32> to vector<128xf32>
    %10 = vector.shape_cast %9 : vector<128xf32> to vector<1x128xf32>
    %cst_7 = arith.constant 3.906250e-03 : f32
    %11 = vector.broadcast %cst_7 : f32 to vector<1x128xf32>
    %12 = arith.mulf %10, %11 : vector<1x128xf32>
    %13 = arith.mulf %7, %7 : vector<1x128xf32>
    %14 = arith.subf %12, %13 : vector<1x128xf32>
    %15 = vector.broadcast %7 : vector<1x128xf32> to vector<256x128xf32>
    %16 = arith.subf %3, %15 : vector<256x128xf32>
    %cst_8 = arith.constant 9.99999974E-6 : f32
    %17 = vector.broadcast %cst_8 : f32 to vector<1x128xf32>
    %18 = arith.addf %14, %17 : vector<1x128xf32>
    %19 = math.rsqrt %18 : vector<1x128xf32>
    %20 = vector.broadcast %19 : vector<1x128xf32> to vector<256x128xf32>
    %21 = arith.mulf %16, %20 : vector<256x128xf32>
    %cst_9 = arith.constant 0.000000e+00 : f32
    %22 = vector.broadcast %cst_9 : f32 to vector<256x128xf32>
    %23 = arith.cmpf oge, %21, %22 : vector<256x128xf32>
    %cst_10 = arith.constant 2.000000e-01 : f32
    %24 = vector.broadcast %cst_10 : f32 to vector<256x128xf32>
    %25 = arith.mulf %24, %21 : vector<256x128xf32>
    %26 = arith.select %23, %21, %25 : vector<256x128xi1>, vector<256x128xf32>
    %27 = arith.truncf %26 : vector<256x128xf32> to vector<256x128xbf16>
    %c0_11 = arith.constant 0 : index
    %c0_12 = arith.constant 0 : index
    %c0_13 = arith.constant 0 : index
    %28 = vector.load %arg3[%c0_11, %c0_12, %c0_13] : memref<1x256x128xbf16, #tpu.memory_space<vmem>>, vector<1x256x128xbf16>
    %29 = vector.shape_cast %28 : vector<1x256x128xbf16> to vector<256x128xbf16>
    %30 = vector.shape_cast %27 : vector<256x128xbf16> to vector<1x256x128xbf16>
    tpu.vector_store %arg3[%c0_11, %c0_12, %c0_13], %30 {strides = array<i32>} : memref<1x256x128xbf16, #tpu.memory_space<vmem>>, vector<1x256x128xbf16>,
    return
  }
  func.func @transform_0(%arg0: i32) -> (i32, i32, i32) {
    %c0_i32 = arith.constant 0 : i32
    %c0_i32_0 = arith.constant 0 : i32
    %c0_i32_1 = arith.constant 0 : i32
    return %arg0, %c0_i32, %c0_i32_0 : i32, i32, i32
  }
  func.func @transform_1(%arg0: i32) -> (i32, i32) {
    %c0_i32 = arith.constant 0 : i32
    %c0_i32_0 = arith.constant 0 : i32
    %c0_i32_1 = arith.constant 0 : i32
    return %c0_i32, %c0_i32_0 : i32, i32
  }
  func.func @transform_2(%arg0: i32) -> (i32, i32, i32) {
    %c0_i32 = arith.constant 0 : i32
    %c0_i32_0 = arith.constant 0 : i32
    %c0_i32_1 = arith.constant 0 : i32
    return %arg0, %c0_i32, %c0_i32_0 : i32, i32, i32
  }
}

module attributes {stable_mosaic.version = 11 : i64} {
  func.func @_conv_in_lrelu_kernel(%arg0: i32, %arg1: memref<1x64x256xbf16, #tpu.memory_space<vmem>>, %arg2: memref<256x128xbf16, #tpu.memory_space<vmem>>, %arg3: memref<1x64x128xbf16, #tpu.memory_space<vmem>>) attributes {dimension_semantics = [#tpu.dimension_semantics<parallel>], iteration_bounds = array<i64: 2>, scalar_prefetch = 0 : i64, scratch_operands = 0 : i64, tpu.core_type = #tpu.core_type<tc>, window_params = [{transform_indices = @transform_0, window_bounds = array<i64: 1, 64, 256>}, {pipeline_mode = #tpu.pipeline_mode<synchronous>, transform_indices = @transform_1, window_bounds = array<i64: 256, 128>}, {transform_indices = @transform_2, window_bounds = array<i64: 1, 64, 128>}]} {
    %c0 = arith.constant 0 : index
    %c0_0 = arith.constant 0 : index
    %c0_1 = arith.constant 0 : index
    %0 = vector.load %arg1[%c0, %c0_0, %c0_1] : memref<1x64x256xbf16, #tpu.memory_space<vmem>>, vector<1x64x256xbf16>
    %1 = vector.shape_cast %0 : vector<1x64x256xbf16> to vector<64x256xbf16>
    %c0_2 = arith.constant 0 : index
    %c0_3 = arith.constant 0 : index
    %2 = vector.load %arg2[%c0_2, %c0_3] : memref<256x128xbf16, #tpu.memory_space<vmem>>, vector<256x128xbf16>
    %cst = arith.constant dense<0.000000e+00> : vector<64x128xf32>
    %3 = tpu.matmul %1, %2, %cst {dimension_numbers = #tpu.dot_dimension_numbers<[1], [0], [0], [1], [0, 0, 1, 1], [], []>} : vector<64x256xbf16>, vector<256x128xbf16>, vector<64x128xf32> -> vector<64x128xf32>
    %cst_4 = arith.constant dense<0.000000e+00> : vector<128xf32>
    %4 = vector.multi_reduction <add>, %3, %cst_4 [0] : vector<64x128xf32> to vector<128xf32>
    %5 = vector.shape_cast %4 : vector<128xf32> to vector<1x128xf32>
    %cst_5 = arith.constant 1.562500e-02 : f32
    %6 = vector.broadcast %cst_5 : f32 to vector<1x128xf32>
    %7 = arith.mulf %5, %6 : vector<1x128xf32>
    %8 = arith.mulf %3, %3 : vector<64x128xf32>
    %cst_6 = arith.constant dense<0.000000e+00> : vector<128xf32>
    %9 = vector.multi_reduction <add>, %8, %cst_6 [0] : vector<64x128xf32> to vector<128xf32>
    %10 = vector.shape_cast %9 : vector<128xf32> to vector<1x128xf32>
    %cst_7 = arith.constant 1.562500e-02 : f32
    %11 = vector.broadcast %cst_7 : f32 to vector<1x128xf32>
    %12 = arith.mulf %10, %11 : vector<1x128xf32>
    %13 = arith.mulf %7, %7 : vector<1x128xf32>
    %14 = arith.subf %12, %13 : vector<1x128xf32>
    %15 = vector.broadcast %7 : vector<1x128xf32> to vector<64x128xf32>
    %16 = arith.subf %3, %15 : vector<64x128xf32>
    %cst_8 = arith.constant 9.99999974E-6 : f32
    %17 = vector.broadcast %cst_8 : f32 to vector<1x128xf32>
    %18 = arith.addf %14, %17 : vector<1x128xf32>
    %19 = math.rsqrt %18 : vector<1x128xf32>
    %20 = vector.broadcast %19 : vector<1x128xf32> to vector<64x128xf32>
    %21 = arith.mulf %16, %20 : vector<64x128xf32>
    %cst_9 = arith.constant 0.000000e+00 : f32
    %22 = vector.broadcast %cst_9 : f32 to vector<64x128xf32>
    %23 = arith.cmpf oge, %21, %22 : vector<64x128xf32>
    %cst_10 = arith.constant 2.000000e-01 : f32
    %24 = vector.broadcast %cst_10 : f32 to vector<64x128xf32>
    %25 = arith.mulf %24, %21 : vector<64x128xf32>
    %26 = arith.select %23, %21, %25 : vector<64x128xi1>, vector<64x128xf32>
    %27 = arith.truncf %26 : vector<64x128xf32> to vector<64x128xbf16>
    %c0_11 = arith.constant 0 : index
    %c0_12 = arith.constant 0 : index
    %c0_13 = arith.constant 0 : index
    %28 = vector.load %arg3[%c0_11, %c0_12, %c0_13] : memref<1x64x128xbf16, #tpu.memory_space<vmem>>, vector<1x64x128xbf16>
    %29 = vector.shape_cast %28 : vector<1x64x128xbf16> to vector<64x128xbf16>
    %30 = vector.shape_cast %27 : vector<64x128xbf16> to vector<1x64x128xbf16>
    tpu.vector_store %arg3[%c0_11, %c0_12, %c0_13], %30 {strides = array<i32>} : memref<1x64x128xbf16, #tpu.memory_space<vmem>>, vector<1x64x128xbf16>,
    return
  }
  func.func @transform_0(%arg0: i32) -> (i32, i32, i32) {
    %c0_i32 = arith.constant 0 : i32
    %c0_i32_0 = arith.constant 0 : i32
    %c0_i32_1 = arith.constant 0 : i32
    return %arg0, %c0_i32, %c0_i32_0 : i32, i32, i32
  }
  func.func @transform_1(%arg0: i32) -> (i32, i32) {
    %c0_i32 = arith.constant 0 : i32
    %c0_i32_0 = arith.constant 0 : i32
    %c0_i32_1 = arith.constant 0 : i32
    return %c0_i32, %c0_i32_0 : i32, i32
  }
  func.func @transform_2(%arg0: i32) -> (i32, i32, i32) {
    %c0_i32 = arith.constant 0 : i32
    %c0_i32_0 = arith.constant 0 : i32
    %c0_i32_1 = arith.constant 0 : i32
    return %arg0, %c0_i32, %c0_i32_0 : i32, i32, i32
  }
}

module attributes {stable_mosaic.version = 11 : i64} {
  func.func @_tail_kernel(%arg0: memref<2x8x8x32xbf16, #tpu.memory_space<vmem>>, %arg1: memref<16x32x64xbf16, #tpu.memory_space<vmem>>, %arg2: memref<16x64x64xbf16, #tpu.memory_space<vmem>>, %arg3: memref<9x64x64xbf16, #tpu.memory_space<vmem>>, %arg4: memref<2x16x64xbf16, #tpu.memory_space<vmem>>, %arg5: memref<2x4x64xbf16, #tpu.memory_space<vmem>>, %arg6: memref<2x1x64xbf16, #tpu.memory_space<vmem>>) attributes {dimension_semantics = [], scalar_prefetch = 0 : i64, scratch_operands = 0 : i64, tpu.core_type = #tpu.core_type<tc>} {
    %c0 = arith.constant 0 : index
    %c0_0 = arith.constant 0 : index
    %c0_1 = arith.constant 0 : index
    %c0_2 = arith.constant 0 : index
    %0 = vector.load %arg0[%c0, %c0_0, %c0_1, %c0_2] : memref<2x8x8x32xbf16, #tpu.memory_space<vmem>>, vector<2x8x8x32xbf16>
    %1 = arith.extf %0 : vector<2x8x8x32xbf16> to vector<2x8x8x32xf32>
    %cst = arith.constant 0.000000e+00 : f32
    %2 = vector.broadcast %cst : f32 to vector<2x1x32xf32>
    %cst_3 = arith.constant 0.000000e+00 : f32
    %3 = vector.broadcast %cst_3 : f32 to vector<32x64xf32>
    %4 = vector.extract_strided_slice %1 {offsets = [0, 1, 1, 0], sizes = [2, 1, 1, 32], strides = [1, 1, 1, 1]} : vector<2x8x8x32xf32> to vector<2x1x1x32xf32>
    %5 = vector.shape_cast %4 : vector<2x1x1x32xf32> to vector<2x1x32xf32>
    %6 = vector.extract_strided_slice %1 {offsets = [0, 1, 3, 0], sizes = [2, 1, 1, 32], strides = [1, 1, 1, 1]} : vector<2x8x8x32xf32> to vector<2x1x1x32xf32>
    %7 = vector.shape_cast %6 : vector<2x1x1x32xf32> to vector<2x1x32xf32>
    %8 = vector.extract_strided_slice %1 {offsets = [0, 1, 5, 0], sizes = [2, 1, 1, 32], strides = [1, 1, 1, 1]} : vector<2x8x8x32xf32> to vector<2x1x1x32xf32>
    %9 = vector.shape_cast %8 : vector<2x1x1x32xf32> to vector<2x1x32xf32>
    %10 = vector.extract_strided_slice %1 {offsets = [0, 3, 1, 0], sizes = [2, 1, 1, 32], strides = [1, 1, 1, 1]} : vector<2x8x8x32xf32> to vector<2x1x1x32xf32>
    %11 = vector.shape_cast %10 : vector<2x1x1x32xf32> to vector<2x1x32xf32>
    %12 = vector.extract_strided_slice %1 {offsets = [0, 3, 3, 0], sizes = [2, 1, 1, 32], strides = [1, 1, 1, 1]} : vector<2x8x8x32xf32> to vector<2x1x1x32xf32>
    %13 = vector.shape_cast %12 : vector<2x1x1x32xf32> to vector<2x1x32xf32>
    %14 = vector.extract_strided_slice %1 {offsets = [0, 3, 5, 0], sizes = [2, 1, 1, 32], strides = [1, 1, 1, 1]} : vector<2x8x8x32xf32> to vector<2x1x1x32xf32>
    %15 = vector.shape_cast %14 : vector<2x1x1x32xf32> to vector<2x1x32xf32>
    %16 = vector.extract_strided_slice %1 {offsets = [0, 5, 1, 0], sizes = [2, 1, 1, 32], strides = [1, 1, 1, 1]} : vector<2x8x8x32xf32> to vector<2x1x1x32xf32>
    %17 = vector.shape_cast %16 : vector<2x1x1x32xf32> to vector<2x1x32xf32>
    %18 = vector.extract_strided_slice %1 {offsets = [0, 5, 3, 0], sizes = [2, 1, 1, 32], strides = [1, 1, 1, 1]} : vector<2x8x8x32xf32> to vector<2x1x1x32xf32>
    %19 = vector.shape_cast %18 : vector<2x1x1x32xf32> to vector<2x1x32xf32>
    %20 = vector.extract_strided_slice %1 {offsets = [0, 5, 5, 0], sizes = [2, 1, 1, 32], strides = [1, 1, 1, 1]} : vector<2x8x8x32xf32> to vector<2x1x1x32xf32>
    %21 = vector.shape_cast %20 : vector<2x1x1x32xf32> to vector<2x1x32xf32>
    %22 = tpu.concatenate %2, %2, %2, %2, %2, %5, %7, %9, %2, %11, %13, %15, %2, %17, %19, %21 in 1 : vector<2x1x32xf32>, vector<2x1x32xf32>, vector<2x1x32xf32>, vector<2x1x32xf32>, vector<2x1x32xf32>, vector<2x1x32xf32>, vector<2x1x32xf32>, vector<2x1x32xf32>, vector<2x1x32xf32>, vector<2x1x32xf32>, vector<2x1x32xf32>, vector<2x1x32xf32>, vector<2x1x32xf32>, vector<2x1x32xf32>, vector<2x1x32xf32>, vector<2x1x32xf32> -> vector<2x16x32xf32>
    %23 = arith.truncf %22 : vector<2x16x32xf32> to vector<2x16x32xbf16>
    %24 = vector.shape_cast %23 : vector<2x16x32xbf16> to vector<32x32xbf16>
    %c0_4 = arith.constant 0 : index
    %c0_5 = arith.constant 0 : index
    %c0_6 = arith.constant 0 : index
    %25 = vector.load %arg1[%c0_4, %c0_5, %c0_6] : memref<16x32x64xbf16, #tpu.memory_space<vmem>>, vector<1x32x64xbf16>
    %26 = vector.shape_cast %25 : vector<1x32x64xbf16> to vector<32x64xbf16>
    %cst_7 = arith.constant dense<0.000000e+00> : vector<32x64xf32>
    %27 = tpu.matmul %24, %26, %cst_7 {dimension_numbers = #tpu.dot_dimension_numbers<[1], [0], [0], [1], [0, 0, 1, 1], [], []>} : vector<32x32xbf16>, vector<32x64xbf16>, vector<32x64xf32> -> vector<32x64xf32>
    %28 = arith.addf %3, %27 : vector<32x64xf32>
    %29 = vector.extract_strided_slice %1 {offsets = [0, 1, 0, 0], sizes = [2, 1, 1, 32], strides = [1, 1, 1, 1]} : vector<2x8x8x32xf32> to vector<2x1x1x32xf32>
    %30 = vector.shape_cast %29 : vector<2x1x1x32xf32> to vector<2x1x32xf32>
    %31 = vector.extract_strided_slice %1 {offsets = [0, 1, 2, 0], sizes = [2, 1, 1, 32], strides = [1, 1, 1, 1]} : vector<2x8x8x32xf32> to vector<2x1x1x32xf32>
    %32 = vector.shape_cast %31 : vector<2x1x1x32xf32> to vector<2x1x32xf32>
    %33 = vector.extract_strided_slice %1 {offsets = [0, 1, 4, 0], sizes = [2, 1, 1, 32], strides = [1, 1, 1, 1]} : vector<2x8x8x32xf32> to vector<2x1x1x32xf32>
    %34 = vector.shape_cast %33 : vector<2x1x1x32xf32> to vector<2x1x32xf32>
    %35 = vector.extract_strided_slice %1 {offsets = [0, 1, 6, 0], sizes = [2, 1, 1, 32], strides = [1, 1, 1, 1]} : vector<2x8x8x32xf32> to vector<2x1x1x32xf32>
    %36 = vector.shape_cast %35 : vector<2x1x1x32xf32> to vector<2x1x32xf32>
    %37 = vector.extract_strided_slice %1 {offsets = [0, 3, 0, 0], sizes = [2, 1, 1, 32], strides = [1, 1, 1, 1]} : vector<2x8x8x32xf32> to vector<2x1x1x32xf32>
    %38 = vector.shape_cast %37 : vector<2x1x1x32xf32> to vector<2x1x32xf32>
    %39 = vector.extract_strided_slice %1 {offsets = [0, 3, 2, 0], sizes = [2, 1, 1, 32], strides = [1, 1, 1, 1]} : vector<2x8x8x32xf32> to vector<2x1x1x32xf32>
    %40 = vector.shape_cast %39 : vector<2x1x1x32xf32> to vector<2x1x32xf32>
    %41 = vector.extract_strided_slice %1 {offsets = [0, 3, 4, 0], sizes = [2, 1, 1, 32], strides = [1, 1, 1, 1]} : vector<2x8x8x32xf32> to vector<2x1x1x32xf32>
    %42 = vector.shape_cast %41 : vector<2x1x1x32xf32> to vector<2x1x32xf32>
    %43 = vector.extract_strided_slice %1 {offsets = [0, 3, 6, 0], sizes = [2, 1, 1, 32], strides = [1, 1, 1, 1]} : vector<2x8x8x32xf32> to vector<2x1x1x32xf32>
    %44 = vector.shape_cast %43 : vector<2x1x1x32xf32> to vector<2x1x32xf32>
    %45 = vector.extract_strided_slice %1 {offsets = [0, 5, 0, 0], sizes = [2, 1, 1, 32], strides = [1, 1, 1, 1]} : vector<2x8x8x32xf32> to vector<2x1x1x32xf32>
    %46 = vector.shape_cast %45 : vector<2x1x1x32xf32> to vector<2x1x32xf32>
    %47 = vector.extract_strided_slice %1 {offsets = [0, 5, 2, 0], sizes = [2, 1, 1, 32], strides = [1, 1, 1, 1]} : vector<2x8x8x32xf32> to vector<2x1x1x32xf32>
    %48 = vector.shape_cast %47 : vector<2x1x1x32xf32> to vector<2x1x32xf32>
    %49 = vector.extract_strided_slice %1 {offsets = [0, 5, 4, 0], sizes = [2, 1, 1, 32], strides = [1, 1, 1, 1]} : vector<2x8x8x32xf32> to vector<2x1x1x32xf32>
    %50 = vector.shape_cast %49 : vector<2x1x1x32xf32> to vector<2x1x32xf32>
    %51 = vector.extract_strided_slice %1 {offsets = [0, 5, 6, 0], sizes = [2, 1, 1, 32], strides = [1, 1, 1, 1]} : vector<2x8x8x32xf32> to vector<2x1x1x32xf32>
    %52 = vector.shape_cast %51 : vector<2x1x1x32xf32> to vector<2x1x32xf32>
    %53 = tpu.concatenate %2, %2, %2, %2, %30, %32, %34, %36, %38, %40, %42, %44, %46, %48, %50, %52 in 1 : vector<2x1x32xf32>, vector<2x1x32xf32>, vector<2x1x32xf32>, vector<2x1x32xf32>, vector<2x1x32xf32>, vector<2x1x32xf32>, vector<2x1x32xf32>, vector<2x1x32xf32>, vector<2x1x32xf32>, vector<2x1x32xf32>, vector<2x1x32xf32>, vector<2x1x32xf32>, vector<2x1x32xf32>, vector<2x1x32xf32>, vector<2x1x32xf32>, vector<2x1x32xf32> -> vector<2x16x32xf32>
    %54 = arith.truncf %53 : vector<2x16x32xf32> to vector<2x16x32xbf16>
    %55 = vector.shape_cast %54 : vector<2x16x32xbf16> to vector<32x32xbf16>
    %c1 = arith.constant 1 : index
    %c0_8 = arith.constant 0 : index
    %c0_9 = arith.constant 0 : index
    %56 = vector.load %arg1[%c1, %c0_8, %c0_9] : memref<16x32x64xbf16, #tpu.memory_space<vmem>>, vector<1x32x64xbf16>
    %57 = vector.shape_cast %56 : vector<1x32x64xbf16> to vector<32x64xbf16>
    %cst_10 = arith.constant dense<0.000000e+00> : vector<32x64xf32>
    %58 = tpu.matmul %55, %57, %cst_10 {dimension_numbers = #tpu.dot_dimension_numbers<[1], [0], [0], [1], [0, 0, 1, 1], [], []>} : vector<32x32xbf16>, vector<32x64xbf16>, vector<32x64xf32> -> vector<32x64xf32>
    %59 = arith.addf %28, %58 : vector<32x64xf32>
    %60 = vector.extract_strided_slice %1 {offsets = [0, 1, 1, 0], sizes = [2, 1, 1, 32], strides = [1, 1, 1, 1]} : vector<2x8x8x32xf32> to vector<2x1x1x32xf32>
    %61 = vector.shape_cast %60 : vector<2x1x1x32xf32> to vector<2x1x32xf32>
    %62 = vector.extract_strided_slice %1 {offsets = [0, 1, 3, 0], sizes = [2, 1, 1, 32], strides = [1, 1, 1, 1]} : vector<2x8x8x32xf32> to vector<2x1x1x32xf32>
    %63 = vector.shape_cast %62 : vector<2x1x1x32xf32> to vector<2x1x32xf32>
    %64 = vector.extract_strided_slice %1 {offsets = [0, 1, 5, 0], sizes = [2, 1, 1, 32], strides = [1, 1, 1, 1]} : vector<2x8x8x32xf32> to vector<2x1x1x32xf32>
    %65 = vector.shape_cast %64 : vector<2x1x1x32xf32> to vector<2x1x32xf32>
    %66 = vector.extract_strided_slice %1 {offsets = [0, 1, 7, 0], sizes = [2, 1, 1, 32], strides = [1, 1, 1, 1]} : vector<2x8x8x32xf32> to vector<2x1x1x32xf32>
    %67 = vector.shape_cast %66 : vector<2x1x1x32xf32> to vector<2x1x32xf32>
    %68 = vector.extract_strided_slice %1 {offsets = [0, 3, 1, 0], sizes = [2, 1, 1, 32], strides = [1, 1, 1, 1]} : vector<2x8x8x32xf32> to vector<2x1x1x32xf32>
    %69 = vector.shape_cast %68 : vector<2x1x1x32xf32> to vector<2x1x32xf32>
    %70 = vector.extract_strided_slice %1 {offsets = [0, 3, 3, 0], sizes = [2, 1, 1, 32], strides = [1, 1, 1, 1]} : vector<2x8x8x32xf32> to vector<2x1x1x32xf32>
    %71 = vector.shape_cast %70 : vector<2x1x1x32xf32> to vector<2x1x32xf32>
    %72 = vector.extract_strided_slice %1 {offsets = [0, 3, 5, 0], sizes = [2, 1, 1, 32], strides = [1, 1, 1, 1]} : vector<2x8x8x32xf32> to vector<2x1x1x32xf32>
    %73 = vector.shape_cast %72 : vector<2x1x1x32xf32> to vector<2x1x32xf32>
    %74 = vector.extract_strided_slice %1 {offsets = [0, 3, 7, 0], sizes = [2, 1, 1, 32], strides = [1, 1, 1, 1]} : vector<2x8x8x32xf32> to vector<2x1x1x32xf32>
    %75 = vector.shape_cast %74 : vector<2x1x1x32xf32> to vector<2x1x32xf32>
    %76 = vector.extract_strided_slice %1 {offsets = [0, 5, 1, 0], sizes = [2, 1, 1, 32], strides = [1, 1, 1, 1]} : vector<2x8x8x32xf32> to vector<2x1x1x32xf32>
    %77 = vector.shape_cast %76 : vector<2x1x1x32xf32> to vector<2x1x32xf32>
    %78 = vector.extract_strided_slice %1 {offsets = [0, 5, 3, 0], sizes = [2, 1, 1, 32], strides = [1, 1, 1, 1]} : vector<2x8x8x32xf32> to vector<2x1x1x32xf32>
    %79 = vector.shape_cast %78 : vector<2x1x1x32xf32> to vector<2x1x32xf32>
    %80 = vector.extract_strided_slice %1 {offsets = [0, 5, 5, 0], sizes = [2, 1, 1, 32], strides = [1, 1, 1, 1]} : vector<2x8x8x32xf32> to vector<2x1x1x32xf32>
    %81 = vector.shape_cast %80 : vector<2x1x1x32xf32> to vector<2x1x32xf32>
    %82 = vector.extract_strided_slice %1 {offsets = [0, 5, 7, 0], sizes = [2, 1, 1, 32], strides = [1, 1, 1, 1]} : vector<2x8x8x32xf32> to vector<2x1x1x32xf32>
    %83 = vector.shape_cast %82 : vector<2x1x1x32xf32> to vector<2x1x32xf32>
    %84 = tpu.concatenate %2, %2, %2, %2, %61, %63, %65, %67, %69, %71, %73, %75, %77, %79, %81, %83 in 1 : vector<2x1x32xf32>, vector<2x1x32xf32>, vector<2x1x32xf32>, vector<2x1x32xf32>, vector<2x1x32xf32>, vector<2x1x32xf32>, vector<2x1x32xf32>, vector<2x1x32xf32>, vector<2x1x32xf32>, vector<2x1x32xf32>, vector<2x1x32xf32>, vector<2x1x32xf32>, vector<2x1x32xf32>, vector<2x1x32xf32>, vector<2x1x32xf32>, vector<2x1x32xf32> -> vector<2x16x32xf32>
    %85 = arith.truncf %84 : vector<2x16x32xf32> to vector<2x16x32xbf16>
    %86 = vector.shape_cast %85 : vector<2x16x32xbf16> to vector<32x32xbf16>
    %c2 = arith.constant 2 : index
    %c0_11 = arith.constant 0 : index
    %c0_12 = arith.constant 0 : index
    %87 = vector.load %arg1[%c2, %c0_11, %c0_12] : memref<16x32x64xbf16, #tpu.memory_space<vmem>>, vector<1x32x64xbf16>
    %88 = vector.shape_cast %87 : vector<1x32x64xbf16> to vector<32x64xbf16>
    %cst_13 = arith.constant dense<0.000000e+00> : vector<32x64xf32>
    %89 = tpu.matmul %86, %88, %cst_13 {dimension_numbers = #tpu.dot_dimension_numbers<[1], [0], [0], [1], [0, 0, 1, 1], [], []>} : vector<32x32xbf16>, vector<32x64xbf16>, vector<32x64xf32> -> vector<32x64xf32>
    %90 = arith.addf %59, %89 : vector<32x64xf32>
    %91 = vector.extract_strided_slice %1 {offsets = [0, 1, 2, 0], sizes = [2, 1, 1, 32], strides = [1, 1, 1, 1]} : vector<2x8x8x32xf32> to vector<2x1x1x32xf32>
    %92 = vector.shape_cast %91 : vector<2x1x1x32xf32> to vector<2x1x32xf32>
    %93 = vector.extract_strided_slice %1 {offsets = [0, 1, 4, 0], sizes = [2, 1, 1, 32], strides = [1, 1, 1, 1]} : vector<2x8x8x32xf32> to vector<2x1x1x32xf32>
    %94 = vector.shape_cast %93 : vector<2x1x1x32xf32> to vector<2x1x32xf32>
    %95 = vector.extract_strided_slice %1 {offsets = [0, 1, 6, 0], sizes = [2, 1, 1, 32], strides = [1, 1, 1, 1]} : vector<2x8x8x32xf32> to vector<2x1x1x32xf32>
    %96 = vector.shape_cast %95 : vector<2x1x1x32xf32> to vector<2x1x32xf32>
    %97 = vector.extract_strided_slice %1 {offsets = [0, 3, 2, 0], sizes = [2, 1, 1, 32], strides = [1, 1, 1, 1]} : vector<2x8x8x32xf32> to vector<2x1x1x32xf32>
    %98 = vector.shape_cast %97 : vector<2x1x1x32xf32> to vector<2x1x32xf32>
    %99 = vector.extract_strided_slice %1 {offsets = [0, 3, 4, 0], sizes = [2, 1, 1, 32], strides = [1, 1, 1, 1]} : vector<2x8x8x32xf32> to vector<2x1x1x32xf32>
    %100 = vector.shape_cast %99 : vector<2x1x1x32xf32> to vector<2x1x32xf32>
    %101 = vector.extract_strided_slice %1 {offsets = [0, 3, 6, 0], sizes = [2, 1, 1, 32], strides = [1, 1, 1, 1]} : vector<2x8x8x32xf32> to vector<2x1x1x32xf32>
    %102 = vector.shape_cast %101 : vector<2x1x1x32xf32> to vector<2x1x32xf32>
    %103 = vector.extract_strided_slice %1 {offsets = [0, 5, 2, 0], sizes = [2, 1, 1, 32], strides = [1, 1, 1, 1]} : vector<2x8x8x32xf32> to vector<2x1x1x32xf32>
    %104 = vector.shape_cast %103 : vector<2x1x1x32xf32> to vector<2x1x32xf32>
    %105 = vector.extract_strided_slice %1 {offsets = [0, 5, 4, 0], sizes = [2, 1, 1, 32], strides = [1, 1, 1, 1]} : vector<2x8x8x32xf32> to vector<2x1x1x32xf32>
    %106 = vector.shape_cast %105 : vector<2x1x1x32xf32> to vector<2x1x32xf32>
    %107 = vector.extract_strided_slice %1 {offsets = [0, 5, 6, 0], sizes = [2, 1, 1, 32], strides = [1, 1, 1, 1]} : vector<2x8x8x32xf32> to vector<2x1x1x32xf32>
    %108 = vector.shape_cast %107 : vector<2x1x1x32xf32> to vector<2x1x32xf32>
    %109 = tpu.concatenate %2, %2, %2, %2, %92, %94, %96, %2, %98, %100, %102, %2, %104, %106, %108, %2 in 1 : vector<2x1x32xf32>, vector<2x1x32xf32>, vector<2x1x32xf32>, vector<2x1x32xf32>, vector<2x1x32xf32>, vector<2x1x32xf32>, vector<2x1x32xf32>, vector<2x1x32xf32>, vector<2x1x32xf32>, vector<2x1x32xf32>, vector<2x1x32xf32>, vector<2x1x32xf32>, vector<2x1x32xf32>, vector<2x1x32xf32>, vector<2x1x32xf32>, vector<2x1x32xf32> -> vector<2x16x32xf32>
    %110 = arith.truncf %109 : vector<2x16x32xf32> to vector<2x16x32xbf16>
    %111 = vector.shape_cast %110 : vector<2x16x32xbf16> to vector<32x32xbf16>
    %c3 = arith.constant 3 : index
    %c0_14 = arith.constant 0 : index
    %c0_15 = arith.constant 0 : index
    %112 = vector.load %arg1[%c3, %c0_14, %c0_15] : memref<16x32x64xbf16, #tpu.memory_space<vmem>>, vector<1x32x64xbf16>
    %113 = vector.shape_cast %112 : vector<1x32x64xbf16> to vector<32x64xbf16>
    %cst_16 = arith.constant dense<0.000000e+00> : vector<32x64xf32>
    %114 = tpu.matmul %111, %113, %cst_16 {dimension_numbers = #tpu.dot_dimension_numbers<[1], [0], [0], [1], [0, 0, 1, 1], [], []>} : vector<32x32xbf16>, vector<32x64xbf16>, vector<32x64xf32> -> vector<32x64xf32>
    %115 = arith.addf %90, %114 : vector<32x64xf32>
    %116 = vector.extract_strided_slice %1 {offsets = [0, 0, 1, 0], sizes = [2, 1, 1, 32], strides = [1, 1, 1, 1]} : vector<2x8x8x32xf32> to vector<2x1x1x32xf32>
    %117 = vector.shape_cast %116 : vector<2x1x1x32xf32> to vector<2x1x32xf32>
    %118 = vector.extract_strided_slice %1 {offsets = [0, 0, 3, 0], sizes = [2, 1, 1, 32], strides = [1, 1, 1, 1]} : vector<2x8x8x32xf32> to vector<2x1x1x32xf32>
    %119 = vector.shape_cast %118 : vector<2x1x1x32xf32> to vector<2x1x32xf32>
    %120 = vector.extract_strided_slice %1 {offsets = [0, 0, 5, 0], sizes = [2, 1, 1, 32], strides = [1, 1, 1, 1]} : vector<2x8x8x32xf32> to vector<2x1x1x32xf32>
    %121 = vector.shape_cast %120 : vector<2x1x1x32xf32> to vector<2x1x32xf32>
    %122 = vector.extract_strided_slice %1 {offsets = [0, 2, 1, 0], sizes = [2, 1, 1, 32], strides = [1, 1, 1, 1]} : vector<2x8x8x32xf32> to vector<2x1x1x32xf32>
    %123 = vector.shape_cast %122 : vector<2x1x1x32xf32> to vector<2x1x32xf32>
    %124 = vector.extract_strided_slice %1 {offsets = [0, 2, 3, 0], sizes = [2, 1, 1, 32], strides = [1, 1, 1, 1]} : vector<2x8x8x32xf32> to vector<2x1x1x32xf32>
    %125 = vector.shape_cast %124 : vector<2x1x1x32xf32> to vector<2x1x32xf32>
    %126 = vector.extract_strided_slice %1 {offsets = [0, 2, 5, 0], sizes = [2, 1, 1, 32], strides = [1, 1, 1, 1]} : vector<2x8x8x32xf32> to vector<2x1x1x32xf32>
    %127 = vector.shape_cast %126 : vector<2x1x1x32xf32> to vector<2x1x32xf32>
    %128 = vector.extract_strided_slice %1 {offsets = [0, 4, 1, 0], sizes = [2, 1, 1, 32], strides = [1, 1, 1, 1]} : vector<2x8x8x32xf32> to vector<2x1x1x32xf32>
    %129 = vector.shape_cast %128 : vector<2x1x1x32xf32> to vector<2x1x32xf32>
    %130 = vector.extract_strided_slice %1 {offsets = [0, 4, 3, 0], sizes = [2, 1, 1, 32], strides = [1, 1, 1, 1]} : vector<2x8x8x32xf32> to vector<2x1x1x32xf32>
    %131 = vector.shape_cast %130 : vector<2x1x1x32xf32> to vector<2x1x32xf32>
    %132 = vector.extract_strided_slice %1 {offsets = [0, 4, 5, 0], sizes = [2, 1, 1, 32], strides = [1, 1, 1, 1]} : vector<2x8x8x32xf32> to vector<2x1x1x32xf32>
    %133 = vector.shape_cast %132 : vector<2x1x1x32xf32> to vector<2x1x32xf32>
    %134 = vector.extract_strided_slice %1 {offsets = [0, 6, 1, 0], sizes = [2, 1, 1, 32], strides = [1, 1, 1, 1]} : vector<2x8x8x32xf32> to vector<2x1x1x32xf32>
    %135 = vector.shape_cast %134 : vector<2x1x1x32xf32> to vector<2x1x32xf32>
    %136 = vector.extract_strided_slice %1 {offsets = [0, 6, 3, 0], sizes = [2, 1, 1, 32], strides = [1, 1, 1, 1]} : vector<2x8x8x32xf32> to vector<2x1x1x32xf32>
    %137 = vector.shape_cast %136 : vector<2x1x1x32xf32> to vector<2x1x32xf32>
    %138 = vector.extract_strided_slice %1 {offsets = [0, 6, 5, 0], sizes = [2, 1, 1, 32], strides = [1, 1, 1, 1]} : vector<2x8x8x32xf32> to vector<2x1x1x32xf32>
    %139 = vector.shape_cast %138 : vector<2x1x1x32xf32> to vector<2x1x32xf32>
    %140 = tpu.concatenate %2, %117, %119, %121, %2, %123, %125, %127, %2, %129, %131, %133, %2, %135, %137, %139 in 1 : vector<2x1x32xf32>, vector<2x1x32xf32>, vector<2x1x32xf32>, vector<2x1x32xf32>, vector<2x1x32xf32>, vector<2x1x32xf32>, vector<2x1x32xf32>, vector<2x1x32xf32>, vector<2x1x32xf32>, vector<2x1x32xf32>, vector<2x1x32xf32>, vector<2x1x32xf32>, vector<2x1x32xf32>, vector<2x1x32xf32>, vector<2x1x32xf32>, vector<2x1x32xf32> -> vector<2x16x32xf32>
    %141 = arith.truncf %140 : vector<2x16x32xf32> to vector<2x16x32xbf16>
    %142 = vector.shape_cast %141 : vector<2x16x32xbf16> to vector<32x32xbf16>
    %c4 = arith.constant 4 : index
    %c0_17 = arith.constant 0 : index
    %c0_18 = arith.constant 0 : index
    %143 = vector.load %arg1[%c4, %c0_17, %c0_18] : memref<16x32x64xbf16, #tpu.memory_space<vmem>>, vector<1x32x64xbf16>
    %144 = vector.shape_cast %143 : vector<1x32x64xbf16> to vector<32x64xbf16>
    %cst_19 = arith.constant dense<0.000000e+00> : vector<32x64xf32>
    %145 = tpu.matmul %142, %144, %cst_19 {dimension_numbers = #tpu.dot_dimension_numbers<[1], [0], [0], [1], [0, 0, 1, 1], [], []>} : vector<32x32xbf16>, vector<32x64xbf16>, vector<32x64xf32> -> vector<32x64xf32>
    %146 = arith.addf %115, %145 : vector<32x64xf32>
    %147 = vector.extract_strided_slice %1 {offsets = [0, 0, 0, 0], sizes = [2, 1, 1, 32], strides = [1, 1, 1, 1]} : vector<2x8x8x32xf32> to vector<2x1x1x32xf32>
    %148 = vector.shape_cast %147 : vector<2x1x1x32xf32> to vector<2x1x32xf32>
    %149 = vector.extract_strided_slice %1 {offsets = [0, 0, 2, 0], sizes = [2, 1, 1, 32], strides = [1, 1, 1, 1]} : vector<2x8x8x32xf32> to vector<2x1x1x32xf32>
    %150 = vector.shape_cast %149 : vector<2x1x1x32xf32> to vector<2x1x32xf32>
    %151 = vector.extract_strided_slice %1 {offsets = [0, 0, 4, 0], sizes = [2, 1, 1, 32], strides = [1, 1, 1, 1]} : vector<2x8x8x32xf32> to vector<2x1x1x32xf32>
    %152 = vector.shape_cast %151 : vector<2x1x1x32xf32> to vector<2x1x32xf32>
    %153 = vector.extract_strided_slice %1 {offsets = [0, 0, 6, 0], sizes = [2, 1, 1, 32], strides = [1, 1, 1, 1]} : vector<2x8x8x32xf32> to vector<2x1x1x32xf32>
    %154 = vector.shape_cast %153 : vector<2x1x1x32xf32> to vector<2x1x32xf32>
    %155 = vector.extract_strided_slice %1 {offsets = [0, 2, 0, 0], sizes = [2, 1, 1, 32], strides = [1, 1, 1, 1]} : vector<2x8x8x32xf32> to vector<2x1x1x32xf32>
    %156 = vector.shape_cast %155 : vector<2x1x1x32xf32> to vector<2x1x32xf32>
    %157 = vector.extract_strided_slice %1 {offsets = [0, 2, 2, 0], sizes = [2, 1, 1, 32], strides = [1, 1, 1, 1]} : vector<2x8x8x32xf32> to vector<2x1x1x32xf32>
    %158 = vector.shape_cast %157 : vector<2x1x1x32xf32> to vector<2x1x32xf32>
    %159 = vector.extract_strided_slice %1 {offsets = [0, 2, 4, 0], sizes = [2, 1, 1, 32], strides = [1, 1, 1, 1]} : vector<2x8x8x32xf32> to vector<2x1x1x32xf32>
    %160 = vector.shape_cast %159 : vector<2x1x1x32xf32> to vector<2x1x32xf32>
    %161 = vector.extract_strided_slice %1 {offsets = [0, 2, 6, 0], sizes = [2, 1, 1, 32], strides = [1, 1, 1, 1]} : vector<2x8x8x32xf32> to vector<2x1x1x32xf32>
    %162 = vector.shape_cast %161 : vector<2x1x1x32xf32> to vector<2x1x32xf32>
    %163 = vector.extract_strided_slice %1 {offsets = [0, 4, 0, 0], sizes = [2, 1, 1, 32], strides = [1, 1, 1, 1]} : vector<2x8x8x32xf32> to vector<2x1x1x32xf32>
    %164 = vector.shape_cast %163 : vector<2x1x1x32xf32> to vector<2x1x32xf32>
    %165 = vector.extract_strided_slice %1 {offsets = [0, 4, 2, 0], sizes = [2, 1, 1, 32], strides = [1, 1, 1, 1]} : vector<2x8x8x32xf32> to vector<2x1x1x32xf32>
    %166 = vector.shape_cast %165 : vector<2x1x1x32xf32> to vector<2x1x32xf32>
    %167 = vector.extract_strided_slice %1 {offsets = [0, 4, 4, 0], sizes = [2, 1, 1, 32], strides = [1, 1, 1, 1]} : vector<2x8x8x32xf32> to vector<2x1x1x32xf32>
    %168 = vector.shape_cast %167 : vector<2x1x1x32xf32> to vector<2x1x32xf32>
    %169 = vector.extract_strided_slice %1 {offsets = [0, 4, 6, 0], sizes = [2, 1, 1, 32], strides = [1, 1, 1, 1]} : vector<2x8x8x32xf32> to vector<2x1x1x32xf32>
    %170 = vector.shape_cast %169 : vector<2x1x1x32xf32> to vector<2x1x32xf32>
    %171 = vector.extract_strided_slice %1 {offsets = [0, 6, 0, 0], sizes = [2, 1, 1, 32], strides = [1, 1, 1, 1]} : vector<2x8x8x32xf32> to vector<2x1x1x32xf32>
    %172 = vector.shape_cast %171 : vector<2x1x1x32xf32> to vector<2x1x32xf32>
    %173 = vector.extract_strided_slice %1 {offsets = [0, 6, 2, 0], sizes = [2, 1, 1, 32], strides = [1, 1, 1, 1]} : vector<2x8x8x32xf32> to vector<2x1x1x32xf32>
    %174 = vector.shape_cast %173 : vector<2x1x1x32xf32> to vector<2x1x32xf32>
    %175 = vector.extract_strided_slice %1 {offsets = [0, 6, 4, 0], sizes = [2, 1, 1, 32], strides = [1, 1, 1, 1]} : vector<2x8x8x32xf32> to vector<2x1x1x32xf32>
    %176 = vector.shape_cast %175 : vector<2x1x1x32xf32> to vector<2x1x32xf32>
    %177 = vector.extract_strided_slice %1 {offsets = [0, 6, 6, 0], sizes = [2, 1, 1, 32], strides = [1, 1, 1, 1]} : vector<2x8x8x32xf32> to vector<2x1x1x32xf32>
    %178 = vector.shape_cast %177 : vector<2x1x1x32xf32> to vector<2x1x32xf32>
    %179 = tpu.concatenate %148, %150, %152, %154, %156, %158, %160, %162, %164, %166, %168, %170, %172, %174, %176, %178 in 1 : vector<2x1x32xf32>, vector<2x1x32xf32>, vector<2x1x32xf32>, vector<2x1x32xf32>, vector<2x1x32xf32>, vector<2x1x32xf32>, vector<2x1x32xf32>, vector<2x1x32xf32>, vector<2x1x32xf32>, vector<2x1x32xf32>, vector<2x1x32xf32>, vector<2x1x32xf32>, vector<2x1x32xf32>, vector<2x1x32xf32>, vector<2x1x32xf32>, vector<2x1x32xf32> -> vector<2x16x32xf32>
    %180 = arith.truncf %179 : vector<2x16x32xf32> to vector<2x16x32xbf16>
    %181 = vector.shape_cast %180 : vector<2x16x32xbf16> to vector<32x32xbf16>
    %c5 = arith.constant 5 : index
    %c0_20 = arith.constant 0 : index
    %c0_21 = arith.constant 0 : index
    %182 = vector.load %arg1[%c5, %c0_20, %c0_21] : memref<16x32x64xbf16, #tpu.memory_space<vmem>>, vector<1x32x64xbf16>
    %183 = vector.shape_cast %182 : vector<1x32x64xbf16> to vector<32x64xbf16>
    %cst_22 = arith.constant dense<0.000000e+00> : vector<32x64xf32>
    %184 = tpu.matmul %181, %183, %cst_22 {dimension_numbers = #tpu.dot_dimension_numbers<[1], [0], [0], [1], [0, 0, 1, 1], [], []>} : vector<32x32xbf16>, vector<32x64xbf16>, vector<32x64xf32> -> vector<32x64xf32>
    %185 = arith.addf %146, %184 : vector<32x64xf32>
    %186 = vector.extract_strided_slice %1 {offsets = [0, 0, 1, 0], sizes = [2, 1, 1, 32], strides = [1, 1, 1, 1]} : vector<2x8x8x32xf32> to vector<2x1x1x32xf32>
    %187 = vector.shape_cast %186 : vector<2x1x1x32xf32> to vector<2x1x32xf32>
    %188 = vector.extract_strided_slice %1 {offsets = [0, 0, 3, 0], sizes = [2, 1, 1, 32], strides = [1, 1, 1, 1]} : vector<2x8x8x32xf32> to vector<2x1x1x32xf32>
    %189 = vector.shape_cast %188 : vector<2x1x1x32xf32> to vector<2x1x32xf32>
    %190 = vector.extract_strided_slice %1 {offsets = [0, 0, 5, 0], sizes = [2, 1, 1, 32], strides = [1, 1, 1, 1]} : vector<2x8x8x32xf32> to vector<2x1x1x32xf32>
    %191 = vector.shape_cast %190 : vector<2x1x1x32xf32> to vector<2x1x32xf32>
    %192 = vector.extract_strided_slice %1 {offsets = [0, 0, 7, 0], sizes = [2, 1, 1, 32], strides = [1, 1, 1, 1]} : vector<2x8x8x32xf32> to vector<2x1x1x32xf32>
    %193 = vector.shape_cast %192 : vector<2x1x1x32xf32> to vector<2x1x32xf32>
    %194 = vector.extract_strided_slice %1 {offsets = [0, 2, 1, 0], sizes = [2, 1, 1, 32], strides = [1, 1, 1, 1]} : vector<2x8x8x32xf32> to vector<2x1x1x32xf32>
    %195 = vector.shape_cast %194 : vector<2x1x1x32xf32> to vector<2x1x32xf32>
    %196 = vector.extract_strided_slice %1 {offsets = [0, 2, 3, 0], sizes = [2, 1, 1, 32], strides = [1, 1, 1, 1]} : vector<2x8x8x32xf32> to vector<2x1x1x32xf32>
    %197 = vector.shape_cast %196 : vector<2x1x1x32xf32> to vector<2x1x32xf32>
    %198 = vector.extract_strided_slice %1 {offsets = [0, 2, 5, 0], sizes = [2, 1, 1, 32], strides = [1, 1, 1, 1]} : vector<2x8x8x32xf32> to vector<2x1x1x32xf32>
    %199 = vector.shape_cast %198 : vector<2x1x1x32xf32> to vector<2x1x32xf32>
    %200 = vector.extract_strided_slice %1 {offsets = [0, 2, 7, 0], sizes = [2, 1, 1, 32], strides = [1, 1, 1, 1]} : vector<2x8x8x32xf32> to vector<2x1x1x32xf32>
    %201 = vector.shape_cast %200 : vector<2x1x1x32xf32> to vector<2x1x32xf32>
    %202 = vector.extract_strided_slice %1 {offsets = [0, 4, 1, 0], sizes = [2, 1, 1, 32], strides = [1, 1, 1, 1]} : vector<2x8x8x32xf32> to vector<2x1x1x32xf32>
    %203 = vector.shape_cast %202 : vector<2x1x1x32xf32> to vector<2x1x32xf32>
    %204 = vector.extract_strided_slice %1 {offsets = [0, 4, 3, 0], sizes = [2, 1, 1, 32], strides = [1, 1, 1, 1]} : vector<2x8x8x32xf32> to vector<2x1x1x32xf32>
    %205 = vector.shape_cast %204 : vector<2x1x1x32xf32> to vector<2x1x32xf32>
    %206 = vector.extract_strided_slice %1 {offsets = [0, 4, 5, 0], sizes = [2, 1, 1, 32], strides = [1, 1, 1, 1]} : vector<2x8x8x32xf32> to vector<2x1x1x32xf32>
    %207 = vector.shape_cast %206 : vector<2x1x1x32xf32> to vector<2x1x32xf32>
    %208 = vector.extract_strided_slice %1 {offsets = [0, 4, 7, 0], sizes = [2, 1, 1, 32], strides = [1, 1, 1, 1]} : vector<2x8x8x32xf32> to vector<2x1x1x32xf32>
    %209 = vector.shape_cast %208 : vector<2x1x1x32xf32> to vector<2x1x32xf32>
    %210 = vector.extract_strided_slice %1 {offsets = [0, 6, 1, 0], sizes = [2, 1, 1, 32], strides = [1, 1, 1, 1]} : vector<2x8x8x32xf32> to vector<2x1x1x32xf32>
    %211 = vector.shape_cast %210 : vector<2x1x1x32xf32> to vector<2x1x32xf32>
    %212 = vector.extract_strided_slice %1 {offsets = [0, 6, 3, 0], sizes = [2, 1, 1, 32], strides = [1, 1, 1, 1]} : vector<2x8x8x32xf32> to vector<2x1x1x32xf32>
    %213 = vector.shape_cast %212 : vector<2x1x1x32xf32> to vector<2x1x32xf32>
    %214 = vector.extract_strided_slice %1 {offsets = [0, 6, 5, 0], sizes = [2, 1, 1, 32], strides = [1, 1, 1, 1]} : vector<2x8x8x32xf32> to vector<2x1x1x32xf32>
    %215 = vector.shape_cast %214 : vector<2x1x1x32xf32> to vector<2x1x32xf32>
    %216 = vector.extract_strided_slice %1 {offsets = [0, 6, 7, 0], sizes = [2, 1, 1, 32], strides = [1, 1, 1, 1]} : vector<2x8x8x32xf32> to vector<2x1x1x32xf32>
    %217 = vector.shape_cast %216 : vector<2x1x1x32xf32> to vector<2x1x32xf32>
    %218 = tpu.concatenate %187, %189, %191, %193, %195, %197, %199, %201, %203, %205, %207, %209, %211, %213, %215, %217 in 1 : vector<2x1x32xf32>, vector<2x1x32xf32>, vector<2x1x32xf32>, vector<2x1x32xf32>, vector<2x1x32xf32>, vector<2x1x32xf32>, vector<2x1x32xf32>, vector<2x1x32xf32>, vector<2x1x32xf32>, vector<2x1x32xf32>, vector<2x1x32xf32>, vector<2x1x32xf32>, vector<2x1x32xf32>, vector<2x1x32xf32>, vector<2x1x32xf32>, vector<2x1x32xf32> -> vector<2x16x32xf32>
    %219 = arith.truncf %218 : vector<2x16x32xf32> to vector<2x16x32xbf16>
    %220 = vector.shape_cast %219 : vector<2x16x32xbf16> to vector<32x32xbf16>
    %c6 = arith.constant 6 : index
    %c0_23 = arith.constant 0 : index
    %c0_24 = arith.constant 0 : index
    %221 = vector.load %arg1[%c6, %c0_23, %c0_24] : memref<16x32x64xbf16, #tpu.memory_space<vmem>>, vector<1x32x64xbf16>
    %222 = vector.shape_cast %221 : vector<1x32x64xbf16> to vector<32x64xbf16>
    %cst_25 = arith.constant dense<0.000000e+00> : vector<32x64xf32>
    %223 = tpu.matmul %220, %222, %cst_25 {dimension_numbers = #tpu.dot_dimension_numbers<[1], [0], [0], [1], [0, 0, 1, 1], [], []>} : vector<32x32xbf16>, vector<32x64xbf16>, vector<32x64xf32> -> vector<32x64xf32>
    %224 = arith.addf %185, %223 : vector<32x64xf32>
    %225 = vector.extract_strided_slice %1 {offsets = [0, 0, 2, 0], sizes = [2, 1, 1, 32], strides = [1, 1, 1, 1]} : vector<2x8x8x32xf32> to vector<2x1x1x32xf32>
    %226 = vector.shape_cast %225 : vector<2x1x1x32xf32> to vector<2x1x32xf32>
    %227 = vector.extract_strided_slice %1 {offsets = [0, 0, 4, 0], sizes = [2, 1, 1, 32], strides = [1, 1, 1, 1]} : vector<2x8x8x32xf32> to vector<2x1x1x32xf32>
    %228 = vector.shape_cast %227 : vector<2x1x1x32xf32> to vector<2x1x32xf32>
    %229 = vector.extract_strided_slice %1 {offsets = [0, 0, 6, 0], sizes = [2, 1, 1, 32], strides = [1, 1, 1, 1]} : vector<2x8x8x32xf32> to vector<2x1x1x32xf32>
    %230 = vector.shape_cast %229 : vector<2x1x1x32xf32> to vector<2x1x32xf32>
    %231 = vector.extract_strided_slice %1 {offsets = [0, 2, 2, 0], sizes = [2, 1, 1, 32], strides = [1, 1, 1, 1]} : vector<2x8x8x32xf32> to vector<2x1x1x32xf32>
    %232 = vector.shape_cast %231 : vector<2x1x1x32xf32> to vector<2x1x32xf32>
    %233 = vector.extract_strided_slice %1 {offsets = [0, 2, 4, 0], sizes = [2, 1, 1, 32], strides = [1, 1, 1, 1]} : vector<2x8x8x32xf32> to vector<2x1x1x32xf32>
    %234 = vector.shape_cast %233 : vector<2x1x1x32xf32> to vector<2x1x32xf32>
    %235 = vector.extract_strided_slice %1 {offsets = [0, 2, 6, 0], sizes = [2, 1, 1, 32], strides = [1, 1, 1, 1]} : vector<2x8x8x32xf32> to vector<2x1x1x32xf32>
    %236 = vector.shape_cast %235 : vector<2x1x1x32xf32> to vector<2x1x32xf32>
    %237 = vector.extract_strided_slice %1 {offsets = [0, 4, 2, 0], sizes = [2, 1, 1, 32], strides = [1, 1, 1, 1]} : vector<2x8x8x32xf32> to vector<2x1x1x32xf32>
    %238 = vector.shape_cast %237 : vector<2x1x1x32xf32> to vector<2x1x32xf32>
    %239 = vector.extract_strided_slice %1 {offsets = [0, 4, 4, 0], sizes = [2, 1, 1, 32], strides = [1, 1, 1, 1]} : vector<2x8x8x32xf32> to vector<2x1x1x32xf32>
    %240 = vector.shape_cast %239 : vector<2x1x1x32xf32> to vector<2x1x32xf32>
    %241 = vector.extract_strided_slice %1 {offsets = [0, 4, 6, 0], sizes = [2, 1, 1, 32], strides = [1, 1, 1, 1]} : vector<2x8x8x32xf32> to vector<2x1x1x32xf32>
    %242 = vector.shape_cast %241 : vector<2x1x1x32xf32> to vector<2x1x32xf32>
    %243 = vector.extract_strided_slice %1 {offsets = [0, 6, 2, 0], sizes = [2, 1, 1, 32], strides = [1, 1, 1, 1]} : vector<2x8x8x32xf32> to vector<2x1x1x32xf32>
    %244 = vector.shape_cast %243 : vector<2x1x1x32xf32> to vector<2x1x32xf32>
    %245 = vector.extract_strided_slice %1 {offsets = [0, 6, 4, 0], sizes = [2, 1, 1, 32], strides = [1, 1, 1, 1]} : vector<2x8x8x32xf32> to vector<2x1x1x32xf32>
    %246 = vector.shape_cast %245 : vector<2x1x1x32xf32> to vector<2x1x32xf32>
    %247 = vector.extract_strided_slice %1 {offsets = [0, 6, 6, 0], sizes = [2, 1, 1, 32], strides = [1, 1, 1, 1]} : vector<2x8x8x32xf32> to vector<2x1x1x32xf32>
    %248 = vector.shape_cast %247 : vector<2x1x1x32xf32> to vector<2x1x32xf32>
    %249 = tpu.concatenate %226, %228, %230, %2, %232, %234, %236, %2, %238, %240, %242, %2, %244, %246, %248, %2 in 1 : vector<2x1x32xf32>, vector<2x1x32xf32>, vector<2x1x32xf32>, vector<2x1x32xf32>, vector<2x1x32xf32>, vector<2x1x32xf32>, vector<2x1x32xf32>, vector<2x1x32xf32>, vector<2x1x32xf32>, vector<2x1x32xf32>, vector<2x1x32xf32>, vector<2x1x32xf32>, vector<2x1x32xf32>, vector<2x1x32xf32>, vector<2x1x32xf32>, vector<2x1x32xf32> -> vector<2x16x32xf32>
    %250 = arith.truncf %249 : vector<2x16x32xf32> to vector<2x16x32xbf16>
    %251 = vector.shape_cast %250 : vector<2x16x32xbf16> to vector<32x32xbf16>
    %c7 = arith.constant 7 : index
    %c0_26 = arith.constant 0 : index
    %c0_27 = arith.constant 0 : index
    %252 = vector.load %arg1[%c7, %c0_26, %c0_27] : memref<16x32x64xbf16, #tpu.memory_space<vmem>>, vector<1x32x64xbf16>
    %253 = vector.shape_cast %252 : vector<1x32x64xbf16> to vector<32x64xbf16>
    %cst_28 = arith.constant dense<0.000000e+00> : vector<32x64xf32>
    %254 = tpu.matmul %251, %253, %cst_28 {dimension_numbers = #tpu.dot_dimension_numbers<[1], [0], [0], [1], [0, 0, 1, 1], [], []>} : vector<32x32xbf16>, vector<32x64xbf16>, vector<32x64xf32> -> vector<32x64xf32>
    %255 = arith.addf %224, %254 : vector<32x64xf32>
    %256 = vector.extract_strided_slice %1 {offsets = [0, 1, 1, 0], sizes = [2, 1, 1, 32], strides = [1, 1, 1, 1]} : vector<2x8x8x32xf32> to vector<2x1x1x32xf32>
    %257 = vector.shape_cast %256 : vector<2x1x1x32xf32> to vector<2x1x32xf32>
    %258 = vector.extract_strided_slice %1 {offsets = [0, 1, 3, 0], sizes = [2, 1, 1, 32], strides = [1, 1, 1, 1]} : vector<2x8x8x32xf32> to vector<2x1x1x32xf32>
    %259 = vector.shape_cast %258 : vector<2x1x1x32xf32> to vector<2x1x32xf32>
    %260 = vector.extract_strided_slice %1 {offsets = [0, 1, 5, 0], sizes = [2, 1, 1, 32], strides = [1, 1, 1, 1]} : vector<2x8x8x32xf32> to vector<2x1x1x32xf32>
    %261 = vector.shape_cast %260 : vector<2x1x1x32xf32> to vector<2x1x32xf32>
    %262 = vector.extract_strided_slice %1 {offsets = [0, 3, 1, 0], sizes = [2, 1, 1, 32], strides = [1, 1, 1, 1]} : vector<2x8x8x32xf32> to vector<2x1x1x32xf32>
    %263 = vector.shape_cast %262 : vector<2x1x1x32xf32> to vector<2x1x32xf32>
    %264 = vector.extract_strided_slice %1 {offsets = [0, 3, 3, 0], sizes = [2, 1, 1, 32], strides = [1, 1, 1, 1]} : vector<2x8x8x32xf32> to vector<2x1x1x32xf32>
    %265 = vector.shape_cast %264 : vector<2x1x1x32xf32> to vector<2x1x32xf32>
    %266 = vector.extract_strided_slice %1 {offsets = [0, 3, 5, 0], sizes = [2, 1, 1, 32], strides = [1, 1, 1, 1]} : vector<2x8x8x32xf32> to vector<2x1x1x32xf32>
    %267 = vector.shape_cast %266 : vector<2x1x1x32xf32> to vector<2x1x32xf32>
    %268 = vector.extract_strided_slice %1 {offsets = [0, 5, 1, 0], sizes = [2, 1, 1, 32], strides = [1, 1, 1, 1]} : vector<2x8x8x32xf32> to vector<2x1x1x32xf32>
    %269 = vector.shape_cast %268 : vector<2x1x1x32xf32> to vector<2x1x32xf32>
    %270 = vector.extract_strided_slice %1 {offsets = [0, 5, 3, 0], sizes = [2, 1, 1, 32], strides = [1, 1, 1, 1]} : vector<2x8x8x32xf32> to vector<2x1x1x32xf32>
    %271 = vector.shape_cast %270 : vector<2x1x1x32xf32> to vector<2x1x32xf32>
    %272 = vector.extract_strided_slice %1 {offsets = [0, 5, 5, 0], sizes = [2, 1, 1, 32], strides = [1, 1, 1, 1]} : vector<2x8x8x32xf32> to vector<2x1x1x32xf32>
    %273 = vector.shape_cast %272 : vector<2x1x1x32xf32> to vector<2x1x32xf32>
    %274 = vector.extract_strided_slice %1 {offsets = [0, 7, 1, 0], sizes = [2, 1, 1, 32], strides = [1, 1, 1, 1]} : vector<2x8x8x32xf32> to vector<2x1x1x32xf32>
    %275 = vector.shape_cast %274 : vector<2x1x1x32xf32> to vector<2x1x32xf32>
    %276 = vector.extract_strided_slice %1 {offsets = [0, 7, 3, 0], sizes = [2, 1, 1, 32], strides = [1, 1, 1, 1]} : vector<2x8x8x32xf32> to vector<2x1x1x32xf32>
    %277 = vector.shape_cast %276 : vector<2x1x1x32xf32> to vector<2x1x32xf32>
    %278 = vector.extract_strided_slice %1 {offsets = [0, 7, 5, 0], sizes = [2, 1, 1, 32], strides = [1, 1, 1, 1]} : vector<2x8x8x32xf32> to vector<2x1x1x32xf32>
    %279 = vector.shape_cast %278 : vector<2x1x1x32xf32> to vector<2x1x32xf32>
    %280 = tpu.concatenate %2, %257, %259, %261, %2, %263, %265, %267, %2, %269, %271, %273, %2, %275, %277, %279 in 1 : vector<2x1x32xf32>, vector<2x1x32xf32>, vector<2x1x32xf32>, vector<2x1x32xf32>, vector<2x1x32xf32>, vector<2x1x32xf32>, vector<2x1x32xf32>, vector<2x1x32xf32>, vector<2x1x32xf32>, vector<2x1x32xf32>, vector<2x1x32xf32>, vector<2x1x32xf32>, vector<2x1x32xf32>, vector<2x1x32xf32>, vector<2x1x32xf32>, vector<2x1x32xf32> -> vector<2x16x32xf32>
    %281 = arith.truncf %280 : vector<2x16x32xf32> to vector<2x16x32xbf16>
    %282 = vector.shape_cast %281 : vector<2x16x32xbf16> to vector<32x32xbf16>
    %c8 = arith.constant 8 : index
    %c0_29 = arith.constant 0 : index
    %c0_30 = arith.constant 0 : index
    %283 = vector.load %arg1[%c8, %c0_29, %c0_30] : memref<16x32x64xbf16, #tpu.memory_space<vmem>>, vector<1x32x64xbf16>
    %284 = vector.shape_cast %283 : vector<1x32x64xbf16> to vector<32x64xbf16>
    %cst_31 = arith.constant dense<0.000000e+00> : vector<32x64xf32>
    %285 = tpu.matmul %282, %284, %cst_31 {dimension_numbers = #tpu.dot_dimension_numbers<[1], [0], [0], [1], [0, 0, 1, 1], [], []>} : vector<32x32xbf16>, vector<32x64xbf16>, vector<32x64xf32> -> vector<32x64xf32>
    %286 = arith.addf %255, %285 : vector<32x64xf32>
    %287 = vector.extract_strided_slice %1 {offsets = [0, 1, 0, 0], sizes = [2, 1, 1, 32], strides = [1, 1, 1, 1]} : vector<2x8x8x32xf32> to vector<2x1x1x32xf32>
    %288 = vector.shape_cast %287 : vector<2x1x1x32xf32> to vector<2x1x32xf32>
    %289 = vector.extract_strided_slice %1 {offsets = [0, 1, 2, 0], sizes = [2, 1, 1, 32], strides = [1, 1, 1, 1]} : vector<2x8x8x32xf32> to vector<2x1x1x32xf32>
    %290 = vector.shape_cast %289 : vector<2x1x1x32xf32> to vector<2x1x32xf32>
    %291 = vector.extract_strided_slice %1 {offsets = [0, 1, 4, 0], sizes = [2, 1, 1, 32], strides = [1, 1, 1, 1]} : vector<2x8x8x32xf32> to vector<2x1x1x32xf32>
    %292 = vector.shape_cast %291 : vector<2x1x1x32xf32> to vector<2x1x32xf32>
    %293 = vector.extract_strided_slice %1 {offsets = [0, 1, 6, 0], sizes = [2, 1, 1, 32], strides = [1, 1, 1, 1]} : vector<2x8x8x32xf32> to vector<2x1x1x32xf32>
    %294 = vector.shape_cast %293 : vector<2x1x1x32xf32> to vector<2x1x32xf32>
    %295 = vector.extract_strided_slice %1 {offsets = [0, 3, 0, 0], sizes = [2, 1, 1, 32], strides = [1, 1, 1, 1]} : vector<2x8x8x32xf32> to vector<2x1x1x32xf32>
    %296 = vector.shape_cast %295 : vector<2x1x1x32xf32> to vector<2x1x32xf32>
    %297 = vector.extract_strided_slice %1 {offsets = [0, 3, 2, 0], sizes = [2, 1, 1, 32], strides = [1, 1, 1, 1]} : vector<2x8x8x32xf32> to vector<2x1x1x32xf32>
    %298 = vector.shape_cast %297 : vector<2x1x1x32xf32> to vector<2x1x32xf32>
    %299 = vector.extract_strided_slice %1 {offsets = [0, 3, 4, 0], sizes = [2, 1, 1, 32], strides = [1, 1, 1, 1]} : vector<2x8x8x32xf32> to vector<2x1x1x32xf32>
    %300 = vector.shape_cast %299 : vector<2x1x1x32xf32> to vector<2x1x32xf32>
    %301 = vector.extract_strided_slice %1 {offsets = [0, 3, 6, 0], sizes = [2, 1, 1, 32], strides = [1, 1, 1, 1]} : vector<2x8x8x32xf32> to vector<2x1x1x32xf32>
    %302 = vector.shape_cast %301 : vector<2x1x1x32xf32> to vector<2x1x32xf32>
    %303 = vector.extract_strided_slice %1 {offsets = [0, 5, 0, 0], sizes = [2, 1, 1, 32], strides = [1, 1, 1, 1]} : vector<2x8x8x32xf32> to vector<2x1x1x32xf32>
    %304 = vector.shape_cast %303 : vector<2x1x1x32xf32> to vector<2x1x32xf32>
    %305 = vector.extract_strided_slice %1 {offsets = [0, 5, 2, 0], sizes = [2, 1, 1, 32], strides = [1, 1, 1, 1]} : vector<2x8x8x32xf32> to vector<2x1x1x32xf32>
    %306 = vector.shape_cast %305 : vector<2x1x1x32xf32> to vector<2x1x32xf32>
    %307 = vector.extract_strided_slice %1 {offsets = [0, 5, 4, 0], sizes = [2, 1, 1, 32], strides = [1, 1, 1, 1]} : vector<2x8x8x32xf32> to vector<2x1x1x32xf32>
    %308 = vector.shape_cast %307 : vector<2x1x1x32xf32> to vector<2x1x32xf32>
    %309 = vector.extract_strided_slice %1 {offsets = [0, 5, 6, 0], sizes = [2, 1, 1, 32], strides = [1, 1, 1, 1]} : vector<2x8x8x32xf32> to vector<2x1x1x32xf32>
    %310 = vector.shape_cast %309 : vector<2x1x1x32xf32> to vector<2x1x32xf32>
    %311 = vector.extract_strided_slice %1 {offsets = [0, 7, 0, 0], sizes = [2, 1, 1, 32], strides = [1, 1, 1, 1]} : vector<2x8x8x32xf32> to vector<2x1x1x32xf32>
    %312 = vector.shape_cast %311 : vector<2x1x1x32xf32> to vector<2x1x32xf32>
    %313 = vector.extract_strided_slice %1 {offsets = [0, 7, 2, 0], sizes = [2, 1, 1, 32], strides = [1, 1, 1, 1]} : vector<2x8x8x32xf32> to vector<2x1x1x32xf32>
    %314 = vector.shape_cast %313 : vector<2x1x1x32xf32> to vector<2x1x32xf32>
    %315 = vector.extract_strided_slice %1 {offsets = [0, 7, 4, 0], sizes = [2, 1, 1, 32], strides = [1, 1, 1, 1]} : vector<2x8x8x32xf32> to vector<2x1x1x32xf32>
    %316 = vector.shape_cast %315 : vector<2x1x1x32xf32> to vector<2x1x32xf32>
    %317 = vector.extract_strided_slice %1 {offsets = [0, 7, 6, 0], sizes = [2, 1, 1, 32], strides = [1, 1, 1, 1]} : vector<2x8x8x32xf32> to vector<2x1x1x32xf32>
    %318 = vector.shape_cast %317 : vector<2x1x1x32xf32> to vector<2x1x32xf32>
    %319 = tpu.concatenate %288, %290, %292, %294, %296, %298, %300, %302, %304, %306, %308, %310, %312, %314, %316, %318 in 1 : vector<2x1x32xf32>, vector<2x1x32xf32>, vector<2x1x32xf32>, vector<2x1x32xf32>, vector<2x1x32xf32>, vector<2x1x32xf32>, vector<2x1x32xf32>, vector<2x1x32xf32>, vector<2x1x32xf32>, vector<2x1x32xf32>, vector<2x1x32xf32>, vector<2x1x32xf32>, vector<2x1x32xf32>, vector<2x1x32xf32>, vector<2x1x32xf32>, vector<2x1x32xf32> -> vector<2x16x32xf32>
    %320 = arith.truncf %319 : vector<2x16x32xf32> to vector<2x16x32xbf16>
    %321 = vector.shape_cast %320 : vector<2x16x32xbf16> to vector<32x32xbf16>
    %c9 = arith.constant 9 : index
    %c0_32 = arith.constant 0 : index
    %c0_33 = arith.constant 0 : index
    %322 = vector.load %arg1[%c9, %c0_32, %c0_33] : memref<16x32x64xbf16, #tpu.memory_space<vmem>>, vector<1x32x64xbf16>
    %323 = vector.shape_cast %322 : vector<1x32x64xbf16> to vector<32x64xbf16>
    %cst_34 = arith.constant dense<0.000000e+00> : vector<32x64xf32>
    %324 = tpu.matmul %321, %323, %cst_34 {dimension_numbers = #tpu.dot_dimension_numbers<[1], [0], [0], [1], [0, 0, 1, 1], [], []>} : vector<32x32xbf16>, vector<32x64xbf16>, vector<32x64xf32> -> vector<32x64xf32>
    %325 = arith.addf %286, %324 : vector<32x64xf32>
    %326 = vector.extract_strided_slice %1 {offsets = [0, 1, 1, 0], sizes = [2, 1, 1, 32], strides = [1, 1, 1, 1]} : vector<2x8x8x32xf32> to vector<2x1x1x32xf32>
    %327 = vector.shape_cast %326 : vector<2x1x1x32xf32> to vector<2x1x32xf32>
    %328 = vector.extract_strided_slice %1 {offsets = [0, 1, 3, 0], sizes = [2, 1, 1, 32], strides = [1, 1, 1, 1]} : vector<2x8x8x32xf32> to vector<2x1x1x32xf32>
    %329 = vector.shape_cast %328 : vector<2x1x1x32xf32> to vector<2x1x32xf32>
    %330 = vector.extract_strided_slice %1 {offsets = [0, 1, 5, 0], sizes = [2, 1, 1, 32], strides = [1, 1, 1, 1]} : vector<2x8x8x32xf32> to vector<2x1x1x32xf32>
    %331 = vector.shape_cast %330 : vector<2x1x1x32xf32> to vector<2x1x32xf32>
    %332 = vector.extract_strided_slice %1 {offsets = [0, 1, 7, 0], sizes = [2, 1, 1, 32], strides = [1, 1, 1, 1]} : vector<2x8x8x32xf32> to vector<2x1x1x32xf32>
    %333 = vector.shape_cast %332 : vector<2x1x1x32xf32> to vector<2x1x32xf32>
    %334 = vector.extract_strided_slice %1 {offsets = [0, 3, 1, 0], sizes = [2, 1, 1, 32], strides = [1, 1, 1, 1]} : vector<2x8x8x32xf32> to vector<2x1x1x32xf32>
    %335 = vector.shape_cast %334 : vector<2x1x1x32xf32> to vector<2x1x32xf32>
    %336 = vector.extract_strided_slice %1 {offsets = [0, 3, 3, 0], sizes = [2, 1, 1, 32], strides = [1, 1, 1, 1]} : vector<2x8x8x32xf32> to vector<2x1x1x32xf32>
    %337 = vector.shape_cast %336 : vector<2x1x1x32xf32> to vector<2x1x32xf32>
    %338 = vector.extract_strided_slice %1 {offsets = [0, 3, 5, 0], sizes = [2, 1, 1, 32], strides = [1, 1, 1, 1]} : vector<2x8x8x32xf32> to vector<2x1x1x32xf32>
    %339 = vector.shape_cast %338 : vector<2x1x1x32xf32> to vector<2x1x32xf32>
    %340 = vector.extract_strided_slice %1 {offsets = [0, 3, 7, 0], sizes = [2, 1, 1, 32], strides = [1, 1, 1, 1]} : vector<2x8x8x32xf32> to vector<2x1x1x32xf32>
    %341 = vector.shape_cast %340 : vector<2x1x1x32xf32> to vector<2x1x32xf32>
    %342 = vector.extract_strided_slice %1 {offsets = [0, 5, 1, 0], sizes = [2, 1, 1, 32], strides = [1, 1, 1, 1]} : vector<2x8x8x32xf32> to vector<2x1x1x32xf32>
    %343 = vector.shape_cast %342 : vector<2x1x1x32xf32> to vector<2x1x32xf32>
    %344 = vector.extract_strided_slice %1 {offsets = [0, 5, 3, 0], sizes = [2, 1, 1, 32], strides = [1, 1, 1, 1]} : vector<2x8x8x32xf32> to vector<2x1x1x32xf32>
    %345 = vector.shape_cast %344 : vector<2x1x1x32xf32> to vector<2x1x32xf32>
    %346 = vector.extract_strided_slice %1 {offsets = [0, 5, 5, 0], sizes = [2, 1, 1, 32], strides = [1, 1, 1, 1]} : vector<2x8x8x32xf32> to vector<2x1x1x32xf32>
    %347 = vector.shape_cast %346 : vector<2x1x1x32xf32> to vector<2x1x32xf32>
    %348 = vector.extract_strided_slice %1 {offsets = [0, 5, 7, 0], sizes = [2, 1, 1, 32], strides = [1, 1, 1, 1]} : vector<2x8x8x32xf32> to vector<2x1x1x32xf32>
    %349 = vector.shape_cast %348 : vector<2x1x1x32xf32> to vector<2x1x32xf32>
    %350 = vector.extract_strided_slice %1 {offsets = [0, 7, 1, 0], sizes = [2, 1, 1, 32], strides = [1, 1, 1, 1]} : vector<2x8x8x32xf32> to vector<2x1x1x32xf32>
    %351 = vector.shape_cast %350 : vector<2x1x1x32xf32> to vector<2x1x32xf32>
    %352 = vector.extract_strided_slice %1 {offsets = [0, 7, 3, 0], sizes = [2, 1, 1, 32], strides = [1, 1, 1, 1]} : vector<2x8x8x32xf32> to vector<2x1x1x32xf32>
    %353 = vector.shape_cast %352 : vector<2x1x1x32xf32> to vector<2x1x32xf32>
    %354 = vector.extract_strided_slice %1 {offsets = [0, 7, 5, 0], sizes = [2, 1, 1, 32], strides = [1, 1, 1, 1]} : vector<2x8x8x32xf32> to vector<2x1x1x32xf32>
    %355 = vector.shape_cast %354 : vector<2x1x1x32xf32> to vector<2x1x32xf32>
    %356 = vector.extract_strided_slice %1 {offsets = [0, 7, 7, 0], sizes = [2, 1, 1, 32], strides = [1, 1, 1, 1]} : vector<2x8x8x32xf32> to vector<2x1x1x32xf32>
    %357 = vector.shape_cast %356 : vector<2x1x1x32xf32> to vector<2x1x32xf32>
    %358 = tpu.concatenate %327, %329, %331, %333, %335, %337, %339, %341, %343, %345, %347, %349, %351, %353, %355, %357 in 1 : vector<2x1x32xf32>, vector<2x1x32xf32>, vector<2x1x32xf32>, vector<2x1x32xf32>, vector<2x1x32xf32>, vector<2x1x32xf32>, vector<2x1x32xf32>, vector<2x1x32xf32>, vector<2x1x32xf32>, vector<2x1x32xf32>, vector<2x1x32xf32>, vector<2x1x32xf32>, vector<2x1x32xf32>, vector<2x1x32xf32>, vector<2x1x32xf32>, vector<2x1x32xf32> -> vector<2x16x32xf32>
    %359 = arith.truncf %358 : vector<2x16x32xf32> to vector<2x16x32xbf16>
    %360 = vector.shape_cast %359 : vector<2x16x32xbf16> to vector<32x32xbf16>
    %c10 = arith.constant 10 : index
    %c0_35 = arith.constant 0 : index
    %c0_36 = arith.constant 0 : index
    %361 = vector.load %arg1[%c10, %c0_35, %c0_36] : memref<16x32x64xbf16, #tpu.memory_space<vmem>>, vector<1x32x64xbf16>
    %362 = vector.shape_cast %361 : vector<1x32x64xbf16> to vector<32x64xbf16>
    %cst_37 = arith.constant dense<0.000000e+00> : vector<32x64xf32>
    %363 = tpu.matmul %360, %362, %cst_37 {dimension_numbers = #tpu.dot_dimension_numbers<[1], [0], [0], [1], [0, 0, 1, 1], [], []>} : vector<32x32xbf16>, vector<32x64xbf16>, vector<32x64xf32> -> vector<32x64xf32>
    %364 = arith.addf %325, %363 : vector<32x64xf32>
    %365 = vector.extract_strided_slice %1 {offsets = [0, 1, 2, 0], sizes = [2, 1, 1, 32], strides = [1, 1, 1, 1]} : vector<2x8x8x32xf32> to vector<2x1x1x32xf32>
    %366 = vector.shape_cast %365 : vector<2x1x1x32xf32> to vector<2x1x32xf32>
    %367 = vector.extract_strided_slice %1 {offsets = [0, 1, 4, 0], sizes = [2, 1, 1, 32], strides = [1, 1, 1, 1]} : vector<2x8x8x32xf32> to vector<2x1x1x32xf32>
    %368 = vector.shape_cast %367 : vector<2x1x1x32xf32> to vector<2x1x32xf32>
    %369 = vector.extract_strided_slice %1 {offsets = [0, 1, 6, 0], sizes = [2, 1, 1, 32], strides = [1, 1, 1, 1]} : vector<2x8x8x32xf32> to vector<2x1x1x32xf32>
    %370 = vector.shape_cast %369 : vector<2x1x1x32xf32> to vector<2x1x32xf32>
    %371 = vector.extract_strided_slice %1 {offsets = [0, 3, 2, 0], sizes = [2, 1, 1, 32], strides = [1, 1, 1, 1]} : vector<2x8x8x32xf32> to vector<2x1x1x32xf32>
    %372 = vector.shape_cast %371 : vector<2x1x1x32xf32> to vector<2x1x32xf32>
    %373 = vector.extract_strided_slice %1 {offsets = [0, 3, 4, 0], sizes = [2, 1, 1, 32], strides = [1, 1, 1, 1]} : vector<2x8x8x32xf32> to vector<2x1x1x32xf32>
    %374 = vector.shape_cast %373 : vector<2x1x1x32xf32> to vector<2x1x32xf32>
    %375 = vector.extract_strided_slice %1 {offsets = [0, 3, 6, 0], sizes = [2, 1, 1, 32], strides = [1, 1, 1, 1]} : vector<2x8x8x32xf32> to vector<2x1x1x32xf32>
    %376 = vector.shape_cast %375 : vector<2x1x1x32xf32> to vector<2x1x32xf32>
    %377 = vector.extract_strided_slice %1 {offsets = [0, 5, 2, 0], sizes = [2, 1, 1, 32], strides = [1, 1, 1, 1]} : vector<2x8x8x32xf32> to vector<2x1x1x32xf32>
    %378 = vector.shape_cast %377 : vector<2x1x1x32xf32> to vector<2x1x32xf32>
    %379 = vector.extract_strided_slice %1 {offsets = [0, 5, 4, 0], sizes = [2, 1, 1, 32], strides = [1, 1, 1, 1]} : vector<2x8x8x32xf32> to vector<2x1x1x32xf32>
    %380 = vector.shape_cast %379 : vector<2x1x1x32xf32> to vector<2x1x32xf32>
    %381 = vector.extract_strided_slice %1 {offsets = [0, 5, 6, 0], sizes = [2, 1, 1, 32], strides = [1, 1, 1, 1]} : vector<2x8x8x32xf32> to vector<2x1x1x32xf32>
    %382 = vector.shape_cast %381 : vector<2x1x1x32xf32> to vector<2x1x32xf32>
    %383 = vector.extract_strided_slice %1 {offsets = [0, 7, 2, 0], sizes = [2, 1, 1, 32], strides = [1, 1, 1, 1]} : vector<2x8x8x32xf32> to vector<2x1x1x32xf32>
    %384 = vector.shape_cast %383 : vector<2x1x1x32xf32> to vector<2x1x32xf32>
    %385 = vector.extract_strided_slice %1 {offsets = [0, 7, 4, 0], sizes = [2, 1, 1, 32], strides = [1, 1, 1, 1]} : vector<2x8x8x32xf32> to vector<2x1x1x32xf32>
    %386 = vector.shape_cast %385 : vector<2x1x1x32xf32> to vector<2x1x32xf32>
    %387 = vector.extract_strided_slice %1 {offsets = [0, 7, 6, 0], sizes = [2, 1, 1, 32], strides = [1, 1, 1, 1]} : vector<2x8x8x32xf32> to vector<2x1x1x32xf32>
    %388 = vector.shape_cast %387 : vector<2x1x1x32xf32> to vector<2x1x32xf32>
    %389 = tpu.concatenate %366, %368, %370, %2, %372, %374, %376, %2, %378, %380, %382, %2, %384, %386, %388, %2 in 1 : vector<2x1x32xf32>, vector<2x1x32xf32>, vector<2x1x32xf32>, vector<2x1x32xf32>, vector<2x1x32xf32>, vector<2x1x32xf32>, vector<2x1x32xf32>, vector<2x1x32xf32>, vector<2x1x32xf32>, vector<2x1x32xf32>, vector<2x1x32xf32>, vector<2x1x32xf32>, vector<2x1x32xf32>, vector<2x1x32xf32>, vector<2x1x32xf32>, vector<2x1x32xf32> -> vector<2x16x32xf32>
    %390 = arith.truncf %389 : vector<2x16x32xf32> to vector<2x16x32xbf16>
    %391 = vector.shape_cast %390 : vector<2x16x32xbf16> to vector<32x32xbf16>
    %c11 = arith.constant 11 : index
    %c0_38 = arith.constant 0 : index
    %c0_39 = arith.constant 0 : index
    %392 = vector.load %arg1[%c11, %c0_38, %c0_39] : memref<16x32x64xbf16, #tpu.memory_space<vmem>>, vector<1x32x64xbf16>
    %393 = vector.shape_cast %392 : vector<1x32x64xbf16> to vector<32x64xbf16>
    %cst_40 = arith.constant dense<0.000000e+00> : vector<32x64xf32>
    %394 = tpu.matmul %391, %393, %cst_40 {dimension_numbers = #tpu.dot_dimension_numbers<[1], [0], [0], [1], [0, 0, 1, 1], [], []>} : vector<32x32xbf16>, vector<32x64xbf16>, vector<32x64xf32> -> vector<32x64xf32>
    %395 = arith.addf %364, %394 : vector<32x64xf32>
    %396 = vector.extract_strided_slice %1 {offsets = [0, 2, 1, 0], sizes = [2, 1, 1, 32], strides = [1, 1, 1, 1]} : vector<2x8x8x32xf32> to vector<2x1x1x32xf32>
    %397 = vector.shape_cast %396 : vector<2x1x1x32xf32> to vector<2x1x32xf32>
    %398 = vector.extract_strided_slice %1 {offsets = [0, 2, 3, 0], sizes = [2, 1, 1, 32], strides = [1, 1, 1, 1]} : vector<2x8x8x32xf32> to vector<2x1x1x32xf32>
    %399 = vector.shape_cast %398 : vector<2x1x1x32xf32> to vector<2x1x32xf32>
    %400 = vector.extract_strided_slice %1 {offsets = [0, 2, 5, 0], sizes = [2, 1, 1, 32], strides = [1, 1, 1, 1]} : vector<2x8x8x32xf32> to vector<2x1x1x32xf32>
    %401 = vector.shape_cast %400 : vector<2x1x1x32xf32> to vector<2x1x32xf32>
    %402 = vector.extract_strided_slice %1 {offsets = [0, 4, 1, 0], sizes = [2, 1, 1, 32], strides = [1, 1, 1, 1]} : vector<2x8x8x32xf32> to vector<2x1x1x32xf32>
    %403 = vector.shape_cast %402 : vector<2x1x1x32xf32> to vector<2x1x32xf32>
    %404 = vector.extract_strided_slice %1 {offsets = [0, 4, 3, 0], sizes = [2, 1, 1, 32], strides = [1, 1, 1, 1]} : vector<2x8x8x32xf32> to vector<2x1x1x32xf32>
    %405 = vector.shape_cast %404 : vector<2x1x1x32xf32> to vector<2x1x32xf32>
    %406 = vector.extract_strided_slice %1 {offsets = [0, 4, 5, 0], sizes = [2, 1, 1, 32], strides = [1, 1, 1, 1]} : vector<2x8x8x32xf32> to vector<2x1x1x32xf32>
    %407 = vector.shape_cast %406 : vector<2x1x1x32xf32> to vector<2x1x32xf32>
    %408 = vector.extract_strided_slice %1 {offsets = [0, 6, 1, 0], sizes = [2, 1, 1, 32], strides = [1, 1, 1, 1]} : vector<2x8x8x32xf32> to vector<2x1x1x32xf32>
    %409 = vector.shape_cast %408 : vector<2x1x1x32xf32> to vector<2x1x32xf32>
    %410 = vector.extract_strided_slice %1 {offsets = [0, 6, 3, 0], sizes = [2, 1, 1, 32], strides = [1, 1, 1, 1]} : vector<2x8x8x32xf32> to vector<2x1x1x32xf32>
    %411 = vector.shape_cast %410 : vector<2x1x1x32xf32> to vector<2x1x32xf32>
    %412 = vector.extract_strided_slice %1 {offsets = [0, 6, 5, 0], sizes = [2, 1, 1, 32], strides = [1, 1, 1, 1]} : vector<2x8x8x32xf32> to vector<2x1x1x32xf32>
    %413 = vector.shape_cast %412 : vector<2x1x1x32xf32> to vector<2x1x32xf32>
    %414 = tpu.concatenate %2, %397, %399, %401, %2, %403, %405, %407, %2, %409, %411, %413, %2, %2, %2, %2 in 1 : vector<2x1x32xf32>, vector<2x1x32xf32>, vector<2x1x32xf32>, vector<2x1x32xf32>, vector<2x1x32xf32>, vector<2x1x32xf32>, vector<2x1x32xf32>, vector<2x1x32xf32>, vector<2x1x32xf32>, vector<2x1x32xf32>, vector<2x1x32xf32>, vector<2x1x32xf32>, vector<2x1x32xf32>, vector<2x1x32xf32>, vector<2x1x32xf32>, vector<2x1x32xf32> -> vector<2x16x32xf32>
    %415 = arith.truncf %414 : vector<2x16x32xf32> to vector<2x16x32xbf16>
    %416 = vector.shape_cast %415 : vector<2x16x32xbf16> to vector<32x32xbf16>
    %c12 = arith.constant 12 : index
    %c0_41 = arith.constant 0 : index
    %c0_42 = arith.constant 0 : index
    %417 = vector.load %arg1[%c12, %c0_41, %c0_42] : memref<16x32x64xbf16, #tpu.memory_space<vmem>>, vector<1x32x64xbf16>
    %418 = vector.shape_cast %417 : vector<1x32x64xbf16> to vector<32x64xbf16>
    %cst_43 = arith.constant dense<0.000000e+00> : vector<32x64xf32>
    %419 = tpu.matmul %416, %418, %cst_43 {dimension_numbers = #tpu.dot_dimension_numbers<[1], [0], [0], [1], [0, 0, 1, 1], [], []>} : vector<32x32xbf16>, vector<32x64xbf16>, vector<32x64xf32> -> vector<32x64xf32>
    %420 = arith.addf %395, %419 : vector<32x64xf32>
    %421 = vector.extract_strided_slice %1 {offsets = [0, 2, 0, 0], sizes = [2, 1, 1, 32], strides = [1, 1, 1, 1]} : vector<2x8x8x32xf32> to vector<2x1x1x32xf32>
    %422 = vector.shape_cast %421 : vector<2x1x1x32xf32> to vector<2x1x32xf32>
    %423 = vector.extract_strided_slice %1 {offsets = [0, 2, 2, 0], sizes = [2, 1, 1, 32], strides = [1, 1, 1, 1]} : vector<2x8x8x32xf32> to vector<2x1x1x32xf32>
    %424 = vector.shape_cast %423 : vector<2x1x1x32xf32> to vector<2x1x32xf32>
    %425 = vector.extract_strided_slice %1 {offsets = [0, 2, 4, 0], sizes = [2, 1, 1, 32], strides = [1, 1, 1, 1]} : vector<2x8x8x32xf32> to vector<2x1x1x32xf32>
    %426 = vector.shape_cast %425 : vector<2x1x1x32xf32> to vector<2x1x32xf32>
    %427 = vector.extract_strided_slice %1 {offsets = [0, 2, 6, 0], sizes = [2, 1, 1, 32], strides = [1, 1, 1, 1]} : vector<2x8x8x32xf32> to vector<2x1x1x32xf32>
    %428 = vector.shape_cast %427 : vector<2x1x1x32xf32> to vector<2x1x32xf32>
    %429 = vector.extract_strided_slice %1 {offsets = [0, 4, 0, 0], sizes = [2, 1, 1, 32], strides = [1, 1, 1, 1]} : vector<2x8x8x32xf32> to vector<2x1x1x32xf32>
    %430 = vector.shape_cast %429 : vector<2x1x1x32xf32> to vector<2x1x32xf32>
    %431 = vector.extract_strided_slice %1 {offsets = [0, 4, 2, 0], sizes = [2, 1, 1, 32], strides = [1, 1, 1, 1]} : vector<2x8x8x32xf32> to vector<2x1x1x32xf32>
    %432 = vector.shape_cast %431 : vector<2x1x1x32xf32> to vector<2x1x32xf32>
    %433 = vector.extract_strided_slice %1 {offsets = [0, 4, 4, 0], sizes = [2, 1, 1, 32], strides = [1, 1, 1, 1]} : vector<2x8x8x32xf32> to vector<2x1x1x32xf32>
    %434 = vector.shape_cast %433 : vector<2x1x1x32xf32> to vector<2x1x32xf32>
    %435 = vector.extract_strided_slice %1 {offsets = [0, 4, 6, 0], sizes = [2, 1, 1, 32], strides = [1, 1, 1, 1]} : vector<2x8x8x32xf32> to vector<2x1x1x32xf32>
    %436 = vector.shape_cast %435 : vector<2x1x1x32xf32> to vector<2x1x32xf32>
    %437 = vector.extract_strided_slice %1 {offsets = [0, 6, 0, 0], sizes = [2, 1, 1, 32], strides = [1, 1, 1, 1]} : vector<2x8x8x32xf32> to vector<2x1x1x32xf32>
    %438 = vector.shape_cast %437 : vector<2x1x1x32xf32> to vector<2x1x32xf32>
    %439 = vector.extract_strided_slice %1 {offsets = [0, 6, 2, 0], sizes = [2, 1, 1, 32], strides = [1, 1, 1, 1]} : vector<2x8x8x32xf32> to vector<2x1x1x32xf32>
    %440 = vector.shape_cast %439 : vector<2x1x1x32xf32> to vector<2x1x32xf32>
    %441 = vector.extract_strided_slice %1 {offsets = [0, 6, 4, 0], sizes = [2, 1, 1, 32], strides = [1, 1, 1, 1]} : vector<2x8x8x32xf32> to vector<2x1x1x32xf32>
    %442 = vector.shape_cast %441 : vector<2x1x1x32xf32> to vector<2x1x32xf32>
    %443 = vector.extract_strided_slice %1 {offsets = [0, 6, 6, 0], sizes = [2, 1, 1, 32], strides = [1, 1, 1, 1]} : vector<2x8x8x32xf32> to vector<2x1x1x32xf32>
    %444 = vector.shape_cast %443 : vector<2x1x1x32xf32> to vector<2x1x32xf32>
    %445 = tpu.concatenate %422, %424, %426, %428, %430, %432, %434, %436, %438, %440, %442, %444, %2, %2, %2, %2 in 1 : vector<2x1x32xf32>, vector<2x1x32xf32>, vector<2x1x32xf32>, vector<2x1x32xf32>, vector<2x1x32xf32>, vector<2x1x32xf32>, vector<2x1x32xf32>, vector<2x1x32xf32>, vector<2x1x32xf32>, vector<2x1x32xf32>, vector<2x1x32xf32>, vector<2x1x32xf32>, vector<2x1x32xf32>, vector<2x1x32xf32>, vector<2x1x32xf32>, vector<2x1x32xf32> -> vector<2x16x32xf32>
    %446 = arith.truncf %445 : vector<2x16x32xf32> to vector<2x16x32xbf16>
    %447 = vector.shape_cast %446 : vector<2x16x32xbf16> to vector<32x32xbf16>
    %c13 = arith.constant 13 : index
    %c0_44 = arith.constant 0 : index
    %c0_45 = arith.constant 0 : index
    %448 = vector.load %arg1[%c13, %c0_44, %c0_45] : memref<16x32x64xbf16, #tpu.memory_space<vmem>>, vector<1x32x64xbf16>
    %449 = vector.shape_cast %448 : vector<1x32x64xbf16> to vector<32x64xbf16>
    %cst_46 = arith.constant dense<0.000000e+00> : vector<32x64xf32>
    %450 = tpu.matmul %447, %449, %cst_46 {dimension_numbers = #tpu.dot_dimension_numbers<[1], [0], [0], [1], [0, 0, 1, 1], [], []>} : vector<32x32xbf16>, vector<32x64xbf16>, vector<32x64xf32> -> vector<32x64xf32>
    %451 = arith.addf %420, %450 : vector<32x64xf32>
    %452 = vector.extract_strided_slice %1 {offsets = [0, 2, 1, 0], sizes = [2, 1, 1, 32], strides = [1, 1, 1, 1]} : vector<2x8x8x32xf32> to vector<2x1x1x32xf32>
    %453 = vector.shape_cast %452 : vector<2x1x1x32xf32> to vector<2x1x32xf32>
    %454 = vector.extract_strided_slice %1 {offsets = [0, 2, 3, 0], sizes = [2, 1, 1, 32], strides = [1, 1, 1, 1]} : vector<2x8x8x32xf32> to vector<2x1x1x32xf32>
    %455 = vector.shape_cast %454 : vector<2x1x1x32xf32> to vector<2x1x32xf32>
    %456 = vector.extract_strided_slice %1 {offsets = [0, 2, 5, 0], sizes = [2, 1, 1, 32], strides = [1, 1, 1, 1]} : vector<2x8x8x32xf32> to vector<2x1x1x32xf32>
    %457 = vector.shape_cast %456 : vector<2x1x1x32xf32> to vector<2x1x32xf32>
    %458 = vector.extract_strided_slice %1 {offsets = [0, 2, 7, 0], sizes = [2, 1, 1, 32], strides = [1, 1, 1, 1]} : vector<2x8x8x32xf32> to vector<2x1x1x32xf32>
    %459 = vector.shape_cast %458 : vector<2x1x1x32xf32> to vector<2x1x32xf32>
    %460 = vector.extract_strided_slice %1 {offsets = [0, 4, 1, 0], sizes = [2, 1, 1, 32], strides = [1, 1, 1, 1]} : vector<2x8x8x32xf32> to vector<2x1x1x32xf32>
    %461 = vector.shape_cast %460 : vector<2x1x1x32xf32> to vector<2x1x32xf32>
    %462 = vector.extract_strided_slice %1 {offsets = [0, 4, 3, 0], sizes = [2, 1, 1, 32], strides = [1, 1, 1, 1]} : vector<2x8x8x32xf32> to vector<2x1x1x32xf32>
    %463 = vector.shape_cast %462 : vector<2x1x1x32xf32> to vector<2x1x32xf32>
    %464 = vector.extract_strided_slice %1 {offsets = [0, 4, 5, 0], sizes = [2, 1, 1, 32], strides = [1, 1, 1, 1]} : vector<2x8x8x32xf32> to vector<2x1x1x32xf32>
    %465 = vector.shape_cast %464 : vector<2x1x1x32xf32> to vector<2x1x32xf32>
    %466 = vector.extract_strided_slice %1 {offsets = [0, 4, 7, 0], sizes = [2, 1, 1, 32], strides = [1, 1, 1, 1]} : vector<2x8x8x32xf32> to vector<2x1x1x32xf32>
    %467 = vector.shape_cast %466 : vector<2x1x1x32xf32> to vector<2x1x32xf32>
    %468 = vector.extract_strided_slice %1 {offsets = [0, 6, 1, 0], sizes = [2, 1, 1, 32], strides = [1, 1, 1, 1]} : vector<2x8x8x32xf32> to vector<2x1x1x32xf32>
    %469 = vector.shape_cast %468 : vector<2x1x1x32xf32> to vector<2x1x32xf32>
    %470 = vector.extract_strided_slice %1 {offsets = [0, 6, 3, 0], sizes = [2, 1, 1, 32], strides = [1, 1, 1, 1]} : vector<2x8x8x32xf32> to vector<2x1x1x32xf32>
    %471 = vector.shape_cast %470 : vector<2x1x1x32xf32> to vector<2x1x32xf32>
    %472 = vector.extract_strided_slice %1 {offsets = [0, 6, 5, 0], sizes = [2, 1, 1, 32], strides = [1, 1, 1, 1]} : vector<2x8x8x32xf32> to vector<2x1x1x32xf32>
    %473 = vector.shape_cast %472 : vector<2x1x1x32xf32> to vector<2x1x32xf32>
    %474 = vector.extract_strided_slice %1 {offsets = [0, 6, 7, 0], sizes = [2, 1, 1, 32], strides = [1, 1, 1, 1]} : vector<2x8x8x32xf32> to vector<2x1x1x32xf32>
    %475 = vector.shape_cast %474 : vector<2x1x1x32xf32> to vector<2x1x32xf32>
    %476 = tpu.concatenate %453, %455, %457, %459, %461, %463, %465, %467, %469, %471, %473, %475, %2, %2, %2, %2 in 1 : vector<2x1x32xf32>, vector<2x1x32xf32>, vector<2x1x32xf32>, vector<2x1x32xf32>, vector<2x1x32xf32>, vector<2x1x32xf32>, vector<2x1x32xf32>, vector<2x1x32xf32>, vector<2x1x32xf32>, vector<2x1x32xf32>, vector<2x1x32xf32>, vector<2x1x32xf32>, vector<2x1x32xf32>, vector<2x1x32xf32>, vector<2x1x32xf32>, vector<2x1x32xf32> -> vector<2x16x32xf32>
    %477 = arith.truncf %476 : vector<2x16x32xf32> to vector<2x16x32xbf16>
    %478 = vector.shape_cast %477 : vector<2x16x32xbf16> to vector<32x32xbf16>
    %c14 = arith.constant 14 : index
    %c0_47 = arith.constant 0 : index
    %c0_48 = arith.constant 0 : index
    %479 = vector.load %arg1[%c14, %c0_47, %c0_48] : memref<16x32x64xbf16, #tpu.memory_space<vmem>>, vector<1x32x64xbf16>
    %480 = vector.shape_cast %479 : vector<1x32x64xbf16> to vector<32x64xbf16>
    %cst_49 = arith.constant dense<0.000000e+00> : vector<32x64xf32>
    %481 = tpu.matmul %478, %480, %cst_49 {dimension_numbers = #tpu.dot_dimension_numbers<[1], [0], [0], [1], [0, 0, 1, 1], [], []>} : vector<32x32xbf16>, vector<32x64xbf16>, vector<32x64xf32> -> vector<32x64xf32>
    %482 = arith.addf %451, %481 : vector<32x64xf32>
    %483 = vector.extract_strided_slice %1 {offsets = [0, 2, 2, 0], sizes = [2, 1, 1, 32], strides = [1, 1, 1, 1]} : vector<2x8x8x32xf32> to vector<2x1x1x32xf32>
    %484 = vector.shape_cast %483 : vector<2x1x1x32xf32> to vector<2x1x32xf32>
    %485 = vector.extract_strided_slice %1 {offsets = [0, 2, 4, 0], sizes = [2, 1, 1, 32], strides = [1, 1, 1, 1]} : vector<2x8x8x32xf32> to vector<2x1x1x32xf32>
    %486 = vector.shape_cast %485 : vector<2x1x1x32xf32> to vector<2x1x32xf32>
    %487 = vector.extract_strided_slice %1 {offsets = [0, 2, 6, 0], sizes = [2, 1, 1, 32], strides = [1, 1, 1, 1]} : vector<2x8x8x32xf32> to vector<2x1x1x32xf32>
    %488 = vector.shape_cast %487 : vector<2x1x1x32xf32> to vector<2x1x32xf32>
    %489 = vector.extract_strided_slice %1 {offsets = [0, 4, 2, 0], sizes = [2, 1, 1, 32], strides = [1, 1, 1, 1]} : vector<2x8x8x32xf32> to vector<2x1x1x32xf32>
    %490 = vector.shape_cast %489 : vector<2x1x1x32xf32> to vector<2x1x32xf32>
    %491 = vector.extract_strided_slice %1 {offsets = [0, 4, 4, 0], sizes = [2, 1, 1, 32], strides = [1, 1, 1, 1]} : vector<2x8x8x32xf32> to vector<2x1x1x32xf32>
    %492 = vector.shape_cast %491 : vector<2x1x1x32xf32> to vector<2x1x32xf32>
    %493 = vector.extract_strided_slice %1 {offsets = [0, 4, 6, 0], sizes = [2, 1, 1, 32], strides = [1, 1, 1, 1]} : vector<2x8x8x32xf32> to vector<2x1x1x32xf32>
    %494 = vector.shape_cast %493 : vector<2x1x1x32xf32> to vector<2x1x32xf32>
    %495 = vector.extract_strided_slice %1 {offsets = [0, 6, 2, 0], sizes = [2, 1, 1, 32], strides = [1, 1, 1, 1]} : vector<2x8x8x32xf32> to vector<2x1x1x32xf32>
    %496 = vector.shape_cast %495 : vector<2x1x1x32xf32> to vector<2x1x32xf32>
    %497 = vector.extract_strided_slice %1 {offsets = [0, 6, 4, 0], sizes = [2, 1, 1, 32], strides = [1, 1, 1, 1]} : vector<2x8x8x32xf32> to vector<2x1x1x32xf32>
    %498 = vector.shape_cast %497 : vector<2x1x1x32xf32> to vector<2x1x32xf32>
    %499 = vector.extract_strided_slice %1 {offsets = [0, 6, 6, 0], sizes = [2, 1, 1, 32], strides = [1, 1, 1, 1]} : vector<2x8x8x32xf32> to vector<2x1x1x32xf32>
    %500 = vector.shape_cast %499 : vector<2x1x1x32xf32> to vector<2x1x32xf32>
    %501 = tpu.concatenate %484, %486, %488, %2, %490, %492, %494, %2, %496, %498, %500, %2, %2, %2, %2, %2 in 1 : vector<2x1x32xf32>, vector<2x1x32xf32>, vector<2x1x32xf32>, vector<2x1x32xf32>, vector<2x1x32xf32>, vector<2x1x32xf32>, vector<2x1x32xf32>, vector<2x1x32xf32>, vector<2x1x32xf32>, vector<2x1x32xf32>, vector<2x1x32xf32>, vector<2x1x32xf32>, vector<2x1x32xf32>, vector<2x1x32xf32>, vector<2x1x32xf32>, vector<2x1x32xf32> -> vector<2x16x32xf32>
    %502 = arith.truncf %501 : vector<2x16x32xf32> to vector<2x16x32xbf16>
    %503 = vector.shape_cast %502 : vector<2x16x32xbf16> to vector<32x32xbf16>
    %c15 = arith.constant 15 : index
    %c0_50 = arith.constant 0 : index
    %c0_51 = arith.constant 0 : index
    %504 = vector.load %arg1[%c15, %c0_50, %c0_51] : memref<16x32x64xbf16, #tpu.memory_space<vmem>>, vector<1x32x64xbf16>
    %505 = vector.shape_cast %504 : vector<1x32x64xbf16> to vector<32x64xbf16>
    %cst_52 = arith.constant dense<0.000000e+00> : vector<32x64xf32>
    %506 = tpu.matmul %503, %505, %cst_52 {dimension_numbers = #tpu.dot_dimension_numbers<[1], [0], [0], [1], [0, 0, 1, 1], [], []>} : vector<32x32xbf16>, vector<32x64xbf16>, vector<32x64xf32> -> vector<32x64xf32>
    %507 = arith.addf %482, %506 : vector<32x64xf32>
    %508 = vector.shape_cast %507 : vector<32x64xf32> to vector<2x16x64xf32>
    %cst_53 = arith.constant dense<0.000000e+00> : vector<2x64xf32>
    %509 = vector.multi_reduction <add>, %508, %cst_53 [1] : vector<2x16x64xf32> to vector<2x64xf32>
    %510 = vector.shape_cast %509 : vector<2x64xf32> to vector<2x1x64xf32>
    %cst_54 = arith.constant 6.250000e-02 : f32
    %511 = vector.broadcast %cst_54 : f32 to vector<2x1x64xf32>
    %512 = arith.mulf %510, %511 : vector<2x1x64xf32>
    %513 = arith.mulf %508, %508 : vector<2x16x64xf32>
    %cst_55 = arith.constant dense<0.000000e+00> : vector<2x64xf32>
    %514 = vector.multi_reduction <add>, %513, %cst_55 [1] : vector<2x16x64xf32> to vector<2x64xf32>
    %515 = vector.shape_cast %514 : vector<2x64xf32> to vector<2x1x64xf32>
    %cst_56 = arith.constant 6.250000e-02 : f32
    %516 = vector.broadcast %cst_56 : f32 to vector<2x1x64xf32>
    %517 = arith.mulf %515, %516 : vector<2x1x64xf32>
    %518 = vector.broadcast %512 : vector<2x1x64xf32> to vector<2x16x64xf32>
    %519 = arith.subf %508, %518 : vector<2x16x64xf32>
    %520 = arith.mulf %512, %512 : vector<2x1x64xf32>
    %521 = arith.subf %517, %520 : vector<2x1x64xf32>
    %cst_57 = arith.constant 9.99999974E-6 : f32
    %522 = vector.broadcast %cst_57 : f32 to vector<2x1x64xf32>
    %523 = arith.addf %521, %522 : vector<2x1x64xf32>
    %524 = math.rsqrt %523 : vector<2x1x64xf32>
    %525 = vector.broadcast %524 : vector<2x1x64xf32> to vector<2x16x64xf32>
    %526 = arith.mulf %519, %525 : vector<2x16x64xf32>
    %cst_58 = arith.constant 0.000000e+00 : f32
    %527 = vector.broadcast %cst_58 : f32 to vector<2x16x64xf32>
    %528 = arith.cmpf oge, %526, %527 : vector<2x16x64xf32>
    %cst_59 = arith.constant 2.000000e-01 : f32
    %529 = vector.broadcast %cst_59 : f32 to vector<2x16x64xf32>
    %530 = arith.mulf %529, %526 : vector<2x16x64xf32>
    %531 = arith.select %528, %526, %530 : vector<2x16x64xi1>, vector<2x16x64xf32>
    %532 = arith.truncf %531 : vector<2x16x64xf32> to vector<2x16x64xbf16>
    %c0_60 = arith.constant 0 : index
    %c0_61 = arith.constant 0 : index
    %c0_62 = arith.constant 0 : index
    %533 = vector.load %arg4[%c0_60, %c0_61, %c0_62] : memref<2x16x64xbf16, #tpu.memory_space<vmem>>, vector<2x16x64xbf16>
    tpu.vector_store %arg4[%c0_60, %c0_61, %c0_62], %532 {strides = array<i32>} : memref<2x16x64xbf16, #tpu.memory_space<vmem>>, vector<2x16x64xbf16>,
    %534 = vector.shape_cast %531 : vector<2x16x64xf32> to vector<2x4x4x64xf32>
    %cst_63 = arith.constant 0.000000e+00 : f32
    %535 = vector.broadcast %cst_63 : f32 to vector<2x1x64xf32>
    %cst_64 = arith.constant 0.000000e+00 : f32
    %536 = vector.broadcast %cst_64 : f32 to vector<8x64xf32>
    %537 = vector.extract_strided_slice %534 {offsets = [0, 1, 1, 0], sizes = [2, 1, 1, 64], strides = [1, 1, 1, 1]} : vector<2x4x4x64xf32> to vector<2x1x1x64xf32>
    %538 = vector.shape_cast %537 : vector<2x1x1x64xf32> to vector<2x1x64xf32>
    %539 = tpu.concatenate %535, %535, %535, %538 in 1 : vector<2x1x64xf32>, vector<2x1x64xf32>, vector<2x1x64xf32>, vector<2x1x64xf32> -> vector<2x4x64xf32>
    %540 = arith.truncf %539 : vector<2x4x64xf32> to vector<2x4x64xbf16>
    %541 = vector.shape_cast %540 : vector<2x4x64xbf16> to vector<8x64xbf16>
    %c0_65 = arith.constant 0 : index
    %c0_66 = arith.constant 0 : index
    %c0_67 = arith.constant 0 : index
    %542 = vector.load %arg2[%c0_65, %c0_66, %c0_67] : memref<16x64x64xbf16, #tpu.memory_space<vmem>>, vector<1x64x64xbf16>
    %543 = vector.shape_cast %542 : vector<1x64x64xbf16> to vector<64x64xbf16>
    %cst_68 = arith.constant dense<0.000000e+00> : vector<8x64xf32>
    %544 = tpu.matmul %541, %543, %cst_68 {dimension_numbers = #tpu.dot_dimension_numbers<[1], [0], [0], [1], [0, 0, 1, 1], [], []>} : vector<8x64xbf16>, vector<64x64xbf16>, vector<8x64xf32> -> vector<8x64xf32>
    %545 = arith.addf %536, %544 : vector<8x64xf32>
    %546 = vector.extract_strided_slice %534 {offsets = [0, 1, 0, 0], sizes = [2, 1, 1, 64], strides = [1, 1, 1, 1]} : vector<2x4x4x64xf32> to vector<2x1x1x64xf32>
    %547 = vector.shape_cast %546 : vector<2x1x1x64xf32> to vector<2x1x64xf32>
    %548 = vector.extract_strided_slice %534 {offsets = [0, 1, 2, 0], sizes = [2, 1, 1, 64], strides = [1, 1, 1, 1]} : vector<2x4x4x64xf32> to vector<2x1x1x64xf32>
    %549 = vector.shape_cast %548 : vector<2x1x1x64xf32> to vector<2x1x64xf32>
    %550 = tpu.concatenate %535, %535, %547, %549 in 1 : vector<2x1x64xf32>, vector<2x1x64xf32>, vector<2x1x64xf32>, vector<2x1x64xf32> -> vector<2x4x64xf32>
    %551 = arith.truncf %550 : vector<2x4x64xf32> to vector<2x4x64xbf16>
    %552 = vector.shape_cast %551 : vector<2x4x64xbf16> to vector<8x64xbf16>
    %c1_69 = arith.constant 1 : index
    %c0_70 = arith.constant 0 : index
    %c0_71 = arith.constant 0 : index
    %553 = vector.load %arg2[%c1_69, %c0_70, %c0_71] : memref<16x64x64xbf16, #tpu.memory_space<vmem>>, vector<1x64x64xbf16>
    %554 = vector.shape_cast %553 : vector<1x64x64xbf16> to vector<64x64xbf16>
    %cst_72 = arith.constant dense<0.000000e+00> : vector<8x64xf32>
    %555 = tpu.matmul %552, %554, %cst_72 {dimension_numbers = #tpu.dot_dimension_numbers<[1], [0], [0], [1], [0, 0, 1, 1], [], []>} : vector<8x64xbf16>, vector<64x64xbf16>, vector<8x64xf32> -> vector<8x64xf32>
    %556 = arith.addf %545, %555 : vector<8x64xf32>
    %557 = vector.extract_strided_slice %534 {offsets = [0, 1, 1, 0], sizes = [2, 1, 1, 64], strides = [1, 1, 1, 1]} : vector<2x4x4x64xf32> to vector<2x1x1x64xf32>
    %558 = vector.shape_cast %557 : vector<2x1x1x64xf32> to vector<2x1x64xf32>
    %559 = vector.extract_strided_slice %534 {offsets = [0, 1, 3, 0], sizes = [2, 1, 1, 64], strides = [1, 1, 1, 1]} : vector<2x4x4x64xf32> to vector<2x1x1x64xf32>
    %560 = vector.shape_cast %559 : vector<2x1x1x64xf32> to vector<2x1x64xf32>
    %561 = tpu.concatenate %535, %535, %558, %560 in 1 : vector<2x1x64xf32>, vector<2x1x64xf32>, vector<2x1x64xf32>, vector<2x1x64xf32> -> vector<2x4x64xf32>
    %562 = arith.truncf %561 : vector<2x4x64xf32> to vector<2x4x64xbf16>
    %563 = vector.shape_cast %562 : vector<2x4x64xbf16> to vector<8x64xbf16>
    %c2_73 = arith.constant 2 : index
    %c0_74 = arith.constant 0 : index
    %c0_75 = arith.constant 0 : index
    %564 = vector.load %arg2[%c2_73, %c0_74, %c0_75] : memref<16x64x64xbf16, #tpu.memory_space<vmem>>, vector<1x64x64xbf16>
    %565 = vector.shape_cast %564 : vector<1x64x64xbf16> to vector<64x64xbf16>
    %cst_76 = arith.constant dense<0.000000e+00> : vector<8x64xf32>
    %566 = tpu.matmul %563, %565, %cst_76 {dimension_numbers = #tpu.dot_dimension_numbers<[1], [0], [0], [1], [0, 0, 1, 1], [], []>} : vector<8x64xbf16>, vector<64x64xbf16>, vector<8x64xf32> -> vector<8x64xf32>
    %567 = arith.addf %556, %566 : vector<8x64xf32>
    %568 = vector.extract_strided_slice %534 {offsets = [0, 1, 2, 0], sizes = [2, 1, 1, 64], strides = [1, 1, 1, 1]} : vector<2x4x4x64xf32> to vector<2x1x1x64xf32>
    %569 = vector.shape_cast %568 : vector<2x1x1x64xf32> to vector<2x1x64xf32>
    %570 = tpu.concatenate %535, %535, %569, %535 in 1 : vector<2x1x64xf32>, vector<2x1x64xf32>, vector<2x1x64xf32>, vector<2x1x64xf32> -> vector<2x4x64xf32>
    %571 = arith.truncf %570 : vector<2x4x64xf32> to vector<2x4x64xbf16>
    %572 = vector.shape_cast %571 : vector<2x4x64xbf16> to vector<8x64xbf16>
    %c3_77 = arith.constant 3 : index
    %c0_78 = arith.constant 0 : index
    %c0_79 = arith.constant 0 : index
    %573 = vector.load %arg2[%c3_77, %c0_78, %c0_79] : memref<16x64x64xbf16, #tpu.memory_space<vmem>>, vector<1x64x64xbf16>
    %574 = vector.shape_cast %573 : vector<1x64x64xbf16> to vector<64x64xbf16>
    %cst_80 = arith.constant dense<0.000000e+00> : vector<8x64xf32>
    %575 = tpu.matmul %572, %574, %cst_80 {dimension_numbers = #tpu.dot_dimension_numbers<[1], [0], [0], [1], [0, 0, 1, 1], [], []>} : vector<8x64xbf16>, vector<64x64xbf16>, vector<8x64xf32> -> vector<8x64xf32>
    %576 = arith.addf %567, %575 : vector<8x64xf32>
    %577 = vector.extract_strided_slice %534 {offsets = [0, 0, 1, 0], sizes = [2, 1, 1, 64], strides = [1, 1, 1, 1]} : vector<2x4x4x64xf32> to vector<2x1x1x64xf32>
    %578 = vector.shape_cast %577 : vector<2x1x1x64xf32> to vector<2x1x64xf32>
    %579 = vector.extract_strided_slice %534 {offsets = [0, 2, 1, 0], sizes = [2, 1, 1, 64], strides = [1, 1, 1, 1]} : vector<2x4x4x64xf32> to vector<2x1x1x64xf32>
    %580 = vector.shape_cast %579 : vector<2x1x1x64xf32> to vector<2x1x64xf32>
    %581 = tpu.concatenate %535, %578, %535, %580 in 1 : vector<2x1x64xf32>, vector<2x1x64xf32>, vector<2x1x64xf32>, vector<2x1x64xf32> -> vector<2x4x64xf32>
    %582 = arith.truncf %581 : vector<2x4x64xf32> to vector<2x4x64xbf16>
    %583 = vector.shape_cast %582 : vector<2x4x64xbf16> to vector<8x64xbf16>
    %c4_81 = arith.constant 4 : index
    %c0_82 = arith.constant 0 : index
    %c0_83 = arith.constant 0 : index
    %584 = vector.load %arg2[%c4_81, %c0_82, %c0_83] : memref<16x64x64xbf16, #tpu.memory_space<vmem>>, vector<1x64x64xbf16>
    %585 = vector.shape_cast %584 : vector<1x64x64xbf16> to vector<64x64xbf16>
    %cst_84 = arith.constant dense<0.000000e+00> : vector<8x64xf32>
    %586 = tpu.matmul %583, %585, %cst_84 {dimension_numbers = #tpu.dot_dimension_numbers<[1], [0], [0], [1], [0, 0, 1, 1], [], []>} : vector<8x64xbf16>, vector<64x64xbf16>, vector<8x64xf32> -> vector<8x64xf32>
    %587 = arith.addf %576, %586 : vector<8x64xf32>
    %588 = vector.extract_strided_slice %534 {offsets = [0, 0, 0, 0], sizes = [2, 1, 1, 64], strides = [1, 1, 1, 1]} : vector<2x4x4x64xf32> to vector<2x1x1x64xf32>
    %589 = vector.shape_cast %588 : vector<2x1x1x64xf32> to vector<2x1x64xf32>
    %590 = vector.extract_strided_slice %534 {offsets = [0, 0, 2, 0], sizes = [2, 1, 1, 64], strides = [1, 1, 1, 1]} : vector<2x4x4x64xf32> to vector<2x1x1x64xf32>
    %591 = vector.shape_cast %590 : vector<2x1x1x64xf32> to vector<2x1x64xf32>
    %592 = vector.extract_strided_slice %534 {offsets = [0, 2, 0, 0], sizes = [2, 1, 1, 64], strides = [1, 1, 1, 1]} : vector<2x4x4x64xf32> to vector<2x1x1x64xf32>
    %593 = vector.shape_cast %592 : vector<2x1x1x64xf32> to vector<2x1x64xf32>
    %594 = vector.extract_strided_slice %534 {offsets = [0, 2, 2, 0], sizes = [2, 1, 1, 64], strides = [1, 1, 1, 1]} : vector<2x4x4x64xf32> to vector<2x1x1x64xf32>
    %595 = vector.shape_cast %594 : vector<2x1x1x64xf32> to vector<2x1x64xf32>
    %596 = tpu.concatenate %589, %591, %593, %595 in 1 : vector<2x1x64xf32>, vector<2x1x64xf32>, vector<2x1x64xf32>, vector<2x1x64xf32> -> vector<2x4x64xf32>
    %597 = arith.truncf %596 : vector<2x4x64xf32> to vector<2x4x64xbf16>
    %598 = vector.shape_cast %597 : vector<2x4x64xbf16> to vector<8x64xbf16>
    %c5_85 = arith.constant 5 : index
    %c0_86 = arith.constant 0 : index
    %c0_87 = arith.constant 0 : index
    %599 = vector.load %arg2[%c5_85, %c0_86, %c0_87] : memref<16x64x64xbf16, #tpu.memory_space<vmem>>, vector<1x64x64xbf16>
    %600 = vector.shape_cast %599 : vector<1x64x64xbf16> to vector<64x64xbf16>
    %cst_88 = arith.constant dense<0.000000e+00> : vector<8x64xf32>
    %601 = tpu.matmul %598, %600, %cst_88 {dimension_numbers = #tpu.dot_dimension_numbers<[1], [0], [0], [1], [0, 0, 1, 1], [], []>} : vector<8x64xbf16>, vector<64x64xbf16>, vector<8x64xf32> -> vector<8x64xf32>
    %602 = arith.addf %587, %601 : vector<8x64xf32>
    %603 = vector.extract_strided_slice %534 {offsets = [0, 0, 1, 0], sizes = [2, 1, 1, 64], strides = [1, 1, 1, 1]} : vector<2x4x4x64xf32> to vector<2x1x1x64xf32>
    %604 = vector.shape_cast %603 : vector<2x1x1x64xf32> to vector<2x1x64xf32>
    %605 = vector.extract_strided_slice %534 {offsets = [0, 0, 3, 0], sizes = [2, 1, 1, 64], strides = [1, 1, 1, 1]} : vector<2x4x4x64xf32> to vector<2x1x1x64xf32>
    %606 = vector.shape_cast %605 : vector<2x1x1x64xf32> to vector<2x1x64xf32>
    %607 = vector.extract_strided_slice %534 {offsets = [0, 2, 1, 0], sizes = [2, 1, 1, 64], strides = [1, 1, 1, 1]} : vector<2x4x4x64xf32> to vector<2x1x1x64xf32>
    %608 = vector.shape_cast %607 : vector<2x1x1x64xf32> to vector<2x1x64xf32>
    %609 = vector.extract_strided_slice %534 {offsets = [0, 2, 3, 0], sizes = [2, 1, 1, 64], strides = [1, 1, 1, 1]} : vector<2x4x4x64xf32> to vector<2x1x1x64xf32>
    %610 = vector.shape_cast %609 : vector<2x1x1x64xf32> to vector<2x1x64xf32>
    %611 = tpu.concatenate %604, %606, %608, %610 in 1 : vector<2x1x64xf32>, vector<2x1x64xf32>, vector<2x1x64xf32>, vector<2x1x64xf32> -> vector<2x4x64xf32>
    %612 = arith.truncf %611 : vector<2x4x64xf32> to vector<2x4x64xbf16>
    %613 = vector.shape_cast %612 : vector<2x4x64xbf16> to vector<8x64xbf16>
    %c6_89 = arith.constant 6 : index
    %c0_90 = arith.constant 0 : index
    %c0_91 = arith.constant 0 : index
    %614 = vector.load %arg2[%c6_89, %c0_90, %c0_91] : memref<16x64x64xbf16, #tpu.memory_space<vmem>>, vector<1x64x64xbf16>
    %615 = vector.shape_cast %614 : vector<1x64x64xbf16> to vector<64x64xbf16>
    %cst_92 = arith.constant dense<0.000000e+00> : vector<8x64xf32>
    %616 = tpu.matmul %613, %615, %cst_92 {dimension_numbers = #tpu.dot_dimension_numbers<[1], [0], [0], [1], [0, 0, 1, 1], [], []>} : vector<8x64xbf16>, vector<64x64xbf16>, vector<8x64xf32> -> vector<8x64xf32>
    %617 = arith.addf %602, %616 : vector<8x64xf32>
    %618 = vector.extract_strided_slice %534 {offsets = [0, 0, 2, 0], sizes = [2, 1, 1, 64], strides = [1, 1, 1, 1]} : vector<2x4x4x64xf32> to vector<2x1x1x64xf32>
    %619 = vector.shape_cast %618 : vector<2x1x1x64xf32> to vector<2x1x64xf32>
    %620 = vector.extract_strided_slice %534 {offsets = [0, 2, 2, 0], sizes = [2, 1, 1, 64], strides = [1, 1, 1, 1]} : vector<2x4x4x64xf32> to vector<2x1x1x64xf32>
    %621 = vector.shape_cast %620 : vector<2x1x1x64xf32> to vector<2x1x64xf32>
    %622 = tpu.concatenate %619, %535, %621, %535 in 1 : vector<2x1x64xf32>, vector<2x1x64xf32>, vector<2x1x64xf32>, vector<2x1x64xf32> -> vector<2x4x64xf32>
    %623 = arith.truncf %622 : vector<2x4x64xf32> to vector<2x4x64xbf16>
    %624 = vector.shape_cast %623 : vector<2x4x64xbf16> to vector<8x64xbf16>
    %c7_93 = arith.constant 7 : index
    %c0_94 = arith.constant 0 : index
    %c0_95 = arith.constant 0 : index
    %625 = vector.load %arg2[%c7_93, %c0_94, %c0_95] : memref<16x64x64xbf16, #tpu.memory_space<vmem>>, vector<1x64x64xbf16>
    %626 = vector.shape_cast %625 : vector<1x64x64xbf16> to vector<64x64xbf16>
    %cst_96 = arith.constant dense<0.000000e+00> : vector<8x64xf32>
    %627 = tpu.matmul %624, %626, %cst_96 {dimension_numbers = #tpu.dot_dimension_numbers<[1], [0], [0], [1], [0, 0, 1, 1], [], []>} : vector<8x64xbf16>, vector<64x64xbf16>, vector<8x64xf32> -> vector<8x64xf32>
    %628 = arith.addf %617, %627 : vector<8x64xf32>
    %629 = vector.extract_strided_slice %534 {offsets = [0, 1, 1, 0], sizes = [2, 1, 1, 64], strides = [1, 1, 1, 1]} : vector<2x4x4x64xf32> to vector<2x1x1x64xf32>
    %630 = vector.shape_cast %629 : vector<2x1x1x64xf32> to vector<2x1x64xf32>
    %631 = vector.extract_strided_slice %534 {offsets = [0, 3, 1, 0], sizes = [2, 1, 1, 64], strides = [1, 1, 1, 1]} : vector<2x4x4x64xf32> to vector<2x1x1x64xf32>
    %632 = vector.shape_cast %631 : vector<2x1x1x64xf32> to vector<2x1x64xf32>
    %633 = tpu.concatenate %535, %630, %535, %632 in 1 : vector<2x1x64xf32>, vector<2x1x64xf32>, vector<2x1x64xf32>, vector<2x1x64xf32> -> vector<2x4x64xf32>
    %634 = arith.truncf %633 : vector<2x4x64xf32> to vector<2x4x64xbf16>
    %635 = vector.shape_cast %634 : vector<2x4x64xbf16> to vector<8x64xbf16>
    %c8_97 = arith.constant 8 : index
    %c0_98 = arith.constant 0 : index
    %c0_99 = arith.constant 0 : index
    %636 = vector.load %arg2[%c8_97, %c0_98, %c0_99] : memref<16x64x64xbf16, #tpu.memory_space<vmem>>, vector<1x64x64xbf16>
    %637 = vector.shape_cast %636 : vector<1x64x64xbf16> to vector<64x64xbf16>
    %cst_100 = arith.constant dense<0.000000e+00> : vector<8x64xf32>
    %638 = tpu.matmul %635, %637, %cst_100 {dimension_numbers = #tpu.dot_dimension_numbers<[1], [0], [0], [1], [0, 0, 1, 1], [], []>} : vector<8x64xbf16>, vector<64x64xbf16>, vector<8x64xf32> -> vector<8x64xf32>
    %639 = arith.addf %628, %638 : vector<8x64xf32>
    %640 = vector.extract_strided_slice %534 {offsets = [0, 1, 0, 0], sizes = [2, 1, 1, 64], strides = [1, 1, 1, 1]} : vector<2x4x4x64xf32> to vector<2x1x1x64xf32>
    %641 = vector.shape_cast %640 : vector<2x1x1x64xf32> to vector<2x1x64xf32>
    %642 = vector.extract_strided_slice %534 {offsets = [0, 1, 2, 0], sizes = [2, 1, 1, 64], strides = [1, 1, 1, 1]} : vector<2x4x4x64xf32> to vector<2x1x1x64xf32>
    %643 = vector.shape_cast %642 : vector<2x1x1x64xf32> to vector<2x1x64xf32>
    %644 = vector.extract_strided_slice %534 {offsets = [0, 3, 0, 0], sizes = [2, 1, 1, 64], strides = [1, 1, 1, 1]} : vector<2x4x4x64xf32> to vector<2x1x1x64xf32>
    %645 = vector.shape_cast %644 : vector<2x1x1x64xf32> to vector<2x1x64xf32>
    %646 = vector.extract_strided_slice %534 {offsets = [0, 3, 2, 0], sizes = [2, 1, 1, 64], strides = [1, 1, 1, 1]} : vector<2x4x4x64xf32> to vector<2x1x1x64xf32>
    %647 = vector.shape_cast %646 : vector<2x1x1x64xf32> to vector<2x1x64xf32>
    %648 = tpu.concatenate %641, %643, %645, %647 in 1 : vector<2x1x64xf32>, vector<2x1x64xf32>, vector<2x1x64xf32>, vector<2x1x64xf32> -> vector<2x4x64xf32>
    %649 = arith.truncf %648 : vector<2x4x64xf32> to vector<2x4x64xbf16>
    %650 = vector.shape_cast %649 : vector<2x4x64xbf16> to vector<8x64xbf16>
    %c9_101 = arith.constant 9 : index
    %c0_102 = arith.constant 0 : index
    %c0_103 = arith.constant 0 : index
    %651 = vector.load %arg2[%c9_101, %c0_102, %c0_103] : memref<16x64x64xbf16, #tpu.memory_space<vmem>>, vector<1x64x64xbf16>
    %652 = vector.shape_cast %651 : vector<1x64x64xbf16> to vector<64x64xbf16>
    %cst_104 = arith.constant dense<0.000000e+00> : vector<8x64xf32>
    %653 = tpu.matmul %650, %652, %cst_104 {dimension_numbers = #tpu.dot_dimension_numbers<[1], [0], [0], [1], [0, 0, 1, 1], [], []>} : vector<8x64xbf16>, vector<64x64xbf16>, vector<8x64xf32> -> vector<8x64xf32>
    %654 = arith.addf %639, %653 : vector<8x64xf32>
    %655 = vector.extract_strided_slice %534 {offsets = [0, 1, 1, 0], sizes = [2, 1, 1, 64], strides = [1, 1, 1, 1]} : vector<2x4x4x64xf32> to vector<2x1x1x64xf32>
    %656 = vector.shape_cast %655 : vector<2x1x1x64xf32> to vector<2x1x64xf32>
    %657 = vector.extract_strided_slice %534 {offsets = [0, 1, 3, 0], sizes = [2, 1, 1, 64], strides = [1, 1, 1, 1]} : vector<2x4x4x64xf32> to vector<2x1x1x64xf32>
    %658 = vector.shape_cast %657 : vector<2x1x1x64xf32> to vector<2x1x64xf32>
    %659 = vector.extract_strided_slice %534 {offsets = [0, 3, 1, 0], sizes = [2, 1, 1, 64], strides = [1, 1, 1, 1]} : vector<2x4x4x64xf32> to vector<2x1x1x64xf32>
    %660 = vector.shape_cast %659 : vector<2x1x1x64xf32> to vector<2x1x64xf32>
    %661 = vector.extract_strided_slice %534 {offsets = [0, 3, 3, 0], sizes = [2, 1, 1, 64], strides = [1, 1, 1, 1]} : vector<2x4x4x64xf32> to vector<2x1x1x64xf32>
    %662 = vector.shape_cast %661 : vector<2x1x1x64xf32> to vector<2x1x64xf32>
    %663 = tpu.concatenate %656, %658, %660, %662 in 1 : vector<2x1x64xf32>, vector<2x1x64xf32>, vector<2x1x64xf32>, vector<2x1x64xf32> -> vector<2x4x64xf32>
    %664 = arith.truncf %663 : vector<2x4x64xf32> to vector<2x4x64xbf16>
    %665 = vector.shape_cast %664 : vector<2x4x64xbf16> to vector<8x64xbf16>
    %c10_105 = arith.constant 10 : index
    %c0_106 = arith.constant 0 : index
    %c0_107 = arith.constant 0 : index
    %666 = vector.load %arg2[%c10_105, %c0_106, %c0_107] : memref<16x64x64xbf16, #tpu.memory_space<vmem>>, vector<1x64x64xbf16>
    %667 = vector.shape_cast %666 : vector<1x64x64xbf16> to vector<64x64xbf16>
    %cst_108 = arith.constant dense<0.000000e+00> : vector<8x64xf32>
    %668 = tpu.matmul %665, %667, %cst_108 {dimension_numbers = #tpu.dot_dimension_numbers<[1], [0], [0], [1], [0, 0, 1, 1], [], []>} : vector<8x64xbf16>, vector<64x64xbf16>, vector<8x64xf32> -> vector<8x64xf32>
    %669 = arith.addf %654, %668 : vector<8x64xf32>
    %670 = vector.extract_strided_slice %534 {offsets = [0, 1, 2, 0], sizes = [2, 1, 1, 64], strides = [1, 1, 1, 1]} : vector<2x4x4x64xf32> to vector<2x1x1x64xf32>
    %671 = vector.shape_cast %670 : vector<2x1x1x64xf32> to vector<2x1x64xf32>
    %672 = vector.extract_strided_slice %534 {offsets = [0, 3, 2, 0], sizes = [2, 1, 1, 64], strides = [1, 1, 1, 1]} : vector<2x4x4x64xf32> to vector<2x1x1x64xf32>
    %673 = vector.shape_cast %672 : vector<2x1x1x64xf32> to vector<2x1x64xf32>
    %674 = tpu.concatenate %671, %535, %673, %535 in 1 : vector<2x1x64xf32>, vector<2x1x64xf32>, vector<2x1x64xf32>, vector<2x1x64xf32> -> vector<2x4x64xf32>
    %675 = arith.truncf %674 : vector<2x4x64xf32> to vector<2x4x64xbf16>
    %676 = vector.shape_cast %675 : vector<2x4x64xbf16> to vector<8x64xbf16>
    %c11_109 = arith.constant 11 : index
    %c0_110 = arith.constant 0 : index
    %c0_111 = arith.constant 0 : index
    %677 = vector.load %arg2[%c11_109, %c0_110, %c0_111] : memref<16x64x64xbf16, #tpu.memory_space<vmem>>, vector<1x64x64xbf16>
    %678 = vector.shape_cast %677 : vector<1x64x64xbf16> to vector<64x64xbf16>
    %cst_112 = arith.constant dense<0.000000e+00> : vector<8x64xf32>
    %679 = tpu.matmul %676, %678, %cst_112 {dimension_numbers = #tpu.dot_dimension_numbers<[1], [0], [0], [1], [0, 0, 1, 1], [], []>} : vector<8x64xbf16>, vector<64x64xbf16>, vector<8x64xf32> -> vector<8x64xf32>
    %680 = arith.addf %669, %679 : vector<8x64xf32>
    %681 = vector.extract_strided_slice %534 {offsets = [0, 2, 1, 0], sizes = [2, 1, 1, 64], strides = [1, 1, 1, 1]} : vector<2x4x4x64xf32> to vector<2x1x1x64xf32>
    %682 = vector.shape_cast %681 : vector<2x1x1x64xf32> to vector<2x1x64xf32>
    %683 = tpu.concatenate %535, %682, %535, %535 in 1 : vector<2x1x64xf32>, vector<2x1x64xf32>, vector<2x1x64xf32>, vector<2x1x64xf32> -> vector<2x4x64xf32>
    %684 = arith.truncf %683 : vector<2x4x64xf32> to vector<2x4x64xbf16>
    %685 = vector.shape_cast %684 : vector<2x4x64xbf16> to vector<8x64xbf16>
    %c12_113 = arith.constant 12 : index
    %c0_114 = arith.constant 0 : index
    %c0_115 = arith.constant 0 : index
    %686 = vector.load %arg2[%c12_113, %c0_114, %c0_115] : memref<16x64x64xbf16, #tpu.memory_space<vmem>>, vector<1x64x64xbf16>
    %687 = vector.shape_cast %686 : vector<1x64x64xbf16> to vector<64x64xbf16>
    %cst_116 = arith.constant dense<0.000000e+00> : vector<8x64xf32>
    %688 = tpu.matmul %685, %687, %cst_116 {dimension_numbers = #tpu.dot_dimension_numbers<[1], [0], [0], [1], [0, 0, 1, 1], [], []>} : vector<8x64xbf16>, vector<64x64xbf16>, vector<8x64xf32> -> vector<8x64xf32>
    %689 = arith.addf %680, %688 : vector<8x64xf32>
    %690 = vector.extract_strided_slice %534 {offsets = [0, 2, 0, 0], sizes = [2, 1, 1, 64], strides = [1, 1, 1, 1]} : vector<2x4x4x64xf32> to vector<2x1x1x64xf32>
    %691 = vector.shape_cast %690 : vector<2x1x1x64xf32> to vector<2x1x64xf32>
    %692 = vector.extract_strided_slice %534 {offsets = [0, 2, 2, 0], sizes = [2, 1, 1, 64], strides = [1, 1, 1, 1]} : vector<2x4x4x64xf32> to vector<2x1x1x64xf32>
    %693 = vector.shape_cast %692 : vector<2x1x1x64xf32> to vector<2x1x64xf32>
    %694 = tpu.concatenate %691, %693, %535, %535 in 1 : vector<2x1x64xf32>, vector<2x1x64xf32>, vector<2x1x64xf32>, vector<2x1x64xf32> -> vector<2x4x64xf32>
    %695 = arith.truncf %694 : vector<2x4x64xf32> to vector<2x4x64xbf16>
    %696 = vector.shape_cast %695 : vector<2x4x64xbf16> to vector<8x64xbf16>
    %c13_117 = arith.constant 13 : index
    %c0_118 = arith.constant 0 : index
    %c0_119 = arith.constant 0 : index
    %697 = vector.load %arg2[%c13_117, %c0_118, %c0_119] : memref<16x64x64xbf16, #tpu.memory_space<vmem>>, vector<1x64x64xbf16>
    %698 = vector.shape_cast %697 : vector<1x64x64xbf16> to vector<64x64xbf16>
    %cst_120 = arith.constant dense<0.000000e+00> : vector<8x64xf32>
    %699 = tpu.matmul %696, %698, %cst_120 {dimension_numbers = #tpu.dot_dimension_numbers<[1], [0], [0], [1], [0, 0, 1, 1], [], []>} : vector<8x64xbf16>, vector<64x64xbf16>, vector<8x64xf32> -> vector<8x64xf32>
    %700 = arith.addf %689, %699 : vector<8x64xf32>
    %701 = vector.extract_strided_slice %534 {offsets = [0, 2, 1, 0], sizes = [2, 1, 1, 64], strides = [1, 1, 1, 1]} : vector<2x4x4x64xf32> to vector<2x1x1x64xf32>
    %702 = vector.shape_cast %701 : vector<2x1x1x64xf32> to vector<2x1x64xf32>
    %703 = vector.extract_strided_slice %534 {offsets = [0, 2, 3, 0], sizes = [2, 1, 1, 64], strides = [1, 1, 1, 1]} : vector<2x4x4x64xf32> to vector<2x1x1x64xf32>
    %704 = vector.shape_cast %703 : vector<2x1x1x64xf32> to vector<2x1x64xf32>
    %705 = tpu.concatenate %702, %704, %535, %535 in 1 : vector<2x1x64xf32>, vector<2x1x64xf32>, vector<2x1x64xf32>, vector<2x1x64xf32> -> vector<2x4x64xf32>
    %706 = arith.truncf %705 : vector<2x4x64xf32> to vector<2x4x64xbf16>
    %707 = vector.shape_cast %706 : vector<2x4x64xbf16> to vector<8x64xbf16>
    %c14_121 = arith.constant 14 : index
    %c0_122 = arith.constant 0 : index
    %c0_123 = arith.constant 0 : index
    %708 = vector.load %arg2[%c14_121, %c0_122, %c0_123] : memref<16x64x64xbf16, #tpu.memory_space<vmem>>, vector<1x64x64xbf16>
    %709 = vector.shape_cast %708 : vector<1x64x64xbf16> to vector<64x64xbf16>
    %cst_124 = arith.constant dense<0.000000e+00> : vector<8x64xf32>
    %710 = tpu.matmul %707, %709, %cst_124 {dimension_numbers = #tpu.dot_dimension_numbers<[1], [0], [0], [1], [0, 0, 1, 1], [], []>} : vector<8x64xbf16>, vector<64x64xbf16>, vector<8x64xf32> -> vector<8x64xf32>
    %711 = arith.addf %700, %710 : vector<8x64xf32>
    %712 = vector.extract_strided_slice %534 {offsets = [0, 2, 2, 0], sizes = [2, 1, 1, 64], strides = [1, 1, 1, 1]} : vector<2x4x4x64xf32> to vector<2x1x1x64xf32>
    %713 = vector.shape_cast %712 : vector<2x1x1x64xf32> to vector<2x1x64xf32>
    %714 = tpu.concatenate %713, %535, %535, %535 in 1 : vector<2x1x64xf32>, vector<2x1x64xf32>, vector<2x1x64xf32>, vector<2x1x64xf32> -> vector<2x4x64xf32>
    %715 = arith.truncf %714 : vector<2x4x64xf32> to vector<2x4x64xbf16>
    %716 = vector.shape_cast %715 : vector<2x4x64xbf16> to vector<8x64xbf16>
    %c15_125 = arith.constant 15 : index
    %c0_126 = arith.constant 0 : index
    %c0_127 = arith.constant 0 : index
    %717 = vector.load %arg2[%c15_125, %c0_126, %c0_127] : memref<16x64x64xbf16, #tpu.memory_space<vmem>>, vector<1x64x64xbf16>
    %718 = vector.shape_cast %717 : vector<1x64x64xbf16> to vector<64x64xbf16>
    %cst_128 = arith.constant dense<0.000000e+00> : vector<8x64xf32>
    %719 = tpu.matmul %716, %718, %cst_128 {dimension_numbers = #tpu.dot_dimension_numbers<[1], [0], [0], [1], [0, 0, 1, 1], [], []>} : vector<8x64xbf16>, vector<64x64xbf16>, vector<8x64xf32> -> vector<8x64xf32>
    %720 = arith.addf %711, %719 : vector<8x64xf32>
    %721 = vector.shape_cast %720 : vector<8x64xf32> to vector<2x4x64xf32>
    %cst_129 = arith.constant dense<0.000000e+00> : vector<2x64xf32>
    %722 = vector.multi_reduction <add>, %721, %cst_129 [1] : vector<2x4x64xf32> to vector<2x64xf32>
    %723 = vector.shape_cast %722 : vector<2x64xf32> to vector<2x1x64xf32>
    %cst_130 = arith.constant 2.500000e-01 : f32
    %724 = vector.broadcast %cst_130 : f32 to vector<2x1x64xf32>
    %725 = arith.mulf %723, %724 : vector<2x1x64xf32>
    %726 = arith.mulf %721, %721 : vector<2x4x64xf32>
    %cst_131 = arith.constant dense<0.000000e+00> : vector<2x64xf32>
    %727 = vector.multi_reduction <add>, %726, %cst_131 [1] : vector<2x4x64xf32> to vector<2x64xf32>
    %728 = vector.shape_cast %727 : vector<2x64xf32> to vector<2x1x64xf32>
    %cst_132 = arith.constant 2.500000e-01 : f32
    %729 = vector.broadcast %cst_132 : f32 to vector<2x1x64xf32>
    %730 = arith.mulf %728, %729 : vector<2x1x64xf32>
    %731 = vector.broadcast %725 : vector<2x1x64xf32> to vector<2x4x64xf32>
    %732 = arith.subf %721, %731 : vector<2x4x64xf32>
    %733 = arith.mulf %725, %725 : vector<2x1x64xf32>
    %734 = arith.subf %730, %733 : vector<2x1x64xf32>
    %cst_133 = arith.constant 9.99999974E-6 : f32
    %735 = vector.broadcast %cst_133 : f32 to vector<2x1x64xf32>
    %736 = arith.addf %734, %735 : vector<2x1x64xf32>
    %737 = math.rsqrt %736 : vector<2x1x64xf32>
    %738 = vector.broadcast %737 : vector<2x1x64xf32> to vector<2x4x64xf32>
    %739 = arith.mulf %732, %738 : vector<2x4x64xf32>
    %cst_134 = arith.constant 0.000000e+00 : f32
    %740 = vector.broadcast %cst_134 : f32 to vector<2x4x64xf32>
    %741 = arith.cmpf oge, %739, %740 : vector<2x4x64xf32>
    %cst_135 = arith.constant 2.000000e-01 : f32
    %742 = vector.broadcast %cst_135 : f32 to vector<2x4x64xf32>
    %743 = arith.mulf %742, %739 : vector<2x4x64xf32>
    %744 = arith.select %741, %739, %743 : vector<2x4x64xi1>, vector<2x4x64xf32>
    %745 = arith.truncf %744 : vector<2x4x64xf32> to vector<2x4x64xbf16>
    %c0_136 = arith.constant 0 : index
    %c0_137 = arith.constant 0 : index
    %c0_138 = arith.constant 0 : index
    %746 = vector.load %arg5[%c0_136, %c0_137, %c0_138] : memref<2x4x64xbf16, #tpu.memory_space<vmem>>, vector<2x4x64xbf16>
    tpu.vector_store %arg5[%c0_136, %c0_137, %c0_138], %745 {strides = array<i32>} : memref<2x4x64xbf16, #tpu.memory_space<vmem>>, vector<2x4x64xbf16>,
    %747 = vector.shape_cast %744 : vector<2x4x64xf32> to vector<2x2x2x64xf32>
    %cst_139 = arith.constant 0.000000e+00 : f32
    %748 = vector.broadcast %cst_139 : f32 to vector<2x64xf32>
    %749 = vector.extract_strided_slice %747 {offsets = [0, 0, 0, 0], sizes = [2, 1, 1, 64], strides = [1, 1, 1, 1]} : vector<2x2x2x64xf32> to vector<2x1x1x64xf32>
    %750 = vector.shape_cast %749 : vector<2x1x1x64xf32> to vector<2x1x64xf32>
    %751 = arith.truncf %750 : vector<2x1x64xf32> to vector<2x1x64xbf16>
    %752 = vector.shape_cast %751 : vector<2x1x64xbf16> to vector<2x64xbf16>
    %c4_140 = arith.constant 4 : index
    %c0_141 = arith.constant 0 : index
    %c0_142 = arith.constant 0 : index
    %753 = vector.load %arg3[%c4_140, %c0_141, %c0_142] : memref<9x64x64xbf16, #tpu.memory_space<vmem>>, vector<1x64x64xbf16>
    %754 = vector.shape_cast %753 : vector<1x64x64xbf16> to vector<64x64xbf16>
    %cst_143 = arith.constant dense<0.000000e+00> : vector<2x64xf32>
    %755 = tpu.matmul %752, %754, %cst_143 {dimension_numbers = #tpu.dot_dimension_numbers<[1], [0], [0], [1], [0, 0, 1, 1], [], []>} : vector<2x64xbf16>, vector<64x64xbf16>, vector<2x64xf32> -> vector<2x64xf32>
    %756 = arith.addf %748, %755 : vector<2x64xf32>
    %757 = vector.extract_strided_slice %747 {offsets = [0, 0, 1, 0], sizes = [2, 1, 1, 64], strides = [1, 1, 1, 1]} : vector<2x2x2x64xf32> to vector<2x1x1x64xf32>
    %758 = vector.shape_cast %757 : vector<2x1x1x64xf32> to vector<2x1x64xf32>
    %759 = arith.truncf %758 : vector<2x1x64xf32> to vector<2x1x64xbf16>
    %760 = vector.shape_cast %759 : vector<2x1x64xbf16> to vector<2x64xbf16>
    %c5_144 = arith.constant 5 : index
    %c0_145 = arith.constant 0 : index
    %c0_146 = arith.constant 0 : index
    %761 = vector.load %arg3[%c5_144, %c0_145, %c0_146] : memref<9x64x64xbf16, #tpu.memory_space<vmem>>, vector<1x64x64xbf16>
    %762 = vector.shape_cast %761 : vector<1x64x64xbf16> to vector<64x64xbf16>
    %cst_147 = arith.constant dense<0.000000e+00> : vector<2x64xf32>
    %763 = tpu.matmul %760, %762, %cst_147 {dimension_numbers = #tpu.dot_dimension_numbers<[1], [0], [0], [1], [0, 0, 1, 1], [], []>} : vector<2x64xbf16>, vector<64x64xbf16>, vector<2x64xf32> -> vector<2x64xf32>
    %764 = arith.addf %756, %763 : vector<2x64xf32>
    %765 = vector.extract_strided_slice %747 {offsets = [0, 1, 0, 0], sizes = [2, 1, 1, 64], strides = [1, 1, 1, 1]} : vector<2x2x2x64xf32> to vector<2x1x1x64xf32>
    %766 = vector.shape_cast %765 : vector<2x1x1x64xf32> to vector<2x1x64xf32>
    %767 = arith.truncf %766 : vector<2x1x64xf32> to vector<2x1x64xbf16>
    %768 = vector.shape_cast %767 : vector<2x1x64xbf16> to vector<2x64xbf16>
    %c7_148 = arith.constant 7 : index
    %c0_149 = arith.constant 0 : index
    %c0_150 = arith.constant 0 : index
    %769 = vector.load %arg3[%c7_148, %c0_149, %c0_150] : memref<9x64x64xbf16, #tpu.memory_space<vmem>>, vector<1x64x64xbf16>
    %770 = vector.shape_cast %769 : vector<1x64x64xbf16> to vector<64x64xbf16>
    %cst_151 = arith.constant dense<0.000000e+00> : vector<2x64xf32>
    %771 = tpu.matmul %768, %770, %cst_151 {dimension_numbers = #tpu.dot_dimension_numbers<[1], [0], [0], [1], [0, 0, 1, 1], [], []>} : vector<2x64xbf16>, vector<64x64xbf16>, vector<2x64xf32> -> vector<2x64xf32>
    %772 = arith.addf %764, %771 : vector<2x64xf32>
    %773 = vector.extract_strided_slice %747 {offsets = [0, 1, 1, 0], sizes = [2, 1, 1, 64], strides = [1, 1, 1, 1]} : vector<2x2x2x64xf32> to vector<2x1x1x64xf32>
    %774 = vector.shape_cast %773 : vector<2x1x1x64xf32> to vector<2x1x64xf32>
    %775 = arith.truncf %774 : vector<2x1x64xf32> to vector<2x1x64xbf16>
    %776 = vector.shape_cast %775 : vector<2x1x64xbf16> to vector<2x64xbf16>
    %c8_152 = arith.constant 8 : index
    %c0_153 = arith.constant 0 : index
    %c0_154 = arith.constant 0 : index
    %777 = vector.load %arg3[%c8_152, %c0_153, %c0_154] : memref<9x64x64xbf16, #tpu.memory_space<vmem>>, vector<1x64x64xbf16>
    %778 = vector.shape_cast %777 : vector<1x64x64xbf16> to vector<64x64xbf16>
    %cst_155 = arith.constant dense<0.000000e+00> : vector<2x64xf32>
    %779 = tpu.matmul %776, %778, %cst_155 {dimension_numbers = #tpu.dot_dimension_numbers<[1], [0], [0], [1], [0, 0, 1, 1], [], []>} : vector<2x64xbf16>, vector<64x64xbf16>, vector<2x64xf32> -> vector<2x64xf32>
    %780 = arith.addf %772, %779 : vector<2x64xf32>
    %781 = vector.shape_cast %780 : vector<2x64xf32> to vector<2x1x64xf32>
    %cst_156 = arith.constant dense<0.000000e+00> : vector<2x64xf32>
    %782 = vector.multi_reduction <add>, %781, %cst_156 [1] : vector<2x1x64xf32> to vector<2x64xf32>
    %783 = vector.shape_cast %782 : vector<2x64xf32> to vector<2x1x64xf32>
    %cst_157 = arith.constant 1.000000e+00 : f32
    %784 = vector.broadcast %cst_157 : f32 to vector<2x1x64xf32>
    %785 = arith.mulf %783, %784 : vector<2x1x64xf32>
    %786 = arith.mulf %781, %781 : vector<2x1x64xf32>
    %cst_158 = arith.constant dense<0.000000e+00> : vector<2x64xf32>
    %787 = vector.multi_reduction <add>, %786, %cst_158 [1] : vector<2x1x64xf32> to vector<2x64xf32>
    %788 = vector.shape_cast %787 : vector<2x64xf32> to vector<2x1x64xf32>
    %cst_159 = arith.constant 1.000000e+00 : f32
    %789 = vector.broadcast %cst_159 : f32 to vector<2x1x64xf32>
    %790 = arith.mulf %788, %789 : vector<2x1x64xf32>
    %791 = arith.subf %781, %785 : vector<2x1x64xf32>
    %792 = arith.mulf %785, %785 : vector<2x1x64xf32>
    %793 = arith.subf %790, %792 : vector<2x1x64xf32>
    %cst_160 = arith.constant 9.99999974E-6 : f32
    %794 = vector.broadcast %cst_160 : f32 to vector<2x1x64xf32>
    %795 = arith.addf %793, %794 : vector<2x1x64xf32>
    %796 = math.rsqrt %795 : vector<2x1x64xf32>
    %797 = arith.mulf %791, %796 : vector<2x1x64xf32>
    %cst_161 = arith.constant 0.000000e+00 : f32
    %798 = vector.broadcast %cst_161 : f32 to vector<2x1x64xf32>
    %799 = arith.cmpf oge, %797, %798 : vector<2x1x64xf32>
    %cst_162 = arith.constant 2.000000e-01 : f32
    %800 = vector.broadcast %cst_162 : f32 to vector<2x1x64xf32>
    %801 = arith.mulf %800, %797 : vector<2x1x64xf32>
    %802 = arith.select %799, %797, %801 : vector<2x1x64xi1>, vector<2x1x64xf32>
    %803 = arith.truncf %802 : vector<2x1x64xf32> to vector<2x1x64xbf16>
    %c0_163 = arith.constant 0 : index
    %c0_164 = arith.constant 0 : index
    %c0_165 = arith.constant 0 : index
    %804 = vector.load %arg6[%c0_163, %c0_164, %c0_165] : memref<2x1x64xbf16, #tpu.memory_space<vmem>>, vector<2x1x64xbf16>
    tpu.vector_store %arg6[%c0_163, %c0_164, %c0_165], %803 {strides = array<i32>} : memref<2x1x64xbf16, #tpu.memory_space<vmem>>, vector<2x1x64xbf16>,
    return
  }
}

</mosaic_0001>

<bundles_post_ra>
// kernel: netc_forward.4
= control target key start
LH: loop header
LB: loop body
LE: loop exit
PB: predicated region body
PF: predicated region fallthrough
CT: control target
= control target key end

     0   :  { %7 = vsyncpa [#allocation3], 0  ;;  %s4027_s0 = inlined_call_operand.hbm [shape: bf16[2,1024,128], index: 0, kind: input, shape index: {}]   ;;  %s4028_s1 = inlined_call_operand.hbm [shape: bf16[128,128], index: 1, kind: input, shape index: {}]   ;;  %s4029_s2 = inlined_call_operand.hbm [shape: bf16[2,1024,128], index: 2, kind: output, shape index: {}]  }
   0x1   :  { %9 = vsyncpa [#allocation3 + $0x1], 0 }
   0x2   :  { %10 = vsyncpa [#allocation6], 0 }
   0x3   :  { %11 = vsyncpa [#allocation4], 0 }
   0x4   :  { %13 = vsyncpa [#allocation4 + $0x1], 0  ;;  %s3666_s9 = smov 0   ;;  %s3668_s10 = smov 0  }
   0x5   :  { %s3670_s11 = smov 0   ;;  %s3672_s12 = smov 0  }
   0x6 LB: > { %s3687_s13 = sadd.s32 4294967295, %s3642_s12   ;;  %s2420_s14 = sadd.s32 4294967294, %s3642_s12   ;;  %s3642_s12 = sphi %s3672_s12, %s4049_s12   ;;  %s3638_s11 = sphi %s3670_s11, %s4048_s11   ;;  %s3634_s10 = sphi %s3668_s10, %s4047_s10   ;;  %s3630_s9 = sphi %s3666_s9, %s4046_s9  }
   0x7   : > { %p39_p0 = scmp.ne.s32.totalorder %s3634_s10, %s3630_s9  ;;  %p4030_p1 = scmp.eq.s32.totalorder %s3687_s13, 0 }
   0x8   : > { %p90_p3 = scmp.eq.s32.totalorder %s2420_s14, 1  ;;  %p2421_p5 = scmp.ge.s32.totalorder %s3642_s12, 1 }
   0x9   : > { %p3696_p4 = por %p4030_p1, %p39_p0  ;;  %p97_p7 = scmp.lt.s32.totalorder %s3642_s12, 3 }
   0xa   : > { %p3701_p6 = por %p90_p3, %p39_p0  ;;  %s3644_s18 = smov [#allocation5]  }
   0xb   : > { %s4033_s15 = scalar_select %p3696_p4, 1, 0 }
   0xc   : > { %s4034_s16 = scalar_select %p3701_p6, 1, 0 }
   0xd   : > { %p3706_p8 = pnand %p2421_p5, %p97_p7  ;;  %s109_s19 = sshll.u32 %s3644_s18, 4  ;;  %s3710_s19 = int_to_ptr.vmem [resolvable:$true] %s109_s19 }
   0xe   : > { %s3722_s21 = sadd.s32 1, %s3642_s12   ;;  %s26_s22 = sadd.s32 1, %s3638_s11 }
   0xf   : > { %s4035_s17 = scalar_select %p3706_p8, 1, 0 }
  0x10   : > { %p3389_p9 = pneg %p3706_p8  ;;  %s23_s23 = ssub.s32 %s3642_s12, %s3722_s21 }
  0x11   : > { %s3514_s26 = scalar_lea.hbm %s4028_s1, 1024 }
  0x12   : > { %p3717_p11 = pnand %p3389_p9, %p4030_p1  ;;  %p3515_p12 = scmp.ne.s32.totalorder %s4028_s1, %s3514_s26 }
  0x13   : > { %p3521_p5 = scmp.lt.u32.totalorder %s3514_s26, %s4028_s1 }
  0x14   : > { %p3516_p13 = pneg %p3717_p11 }
  0x16   : > { %p3517_p0 = pnand %p3516_p13, %p3515_p12 }
  0x18   : > { %p3518_p3 = pneg %p3517_p0 }
  0x1a   : > { %p3523_p7 = pnand %p3521_p5, %p3518_p3 }
  0x1c   : > { %3526 = shalt.err (!%p3523_p7)
}
  0x1d   : > { %s3527_s3 = scalar_lea.vmem %s3710_s19, 1024  ;;  %p3535_p2 = scmp.lt.s32.totalorder %s3710_s19, %s3710_s19 }
  0x1e   : > { %p3528_p9 = scmp.ne.s32.totalorder %s3710_s19, %s3527_s3  ;;  %p3536_p6 = scmp.lt.s32.totalorder %s3527_s3, %s3527_s3 }
  0x20   : > { %p3530_p10 = pnand %p3528_p9, %p3516_p13  ;;  %p3537_p4 = por %p3536_p6, %p3535_p2 }
  0x22   : > { %p3531_p1 = pneg %p3530_p10 }
  0x24   : > { %p3538_p8 = pnand %p3537_p4, %p3531_p1 }
  0x26   : > { %3541 = shalt.err (!%p3538_p8)
}
  0x27   : > { %s3645_s4 = smov 64   ;;  %s3646_s5 = smov 4  }
  0x28   : > { %3392 = dma.hbm_to_vmem [thread:$0]  (!%p3717_p11), %s4028_s1, 1024, %s3710_s19, [#allocation6], %s3645_s4, %s3645_s4, %s3646_s5  }
  0x29   : > { %p24_p1 = scmp.eq.s32.totalorder %s23_s23, 0  ;;  %p33_p2 = scmp.ne.s32.totalorder %s3638_s11, %s3634_s10 }
  0x2a   : > { %p34_p4 = scmp.eq.s32.totalorder %s3642_s12, 0  ;;  %p3402_p6 = scmp.lt.s32.totalorder %s3642_s12, 2 }
  0x2b   : > { %s3756_s8 = scalar_select %p24_p1, %s3638_s11, %s26_s22  }
  0x2c   : > { %p35_p8 = por %p34_p4, %p33_p2  ;;  %p4037_p10 = scmp.eq.s32.totalorder %s3687_s13, 1 }
  0x2d   : > { %s123_s18 = sand.u32 1, %s3638_s11   ;;  %s2636_s20 = sshll.u32 %s3642_s12, 13 }
  0x2e   : > { %p3760_p12 = por %p4037_p10, %p33_p2  ;;  %s2424_s24 = sshll.u32 %s123_s18, 9 }
  0x2f   : > { %s3769_s27 = scalar_lea.hbm %s4027_s0, %s2636_s20  ;;  %s127_s19 = scalar_lea.vmem [#allocation2], %s2424_s24 }
  0x30   : > { %s134_s22 = sshll.u32 %s127_s19, 4  ;;  %p3771_p11 = pnand %p3402_p6, %p35_p8  ;;  %s3775_s22 = int_to_ptr.vmem [resolvable:$true] %s134_s22 }
  0x31   : > { %s3777_s28 = scalar_lea.sflag [#allocation3], %s123_s18  ;;  %s3542_s29 = scalar_lea.hbm %s3769_s27, 8192 }
  0x32   : > { %p3543_p13 = scmp.ne.s32.totalorder %s3769_s27, %s3542_s29  ;;  %p3544_p0 = pneg %p3771_p11 }
  0x33   : > { %s3547_s6 = scalar_lea.hbm %s4027_s0, 16384  ;;  %p3548_p7 = scmp.lt.u32.totalorder %s3769_s27, %s4027_s0 }
  0x34   : > { %p3545_p3 = pnand %p3544_p0, %p3543_p13  ;;  %p3549_p9 = scmp.lt.u32.totalorder %s3547_s6, %s3542_s29 }
  0x35   : > { %p3551_p2 = scmp.lt.u32.totalorder %s3542_s29, %s3769_s27 }
  0x36   : > { %p3546_p5 = pneg %p3545_p3  ;;  %p3550_p1 = por %p3549_p9, %p3548_p7 }
  0x38   : > { %p3552_p4 = por %p3551_p2, %p3550_p1 }
  0x3a   : > { %p3553_p6 = pnand %p3552_p4, %p3546_p5 }
  0x3c   : > { %3556 = shalt.err (!%p3553_p6)
}
  0x3d   : > { %s3557_s18 = scalar_lea.vmem %s3775_s22, 8192  ;;  %s3647_s24 = smov [#allocation2]  }
  0x3e   : > { %p3558_p8 = scmp.ne.s32.totalorder %s3775_s22, %s3557_s18  ;;  %s3562_s25 = sshll.u32 %s3647_s24, 4  ;;  %s3563_s25 = int_to_ptr.vmem [resolvable:$false] %s3562_s25 }
  0x3f   : > { %s3564_s26 = scalar_lea.vmem %s3563_s25, 16384  ;;  %p3565_p3 = scmp.lt.s32.totalorder %s3775_s22, %s3563_s25 }
  0x40   : > { %p3560_p10 = pnand %p3558_p8, %p3544_p0  ;;  %p3566_p7 = scmp.lt.s32.totalorder %s3564_s26, %s3557_s18 }
  0x42   : > { %p3561_p13 = pneg %p3560_p10  ;;  %p3567_p9 = por %p3566_p7, %p3565_p3 }
  0x44   : > { %p3568_p1 = pnand %p3567_p9, %p3561_p13 }
  0x46   : > { %3571 = shalt.err (!%p3568_p1)
}
  0x47   : > { %3396 = dma.hbm_to_vmem [thread:$0]  (!%p3771_p11), %s3769_s27, 8192, %s3775_s22, %s3777_s28, %s3645_s4, %s3645_s4, %s3646_s5  }
  0x48   : > { %p4040_p0 = scmp.ne.s32.totalorder %s4035_s17, 0 }
  0x49   : > { %s3811_s19 = sand.u32 (!%p4040_p0), 1, %s3634_s10   ;;  %p4041_p5 = scmp.ne.s32.totalorder (!%p4040_p0), %s4033_s15, 0 }
  0x4a   : > { %146 = sbr.rel (%p4040_p0) target bundleno = 475 (0x1db), region = 28  ;;  %s2428_s29 = sshll.u32 (!%p4040_p0), %s3811_s19, 9 }
  0x4b   : > { %s149_s30 = scalar_lea.sflag (!%p4040_p0), [#allocation3], %s3811_s19  ;;  %s3817_s23 = scalar_lea.vmem (!%p4040_p0), [#allocation2], %s2428_s29 }
  0x51   : > { %3617 = dma.done.wait (%p4041_p5), %s149_s30, 8192  }
  0x52   : > { %3619 = vsyncadd (%p4041_p5), %s149_s30, 4294959104  ;;  %p4042_p11 = scmp.eq.s32.totalorder %s3687_s13, 0 }
  0x54   : > { %3621 = dma.done.wait (%p4042_p11), [#allocation6], 1024   ;;  %p4043_p2 = pmov %p4042_p11 }
  0x55   : > { %v3442_v0 = vld [vmem:[#allocation5] sm:$0xff]   ;;  %v3443_v1 = vld [vmem:[#allocation5 + $0x8] sm:$0xff]   ;;  %v3444_v2 = vld [vmem:[#allocation5 + $0x10] sm:$0xff]   ;;  %s3893_s15 = scalar_lea.vmem [#allocation7], %s2428_s29  ;;  %s2765_s17 = sshll.u32 %s3687_s13, 13 }
  0x56   : > { %3623 = vsyncadd (%p4043_p2), [#allocation6], 4294966272  ;;  %3221 = vmatprep.subr.bf16.mxu0 %v3442_v0  ;;  %3365 = vmatprep.subr.bf16.mxu1 %v3442_v0  ;;  %v3445_v3 = vld [vmem:[#allocation5 + $0x18] sm:$0xff]   ;;  %v3450_v4 = vld [vmem:[%s3817_s23] sm:$0xff]   ;;  %s2337_s4 = sshll.u32 %s3893_s15, 4  ;;  %s3977_s22 = scalar_lea.hbm %s4029_s2, %s2765_s17  ;;  %s3979_s4 = int_to_ptr.vmem [resolvable:$true] %s2337_s4 }
  0x57   : > { %3222 = vmatpush3.bf16.msra.mxu0 %v3442_v0  ;;  %3373 = vmatpush3.bf16.msra.mxu1 %v3442_v0  ;;  %v3451_v5 = vld [vmem:[%s3817_s23 + $0x100] sm:$0xff]   ;;  %v3447_v7 = vld [vmem:[#allocation5 + $0x28] sm:$0xff]   ;;  %v3448_v8 = vld [vmem:[#allocation5 + $0x30] sm:$0xff]   ;;  %s2324_s28 = scalar_lea.sflag [#allocation4], %s3811_s19  ;;  %s3572_s3 = scalar_lea.vmem %s3979_s4, 8192 }
  0x58   : > { %3223 = vmatprep.subr.bf16.mxu0 %v3443_v1  ;;  %3366 = vmatprep.subr.bf16.mxu1 %v3443_v1  ;;  %v3446_v6 = vld [vmem:[#allocation5 + $0x20] sm:$0xff]   ;;  %v3449_v9 = vld [vmem:[#allocation5 + $0x38] sm:$0xff]   ;;  %v3452_v10 = vld [vmem:[%s3817_s23 + $0x8] sm:$0xff]   ;;  %p3573_p4 = scmp.ne.s32.totalorder %s3979_s4, %s3572_s3  ;;  %s3648_s13 = smov [#allocation7]  }
  0x59   : > { %3237 = vmatprep.mubr.bf16.mxu0 %v3450_v4  ;;  %3301 = vmatprep.mubr.bf16.mxu1 %v3451_v5  ;;  %v3453_v11 = vld [vmem:[%s3817_s23 + $0x108] sm:$0xff]   ;;  %v3454_v12 = vld [vmem:[%s3817_s23 + $0x10] sm:$0xff]   ;;  %v3456_v14 = vld [vmem:[%s3817_s23 + $0x18] sm:$0xff]   ;;  %s3576_s6 = sshll.u32 %s3648_s13, 4  ;;  %s3577_s6 = int_to_ptr.vmem [resolvable:$false] %s3576_s6 }
  0x5a   : > { %v3455_v13 = vld [vmem:[%s3817_s23 + $0x110] sm:$0xff]   ;;  %v3457_v15 = vld [vmem:[%s3817_s23 + $0x118] sm:$0xff]   ;;  %v3458_v16 = vld [vmem:[%s3817_s23 + $0x20] sm:$0xff]   ;;  %p3574_p6 = pnand %p3573_p4, %p3760_p12  ;;  %s3578_s7 = scalar_lea.vmem %s3577_s6, 16384 }
  0x5b   : > { %3224 = vmatpush3.bf16.msra.mxu0 %v3443_v1  ;;  %3374 = vmatpush3.bf16.msra.mxu1 %v3443_v1  ;;  %v3459_v17 = vld [vmem:[%s3817_s23 + $0x120] sm:$0xff]   ;;  %v3460_v18 = vld [vmem:[%s3817_s23 + $0x28] sm:$0xff]   ;;  %v3462_v20 = vld [vmem:[%s3817_s23 + $0x30] sm:$0xff]   ;;  %p3579_p10 = scmp.lt.s32.totalorder %s3979_s4, %s3577_s6  ;;  %p3580_p13 = scmp.lt.s32.totalorder %s3578_s7, %s3572_s3 }
  0x5c   : > { %3225 = vmatprep.subr.bf16.mxu0 %v3444_v2  ;;  %3367 = vmatprep.subr.bf16.mxu1 %v3444_v2  ;;  %v3461_v19 = vld [vmem:[%s3817_s23 + $0x128] sm:$0xff]   ;;  %v3463_v21 = vld [vmem:[%s3817_s23 + $0x130] sm:$0xff]   ;;  %v3464_v22 = vld [vmem:[%s3817_s23 + $0x38] sm:$0xff]   ;;  %p3575_p8 = pneg %p3574_p6 }
  0x5d   : > { %v3465_v23 = vld [vmem:[%s3817_s23 + $0x138] sm:$0xff]   ;;  %v3466_v24 = vld [vmem:[%s3817_s23 + $0x40] sm:$0xff]   ;;  %v3468_v26 = vld [vmem:[%s3817_s23 + $0x48] sm:$0xff]   ;;  %p3581_p3 = por %p3580_p13, %p3579_p10 }
  0x5e   : > { %v3467_v25 = vld [vmem:[%s3817_s23 + $0x140] sm:$0xff]   ;;  %v3469_v27 = vld [vmem:[%s3817_s23 + $0x148] sm:$0xff]   ;;  %v3470_v28 = vld [vmem:[%s3817_s23 + $0x50] sm:$0xff]  }
  0x5f   : > { %3226 = vmatpush3.bf16.msra.mxu0 %v3444_v2  ;;  %3375 = vmatpush3.bf16.msra.mxu1 %v3444_v2  ;;  %v3471_v29 = vld [vmem:[%s3817_s23 + $0x150] sm:$0xff]   ;;  %v3472_v30 = vld [vmem:[%s3817_s23 + $0x58] sm:$0xff]   ;;  %v3474_v32 = vld [vmem:[%s3817_s23 + $0x60] sm:$0xff]   ;;  %p3582_p7 = pnand %p3581_p3, %p3575_p8 }
  0x60   : > { %3227 = vmatprep.subr.bf16.mxu0 %v3445_v3  ;;  %3368 = vmatprep.subr.bf16.mxu1 %v3445_v3  ;;  %v3473_v31 = vld [vmem:[%s3817_s23 + $0x158] sm:$0xff]   ;;  %v3475_v33 = vld [vmem:[%s3817_s23 + $0x160] sm:$0xff]   ;;  %v3476_v34 = vld [vmem:[%s3817_s23 + $0x68] sm:$0xff]  }
  0x61   : > { %v3477_v35 = vld [vmem:[%s3817_s23 + $0x168] sm:$0xff]   ;;  %v3478_v36 = vld [vmem:[%s3817_s23 + $0x70] sm:$0xff]   ;;  %v3480_v38 = vld [vmem:[%s3817_s23 + $0x78] sm:$0xff]  }
  0x62   : > { %v3479_v37 = vld [vmem:[%s3817_s23 + $0x170] sm:$0xff]   ;;  %v3481_v39 = vld [vmem:[%s3817_s23 + $0x178] sm:$0xff]   ;;  %v3482_v40 = vld [vmem:[%s3817_s23 + $0x80] sm:$0xff]  }
  0x63   : > { %3228 = vmatpush3.bf16.msra.mxu0 %v3445_v3  ;;  %3376 = vmatpush3.bf16.msra.mxu1 %v3445_v3  ;;  %v3483_v41 = vld [vmem:[%s3817_s23 + $0x180] sm:$0xff]   ;;  %v3484_v42 = vld [vmem:[%s3817_s23 + $0x88] sm:$0xff]   ;;  %v3486_v44 = vld [vmem:[%s3817_s23 + $0x90] sm:$0xff]  }
  0x64   : > { %3229 = vmatprep.subr.bf16.mxu0 %v3446_v6  ;;  %3369 = vmatprep.subr.bf16.mxu1 %v3446_v6  ;;  %v3485_v43 = vld [vmem:[%s3817_s23 + $0x188] sm:$0xff]   ;;  %v3487_v45 = vld [vmem:[%s3817_s23 + $0x190] sm:$0xff]   ;;  %v3488_v46 = vld [vmem:[%s3817_s23 + $0x98] sm:$0xff]  }
  0x65   : > { %v3489_v47 = vld [vmem:[%s3817_s23 + $0x198] sm:$0xff]   ;;  %v3490_v48 = vld [vmem:[%s3817_s23 + $0xa0] sm:$0xff]   ;;  %v3492_v50 = vld [vmem:[%s3817_s23 + $0xa8] sm:$0xff]  }
  0x66   : > { %v3491_v49 = vld [vmem:[%s3817_s23 + $0x1a0] sm:$0xff]   ;;  %v3493_v51 = vld [vmem:[%s3817_s23 + $0x1a8] sm:$0xff]   ;;  %v3494_v52 = vld [vmem:[%s3817_s23 + $0xb0] sm:$0xff]  }
  0x67   : > { %3230 = vmatpush3.bf16.msra.mxu0 %v3446_v6  ;;  %3377 = vmatpush3.bf16.msra.mxu1 %v3446_v6  ;;  %v3495_v53 = vld [vmem:[%s3817_s23 + $0x1b0] sm:$0xff]   ;;  %v3496_v54 = vld [vmem:[%s3817_s23 + $0xb8] sm:$0xff]   ;;  %v3498_v56 = vld [vmem:[%s3817_s23 + $0xc0] sm:$0xff]  }
  0x68   : > { %3231 = vmatprep.subr.bf16.mxu0 %v3447_v7  ;;  %3370 = vmatprep.subr.bf16.mxu1 %v3447_v7  ;;  %v3497_v55 = vld [vmem:[%s3817_s23 + $0x1b8] sm:$0xff]   ;;  %v3499_v57 = vld [vmem:[%s3817_s23 + $0x1c0] sm:$0xff]   ;;  %v3500_v58 = vld [vmem:[%s3817_s23 + $0xc8] sm:$0xff]  }
  0x69   : > { %v3501_v59 = vld [vmem:[%s3817_s23 + $0x1c8] sm:$0xff]   ;;  %v3502_v60 = vld [vmem:[%s3817_s23 + $0xd0] sm:$0xff]   ;;  %v3504_v62 = vld [vmem:[%s3817_s23 + $0xd8] sm:$0xff]  }
  0x6a   : > { %v3503_v61 = vld [vmem:[%s3817_s23 + $0x1d0] sm:$0xff]   ;;  %v3505_v63 = vld [vmem:[%s3817_s23 + $0x1d8] sm:$0xff]   ;;  %v3506_v0 = vld [vmem:[%s3817_s23 + $0xe0] sm:$0xff]  }
  0x6b   : > { %3232 = vmatpush3.bf16.msra.mxu0 %v3447_v7  ;;  %3378 = vmatpush3.bf16.msra.mxu1 %v3447_v7  ;;  %v3507_v1 = vld [vmem:[%s3817_s23 + $0x1e0] sm:$0xff]   ;;  %v3508_v2 = vld [vmem:[%s3817_s23 + $0xe8] sm:$0xff]   ;;  %v3510_v4 = vld [vmem:[%s3817_s23 + $0xf0] sm:$0xff]  }
  0x6c   : > { %3233 = vmatprep.subr.bf16.mxu0 %v3448_v8  ;;  %3371 = vmatprep.subr.bf16.mxu1 %v3448_v8  ;;  %v3509_v3 = vld [vmem:[%s3817_s23 + $0x1e8] sm:$0xff]   ;;  %v3511_v5 = vld [vmem:[%s3817_s23 + $0x1f0] sm:$0xff]   ;;  %v3512_v6 = vld [vmem:[%s3817_s23 + $0xf8] sm:$0xff]  }
  0x6d   : > { %v3513_v7 = vld [vmem:[%s3817_s23 + $0x1f8] sm:$0xff]  }
  0x6f   : > { %3234 = vmatpush3.bf16.msra.mxu0 %v3448_v8  ;;  %3379 = vmatpush3.bf16.msra.mxu1 %v3448_v8 }
  0x70   : > { %3235 = vmatprep.subr.bf16.mxu0 %v3449_v9  ;;  %3372 = vmatprep.subr.bf16.mxu1 %v3449_v9 }
  0x73   : > { %3236 = vmatpush3.bf16.msra.mxu0 %v3449_v9  ;;  %3380 = vmatpush3.bf16.msra.mxu1 %v3449_v9 }
  0x76   : > { %3238 = vmatmul.mubr.bf16.vlgmr.msra.gmra.mrb[0].mxu0 %v3452_v10  ;;  %3302 = vmatmul.mubr.bf16.vlgmr.msra.gmra.mrb[0].mxu1 %v3453_v11 }
  0x77   : > { %3241 = vmatprep.mubr.bf16.mxu0 %v3454_v12  ;;  %3305 = vmatprep.mubr.bf16.mxu1 %v3455_v13 }
  0x7e   : > { %3242 = vmatmul.mubr.bf16.gmra.mrb[4].mxu0 %v3456_v14  ;;  %3306 = vmatmul.mubr.bf16.gmra.mrb[4].mxu1 %v3457_v15 }
  0x7f   : > { %3245 = vmatprep.mubr.bf16.mxu0 %v3458_v16  ;;  %3309 = vmatprep.mubr.bf16.mxu1 %v3459_v17 }
  0x86   : > { %3246 = vmatmul.mubr.bf16.gmra.mrb[8].mxu0 %v3460_v18  ;;  %3310 = vmatmul.mubr.bf16.gmra.mrb[8].mxu1 %v3461_v19 }
  0x87   : > { %3249 = vmatprep.mubr.bf16.mxu0 %v3462_v20  ;;  %3313 = vmatprep.mubr.bf16.mxu1 %v3463_v21 }
  0x8e   : > { %3250 = vmatmul.mubr.bf16.gmra.mrb[12].mxu0 %v3464_v22  ;;  %3314 = vmatmul.mubr.bf16.gmra.mrb[12].mxu1 %v3465_v23 }
  0x8f   : > { %3253 = vmatprep.mubr.bf16.mxu0 %v3466_v24  ;;  %3317 = vmatprep.mubr.bf16.mxu1 %v3467_v25 }
  0x96   : > { %3254 = vmatmul.mubr.bf16.gmra.mrb[16].mxu0 %v3468_v26  ;;  %3318 = vmatmul.mubr.bf16.gmra.mrb[16].mxu1 %v3469_v27 }
  0x97   : > { %3257 = vmatprep.mubr.bf16.mxu0 %v3470_v28  ;;  %3321 = vmatprep.mubr.bf16.mxu1 %v3471_v29 }
  0x9e   : > { %3258 = vmatmul.mubr.bf16.gmra.mrb[20].mxu0 %v3472_v30  ;;  %3322 = vmatmul.mubr.bf16.gmra.mrb[20].mxu1 %v3473_v31 }
  0x9f   : > { %3261 = vmatprep.mubr.bf16.mxu0 %v3474_v32  ;;  %3325 = vmatprep.mubr.bf16.mxu1 %v3475_v33 }
  0xa6   : > { %3262 = vmatmul.mubr.bf16.gmra.mrb[24].mxu0 %v3476_v34  ;;  %3326 = vmatmul.mubr.bf16.gmra.mrb[24].mxu1 %v3477_v35 }
  0xa7   : > { %3265 = vmatprep.mubr.bf16.mxu0 %v3478_v36  ;;  %3329 = vmatprep.mubr.bf16.mxu1 %v3479_v37 }
  0xae   : > { %3266 = vmatmul.mubr.bf16.gmra.mrb[28].mxu0 %v3480_v38  ;;  %3330 = vmatmul.mubr.bf16.gmra.mrb[28].mxu1 %v3481_v39 }
  0xaf   : > { %3269 = vmatprep.mubr.bf16.mxu0 %v3482_v40  ;;  %3333 = vmatprep.mubr.bf16.mxu1 %v3483_v41 }
  0xb6   : > { %3270 = vmatmul.mubr.bf16.gmra.mrb[32].mxu0 %v3484_v42  ;;  %3334 = vmatmul.mubr.bf16.gmra.mrb[32].mxu1 %v3485_v43 }
  0xb7   : > { %3273 = vmatprep.mubr.bf16.mxu0 %v3486_v44  ;;  %3337 = vmatprep.mubr.bf16.mxu1 %v3487_v45 }
  0xbe   : > { %3274 = vmatmul.mubr.bf16.gmra.mrb[36].mxu0 %v3488_v46  ;;  %3338 = vmatmul.mubr.bf16.gmra.mrb[36].mxu1 %v3489_v47 }
  0xbf   : > { %3277 = vmatprep.mubr.bf16.mxu0 %v3490_v48  ;;  %3341 = vmatprep.mubr.bf16.mxu1 %v3491_v49 }
  0xc6   : > { %3278 = vmatmul.mubr.bf16.gmra.mrb[40].mxu0 %v3492_v50  ;;  %3342 = vmatmul.mubr.bf16.gmra.mrb[40].mxu1 %v3493_v51 }
  0xc7   : > { %3281 = vmatprep.mubr.bf16.mxu0 %v3494_v52  ;;  %3345 = vmatprep.mubr.bf16.mxu1 %v3495_v53 }
  0xce   : > { %3282 = vmatmul.mubr.bf16.gmra.mrb[44].mxu0 %v3496_v54  ;;  %3346 = vmatmul.mubr.bf16.gmra.mrb[44].mxu1 %v3497_v55 }
  0xcf   : > { %3285 = vmatprep.mubr.bf16.mxu0 %v3498_v56  ;;  %3349 = vmatprep.mubr.bf16.mxu1 %v3499_v57 }
  0xd6   : > { %3286 = vmatmul.mubr.bf16.gmra.mrb[48].mxu0 %v3500_v58  ;;  %3350 = vmatmul.mubr.bf16.gmra.mrb[48].mxu1 %v3501_v59 }
  0xd7   : > { %3289 = vmatprep.mubr.bf16.mxu0 %v3502_v60  ;;  %3353 = vmatprep.mubr.bf16.mxu1 %v3503_v61 }
  0xde   : > { %3290 = vmatmul.mubr.bf16.gmra.mrb[52].mxu0 %v3504_v62  ;;  %3354 = vmatmul.mubr.bf16.gmra.mrb[52].mxu1 %v3505_v63 }
  0xdf   : > { %3293 = vmatprep.mubr.bf16.mxu0 %v3506_v0  ;;  %3357 = vmatprep.mubr.bf16.mxu1 %v3507_v1 }
  0xe6   : > { %3294 = vmatmul.mubr.bf16.gmra.mrb[56].mxu0 %v3508_v2  ;;  %3358 = vmatmul.mubr.bf16.gmra.mrb[56].mxu1 %v3509_v3 }
  0xe7   : > { %3297 = vmatprep.mubr.bf16.mxu0 %v3510_v4  ;;  %3361 = vmatprep.mubr.bf16.mxu1 %v3511_v5 }
  0xee   : > { %3298 = vmatmul.mubr.bf16.gmra.mrb[60].mxu0 %v3512_v6  ;;  %3362 = vmatmul.mubr.bf16.gmra.mrb[60].mxu1 %v3513_v7 }
 0x149   : > { %v3239_v8 = vpop.f32.mrb[0].mxu0  ;;  %v3303_v9 = vpop.f32.mrb[0].mxu1 }
 0x14a   : > { %vm1301_vm0 = vcmp.ge.f32.partialorder %v3239_v8, 0.0  ;;  %v1429_v10 = vmul.f32 0.2, %v3239_v8  ;;  %v1493_v11 = vmul.f32 0.2, %v3303_v9  ;;  %vm1365_vm1 = vcmp.ge.f32.partialorder %v3303_v9, 0.0 }
 0x14b   : > { %v788_v12 = vpop.f32.mrb[1].mxu0  ;;  %v1044_v13 = vpop.f32.mrb[1].mxu1 }
 0x14c   : > { %v1427_v14 = vmul.f32 0.2, %v788_v12  ;;  %v3240_v15 = vpop.f32.mrb[2].mxu0  ;;  %v3304_v16 = vpop.f32.mrb[2].mxu1  ;;  %v1557_v17 = vsel %vm1301_vm0, %v3239_v8, %v1429_v10  ;;  %v1491_v18 = vmul.f32 0.2, %v1044_v13  ;;  %v1621_v20 = vsel %vm1365_vm1, %v3303_v9, %v1493_v11 }
 0x14d   : > { %vm1302_vm2 = vcmp.ge.f32.partialorder %v3240_v15, 0.0  ;;  %v1430_v19 = vmul.f32 0.2, %v3240_v15  ;;  %vm1299_vm3 = vcmp.ge.f32.partialorder %v788_v12, 0.0  ;;  %vm1366_vm4 = vcmp.ge.f32.partialorder %v3304_v16, 0.0  ;;  %v791_v22 = vpop.f32.mrb[3].mxu0 }
 0x14e   : > { %v1494_v21 = vmul.f32 0.2, %v3304_v16  ;;  %v1047_v23 = vpop.f32.mrb[3].mxu1  ;;  %vm1363_vm5 = vcmp.ge.f32.partialorder %v1044_v13, 0.0  ;;  %vm1300_vm6 = vcmp.ge.f32.partialorder %v791_v22, 0.0  ;;  %v1555_v29 = vsel %vm1299_vm3, %v788_v12, %v1427_v14 }
 0x14f   : > { %v1558_v24 = vsel %vm1302_vm2, %v3240_v15, %v1430_v19  ;;  %v1428_v25 = vmul.f32 0.2, %v791_v22  ;;  %vm1364_vm7 = vcmp.ge.f32.partialorder %v1047_v23, 0.0  ;;  %v1492_v28 = vmul.f32 0.2, %v1047_v23 }
 0x150   : > { %v2774_v26 = vpack.c.bf16 %v1558_v24, %v1557_v17  ;;  %v1622_v27 = vsel %vm1366_vm4, %v3304_v16, %v1494_v21  ;;  %v1619_v34 = vsel %vm1363_vm5, %v1044_v13, %v1491_v18 }
 0x151   : > { %v2934_v30 = vpack.c.bf16 %v1622_v27, %v1621_v20  ;;  %v1556_v31 = vsel %vm1300_vm6, %v791_v22, %v1428_v25  ;;  %v3243_v32 = vpop.f32.mrb[4].mxu0  ;;  %v3307_v33 = vpop.f32.mrb[4].mxu1  ;;  %v1620_v36 = vsel %vm1364_vm7, %v1047_v23, %v1492_v28 }
 0x152   : > { %3086 = vst [vmem:[%s3893_s15 + $0x8] sm:$0xff] %v2774_v26   ;;  %v2769_v35 = vpack.c.bf16 %v1556_v31, %v1555_v29  ;;  %v1433_v37 = vmul.f32 0.2, %v3243_v32  ;;  %v804_v38 = vpop.f32.mrb[5].mxu0  ;;  %v1060_v39 = vpop.f32.mrb[5].mxu1  ;;  %v2929_v40 = vpack.c.bf16 %v1620_v36, %v1619_v34  ;;  %vm1305_vm8 = vcmp.ge.f32.partialorder %v3243_v32, 0.0 }
 0x153   : > { %3118 = vst [vmem:[%s3893_s15 + $0x108] sm:$0xff] %v2934_v30   ;;  %v1497_v41 = vmul.f32 0.2, %v3307_v33  ;;  %v3244_v42 = vpop.f32.mrb[6].mxu0  ;;  %v3308_v43 = vpop.f32.mrb[6].mxu1  ;;  %vm1369_vm9 = vcmp.ge.f32.partialorder %v3307_v33, 0.0 }
 0x154   : > { %2770 = vst [vmem:[%s3893_s15] sm:$0xff] %v2769_v35   ;;  %v1431_v44 = vmul.f32 0.2, %v804_v38  ;;  %v1495_v45 = vmul.f32 0.2, %v1060_v39  ;;  %v807_v46 = vpop.f32.mrb[7].mxu0  ;;  %3117 = vst [vmem:[%s3893_s15 + $0x100] sm:$0xff] %v2929_v40   ;;  %v1561_v49 = vsel %vm1305_vm8, %v3243_v32, %v1433_v37 }
 0x155   : > { %vm1303_vm10 = vcmp.ge.f32.partialorder %v804_v38, 0.0  ;;  %vm1306_vm11 = vcmp.ge.f32.partialorder %v3244_v42, 0.0  ;;  %v1434_v47 = vmul.f32 0.2, %v3244_v42  ;;  %vm1370_vm12 = vcmp.ge.f32.partialorder %v3308_v43, 0.0  ;;  %v1063_v48 = vpop.f32.mrb[7].mxu1 }
 0x156   : > { %vm1367_vm13 = vcmp.ge.f32.partialorder %v1060_v39, 0.0  ;;  %v1498_v50 = vmul.f32 0.2, %v3308_v43  ;;  %vm1304_vm14 = vcmp.ge.f32.partialorder %v807_v46, 0.0  ;;  %v1432_v52 = vmul.f32 0.2, %v807_v46 }
 0x157   : > { %v1562_v51 = vsel %vm1306_vm11, %v3244_v42, %v1434_v47  ;;  %vm1368_vm15 = vcmp.ge.f32.partialorder %v1063_v48, 0.0  ;;  %v1496_v53 = vmul.f32 0.2, %v1063_v48  ;;  %v1625_v54 = vsel %vm1369_vm9, %v3307_v33, %v1497_v41 }
 0x158   : > { %v1559_v55 = vsel %vm1303_vm10, %v804_v38, %v1431_v44  ;;  %v2784_v56 = vpack.c.bf16 %v1562_v51, %v1561_v49  ;;  %v1626_v57 = vsel %vm1370_vm12, %v3308_v43, %v1498_v50  ;;  %v1623_v58 = vsel %vm1367_vm13, %v1060_v39, %v1495_v45 }
 0x159   : > { %v2944_v59 = vpack.c.bf16 %v1626_v57, %v1625_v54  ;;  %v1560_v60 = vsel %vm1304_vm14, %v807_v46, %v1432_v52  ;;  %v1624_v61 = vsel %vm1368_vm15, %v1063_v48, %v1496_v53  ;;  %v3247_v62 = vpop.f32.mrb[8].mxu0  ;;  %v3311_v63 = vpop.f32.mrb[8].mxu1 }
 0x15a   : > { %3088 = vst [vmem:[%s3893_s15 + $0x18] sm:$0xff] %v2784_v56   ;;  %v2779_v0 = vpack.c.bf16 %v1560_v60, %v1559_v55  ;;  %v2939_v1 = vpack.c.bf16 %v1624_v61, %v1623_v58  ;;  %vm1309_vm0 = vcmp.ge.f32.partialorder %v3247_v62, 0.0  ;;  %v1437_v2 = vmul.f32 0.2, %v3247_v62  ;;  %v820_v3 = vpop.f32.mrb[9].mxu0  ;;  %v1076_v4 = vpop.f32.mrb[9].mxu1 }
 0x15b   : > { %3120 = vst [vmem:[%s3893_s15 + $0x118] sm:$0xff] %v2944_v59   ;;  %vm1373_vm1 = vcmp.ge.f32.partialorder %v3311_v63, 0.0  ;;  %v1501_v5 = vmul.f32 0.2, %v3311_v63  ;;  %v1435_v6 = vmul.f32 0.2, %v820_v3 }
 0x15c   : > { %3087 = vst [vmem:[%s3893_s15 + $0x10] sm:$0xff] %v2779_v0   ;;  %3119 = vst [vmem:[%s3893_s15 + $0x110] sm:$0xff] %v2939_v1   ;;  %v1499_v7 = vmul.f32 0.2, %v1076_v4  ;;  %v3248_v8 = vpop.f32.mrb[10].mxu0  ;;  %v3312_v9 = vpop.f32.mrb[10].mxu1  ;;  %v1565_v10 = vsel %vm1309_vm0, %v3247_v62, %v1437_v2 }
 0x15d   : > { %vm1307_vm2 = vcmp.ge.f32.partialorder %v820_v3, 0.0  ;;  %vm1310_vm3 = vcmp.ge.f32.partialorder %v3248_v8, 0.0  ;;  %v1438_v11 = vmul.f32 0.2, %v3248_v8  ;;  %v823_v12 = vpop.f32.mrb[11].mxu0  ;;  %v1079_v13 = vpop.f32.mrb[11].mxu1  ;;  %v1629_v18 = vsel %vm1373_vm1, %v3311_v63, %v1501_v5 }
 0x15e   : > { %vm1371_vm4 = vcmp.ge.f32.partialorder %v1076_v4, 0.0  ;;  %vm1374_vm5 = vcmp.ge.f32.partialorder %v3312_v9, 0.0  ;;  %v1502_v14 = vmul.f32 0.2, %v3312_v9  ;;  %vm1308_vm6 = vcmp.ge.f32.partialorder %v823_v12, 0.0 }
 0x15f   : > { %v1566_v15 = vsel %vm1310_vm3, %v3248_v8, %v1438_v11  ;;  %v1436_v16 = vmul.f32 0.2, %v823_v12  ;;  %vm1372_vm7 = vcmp.ge.f32.partialorder %v1079_v13, 0.0  ;;  %v1500_v17 = vmul.f32 0.2, %v1079_v13 }
 0x160   : > { %v1563_v19 = vsel %vm1307_vm2, %v820_v3, %v1435_v6  ;;  %v2794_v20 = vpack.c.bf16 %v1566_v15, %v1565_v10  ;;  %v1630_v21 = vsel %vm1374_vm5, %v3312_v9, %v1502_v14  ;;  %v1627_v22 = vsel %vm1371_vm4, %v1076_v4, %v1499_v7 }
 0x161   : > { %v2954_v23 = vpack.c.bf16 %v1630_v21, %v1629_v18  ;;  %v1564_v24 = vsel %vm1308_vm6, %v823_v12, %v1436_v16  ;;  %v1628_v25 = vsel %vm1372_vm7, %v1079_v13, %v1500_v17  ;;  %v3251_v26 = vpop.f32.mrb[12].mxu0  ;;  %v3315_v27 = vpop.f32.mrb[12].mxu1 }
 0x162   : > { %3090 = vst [vmem:[%s3893_s15 + $0x28] sm:$0xff] %v2794_v20   ;;  %v2789_v28 = vpack.c.bf16 %v1564_v24, %v1563_v19  ;;  %v2949_v29 = vpack.c.bf16 %v1628_v25, %v1627_v22  ;;  %vm1313_vm8 = vcmp.ge.f32.partialorder %v3251_v26, 0.0  ;;  %v1441_v30 = vmul.f32 0.2, %v3251_v26  ;;  %v836_v31 = vpop.f32.mrb[13].mxu0  ;;  %v1092_v32 = vpop.f32.mrb[13].mxu1 }
 0x163   : > { %3122 = vst [vmem:[%s3893_s15 + $0x128] sm:$0xff] %v2954_v23   ;;  %vm1377_vm9 = vcmp.ge.f32.partialorder %v3315_v27, 0.0  ;;  %v1505_v33 = vmul.f32 0.2, %v3315_v27  ;;  %v1439_v34 = vmul.f32 0.2, %v836_v31 }
 0x164   : > { %3089 = vst [vmem:[%s3893_s15 + $0x20] sm:$0xff] %v2789_v28   ;;  %3121 = vst [vmem:[%s3893_s15 + $0x120] sm:$0xff] %v2949_v29   ;;  %v1503_v35 = vmul.f32 0.2, %v1092_v32  ;;  %v3252_v36 = vpop.f32.mrb[14].mxu0  ;;  %v3316_v37 = vpop.f32.mrb[14].mxu1  ;;  %v1569_v38 = vsel %vm1313_vm8, %v3251_v26, %v1441_v30 }
 0x165   : > { %vm1311_vm10 = vcmp.ge.f32.partialorder %v836_v31, 0.0  ;;  %vm1314_vm11 = vcmp.ge.f32.partialorder %v3252_v36, 0.0  ;;  %v1442_v39 = vmul.f32 0.2, %v3252_v36  ;;  %v839_v40 = vpop.f32.mrb[15].mxu0  ;;  %v1095_v41 = vpop.f32.mrb[15].mxu1  ;;  %v1633_v46 = vsel %vm1377_vm9, %v3315_v27, %v1505_v33 }
 0x166   : > { %vm1375_vm12 = vcmp.ge.f32.partialorder %v1092_v32, 0.0  ;;  %vm1378_vm13 = vcmp.ge.f32.partialorder %v3316_v37, 0.0  ;;  %v1506_v42 = vmul.f32 0.2, %v3316_v37  ;;  %vm1312_vm14 = vcmp.ge.f32.partialorder %v839_v40, 0.0 }
 0x167   : > { %v1570_v43 = vsel %vm1314_vm11, %v3252_v36, %v1442_v39  ;;  %v1440_v44 = vmul.f32 0.2, %v839_v40  ;;  %vm1376_vm15 = vcmp.ge.f32.partialorder %v1095_v41, 0.0  ;;  %v1504_v45 = vmul.f32 0.2, %v1095_v41 }
 0x168   : > { %v1567_v47 = vsel %vm1311_vm10, %v836_v31, %v1439_v34  ;;  %v2804_v48 = vpack.c.bf16 %v1570_v43, %v1569_v38  ;;  %v1634_v49 = vsel %vm1378_vm13, %v3316_v37, %v1506_v42  ;;  %v1631_v50 = vsel %vm1375_vm12, %v1092_v32, %v1503_v35 }
 0x169   : > { %v2964_v51 = vpack.c.bf16 %v1634_v49, %v1633_v46  ;;  %v1568_v52 = vsel %vm1312_vm14, %v839_v40, %v1440_v44  ;;  %v1632_v53 = vsel %vm1376_vm15, %v1095_v41, %v1504_v45  ;;  %v3255_v54 = vpop.f32.mrb[16].mxu0  ;;  %v3319_v55 = vpop.f32.mrb[16].mxu1 }
 0x16a   : > { %3092 = vst [vmem:[%s3893_s15 + $0x38] sm:$0xff] %v2804_v48   ;;  %v2799_v56 = vpack.c.bf16 %v1568_v52, %v1567_v47  ;;  %v2959_v57 = vpack.c.bf16 %v1632_v53, %v1631_v50  ;;  %vm1317_vm0 = vcmp.ge.f32.partialorder %v3255_v54, 0.0  ;;  %v1445_v58 = vmul.f32 0.2, %v3255_v54  ;;  %v852_v59 = vpop.f32.mrb[17].mxu0  ;;  %v1108_v60 = vpop.f32.mrb[17].mxu1 }
 0x16b   : > { %3124 = vst [vmem:[%s3893_s15 + $0x138] sm:$0xff] %v2964_v51   ;;  %vm1381_vm1 = vcmp.ge.f32.partialorder %v3319_v55, 0.0  ;;  %v1509_v61 = vmul.f32 0.2, %v3319_v55  ;;  %v1443_v62 = vmul.f32 0.2, %v852_v59 }
 0x16c   : > { %3091 = vst [vmem:[%s3893_s15 + $0x30] sm:$0xff] %v2799_v56   ;;  %3123 = vst [vmem:[%s3893_s15 + $0x130] sm:$0xff] %v2959_v57   ;;  %v1507_v63 = vmul.f32 0.2, %v1108_v60  ;;  %v3256_v0 = vpop.f32.mrb[18].mxu0  ;;  %v3320_v1 = vpop.f32.mrb[18].mxu1  ;;  %v1573_v2 = vsel %vm1317_vm0, %v3255_v54, %v1445_v58 }
 0x16d   : > { %vm1315_vm2 = vcmp.ge.f32.partialorder %v852_v59, 0.0  ;;  %vm1318_vm3 = vcmp.ge.f32.partialorder %v3256_v0, 0.0  ;;  %v1446_v3 = vmul.f32 0.2, %v3256_v0  ;;  %v855_v4 = vpop.f32.mrb[19].mxu0  ;;  %v1111_v5 = vpop.f32.mrb[19].mxu1  ;;  %v1637_v10 = vsel %vm1381_vm1, %v3319_v55, %v1509_v61 }
 0x16e   : > { %vm1379_vm4 = vcmp.ge.f32.partialorder %v1108_v60, 0.0  ;;  %vm1382_vm5 = vcmp.ge.f32.partialorder %v3320_v1, 0.0  ;;  %v1510_v6 = vmul.f32 0.2, %v3320_v1  ;;  %vm1316_vm6 = vcmp.ge.f32.partialorder %v855_v4, 0.0 }
 0x16f   : > { %v1574_v7 = vsel %vm1318_vm3, %v3256_v0, %v1446_v3  ;;  %v1444_v8 = vmul.f32 0.2, %v855_v4  ;;  %vm1380_vm7 = vcmp.ge.f32.partialorder %v1111_v5, 0.0  ;;  %v1508_v9 = vmul.f32 0.2, %v1111_v5 }
 0x170   : > { %v1571_v11 = vsel %vm1315_vm2, %v852_v59, %v1443_v62  ;;  %v2814_v12 = vpack.c.bf16 %v1574_v7, %v1573_v2  ;;  %v1638_v13 = vsel %vm1382_vm5, %v3320_v1, %v1510_v6  ;;  %v1635_v14 = vsel %vm1379_vm4, %v1108_v60, %v1507_v63 }
 0x171   : > { %v2974_v15 = vpack.c.bf16 %v1638_v13, %v1637_v10  ;;  %v1572_v16 = vsel %vm1316_vm6, %v855_v4, %v1444_v8  ;;  %v1636_v17 = vsel %vm1380_vm7, %v1111_v5, %v1508_v9  ;;  %v3259_v18 = vpop.f32.mrb[20].mxu0  ;;  %v3323_v19 = vpop.f32.mrb[20].mxu1 }
 0x172   : > { %3094 = vst [vmem:[%s3893_s15 + $0x48] sm:$0xff] %v2814_v12   ;;  %v2809_v20 = vpack.c.bf16 %v1572_v16, %v1571_v11  ;;  %v2969_v21 = vpack.c.bf16 %v1636_v17, %v1635_v14  ;;  %vm1321_vm8 = vcmp.ge.f32.partialorder %v3259_v18, 0.0  ;;  %v1449_v22 = vmul.f32 0.2, %v3259_v18  ;;  %v868_v23 = vpop.f32.mrb[21].mxu0  ;;  %v1124_v24 = vpop.f32.mrb[21].mxu1 }
 0x173   : > { %3126 = vst [vmem:[%s3893_s15 + $0x148] sm:$0xff] %v2974_v15   ;;  %vm1385_vm9 = vcmp.ge.f32.partialorder %v3323_v19, 0.0  ;;  %v1513_v25 = vmul.f32 0.2, %v3323_v19  ;;  %v1447_v26 = vmul.f32 0.2, %v868_v23 }
 0x174   : > { %3093 = vst [vmem:[%s3893_s15 + $0x40] sm:$0xff] %v2809_v20   ;;  %3125 = vst [vmem:[%s3893_s15 + $0x140] sm:$0xff] %v2969_v21   ;;  %v1511_v27 = vmul.f32 0.2, %v1124_v24  ;;  %v3260_v28 = vpop.f32.mrb[22].mxu0  ;;  %v3324_v29 = vpop.f32.mrb[22].mxu1  ;;  %v1577_v30 = vsel %vm1321_vm8, %v3259_v18, %v1449_v22 }
 0x175   : > { %vm1319_vm10 = vcmp.ge.f32.partialorder %v868_v23, 0.0  ;;  %vm1322_vm11 = vcmp.ge.f32.partialorder %v3260_v28, 0.0  ;;  %v1450_v31 = vmul.f32 0.2, %v3260_v28  ;;  %v871_v32 = vpop.f32.mrb[23].mxu0  ;;  %v1127_v33 = vpop.f32.mrb[23].mxu1  ;;  %v1641_v38 = vsel %vm1385_vm9, %v3323_v19, %v1513_v25 }
 0x176   : > { %vm1383_vm12 = vcmp.ge.f32.partialorder %v1124_v24, 0.0  ;;  %vm1386_vm13 = vcmp.ge.f32.partialorder %v3324_v29, 0.0  ;;  %v1514_v34 = vmul.f32 0.2, %v3324_v29  ;;  %vm1320_vm14 = vcmp.ge.f32.partialorder %v871_v32, 0.0 }
 0x177   : > { %v1578_v35 = vsel %vm1322_vm11, %v3260_v28, %v1450_v31  ;;  %v1448_v36 = vmul.f32 0.2, %v871_v32  ;;  %vm1384_vm15 = vcmp.ge.f32.partialorder %v1127_v33, 0.0  ;;  %v1512_v37 = vmul.f32 0.2, %v1127_v33 }
 0x178   : > { %v1575_v39 = vsel %vm1319_vm10, %v868_v23, %v1447_v26  ;;  %v2824_v40 = vpack.c.bf16 %v1578_v35, %v1577_v30  ;;  %v1642_v41 = vsel %vm1386_vm13, %v3324_v29, %v1514_v34  ;;  %v1639_v42 = vsel %vm1383_vm12, %v1124_v24, %v1511_v27 }
 0x179   : > { %v2984_v43 = vpack.c.bf16 %v1642_v41, %v1641_v38  ;;  %v1576_v44 = vsel %vm1320_vm14, %v871_v32, %v1448_v36  ;;  %v1640_v45 = vsel %vm1384_vm15, %v1127_v33, %v1512_v37  ;;  %v3263_v46 = vpop.f32.mrb[24].mxu0  ;;  %v3327_v47 = vpop.f32.mrb[24].mxu1 }
 0x17a   : > { %3096 = vst [vmem:[%s3893_s15 + $0x58] sm:$0xff] %v2824_v40   ;;  %v2819_v48 = vpack.c.bf16 %v1576_v44, %v1575_v39  ;;  %v2979_v49 = vpack.c.bf16 %v1640_v45, %v1639_v42  ;;  %vm1325_vm0 = vcmp.ge.f32.partialorder %v3263_v46, 0.0  ;;  %v1453_v50 = vmul.f32 0.2, %v3263_v46  ;;  %v884_v51 = vpop.f32.mrb[25].mxu0  ;;  %v1140_v52 = vpop.f32.mrb[25].mxu1 }
 0x17b   : > { %3128 = vst [vmem:[%s3893_s15 + $0x158] sm:$0xff] %v2984_v43   ;;  %vm1389_vm1 = vcmp.ge.f32.partialorder %v3327_v47, 0.0  ;;  %v1517_v53 = vmul.f32 0.2, %v3327_v47  ;;  %v1451_v54 = vmul.f32 0.2, %v884_v51 }
 0x17c   : > { %3095 = vst [vmem:[%s3893_s15 + $0x50] sm:$0xff] %v2819_v48   ;;  %3127 = vst [vmem:[%s3893_s15 + $0x150] sm:$0xff] %v2979_v49   ;;  %v1515_v55 = vmul.f32 0.2, %v1140_v52  ;;  %v3264_v56 = vpop.f32.mrb[26].mxu0  ;;  %v3328_v57 = vpop.f32.mrb[26].mxu1  ;;  %v1581_v58 = vsel %vm1325_vm0, %v3263_v46, %v1453_v50 }
 0x17d   : > { %vm1323_vm2 = vcmp.ge.f32.partialorder %v884_v51, 0.0  ;;  %vm1326_vm3 = vcmp.ge.f32.partialorder %v3264_v56, 0.0  ;;  %v1454_v59 = vmul.f32 0.2, %v3264_v56  ;;  %v887_v60 = vpop.f32.mrb[27].mxu0  ;;  %v1143_v61 = vpop.f32.mrb[27].mxu1  ;;  %v1645_v2 = vsel %vm1389_vm1, %v3327_v47, %v1517_v53 }
 0x17e   : > { %vm1387_vm4 = vcmp.ge.f32.partialorder %v1140_v52, 0.0  ;;  %vm1390_vm5 = vcmp.ge.f32.partialorder %v3328_v57, 0.0  ;;  %v1518_v62 = vmul.f32 0.2, %v3328_v57  ;;  %vm1324_vm6 = vcmp.ge.f32.partialorder %v887_v60, 0.0 }
 0x17f   : > { %v1582_v63 = vsel %vm1326_vm3, %v3264_v56, %v1454_v59  ;;  %v1452_v0 = vmul.f32 0.2, %v887_v60  ;;  %vm1388_vm7 = vcmp.ge.f32.partialorder %v1143_v61, 0.0  ;;  %v1516_v1 = vmul.f32 0.2, %v1143_v61 }
 0x180   : > { %v1579_v3 = vsel %vm1323_vm2, %v884_v51, %v1451_v54  ;;  %v2834_v4 = vpack.c.bf16 %v1582_v63, %v1581_v58  ;;  %v1646_v5 = vsel %vm1390_vm5, %v3328_v57, %v1518_v62  ;;  %v1643_v6 = vsel %vm1387_vm4, %v1140_v52, %v1515_v55 }
 0x181   : > { %v2994_v7 = vpack.c.bf16 %v1646_v5, %v1645_v2  ;;  %v1580_v8 = vsel %vm1324_vm6, %v887_v60, %v1452_v0  ;;  %v1644_v9 = vsel %vm1388_vm7, %v1143_v61, %v1516_v1  ;;  %v3267_v10 = vpop.f32.mrb[28].mxu0  ;;  %v3331_v11 = vpop.f32.mrb[28].mxu1 }
 0x182   : > { %3098 = vst [vmem:[%s3893_s15 + $0x68] sm:$0xff] %v2834_v4   ;;  %v2829_v12 = vpack.c.bf16 %v1580_v8, %v1579_v3  ;;  %v2989_v13 = vpack.c.bf16 %v1644_v9, %v1643_v6  ;;  %vm1329_vm8 = vcmp.ge.f32.partialorder %v3267_v10, 0.0  ;;  %v1457_v14 = vmul.f32 0.2, %v3267_v10  ;;  %v900_v15 = vpop.f32.mrb[29].mxu0  ;;  %v1156_v16 = vpop.f32.mrb[29].mxu1 }
 0x183   : > { %3130 = vst [vmem:[%s3893_s15 + $0x168] sm:$0xff] %v2994_v7   ;;  %vm1393_vm9 = vcmp.ge.f32.partialorder %v3331_v11, 0.0  ;;  %v1521_v17 = vmul.f32 0.2, %v3331_v11  ;;  %v1455_v18 = vmul.f32 0.2, %v900_v15 }
 0x184   : > { %3097 = vst [vmem:[%s3893_s15 + $0x60] sm:$0xff] %v2829_v12   ;;  %3129 = vst [vmem:[%s3893_s15 + $0x160] sm:$0xff] %v2989_v13   ;;  %v1519_v19 = vmul.f32 0.2, %v1156_v16  ;;  %v3268_v20 = vpop.f32.mrb[30].mxu0  ;;  %v3332_v21 = vpop.f32.mrb[30].mxu1  ;;  %v1585_v22 = vsel %vm1329_vm8, %v3267_v10, %v1457_v14 }
 0x185   : > { %vm1327_vm10 = vcmp.ge.f32.partialorder %v900_v15, 0.0  ;;  %vm1330_vm11 = vcmp.ge.f32.partialorder %v3268_v20, 0.0  ;;  %v1458_v23 = vmul.f32 0.2, %v3268_v20  ;;  %v903_v24 = vpop.f32.mrb[31].mxu0  ;;  %v1159_v25 = vpop.f32.mrb[31].mxu1  ;;  %v1649_v30 = vsel %vm1393_vm9, %v3331_v11, %v1521_v17 }
 0x186   : > { %vm1391_vm12 = vcmp.ge.f32.partialorder %v1156_v16, 0.0  ;;  %vm1394_vm13 = vcmp.ge.f32.partialorder %v3332_v21, 0.0  ;;  %v1522_v26 = vmul.f32 0.2, %v3332_v21  ;;  %vm1328_vm14 = vcmp.ge.f32.partialorder %v903_v24, 0.0 }
 0x187   : > { %v1586_v27 = vsel %vm1330_vm11, %v3268_v20, %v1458_v23  ;;  %v1456_v28 = vmul.f32 0.2, %v903_v24  ;;  %vm1392_vm15 = vcmp.ge.f32.partialorder %v1159_v25, 0.0  ;;  %v1520_v29 = vmul.f32 0.2, %v1159_v25 }
 0x188   : > { %v1583_v31 = vsel %vm1327_vm10, %v900_v15, %v1455_v18  ;;  %v2844_v32 = vpack.c.bf16 %v1586_v27, %v1585_v22  ;;  %v1650_v33 = vsel %vm1394_vm13, %v3332_v21, %v1522_v26  ;;  %v1647_v34 = vsel %vm1391_vm12, %v1156_v16, %v1519_v19 }
 0x189   : > { %v3004_v35 = vpack.c.bf16 %v1650_v33, %v1649_v30  ;;  %v1584_v36 = vsel %vm1328_vm14, %v903_v24, %v1456_v28  ;;  %v1648_v37 = vsel %vm1392_vm15, %v1159_v25, %v1520_v29  ;;  %v3271_v38 = vpop.f32.mrb[32].mxu0  ;;  %v3335_v39 = vpop.f32.mrb[32].mxu1 }
 0x18a   : > { %3100 = vst [vmem:[%s3893_s15 + $0x78] sm:$0xff] %v2844_v32   ;;  %v2839_v40 = vpack.c.bf16 %v1584_v36, %v1583_v31  ;;  %v2999_v41 = vpack.c.bf16 %v1648_v37, %v1647_v34  ;;  %vm1333_vm0 = vcmp.ge.f32.partialorder %v3271_v38, 0.0  ;;  %v1461_v42 = vmul.f32 0.2, %v3271_v38  ;;  %v916_v43 = vpop.f32.mrb[33].mxu0  ;;  %v1172_v44 = vpop.f32.mrb[33].mxu1 }
 0x18b   : > { %3132 = vst [vmem:[%s3893_s15 + $0x178] sm:$0xff] %v3004_v35   ;;  %vm1397_vm1 = vcmp.ge.f32.partialorder %v3335_v39, 0.0  ;;  %v1525_v45 = vmul.f32 0.2, %v3335_v39  ;;  %v1459_v46 = vmul.f32 0.2, %v916_v43 }
 0x18c   : > { %3099 = vst [vmem:[%s3893_s15 + $0x70] sm:$0xff] %v2839_v40   ;;  %3131 = vst [vmem:[%s3893_s15 + $0x170] sm:$0xff] %v2999_v41   ;;  %v1523_v47 = vmul.f32 0.2, %v1172_v44  ;;  %v3272_v48 = vpop.f32.mrb[34].mxu0  ;;  %v3336_v49 = vpop.f32.mrb[34].mxu1  ;;  %v1589_v50 = vsel %vm1333_vm0, %v3271_v38, %v1461_v42 }
 0x18d   : > { %vm1331_vm2 = vcmp.ge.f32.partialorder %v916_v43, 0.0  ;;  %vm1334_vm3 = vcmp.ge.f32.partialorder %v3272_v48, 0.0  ;;  %v1462_v51 = vmul.f32 0.2, %v3272_v48  ;;  %v919_v52 = vpop.f32.mrb[35].mxu0  ;;  %v1175_v53 = vpop.f32.mrb[35].mxu1  ;;  %v1653_v58 = vsel %vm1397_vm1, %v3335_v39, %v1525_v45 }
 0x18e   : > { %vm1395_vm4 = vcmp.ge.f32.partialorder %v1172_v44, 0.0  ;;  %vm1398_vm5 = vcmp.ge.f32.partialorder %v3336_v49, 0.0  ;;  %v1526_v54 = vmul.f32 0.2, %v3336_v49  ;;  %vm1332_vm6 = vcmp.ge.f32.partialorder %v919_v52, 0.0 }
 0x18f   : > { %v1590_v55 = vsel %vm1334_vm3, %v3272_v48, %v1462_v51  ;;  %v1460_v56 = vmul.f32 0.2, %v919_v52  ;;  %vm1396_vm7 = vcmp.ge.f32.partialorder %v1175_v53, 0.0  ;;  %v1524_v57 = vmul.f32 0.2, %v1175_v53 }
 0x190   : > { %v1587_v59 = vsel %vm1331_vm2, %v916_v43, %v1459_v46  ;;  %v2854_v60 = vpack.c.bf16 %v1590_v55, %v1589_v50  ;;  %v1654_v61 = vsel %vm1398_vm5, %v3336_v49, %v1526_v54  ;;  %v1651_v62 = vsel %vm1395_vm4, %v1172_v44, %v1523_v47 }
 0x191   : > { %v3014_v63 = vpack.c.bf16 %v1654_v61, %v1653_v58  ;;  %v1588_v0 = vsel %vm1332_vm6, %v919_v52, %v1460_v56  ;;  %v1652_v1 = vsel %vm1396_vm7, %v1175_v53, %v1524_v57  ;;  %v3275_v2 = vpop.f32.mrb[36].mxu0  ;;  %v3339_v3 = vpop.f32.mrb[36].mxu1 }
 0x192   : > { %3102 = vst [vmem:[%s3893_s15 + $0x88] sm:$0xff] %v2854_v60   ;;  %v2849_v4 = vpack.c.bf16 %v1588_v0, %v1587_v59  ;;  %v3009_v5 = vpack.c.bf16 %v1652_v1, %v1651_v62  ;;  %vm1337_vm8 = vcmp.ge.f32.partialorder %v3275_v2, 0.0  ;;  %v1465_v6 = vmul.f32 0.2, %v3275_v2  ;;  %v932_v7 = vpop.f32.mrb[37].mxu0  ;;  %v1188_v8 = vpop.f32.mrb[37].mxu1 }
 0x193   : > { %3134 = vst [vmem:[%s3893_s15 + $0x188] sm:$0xff] %v3014_v63   ;;  %vm1401_vm9 = vcmp.ge.f32.partialorder %v3339_v3, 0.0  ;;  %v1529_v9 = vmul.f32 0.2, %v3339_v3  ;;  %v1463_v10 = vmul.f32 0.2, %v932_v7 }
 0x194   : > { %3101 = vst [vmem:[%s3893_s15 + $0x80] sm:$0xff] %v2849_v4   ;;  %3133 = vst [vmem:[%s3893_s15 + $0x180] sm:$0xff] %v3009_v5   ;;  %v1527_v11 = vmul.f32 0.2, %v1188_v8  ;;  %v3276_v12 = vpop.f32.mrb[38].mxu0  ;;  %v3340_v13 = vpop.f32.mrb[38].mxu1  ;;  %v1593_v14 = vsel %vm1337_vm8, %v3275_v2, %v1465_v6 }
 0x195   : > { %vm1335_vm10 = vcmp.ge.f32.partialorder %v932_v7, 0.0  ;;  %vm1338_vm11 = vcmp.ge.f32.partialorder %v3276_v12, 0.0  ;;  %v1466_v15 = vmul.f32 0.2, %v3276_v12  ;;  %v935_v16 = vpop.f32.mrb[39].mxu0  ;;  %v1191_v17 = vpop.f32.mrb[39].mxu1  ;;  %v1657_v22 = vsel %vm1401_vm9, %v3339_v3, %v1529_v9 }
 0x196   : > { %vm1399_vm12 = vcmp.ge.f32.partialorder %v1188_v8, 0.0  ;;  %vm1402_vm13 = vcmp.ge.f32.partialorder %v3340_v13, 0.0  ;;  %v1530_v18 = vmul.f32 0.2, %v3340_v13  ;;  %vm1336_vm14 = vcmp.ge.f32.partialorder %v935_v16, 0.0 }
 0x197   : > { %v1594_v19 = vsel %vm1338_vm11, %v3276_v12, %v1466_v15  ;;  %v1464_v20 = vmul.f32 0.2, %v935_v16  ;;  %vm1400_vm15 = vcmp.ge.f32.partialorder %v1191_v17, 0.0  ;;  %v1528_v21 = vmul.f32 0.2, %v1191_v17 }
 0x198   : > { %v1591_v23 = vsel %vm1335_vm10, %v932_v7, %v1463_v10  ;;  %v2864_v24 = vpack.c.bf16 %v1594_v19, %v1593_v14  ;;  %v1658_v25 = vsel %vm1402_vm13, %v3340_v13, %v1530_v18  ;;  %v1655_v26 = vsel %vm1399_vm12, %v1188_v8, %v1527_v11 }
 0x199   : > { %v3024_v27 = vpack.c.bf16 %v1658_v25, %v1657_v22  ;;  %v1592_v28 = vsel %vm1336_vm14, %v935_v16, %v1464_v20  ;;  %v1656_v29 = vsel %vm1400_vm15, %v1191_v17, %v1528_v21  ;;  %v3279_v30 = vpop.f32.mrb[40].mxu0  ;;  %v3343_v31 = vpop.f32.mrb[40].mxu1 }
 0x19a   : > { %3104 = vst [vmem:[%s3893_s15 + $0x98] sm:$0xff] %v2864_v24   ;;  %v2859_v32 = vpack.c.bf16 %v1592_v28, %v1591_v23  ;;  %v3019_v33 = vpack.c.bf16 %v1656_v29, %v1655_v26  ;;  %vm1341_vm0 = vcmp.ge.f32.partialorder %v3279_v30, 0.0  ;;  %v1469_v34 = vmul.f32 0.2, %v3279_v30  ;;  %v948_v35 = vpop.f32.mrb[41].mxu0  ;;  %v1204_v36 = vpop.f32.mrb[41].mxu1 }
 0x19b   : > { %3136 = vst [vmem:[%s3893_s15 + $0x198] sm:$0xff] %v3024_v27   ;;  %vm1405_vm1 = vcmp.ge.f32.partialorder %v3343_v31, 0.0  ;;  %v1533_v37 = vmul.f32 0.2, %v3343_v31  ;;  %v1467_v38 = vmul.f32 0.2, %v948_v35 }
 0x19c   : > { %3103 = vst [vmem:[%s3893_s15 + $0x90] sm:$0xff] %v2859_v32   ;;  %3135 = vst [vmem:[%s3893_s15 + $0x190] sm:$0xff] %v3019_v33   ;;  %v1531_v39 = vmul.f32 0.2, %v1204_v36  ;;  %v3280_v40 = vpop.f32.mrb[42].mxu0  ;;  %v3344_v41 = vpop.f32.mrb[42].mxu1  ;;  %v1597_v42 = vsel %vm1341_vm0, %v3279_v30, %v1469_v34 }
 0x19d   : > { %vm1339_vm2 = vcmp.ge.f32.partialorder %v948_v35, 0.0  ;;  %vm1342_vm3 = vcmp.ge.f32.partialorder %v3280_v40, 0.0  ;;  %v1470_v43 = vmul.f32 0.2, %v3280_v40  ;;  %v951_v44 = vpop.f32.mrb[43].mxu0  ;;  %v1207_v45 = vpop.f32.mrb[43].mxu1  ;;  %v1661_v50 = vsel %vm1405_vm1, %v3343_v31, %v1533_v37 }
 0x19e   : > { %vm1403_vm4 = vcmp.ge.f32.partialorder %v1204_v36, 0.0  ;;  %vm1406_vm5 = vcmp.ge.f32.partialorder %v3344_v41, 0.0  ;;  %v1534_v46 = vmul.f32 0.2, %v3344_v41  ;;  %vm1340_vm6 = vcmp.ge.f32.partialorder %v951_v44, 0.0 }
 0x19f   : > { %v1598_v47 = vsel %vm1342_vm3, %v3280_v40, %v1470_v43  ;;  %v1468_v48 = vmul.f32 0.2, %v951_v44  ;;  %vm1404_vm7 = vcmp.ge.f32.partialorder %v1207_v45, 0.0  ;;  %v1532_v49 = vmul.f32 0.2, %v1207_v45 }
 0x1a0   : > { %v1595_v51 = vsel %vm1339_vm2, %v948_v35, %v1467_v38  ;;  %v2874_v52 = vpack.c.bf16 %v1598_v47, %v1597_v42  ;;  %v1662_v53 = vsel %vm1406_vm5, %v3344_v41, %v1534_v46  ;;  %v1659_v54 = vsel %vm1403_vm4, %v1204_v36, %v1531_v39 }
 0x1a1   : > { %v3034_v55 = vpack.c.bf16 %v1662_v53, %v1661_v50  ;;  %v1596_v56 = vsel %vm1340_vm6, %v951_v44, %v1468_v48  ;;  %v1660_v57 = vsel %vm1404_vm7, %v1207_v45, %v1532_v49  ;;  %v3283_v58 = vpop.f32.mrb[44].mxu0  ;;  %v3347_v59 = vpop.f32.mrb[44].mxu1 }
 0x1a2   : > { %3106 = vst [vmem:[%s3893_s15 + $0xa8] sm:$0xff] %v2874_v52   ;;  %v2869_v60 = vpack.c.bf16 %v1596_v56, %v1595_v51  ;;  %v3029_v61 = vpack.c.bf16 %v1660_v57, %v1659_v54  ;;  %vm1345_vm8 = vcmp.ge.f32.partialorder %v3283_v58, 0.0  ;;  %v1473_v62 = vmul.f32 0.2, %v3283_v58  ;;  %v964_v63 = vpop.f32.mrb[45].mxu0  ;;  %v1220_v0 = vpop.f32.mrb[45].mxu1 }
 0x1a3   : > { %3138 = vst [vmem:[%s3893_s15 + $0x1a8] sm:$0xff] %v3034_v55   ;;  %vm1409_vm9 = vcmp.ge.f32.partialorder %v3347_v59, 0.0  ;;  %v1537_v1 = vmul.f32 0.2, %v3347_v59  ;;  %v1471_v2 = vmul.f32 0.2, %v964_v63 }
 0x1a4   : > { %3105 = vst [vmem:[%s3893_s15 + $0xa0] sm:$0xff] %v2869_v60   ;;  %3137 = vst [vmem:[%s3893_s15 + $0x1a0] sm:$0xff] %v3029_v61   ;;  %v1535_v3 = vmul.f32 0.2, %v1220_v0  ;;  %v3284_v4 = vpop.f32.mrb[46].mxu0  ;;  %v3348_v5 = vpop.f32.mrb[46].mxu1  ;;  %v1601_v6 = vsel %vm1345_vm8, %v3283_v58, %v1473_v62 }
 0x1a5   : > { %vm1343_vm10 = vcmp.ge.f32.partialorder %v964_v63, 0.0  ;;  %vm1346_vm11 = vcmp.ge.f32.partialorder %v3284_v4, 0.0  ;;  %v1474_v7 = vmul.f32 0.2, %v3284_v4  ;;  %v967_v8 = vpop.f32.mrb[47].mxu0  ;;  %v1223_v9 = vpop.f32.mrb[47].mxu1  ;;  %v1665_v14 = vsel %vm1409_vm9, %v3347_v59, %v1537_v1 }
 0x1a6   : > { %vm1407_vm12 = vcmp.ge.f32.partialorder %v1220_v0, 0.0  ;;  %vm1410_vm13 = vcmp.ge.f32.partialorder %v3348_v5, 0.0  ;;  %v1538_v10 = vmul.f32 0.2, %v3348_v5  ;;  %vm1344_vm14 = vcmp.ge.f32.partialorder %v967_v8, 0.0 }
 0x1a7   : > { %v1602_v11 = vsel %vm1346_vm11, %v3284_v4, %v1474_v7  ;;  %v1472_v12 = vmul.f32 0.2, %v967_v8  ;;  %vm1408_vm15 = vcmp.ge.f32.partialorder %v1223_v9, 0.0  ;;  %v1536_v13 = vmul.f32 0.2, %v1223_v9 }
 0x1a8   : > { %v1599_v15 = vsel %vm1343_vm10, %v964_v63, %v1471_v2  ;;  %v2884_v16 = vpack.c.bf16 %v1602_v11, %v1601_v6  ;;  %v1666_v17 = vsel %vm1410_vm13, %v3348_v5, %v1538_v10  ;;  %v1663_v18 = vsel %vm1407_vm12, %v1220_v0, %v1535_v3 }
 0x1a9   : > { %v3044_v19 = vpack.c.bf16 %v1666_v17, %v1665_v14  ;;  %v1600_v20 = vsel %vm1344_vm14, %v967_v8, %v1472_v12  ;;  %v1664_v21 = vsel %vm1408_vm15, %v1223_v9, %v1536_v13  ;;  %v3287_v22 = vpop.f32.mrb[48].mxu0  ;;  %v3351_v23 = vpop.f32.mrb[48].mxu1 }
 0x1aa   : > { %3108 = vst [vmem:[%s3893_s15 + $0xb8] sm:$0xff] %v2884_v16   ;;  %v2879_v24 = vpack.c.bf16 %v1600_v20, %v1599_v15  ;;  %v3039_v25 = vpack.c.bf16 %v1664_v21, %v1663_v18  ;;  %vm1349_vm0 = vcmp.ge.f32.partialorder %v3287_v22, 0.0  ;;  %v1477_v26 = vmul.f32 0.2, %v3287_v22  ;;  %v980_v27 = vpop.f32.mrb[49].mxu0  ;;  %v1236_v28 = vpop.f32.mrb[49].mxu1 }
 0x1ab   : > { %3140 = vst [vmem:[%s3893_s15 + $0x1b8] sm:$0xff] %v3044_v19   ;;  %vm1413_vm1 = vcmp.ge.f32.partialorder %v3351_v23, 0.0  ;;  %v1541_v29 = vmul.f32 0.2, %v3351_v23  ;;  %v1475_v30 = vmul.f32 0.2, %v980_v27 }
 0x1ac   : > { %3107 = vst [vmem:[%s3893_s15 + $0xb0] sm:$0xff] %v2879_v24   ;;  %3139 = vst [vmem:[%s3893_s15 + $0x1b0] sm:$0xff] %v3039_v25   ;;  %v1539_v31 = vmul.f32 0.2, %v1236_v28  ;;  %v3288_v32 = vpop.f32.mrb[50].mxu0  ;;  %v3352_v33 = vpop.f32.mrb[50].mxu1  ;;  %v1605_v34 = vsel %vm1349_vm0, %v3287_v22, %v1477_v26 }
 0x1ad   : > { %vm1347_vm2 = vcmp.ge.f32.partialorder %v980_v27, 0.0  ;;  %vm1350_vm3 = vcmp.ge.f32.partialorder %v3288_v32, 0.0  ;;  %v1478_v35 = vmul.f32 0.2, %v3288_v32  ;;  %v983_v36 = vpop.f32.mrb[51].mxu0  ;;  %v1239_v37 = vpop.f32.mrb[51].mxu1  ;;  %v1669_v42 = vsel %vm1413_vm1, %v3351_v23, %v1541_v29 }
 0x1ae   : > { %vm1411_vm4 = vcmp.ge.f32.partialorder %v1236_v28, 0.0  ;;  %vm1414_vm5 = vcmp.ge.f32.partialorder %v3352_v33, 0.0  ;;  %v1542_v38 = vmul.f32 0.2, %v3352_v33  ;;  %vm1348_vm6 = vcmp.ge.f32.partialorder %v983_v36, 0.0 }
 0x1af   : > { %v1606_v39 = vsel %vm1350_vm3, %v3288_v32, %v1478_v35  ;;  %v1476_v40 = vmul.f32 0.2, %v983_v36  ;;  %vm1412_vm7 = vcmp.ge.f32.partialorder %v1239_v37, 0.0  ;;  %v1540_v41 = vmul.f32 0.2, %v1239_v37 }
 0x1b0   : > { %v1603_v43 = vsel %vm1347_vm2, %v980_v27, %v1475_v30  ;;  %v2894_v44 = vpack.c.bf16 %v1606_v39, %v1605_v34  ;;  %v1670_v45 = vsel %vm1414_vm5, %v3352_v33, %v1542_v38  ;;  %v1667_v46 = vsel %vm1411_vm4, %v1236_v28, %v1539_v31 }
 0x1b1   : > { %v3054_v47 = vpack.c.bf16 %v1670_v45, %v1669_v42  ;;  %v1604_v48 = vsel %vm1348_vm6, %v983_v36, %v1476_v40  ;;  %v1668_v49 = vsel %vm1412_vm7, %v1239_v37, %v1540_v41  ;;  %v3291_v50 = vpop.f32.mrb[52].mxu0  ;;  %v3355_v51 = vpop.f32.mrb[52].mxu1 }
 0x1b2   : > { %3110 = vst [vmem:[%s3893_s15 + $0xc8] sm:$0xff] %v2894_v44   ;;  %v2889_v52 = vpack.c.bf16 %v1604_v48, %v1603_v43  ;;  %v3049_v53 = vpack.c.bf16 %v1668_v49, %v1667_v46  ;;  %vm1353_vm8 = vcmp.ge.f32.partialorder %v3291_v50, 0.0  ;;  %v1481_v54 = vmul.f32 0.2, %v3291_v50  ;;  %v996_v55 = vpop.f32.mrb[53].mxu0  ;;  %v1252_v56 = vpop.f32.mrb[53].mxu1 }
 0x1b3   : > { %3142 = vst [vmem:[%s3893_s15 + $0x1c8] sm:$0xff] %v3054_v47   ;;  %vm1417_vm9 = vcmp.ge.f32.partialorder %v3355_v51, 0.0  ;;  %v1545_v57 = vmul.f32 0.2, %v3355_v51  ;;  %v1479_v58 = vmul.f32 0.2, %v996_v55 }
 0x1b4   : > { %3109 = vst [vmem:[%s3893_s15 + $0xc0] sm:$0xff] %v2889_v52   ;;  %3141 = vst [vmem:[%s3893_s15 + $0x1c0] sm:$0xff] %v3049_v53   ;;  %v1543_v59 = vmul.f32 0.2, %v1252_v56  ;;  %v3292_v60 = vpop.f32.mrb[54].mxu0  ;;  %v3356_v61 = vpop.f32.mrb[54].mxu1  ;;  %v1609_v62 = vsel %vm1353_vm8, %v3291_v50, %v1481_v54 }
 0x1b5   : > { %vm1351_vm10 = vcmp.ge.f32.partialorder %v996_v55, 0.0  ;;  %vm1354_vm11 = vcmp.ge.f32.partialorder %v3292_v60, 0.0  ;;  %v1482_v63 = vmul.f32 0.2, %v3292_v60  ;;  %v999_v0 = vpop.f32.mrb[55].mxu0  ;;  %v1255_v1 = vpop.f32.mrb[55].mxu1  ;;  %v1673_v6 = vsel %vm1417_vm9, %v3355_v51, %v1545_v57 }
 0x1b6   : > { %vm1415_vm12 = vcmp.ge.f32.partialorder %v1252_v56, 0.0  ;;  %vm1418_vm13 = vcmp.ge.f32.partialorder %v3356_v61, 0.0  ;;  %v1546_v2 = vmul.f32 0.2, %v3356_v61  ;;  %vm1352_vm14 = vcmp.ge.f32.partialorder %v999_v0, 0.0 }
 0x1b7   : > { %v1610_v3 = vsel %vm1354_vm11, %v3292_v60, %v1482_v63  ;;  %v1480_v4 = vmul.f32 0.2, %v999_v0  ;;  %vm1416_vm15 = vcmp.ge.f32.partialorder %v1255_v1, 0.0  ;;  %v1544_v5 = vmul.f32 0.2, %v1255_v1 }
 0x1b8   : > { %v1607_v7 = vsel %vm1351_vm10, %v996_v55, %v1479_v58  ;;  %v2904_v8 = vpack.c.bf16 %v1610_v3, %v1609_v62  ;;  %v1674_v9 = vsel %vm1418_vm13, %v3356_v61, %v1546_v2  ;;  %v1671_v10 = vsel %vm1415_vm12, %v1252_v56, %v1543_v59 }
 0x1b9   : > { %v3064_v11 = vpack.c.bf16 %v1674_v9, %v1673_v6  ;;  %v1608_v12 = vsel %vm1352_vm14, %v999_v0, %v1480_v4  ;;  %v1672_v13 = vsel %vm1416_vm15, %v1255_v1, %v1544_v5  ;;  %v3295_v14 = vpop.f32.mrb[56].mxu0  ;;  %v3359_v15 = vpop.f32.mrb[56].mxu1 }
 0x1ba   : > { %3112 = vst [vmem:[%s3893_s15 + $0xd8] sm:$0xff] %v2904_v8   ;;  %v2899_v16 = vpack.c.bf16 %v1608_v12, %v1607_v7  ;;  %v3059_v17 = vpack.c.bf16 %v1672_v13, %v1671_v10  ;;  %vm1357_vm0 = vcmp.ge.f32.partialorder %v3295_v14, 0.0  ;;  %v1485_v18 = vmul.f32 0.2, %v3295_v14  ;;  %v1012_v19 = vpop.f32.mrb[57].mxu0  ;;  %v1268_v20 = vpop.f32.mrb[57].mxu1 }
 0x1bb   : > { %3144 = vst [vmem:[%s3893_s15 + $0x1d8] sm:$0xff] %v3064_v11   ;;  %vm1421_vm1 = vcmp.ge.f32.partialorder %v3359_v15, 0.0  ;;  %v1549_v21 = vmul.f32 0.2, %v3359_v15  ;;  %v1483_v22 = vmul.f32 0.2, %v1012_v19 }
 0x1bc   : > { %3111 = vst [vmem:[%s3893_s15 + $0xd0] sm:$0xff] %v2899_v16   ;;  %3143 = vst [vmem:[%s3893_s15 + $0x1d0] sm:$0xff] %v3059_v17   ;;  %v1547_v23 = vmul.f32 0.2, %v1268_v20  ;;  %v3296_v24 = vpop.f32.mrb[58].mxu0  ;;  %v3360_v25 = vpop.f32.mrb[58].mxu1  ;;  %v1613_v26 = vsel %vm1357_vm0, %v3295_v14, %v1485_v18 }
 0x1bd   : > { %vm1355_vm2 = vcmp.ge.f32.partialorder %v1012_v19, 0.0  ;;  %vm1358_vm3 = vcmp.ge.f32.partialorder %v3296_v24, 0.0  ;;  %v1486_v27 = vmul.f32 0.2, %v3296_v24  ;;  %v1015_v28 = vpop.f32.mrb[59].mxu0  ;;  %v1271_v29 = vpop.f32.mrb[59].mxu1  ;;  %v1677_v34 = vsel %vm1421_vm1, %v3359_v15, %v1549_v21 }
 0x1be   : > { %vm1419_vm4 = vcmp.ge.f32.partialorder %v1268_v20, 0.0  ;;  %vm1422_vm5 = vcmp.ge.f32.partialorder %v3360_v25, 0.0  ;;  %v1550_v30 = vmul.f32 0.2, %v3360_v25  ;;  %vm1356_vm6 = vcmp.ge.f32.partialorder %v1015_v28, 0.0 }
 0x1bf   : > { %v1614_v31 = vsel %vm1358_vm3, %v3296_v24, %v1486_v27  ;;  %v1484_v32 = vmul.f32 0.2, %v1015_v28  ;;  %vm1420_vm7 = vcmp.ge.f32.partialorder %v1271_v29, 0.0  ;;  %v1548_v33 = vmul.f32 0.2, %v1271_v29 }
 0x1c0   : > { %v1611_v35 = vsel %vm1355_vm2, %v1012_v19, %v1483_v22  ;;  %v2914_v36 = vpack.c.bf16 %v1614_v31, %v1613_v26  ;;  %v1678_v37 = vsel %vm1422_vm5, %v3360_v25, %v1550_v30  ;;  %v1675_v38 = vsel %vm1419_vm4, %v1268_v20, %v1547_v23 }
 0x1c1   : > { %v3074_v39 = vpack.c.bf16 %v1678_v37, %v1677_v34  ;;  %v1612_v40 = vsel %vm1356_vm6, %v1015_v28, %v1484_v32  ;;  %v1676_v41 = vsel %vm1420_vm7, %v1271_v29, %v1548_v33  ;;  %v3299_v42 = vpop.f32.mrb[60].mxu0  ;;  %v3363_v43 = vpop.f32.mrb[60].mxu1 }
 0x1c2   : > { %3114 = vst [vmem:[%s3893_s15 + $0xe8] sm:$0xff] %v2914_v36   ;;  %v2909_v44 = vpack.c.bf16 %v1612_v40, %v1611_v35  ;;  %v3069_v45 = vpack.c.bf16 %v1676_v41, %v1675_v38  ;;  %vm1361_vm8 = vcmp.ge.f32.partialorder %v3299_v42, 0.0  ;;  %v1489_v46 = vmul.f32 0.2, %v3299_v42  ;;  %v1028_v47 = vpop.f32.mrb[61].mxu0  ;;  %v1284_v48 = vpop.f32.mrb[61].mxu1 }
 0x1c3   : > { %3146 = vst [vmem:[%s3893_s15 + $0x1e8] sm:$0xff] %v3074_v39   ;;  %vm1425_vm9 = vcmp.ge.f32.partialorder %v3363_v43, 0.0  ;;  %v1553_v49 = vmul.f32 0.2, %v3363_v43  ;;  %v1487_v50 = vmul.f32 0.2, %v1028_v47 }
 0x1c4   : > { %3113 = vst [vmem:[%s3893_s15 + $0xe0] sm:$0xff] %v2909_v44   ;;  %3145 = vst [vmem:[%s3893_s15 + $0x1e0] sm:$0xff] %v3069_v45   ;;  %v1551_v51 = vmul.f32 0.2, %v1284_v48  ;;  %v3300_v52 = vpop.f32.mrb[62].mxu0  ;;  %v3364_v53 = vpop.f32.mrb[62].mxu1  ;;  %v1617_v54 = vsel %vm1361_vm8, %v3299_v42, %v1489_v46 }
 0x1c5   : > { %vm1359_vm10 = vcmp.ge.f32.partialorder %v1028_v47, 0.0  ;;  %vm1362_vm11 = vcmp.ge.f32.partialorder %v3300_v52, 0.0  ;;  %v1490_v55 = vmul.f32 0.2, %v3300_v52  ;;  %v1031_v56 = vpop.f32.mrb[63].mxu0  ;;  %v1287_v57 = vpop.f32.mrb[63].mxu1  ;;  %v1681_v62 = vsel %vm1425_vm9, %v3363_v43, %v1553_v49 }
 0x1c6   : > { %vm1423_vm12 = vcmp.ge.f32.partialorder %v1284_v48, 0.0  ;;  %vm1426_vm13 = vcmp.ge.f32.partialorder %v3364_v53, 0.0  ;;  %v1554_v58 = vmul.f32 0.2, %v3364_v53  ;;  %vm1360_vm14 = vcmp.ge.f32.partialorder %v1031_v56, 0.0 }
 0x1c7   : > { %v1618_v59 = vsel %vm1362_vm11, %v3300_v52, %v1490_v55  ;;  %v1488_v60 = vmul.f32 0.2, %v1031_v56  ;;  %vm1424_vm15 = vcmp.ge.f32.partialorder %v1287_v57, 0.0  ;;  %v1552_v61 = vmul.f32 0.2, %v1287_v57 }
 0x1c8   : > { %v1615_v63 = vsel %vm1359_vm10, %v1028_v47, %v1487_v50  ;;  %v2924_v0 = vpack.c.bf16 %v1618_v59, %v1617_v54  ;;  %v1682_v1 = vsel %vm1426_vm13, %v3364_v53, %v1554_v58  ;;  %v1679_v2 = vsel %vm1423_vm12, %v1284_v48, %v1551_v51 }
 0x1c9   : > { %v3084_v3 = vpack.c.bf16 %v1682_v1, %v1681_v62  ;;  %v1616_v4 = vsel %vm1360_vm14, %v1031_v56, %v1488_v60  ;;  %v1680_v5 = vsel %vm1424_vm15, %v1287_v57, %v1552_v61 }
 0x1ca   : > { %3116 = vst [vmem:[%s3893_s15 + $0xf8] sm:$0xff] %v2924_v0   ;;  %v2919_v6 = vpack.c.bf16 %v1616_v4, %v1615_v63  ;;  %v3079_v7 = vpack.c.bf16 %v1680_v5, %v1679_v2 }
 0x1cb   : > { %3148 = vst [vmem:[%s3893_s15 + $0x1f8] sm:$0xff] %v3084_v3  }
 0x1cc   : > { %3115 = vst [vmem:[%s3893_s15 + $0xf0] sm:$0xff] %v2919_v6   ;;  %3147 = vst [vmem:[%s3893_s15 + $0x1f0] sm:$0xff] %v3079_v7  }
 0x1cd   : > { %3585 = shalt.err (!%p3582_p7)
}
 0x1ce   : > { %s3586_s20 = scalar_lea.hbm %s3977_s22, 8192  ;;  %s3590_s25 = scalar_lea.hbm %s4029_s2, 16384 }
 0x1cf   : > { %p3587_p9 = scmp.ne.s32.totalorder %s3977_s22, %s3586_s20  ;;  %p3591_p5 = scmp.lt.u32.totalorder %s3977_s22, %s4029_s2 }
 0x1d0   : > { %p3592_p11 = scmp.lt.u32.totalorder %s3590_s25, %s3586_s20  ;;  %p3594_p4 = scmp.lt.u32.totalorder %s3586_s20, %s3977_s22 }
 0x1d1   : > { %p3588_p1 = pnand %p3587_p9, %p3760_p12 }
 0x1d2   : > { %p3593_p2 = por %p3592_p11, %p3591_p5 }
 0x1d3   : > { %p3589_p0 = pneg %p3588_p1 }
 0x1d4   : > { %p3595_p6 = por %p3594_p4, %p3593_p2 }
 0x1d6   : > { %p3596_p8 = pnand %p3595_p6, %p3589_p0 }
 0x1d8   : > { %3599 = shalt.err (!%p3596_p8)
}
 0x1d9   : > { %s3649_s30 = smov 64   ;;  %s3650_s23 = smov 4  }
 0x1da   : > { %3387 = dma.vmem_to_hbm [thread:$0]  (%p3760_p12), %s3979_s4, 8192, %s3977_s22, %s2324_s28, %s3649_s30, %s3649_s30, %s3650_s23  }
 0x1db PF: > { %s2352_s15 = sand.u32 1, %s3630_s9   ;;  %p4044_p10 = scmp.ne.s32.totalorder %s4034_s16, 0 }
 0x1dc   : > { %p4045_p13 = scmp.ge.s32.totalorder %s3642_s12, 2  ;;  %s2353_s17 = scalar_lea.sflag [#allocation4], %s2352_s15 }
 0x1de   : > { %p3398_p3 = pnand %p4045_p13, %p4044_p10 }
 0x1e0   : > { %3625 = dma.done.wait (!%p3398_p3), %s2353_s17, 8192  }
 0x1e1   : > { %3627 = vsyncadd (!%p3398_p3), %s2353_s17, 4294959104  ;;  %p16_p7 = scmp.ge.s32.totalorder %s3722_s21, 4   ;;  %s4046_s9 = smov %s3634_s10 }
 0x1e2   : > { %s4047_s10 = smov %s3638_s11  ;;  %s4048_s11 = smov %s3756_s8 }
 0x1e3   : > { %s4049_s12 = smov %s3722_s21  ;;  %18 = sbr.rel (!%p16_p7) target bundleno = 6 (0x6), region = 77 }
 0x1ea   :  { %2358 = vsyncpa [#allocation3], 1 }
 0x1eb   :  { %2360 = vsyncpa [#allocation3 + $0x1], 1 }
 0x1ec   :  { %2361 = vsyncpa [#allocation6], 1 }
 0x1ed   :  { %2362 = vsyncpa [#allocation4], 1 }
 0x1ee   :  { %2364 = vsyncpa [#allocation4 + $0x1], 1 }

// kernel: netc_forward.5
= control target key start
LH: loop header
LB: loop body
LE: loop exit
PB: predicated region body
PF: predicated region fallthrough
CT: control target
= control target key end

     0   :  { %7 = vsyncpa [#allocation3], 0  ;;  %s2523_s0 = inlined_call_operand.hbm [shape: bf16[2,256,256], index: 0, kind: input, shape index: {}]   ;;  %s2524_s1 = inlined_call_operand.hbm [shape: bf16[256,128], index: 1, kind: input, shape index: {}]   ;;  %s2525_s2 = inlined_call_operand.hbm [shape: bf16[2,256,128], index: 2, kind: output, shape index: {}]  }
   0x1   :  { %9 = vsyncpa [#allocation3 + $0x1], 0 }
   0x2   :  { %10 = vsyncpa [#allocation6], 0 }
   0x3   :  { %11 = vsyncpa [#allocation4], 0 }
   0x4   :  { %13 = vsyncpa [#allocation4 + $0x1], 0  ;;  %s1824_s9 = smov 0   ;;  %s1826_s10 = smov 0  }
   0x5   :  { %s1828_s11 = smov 0   ;;  %s1830_s12 = smov 0  }
   0x6 LB: > { %s1845_s13 = sadd.s32 4294967295, %s1798_s12   ;;  %s1188_s14 = sadd.s32 4294967294, %s1798_s12   ;;  %s1798_s12 = sphi %s1830_s12, %s2558_s12   ;;  %s1794_s11 = sphi %s1828_s11, %s2557_s11   ;;  %s1790_s10 = sphi %s1826_s10, %s2556_s10   ;;  %s1786_s9 = sphi %s1824_s9, %s2555_s9  }
   0x7   : > { %p39_p0 = scmp.ne.s32.totalorder %s1790_s10, %s1786_s9  ;;  %p2526_p1 = scmp.eq.s32.totalorder %s1845_s13, 0 }
   0x8   : > { %p90_p3 = scmp.eq.s32.totalorder %s1188_s14, 1  ;;  %p1189_p5 = scmp.ge.s32.totalorder %s1798_s12, 1 }
   0x9   : > { %p1854_p4 = por %p2526_p1, %p39_p0  ;;  %p97_p7 = scmp.lt.s32.totalorder %s1798_s12, 3 }
   0xa   : > { %p1859_p6 = por %p90_p3, %p39_p0  ;;  %s1800_s18 = smov [#allocation5]  }
   0xb   : > { %s2529_s15 = scalar_select %p1854_p4, 1, 0 }
   0xc   : > { %s2530_s16 = scalar_select %p1859_p6, 1, 0 }
   0xd   : > { %p1864_p8 = pnand %p1189_p5, %p97_p7  ;;  %s109_s19 = sshll.u32 %s1800_s18, 4  ;;  %s1868_s19 = int_to_ptr.vmem [resolvable:$true] %s109_s19 }
   0xe   : > { %s1880_s21 = sadd.s32 1, %s1798_s12   ;;  %s26_s22 = sadd.s32 1, %s1794_s11 }
   0xf   : > { %s2531_s17 = scalar_select %p1864_p8, 1, 0 }
  0x10   : > { %p1549_p9 = pneg %p1864_p8  ;;  %s23_s23 = ssub.s32 %s1798_s12, %s1880_s21 }
  0x11   : > { %s1670_s26 = scalar_lea.hbm %s2524_s1, 2048 }
  0x12   : > { %p1875_p11 = pnand %p1549_p9, %p2526_p1  ;;  %p1671_p12 = scmp.ne.s32.totalorder %s2524_s1, %s1670_s26 }
  0x13   : > { %p1677_p5 = scmp.lt.u32.totalorder %s1670_s26, %s2524_s1 }
  0x14   : > { %p1672_p13 = pneg %p1875_p11 }
  0x16   : > { %p1673_p0 = pnand %p1672_p13, %p1671_p12 }
  0x18   : > { %p1674_p3 = pneg %p1673_p0 }
  0x1a   : > { %p1679_p7 = pnand %p1677_p5, %p1674_p3 }
  0x1c   : > { %1682 = shalt.err (!%p1679_p7)
}
  0x1d   : > { %s1683_s3 = scalar_lea.vmem %s1868_s19, 2048  ;;  %p1691_p2 = scmp.lt.s32.totalorder %s1868_s19, %s1868_s19 }
  0x1e   : > { %p1684_p9 = scmp.ne.s32.totalorder %s1868_s19, %s1683_s3  ;;  %p1692_p6 = scmp.lt.s32.totalorder %s1683_s3, %s1683_s3 }
  0x20   : > { %p1686_p10 = pnand %p1684_p9, %p1672_p13  ;;  %p1693_p4 = por %p1692_p6, %p1691_p2 }
  0x22   : > { %p1687_p1 = pneg %p1686_p10 }
  0x24   : > { %p1694_p8 = pnand %p1693_p4, %p1687_p1 }
  0x26   : > { %1697 = shalt.err (!%p1694_p8)
}
  0x27   : > { %s1801_s4 = smov 64   ;;  %s1802_s5 = smov 4  }
  0x28   : > { %1552 = dma.hbm_to_vmem [thread:$0]  (!%p1875_p11), %s2524_s1, 2048, %s1868_s19, [#allocation6], %s1801_s4, %s1801_s4, %s1802_s5  }
  0x29   : > { %p24_p2 = scmp.eq.s32.totalorder %s23_s23, 0  ;;  %p33_p1 = scmp.ne.s32.totalorder %s1794_s11, %s1790_s10 }
  0x2a   : > { %p34_p4 = scmp.eq.s32.totalorder %s1798_s12, 0  ;;  %p1562_p6 = scmp.lt.s32.totalorder %s1798_s12, 2 }
  0x2b   : > { %s1911_s8 = scalar_select %p24_p2, %s1794_s11, %s26_s22  }
  0x2c   : > { %p35_p8 = por %p34_p4, %p33_p1  ;;  %p2533_p10 = scmp.eq.s32.totalorder %s1845_s13, 1 }
  0x2d   : > { %s123_s18 = sand.u32 1, %s1794_s11   ;;  %s1284_s24 = sshll.u32 %s1798_s12, 12 }
  0x2e   : > { %p1915_p12 = por %p2533_p10, %p33_p1  ;;  %s1192_s25 = sshll.u32 %s123_s18, 8 }
  0x2f   : > { %s1924_s27 = scalar_lea.hbm %s2523_s0, %s1284_s24  ;;  %s127_s19 = scalar_lea.vmem [#allocation2], %s1192_s25 }
  0x30   : > { %s134_s22 = sshll.u32 %s127_s19, 4  ;;  %p1926_p11 = pnand %p1562_p6, %p35_p8  ;;  %s1930_s22 = int_to_ptr.vmem [resolvable:$true] %s134_s22 }
  0x31   : > { %s1932_s28 = scalar_lea.sflag [#allocation3], %s123_s18  ;;  %s1698_s29 = scalar_lea.hbm %s1924_s27, 4096 }
  0x32   : > { %p1699_p13 = scmp.ne.s32.totalorder %s1924_s27, %s1698_s29  ;;  %p1700_p0 = pneg %p1926_p11 }
  0x33   : > { %s1703_s4 = scalar_lea.hbm %s2523_s0, 8192  ;;  %p1704_p7 = scmp.lt.u32.totalorder %s1924_s27, %s2523_s0 }
  0x34   : > { %p1701_p3 = pnand %p1700_p0, %p1699_p13  ;;  %p1705_p9 = scmp.lt.u32.totalorder %s1703_s4, %s1698_s29 }
  0x35   : > { %p1707_p1 = scmp.lt.u32.totalorder %s1698_s29, %s1924_s27 }
  0x36   : > { %p1702_p5 = pneg %p1701_p3  ;;  %p1706_p2 = por %p1705_p9, %p1704_p7 }
  0x38   : > { %p1708_p4 = por %p1707_p1, %p1706_p2 }
  0x3a   : > { %p1709_p6 = pnand %p1708_p4, %p1702_p5 }
  0x3c   : > { %1712 = shalt.err (!%p1709_p6)
}
  0x3d   : > { %s1713_s7 = scalar_lea.vmem %s1930_s22, 4096  ;;  %s1803_s18 = smov [#allocation2]  }
  0x3e   : > { %p1714_p8 = scmp.ne.s32.totalorder %s1930_s22, %s1713_s7  ;;  %s1718_s24 = sshll.u32 %s1803_s18, 4  ;;  %s1719_s24 = int_to_ptr.vmem [resolvable:$false] %s1718_s24 }
  0x3f   : > { %s1720_s25 = scalar_lea.vmem %s1719_s24, 8192  ;;  %p1721_p3 = scmp.lt.s32.totalorder %s1930_s22, %s1719_s24 }
  0x40   : > { %p1716_p10 = pnand %p1714_p8, %p1700_p0  ;;  %p1722_p7 = scmp.lt.s32.totalorder %s1720_s25, %s1713_s7 }
  0x42   : > { %p1717_p13 = pneg %p1716_p10  ;;  %p1723_p9 = por %p1722_p7, %p1721_p3 }
  0x44   : > { %p1724_p2 = pnand %p1723_p9, %p1717_p13 }
  0x46   : > { %1727 = shalt.err (!%p1724_p2)
}
  0x47   : > { %s1804_s20 = smov 128   ;;  %s1805_s26 = smov 8  }
  0x48   : > { %1556 = dma.hbm_to_vmem [thread:$0]  (!%p1926_p11), %s1924_s27, 4096, %s1930_s22, %s1932_s28, %s1804_s20, %s1804_s20, %s1805_s26  }
  0x49   : > { %p2536_p0 = scmp.ne.s32.totalorder %s2531_s17, 0 }
  0x4a   : > { %s1963_s19 = sand.u32 (!%p2536_p0), 1, %s1790_s10   ;;  %p2537_p5 = scmp.ne.s32.totalorder (!%p2536_p0), %s2529_s15, 0 }
  0x4b   : > { %146 = sbr.rel (%p2536_p0) target bundleno = 513 (0x201), region = 28  ;;  %s1196_s29 = sshll.u32 (!%p2536_p0), %s1963_s19, 8 }
  0x4c   : > { %s149_s30 = scalar_lea.sflag (!%p2536_p0), [#allocation3], %s1963_s19  ;;  %s1967_s3 = scalar_lea.vmem (!%p2536_p0), [#allocation2], %s1196_s29 }
  0x52   : > { %1773 = dma.done.wait (%p2537_p5), %s149_s30, 4096  }
  0x53   : > { %1775 = vsyncadd (%p2537_p5), %s149_s30, 4294963200  ;;  %p2538_p11 = scmp.eq.s32.totalorder %s1845_s13, 0 }
  0x55   : > { %1777 = dma.done.wait (%p2538_p11), [#allocation6], 2048   ;;  %p2539_p1 = pmov %p2538_p11 }
  0x56   : > { %v1604_v0 = vld [vmem:[#allocation5 + $0x40] sm:$0xff]   ;;  %v1606_v2 = vld [vmem:[#allocation5 + $0x48] sm:$0xff]   ;;  %v1608_v4 = vld [vmem:[#allocation5 + $0x50] sm:$0xff]   ;;  %s1198_s15 = sshll.u32 %s1963_s19, 7  ;;  %s1317_s27 = sshll.u32 %s1845_s13, 11 }
  0x57   : > { %1779 = vsyncadd (%p2539_p1), [#allocation6], 4294965248  ;;  %v1605_v1 = vld [vmem:[#allocation5] sm:$0xff]   ;;  %1413 = vmatprep.subr.bf16.mxu0 %v1604_v0  ;;  %1525 = vmatprep.subr.bf16.mxu1 %v1604_v0  ;;  %v1607_v3 = vld [vmem:[#allocation5 + $0x8] sm:$0xff]   ;;  %s2276_s17 = scalar_lea.vmem [#allocation7], %s1198_s15  ;;  %s2467_s28 = scalar_lea.hbm %s2525_s2, %s1317_s27 }
  0x58   : > { %1414 = vmatpush3.bf16.msra.mxu0 %v1605_v1  ;;  %1533 = vmatpush3.bf16.msra.mxu1 %v1605_v1  ;;  %v1609_v5 = vld [vmem:[#allocation5 + $0x10] sm:$0xff]   ;;  %v1610_v6 = vld [vmem:[#allocation5 + $0x58] sm:$0xff]   ;;  %v1612_v8 = vld [vmem:[#allocation5 + $0x60] sm:$0xff]   ;;  %s1105_s22 = sshll.u32 %s2276_s17, 4  ;;  %s1092_s4 = scalar_lea.sflag [#allocation4], %s1963_s19  ;;  %s2469_s22 = int_to_ptr.vmem [resolvable:$true] %s1105_s22 }
  0x59   : > { %1415 = vmatprep.subr.bf16.mxu0 %v1606_v2  ;;  %1526 = vmatprep.subr.bf16.mxu1 %v1606_v2  ;;  %v1611_v7 = vld [vmem:[#allocation5 + $0x18] sm:$0xff]   ;;  %v1613_v9 = vld [vmem:[#allocation5 + $0x20] sm:$0xff]   ;;  %v1614_v10 = vld [vmem:[#allocation5 + $0x68] sm:$0xff]   ;;  %s1728_s5 = scalar_lea.vmem %s2469_s22, 2048  ;;  %s1806_s6 = smov [#allocation7]  }
  0x5a   : > { %v1622_v11 = vld [vmem:[%s1967_s3 + $0x4] ss:$8 sps:$4 sm:$0xff]   ;;  %v1616_v13 = vld [vmem:[#allocation5 + $0x70] sm:$0xff]   ;;  %v1618_v16 = vld [vmem:[#allocation5 + $0x78] sm:$0xff]   ;;  %p1729_p4 = scmp.ne.s32.totalorder %s2469_s22, %s1728_s5  ;;  %s1732_s7 = sshll.u32 %s1806_s6, 4  ;;  %s1733_s7 = int_to_ptr.vmem [resolvable:$false] %s1732_s7 }
  0x5b   : > { %v1615_v12 = vld [vmem:[#allocation5 + $0x28] sm:$0xff]   ;;  %530 = vmatprep.mubr.bf16.mxu0 %v1622_v11  ;;  %v1617_v15 = vld [vmem:[#allocation5 + $0x30] sm:$0xff]   ;;  %v1619_v17 = vld [vmem:[#allocation5 + $0x38] sm:$0xff]   ;;  %s1734_s18 = scalar_lea.vmem %s1733_s7, 4096  ;;  %p1735_p10 = scmp.lt.s32.totalorder %s2469_s22, %s1733_s7 }
  0x5c   : > { %1416 = vmatpush3.bf16.msra.mxu0 %v1607_v3  ;;  %1534 = vmatpush3.bf16.msra.mxu1 %v1607_v3  ;;  %v1634_v14 = vld [vmem:[%s1967_s3 + $0x84] ss:$8 sps:$4 sm:$0xff]   ;;  %v1620_v18 = vld [vmem:[%s1967_s3] ss:$8 sps:$4 sm:$0xff]   ;;  %v1623_v19 = vld [vmem:[%s1967_s3 + $0x14] ss:$8 sps:$4 sm:$0xff]   ;;  %p1730_p6 = pnand %p1729_p4, %p1915_p12  ;;  %p1736_p13 = scmp.lt.s32.totalorder %s1734_s18, %s1728_s5 }
  0x5d   : > { %1417 = vmatprep.subr.bf16.mxu0 %v1608_v4  ;;  %1527 = vmatprep.subr.bf16.mxu1 %v1608_v4  ;;  %v1632_v20 = vld [vmem:[%s1967_s3 + $0x80] ss:$8 sps:$4 sm:$0xff]   ;;  %v1638_v21 = vld [vmem:[%s1967_s3 + $0x94] ss:$8 sps:$4 sm:$0xff]   ;;  %v1625_v22 = vld [vmem:[%s1967_s3 + $0x10] ss:$8 sps:$4 sm:$0xff]  }
  0x5e   : > { %594 = vmatprep.mubr.bf16.mxu1 %v1634_v14  ;;  %v1626_v23 = vld [vmem:[%s1967_s3 + $0x24] ss:$8 sps:$4 sm:$0xff]   ;;  %v1640_v24 = vld [vmem:[%s1967_s3 + $0x90] ss:$8 sps:$4 sm:$0xff]   ;;  %v1628_v26 = vld [vmem:[%s1967_s3 + $0x20] ss:$8 sps:$4 sm:$0xff]   ;;  %p1731_p8 = pneg %p1730_p6  ;;  %p1737_p3 = por %p1736_p13, %p1735_p10 }
  0x5f   : > { %v1644_v25 = vld [vmem:[%s1967_s3 + $0xa4] ss:$8 sps:$4 sm:$0xff]   ;;  %v1629_v27 = vld [vmem:[%s1967_s3 + $0x34] ss:$8 sps:$4 sm:$0xff]   ;;  %v1646_v28 = vld [vmem:[%s1967_s3 + $0xa0] ss:$8 sps:$4 sm:$0xff]  }
  0x60   : > { %1418 = vmatpush3.bf16.msra.mxu0 %v1609_v5  ;;  %1535 = vmatpush3.bf16.msra.mxu1 %v1609_v5  ;;  %v1650_v29 = vld [vmem:[%s1967_s3 + $0xb4] ss:$8 sps:$4 sm:$0xff]   ;;  %v1631_v30 = vld [vmem:[%s1967_s3 + $0x30] ss:$8 sps:$4 sm:$0xff]   ;;  %v1635_v31 = vld [vmem:[%s1967_s3 + $0x44] ss:$8 sps:$4 sm:$0xff]   ;;  %p1738_p7 = pnand %p1737_p3, %p1731_p8 }
  0x61   : > { %1419 = vmatprep.subr.bf16.mxu0 %v1610_v6  ;;  %1528 = vmatprep.subr.bf16.mxu1 %v1610_v6  ;;  %v1652_v32 = vld [vmem:[%s1967_s3 + $0xb0] ss:$8 sps:$4 sm:$0xff]   ;;  %v1656_v33 = vld [vmem:[%s1967_s3 + $0xc4] ss:$8 sps:$4 sm:$0xff]   ;;  %v1637_v34 = vld [vmem:[%s1967_s3 + $0x40] ss:$8 sps:$4 sm:$0xff]  }
  0x62   : > { %v1641_v35 = vld [vmem:[%s1967_s3 + $0x54] ss:$8 sps:$4 sm:$0xff]   ;;  %v1658_v36 = vld [vmem:[%s1967_s3 + $0xc0] ss:$8 sps:$4 sm:$0xff]   ;;  %v1643_v38 = vld [vmem:[%s1967_s3 + $0x50] ss:$8 sps:$4 sm:$0xff]  }
  0x63   : > { %v1659_v37 = vld [vmem:[%s1967_s3 + $0xd4] ss:$8 sps:$4 sm:$0xff]   ;;  %v1647_v39 = vld [vmem:[%s1967_s3 + $0x64] ss:$8 sps:$4 sm:$0xff]   ;;  %v1661_v40 = vld [vmem:[%s1967_s3 + $0xd0] ss:$8 sps:$4 sm:$0xff]  }
  0x64   : > { %1420 = vmatpush3.bf16.msra.mxu0 %v1611_v7  ;;  %1536 = vmatpush3.bf16.msra.mxu1 %v1611_v7  ;;  %v1662_v41 = vld [vmem:[%s1967_s3 + $0xe4] ss:$8 sps:$4 sm:$0xff]   ;;  %v1649_v42 = vld [vmem:[%s1967_s3 + $0x60] ss:$8 sps:$4 sm:$0xff]   ;;  %v1653_v43 = vld [vmem:[%s1967_s3 + $0x74] ss:$8 sps:$4 sm:$0xff]  }
  0x65   : > { %1421 = vmatprep.subr.bf16.mxu0 %v1612_v8  ;;  %1529 = vmatprep.subr.bf16.mxu1 %v1612_v8  ;;  %v1664_v44 = vld [vmem:[%s1967_s3 + $0xe0] ss:$8 sps:$4 sm:$0xff]   ;;  %v1665_v45 = vld [vmem:[%s1967_s3 + $0xf4] ss:$8 sps:$4 sm:$0xff]   ;;  %v1655_v46 = vld [vmem:[%s1967_s3 + $0x70] ss:$8 sps:$4 sm:$0xff]  }
  0x66   : > { %v1667_v47 = vld [vmem:[%s1967_s3 + $0xf0] ss:$8 sps:$4 sm:$0xff]  }
  0x68   : > { %1422 = vmatpush3.bf16.msra.mxu0 %v1613_v9  ;;  %1537 = vmatpush3.bf16.msra.mxu1 %v1613_v9 }
  0x69   : > { %1423 = vmatprep.subr.bf16.mxu0 %v1614_v10  ;;  %1530 = vmatprep.subr.bf16.mxu1 %v1614_v10 }
  0x6c   : > { %1424 = vmatpush3.bf16.msra.mxu0 %v1615_v12  ;;  %1538 = vmatpush3.bf16.msra.mxu1 %v1615_v12 }
  0x6d   : > { %1425 = vmatprep.subr.bf16.mxu0 %v1616_v13  ;;  %1531 = vmatprep.subr.bf16.mxu1 %v1616_v13 }
  0x70   : > { %1426 = vmatpush3.bf16.msra.mxu0 %v1617_v15  ;;  %1539 = vmatpush3.bf16.msra.mxu1 %v1617_v15 }
  0x71   : > { %1427 = vmatprep.subr.bf16.mxu0 %v1618_v16  ;;  %1532 = vmatprep.subr.bf16.mxu1 %v1618_v16 }
  0x74   : > { %1428 = vmatpush3.bf16.msra.mxu0 %v1619_v17  ;;  %1540 = vmatpush3.bf16.msra.mxu1 %v1619_v17 }
  0x77   : > { %531 = vmatmul.mubr.bf16.vlgmr.msra.gmra.mrb[0].mxu0 %v1620_v18  ;;  %595 = vmatmul.mubr.bf16.vlgmr.msra.gmra.mrb[0].mxu1 %v1632_v20 }
  0x78   : > { %538 = vmatprep.mubr.bf16.mxu0 %v1623_v19  ;;  %602 = vmatprep.mubr.bf16.mxu1 %v1638_v21 }
  0x7f   : > { %539 = vmatmul.mubr.bf16.gmra.mrb[4].mxu0 %v1625_v22  ;;  %603 = vmatmul.mubr.bf16.gmra.mrb[4].mxu1 %v1640_v24 }
  0x80   : > { %546 = vmatprep.mubr.bf16.mxu0 %v1626_v23  ;;  %610 = vmatprep.mubr.bf16.mxu1 %v1644_v25 }
  0x87   : > { %547 = vmatmul.mubr.bf16.gmra.mrb[8].mxu0 %v1628_v26  ;;  %611 = vmatmul.mubr.bf16.gmra.mrb[8].mxu1 %v1646_v28 }
  0x88   : > { %554 = vmatprep.mubr.bf16.mxu0 %v1629_v27  ;;  %618 = vmatprep.mubr.bf16.mxu1 %v1650_v29 }
  0x8f   : > { %555 = vmatmul.mubr.bf16.gmra.mrb[12].mxu0 %v1631_v30  ;;  %619 = vmatmul.mubr.bf16.gmra.mrb[12].mxu1 %v1652_v32 }
  0x90   : > { %562 = vmatprep.mubr.bf16.mxu0 %v1635_v31  ;;  %626 = vmatprep.mubr.bf16.mxu1 %v1656_v33 }
  0x97   : > { %563 = vmatmul.mubr.bf16.gmra.mrb[16].mxu0 %v1637_v34  ;;  %627 = vmatmul.mubr.bf16.gmra.mrb[16].mxu1 %v1658_v36 }
  0x98   : > { %570 = vmatprep.mubr.bf16.mxu0 %v1641_v35  ;;  %634 = vmatprep.mubr.bf16.mxu1 %v1659_v37 }
  0x9f   : > { %571 = vmatmul.mubr.bf16.gmra.mrb[20].mxu0 %v1643_v38  ;;  %635 = vmatmul.mubr.bf16.gmra.mrb[20].mxu1 %v1661_v40 }
  0xa0   : > { %578 = vmatprep.mubr.bf16.mxu0 %v1647_v39  ;;  %642 = vmatprep.mubr.bf16.mxu1 %v1662_v41 }
  0xa7   : > { %579 = vmatmul.mubr.bf16.gmra.mrb[24].mxu0 %v1649_v42  ;;  %643 = vmatmul.mubr.bf16.gmra.mrb[24].mxu1 %v1664_v44 }
  0xa8   : > { %586 = vmatprep.mubr.bf16.mxu0 %v1653_v43  ;;  %650 = vmatprep.mubr.bf16.mxu1 %v1665_v45 }
  0xaf   : > { %587 = vmatmul.mubr.bf16.gmra.mrb[28].mxu0 %v1655_v46  ;;  %651 = vmatmul.mubr.bf16.gmra.mrb[28].mxu1 %v1667_v47 }
 0x14a   : > { %v1429_v48 = vpop.f32.mrb[0].mxu0  ;;  %v1477_v50 = vpop.f32.mrb[0].mxu1 }
 0x14b   : > { %v1430_v49 = vpop.f32.mrb[1].mxu0  ;;  %v1478_v53 = vpop.f32.mrb[1].mxu1 }
 0x14c   : > { %v2009_v51 = vadd.f32 %v1430_v49, %v1429_v48  ;;  %v1432_v52 = vpop.f32.mrb[2].mxu0  ;;  %v2011_v55 = vadd.f32 %v1478_v53, %v1477_v50  ;;  %v1480_v56 = vpop.f32.mrb[2].mxu1 }
 0x14d   : > { %v1433_v54 = vpop.f32.mrb[3].mxu0  ;;  %v1481_v58 = vpop.f32.mrb[3].mxu1 }
 0x14e   : > { %v2013_v57 = vadd.f32 %v1433_v54, %v1432_v52  ;;  %v2015_v59 = vadd.f32 %v1481_v58, %v1480_v56  ;;  %v697_v18 = vmul.f32 %v2009_v51, %v2009_v51 }
 0x150   : > { %v698_v11 = vmul.f32 %v2013_v57, %v2013_v57  ;;  %v659_v19 = vadd.f32 %v2013_v57, %v2009_v51 }
 0x152   : > { %v1435_v60 = vpop.f32.mrb[4].mxu0  ;;  %v1483_v62 = vpop.f32.mrb[4].mxu1  ;;  %v729_v24 = vadd.f32 %v698_v11, %v697_v18 }
 0x153   : > { %v1436_v61 = vpop.f32.mrb[5].mxu0  ;;  %v1484_v1 = vpop.f32.mrb[5].mxu1 }
 0x154   : > { %v2017_v63 = vadd.f32 %v1436_v61, %v1435_v60  ;;  %v1438_v0 = vpop.f32.mrb[6].mxu0  ;;  %v2019_v3 = vadd.f32 %v1484_v1, %v1483_v62  ;;  %v1486_v4 = vpop.f32.mrb[6].mxu1 }
 0x155   : > { %v1439_v2 = vpop.f32.mrb[7].mxu0  ;;  %v1487_v6 = vpop.f32.mrb[7].mxu1 }
 0x156   : > { %v2021_v5 = vadd.f32 %v1439_v2, %v1438_v0  ;;  %v2023_v7 = vadd.f32 %v1487_v6, %v1486_v4  ;;  %v699_v20 = vmul.f32 %v2017_v63, %v2017_v63  ;;  %v660_v25 = vadd.f32 %v2017_v63, %v659_v19 }
 0x158   : > { %v730_v26 = vadd.f32 %v729_v24, %v699_v20  ;;  %v700_v27 = vmul.f32 %v2021_v5, %v2021_v5  ;;  %v661_v31 = vadd.f32 %v2021_v5, %v660_v25 }
 0x15a   : > { %v1441_v8 = vpop.f32.mrb[8].mxu0  ;;  %v1489_v10 = vpop.f32.mrb[8].mxu1  ;;  %v731_v39 = vadd.f32 %v730_v26, %v700_v27 }
 0x15b   : > { %v1442_v9 = vpop.f32.mrb[9].mxu0  ;;  %v1490_v14 = vpop.f32.mrb[9].mxu1 }
 0x15c   : > { %v2027_v12 = vadd.f32 %v1442_v9, %v1441_v8  ;;  %v1444_v13 = vpop.f32.mrb[10].mxu0  ;;  %v2029_v16 = vadd.f32 %v1490_v14, %v1489_v10  ;;  %v1492_v17 = vpop.f32.mrb[10].mxu1 }
 0x15d   : > { %v1445_v15 = vpop.f32.mrb[11].mxu0  ;;  %v1493_v22 = vpop.f32.mrb[11].mxu1 }
 0x15e   : > { %v2037_v21 = vadd.f32 %v1445_v15, %v1444_v13  ;;  %v2039_v23 = vadd.f32 %v1493_v22, %v1492_v17  ;;  %v701_v32 = vmul.f32 %v2027_v12, %v2027_v12  ;;  %v662_v40 = vadd.f32 %v2027_v12, %v661_v31 }
 0x160   : > { %v732_v44 = vadd.f32 %v731_v39, %v701_v32  ;;  %v702_v45 = vmul.f32 %v2037_v21, %v2037_v21  ;;  %v663_v46 = vadd.f32 %v2037_v21, %v662_v40 }
 0x162   : > { %v1447_v28 = vpop.f32.mrb[12].mxu0  ;;  %v1495_v30 = vpop.f32.mrb[12].mxu1  ;;  %v733_v52 = vadd.f32 %v732_v44, %v702_v45 }
 0x163   : > { %v1448_v29 = vpop.f32.mrb[13].mxu0  ;;  %v1496_v35 = vpop.f32.mrb[13].mxu1 }
 0x164   : > { %v2047_v33 = vadd.f32 %v1448_v29, %v1447_v28  ;;  %v1450_v34 = vpop.f32.mrb[14].mxu0  ;;  %v2049_v37 = vadd.f32 %v1496_v35, %v1495_v30  ;;  %v1498_v38 = vpop.f32.mrb[14].mxu1 }
 0x165   : > { %v1451_v36 = vpop.f32.mrb[15].mxu0  ;;  %v1499_v42 = vpop.f32.mrb[15].mxu1 }
 0x166   : > { %v2052_v41 = vadd.f32 %v1451_v36, %v1450_v34  ;;  %v2054_v43 = vadd.f32 %v1499_v42, %v1498_v38  ;;  %v703_v47 = vmul.f32 %v2047_v33, %v2047_v33  ;;  %v664_v53 = vadd.f32 %v2047_v33, %v663_v46 }
 0x168   : > { %v734_v0 = vadd.f32 %v733_v52, %v703_v47  ;;  %v704_v1 = vmul.f32 %v2052_v41, %v2052_v41  ;;  %v665_v8 = vadd.f32 %v2052_v41, %v664_v53 }
 0x16a   : > { %v1453_v48 = vpop.f32.mrb[16].mxu0  ;;  %v1501_v50 = vpop.f32.mrb[16].mxu1  ;;  %v735_v10 = vadd.f32 %v734_v0, %v704_v1 }
 0x16b   : > { %v1454_v49 = vpop.f32.mrb[17].mxu0  ;;  %v1502_v58 = vpop.f32.mrb[17].mxu1 }
 0x16c   : > { %v2062_v54 = vadd.f32 %v1454_v49, %v1453_v48  ;;  %v1456_v56 = vpop.f32.mrb[18].mxu0  ;;  %v2064_v61 = vadd.f32 %v1502_v58, %v1501_v50  ;;  %v1504_v62 = vpop.f32.mrb[18].mxu1 }
 0x16d   : > { %v1457_v60 = vpop.f32.mrb[19].mxu0  ;;  %v1505_v4 = vpop.f32.mrb[19].mxu1 }
 0x16e   : > { %v2068_v2 = vadd.f32 %v1457_v60, %v1456_v56  ;;  %v2070_v6 = vadd.f32 %v1505_v4, %v1504_v62  ;;  %v705_v9 = vmul.f32 %v2062_v54, %v2062_v54  ;;  %v666_v11 = vadd.f32 %v2062_v54, %v665_v8 }
 0x170   : > { %v736_v17 = vadd.f32 %v735_v10, %v705_v9  ;;  %v706_v18 = vmul.f32 %v2068_v2, %v2068_v2  ;;  %v667_v27 = vadd.f32 %v2068_v2, %v666_v11 }
 0x172   : > { %v1459_v13 = vpop.f32.mrb[20].mxu0  ;;  %v1507_v15 = vpop.f32.mrb[20].mxu1  ;;  %v737_v32 = vadd.f32 %v736_v17, %v706_v18 }
 0x173   : > { %v1460_v14 = vpop.f32.mrb[21].mxu0  ;;  %v1508_v22 = vpop.f32.mrb[21].mxu1 }
 0x174   : > { %v2078_v19 = vadd.f32 %v1460_v14, %v1459_v13  ;;  %v1462_v20 = vpop.f32.mrb[22].mxu0  ;;  %v2080_v25 = vadd.f32 %v1508_v22, %v1507_v15  ;;  %v1510_v26 = vpop.f32.mrb[22].mxu1 }
 0x175   : > { %v1463_v24 = vpop.f32.mrb[23].mxu0  ;;  %v1511_v30 = vpop.f32.mrb[23].mxu1 }
 0x176   : > { %v707_v28 = vmul.f32 %v2078_v19, %v2078_v19  ;;  %v2085_v29 = vadd.f32 %v1463_v24, %v1462_v20  ;;  %v2087_v31 = vadd.f32 %v1511_v30, %v1510_v26  ;;  %v668_v34 = vadd.f32 %v2078_v19, %v667_v27 }
 0x178   : > { %v738_v35 = vadd.f32 %v737_v32, %v707_v28  ;;  %v708_v36 = vmul.f32 %v2085_v29, %v2085_v29  ;;  %v669_v42 = vadd.f32 %v2085_v29, %v668_v34  ;;  %v713_v34 = vmul.f32 %v2011_v55, %v2011_v55 }
 0x17a   : > { %v1465_v38 = vpop.f32.mrb[24].mxu0  ;;  %v1513_v40 = vpop.f32.mrb[24].mxu1  ;;  %v739_v50 = vadd.f32 %v738_v35, %v708_v36 }
 0x17b   : > { %v1466_v39 = vpop.f32.mrb[25].mxu0  ;;  %v1514_v46 = vpop.f32.mrb[25].mxu1 }
 0x17c   : > { %v2093_v44 = vadd.f32 %v1466_v39, %v1465_v38  ;;  %v1468_v45 = vpop.f32.mrb[26].mxu0  ;;  %v2095_v48 = vadd.f32 %v1514_v46, %v1513_v40  ;;  %v1516_v49 = vpop.f32.mrb[26].mxu1  ;;  %v714_v38 = vmul.f32 %v2015_v59, %v2015_v59 }
 0x17d   : > { %v1469_v47 = vpop.f32.mrb[27].mxu0  ;;  %v1517_v58 = vpop.f32.mrb[27].mxu1 }
 0x17e   : > { %v670_v52 = vadd.f32 %v2093_v44, %v669_v42  ;;  %v709_v53 = vmul.f32 %v2093_v44, %v2093_v44  ;;  %v2100_v56 = vadd.f32 %v1469_v47, %v1468_v45  ;;  %v2102_v60 = vadd.f32 %v1517_v58, %v1516_v49 }
 0x17f   : > { %v715_v42 = vmul.f32 %v2019_v3, %v2019_v3  ;;  %v716_v47 = vmul.f32 %v2023_v7, %v2023_v7 }
 0x180   : > { %v740_v62 = vadd.f32 %v739_v50, %v709_v53  ;;  %v671_v0 = vadd.f32 %v2100_v56, %v670_v52  ;;  %v710_v1 = vmul.f32 %v2100_v56, %v2100_v56  ;;  %v717_v52 = vmul.f32 %v2029_v16, %v2029_v16 }
 0x182   : > { %v741_v4 = vadd.f32 %v740_v62, %v710_v1  ;;  %v1471_v8 = vpop.f32.mrb[28].mxu0  ;;  %v1519_v10 = vpop.f32.mrb[28].mxu1  ;;  %v718_v62 = vmul.f32 %v2039_v23, %v2039_v23 }
 0x183   : > { %v1472_v9 = vpop.f32.mrb[29].mxu0  ;;  %v1520_v14 = vpop.f32.mrb[29].mxu1 }
 0x184   : > { %v2107_v11 = vadd.f32 %v1472_v9, %v1471_v8  ;;  %v1474_v13 = vpop.f32.mrb[30].mxu0  ;;  %v2109_v17 = vadd.f32 %v1520_v14, %v1519_v10  ;;  %v1522_v18 = vpop.f32.mrb[30].mxu1  ;;  %v720_v10 = vmul.f32 %v2054_v43, %v2054_v43 }
 0x185   : > { %v1475_v15 = vpop.f32.mrb[31].mxu0  ;;  %v1523_v26 = vpop.f32.mrb[31].mxu1 }
 0x186   : > { %v672_v20 = vadd.f32 %v2107_v11, %v671_v0  ;;  %v711_v22 = vmul.f32 %v2107_v11, %v2107_v11  ;;  %v2114_v24 = vadd.f32 %v1475_v15, %v1474_v13  ;;  %v2116_v27 = vadd.f32 %v1523_v26, %v1522_v18 }
 0x187   : > { %v721_v18 = vmul.f32 %v2064_v61, %v2064_v61 }
 0x188   : > { %v742_v28 = vadd.f32 %v741_v4, %v711_v22  ;;  %v673_v30 = vadd.f32 %v2114_v24, %v672_v20  ;;  %v712_v32 = vmul.f32 %v2114_v24, %v2114_v24  ;;  %v719_v4 = vmul.f32 %v2049_v37, %v2049_v37 }
 0x18a   : > { %v674_v35 = vadd.f32 %v2011_v55, %v673_v30  ;;  %v743_v36 = vadd.f32 %v742_v28, %v712_v32  ;;  %v722_v28 = vmul.f32 %v2070_v6, %v2070_v6 }
 0x18c   : > { %v675_v39 = vadd.f32 %v2015_v59, %v674_v35  ;;  %v744_v40 = vadd.f32 %v743_v36, %v713_v34  ;;  %v723_v34 = vmul.f32 %v2080_v25, %v2080_v25 }
 0x18e   : > { %v676_v45 = vadd.f32 %v2019_v3, %v675_v39  ;;  %v745_v46 = vadd.f32 %v744_v40, %v714_v38  ;;  %v724_v38 = vmul.f32 %v2087_v31, %v2087_v31 }
 0x190   : > { %v677_v49 = vadd.f32 %v2023_v7, %v676_v45  ;;  %v746_v50 = vadd.f32 %v745_v46, %v715_v42  ;;  %v725_v42 = vmul.f32 %v2095_v48, %v2095_v48 }
 0x192   : > { %v747_v53 = vadd.f32 %v746_v50, %v716_v47  ;;  %v678_v58 = vadd.f32 %v2029_v16, %v677_v49  ;;  %v726_v47 = vmul.f32 %v2102_v60, %v2102_v60  ;;  %v727_v49 = vmul.f32 %v2109_v17, %v2109_v17 }
 0x194   : > { %v679_v0 = vadd.f32 %v2039_v23, %v678_v58  ;;  %v748_v1 = vadd.f32 %v747_v53, %v717_v52 }
 0x196   : > { %v680_v8 = vadd.f32 %v2049_v37, %v679_v0  ;;  %v749_v9 = vadd.f32 %v748_v1, %v718_v62  ;;  %v728_v62 = vmul.f32 %v2116_v27, %v2116_v27 }
 0x198   : > { %v681_v13 = vadd.f32 %v2054_v43, %v680_v8  ;;  %v750_v14 = vadd.f32 %v749_v9, %v719_v4 }
 0x19a   : > { %v682_v15 = vadd.f32 %v2064_v61, %v681_v13  ;;  %v751_v20 = vadd.f32 %v750_v14, %v720_v10 }
 0x19c   : > { %v752_v22 = vadd.f32 %v751_v20, %v721_v18  ;;  %v683_v26 = vadd.f32 %v2070_v6, %v682_v15 }
 0x19e   : > { %v753_v30 = vadd.f32 %v752_v22, %v722_v28  ;;  %v684_v32 = vadd.f32 %v2080_v25, %v683_v26 }
 0x1a0   : > { %v754_v35 = vadd.f32 %v753_v30, %v723_v34  ;;  %v685_v36 = vadd.f32 %v2087_v31, %v684_v32 }
 0x1a2   : > { %v755_v39 = vadd.f32 %v754_v35, %v724_v38  ;;  %v686_v40 = vadd.f32 %v2095_v48, %v685_v36 }
 0x1a4   : > { %v756_v45 = vadd.f32 %v755_v39, %v725_v42  ;;  %v687_v46 = vadd.f32 %v2102_v60, %v686_v40 }
 0x1a6   : > { %v757_v50 = vadd.f32 %v756_v45, %v726_v47  ;;  %v688_v52 = vadd.f32 %v2109_v17, %v687_v46 }
 0x1a8   : > { %v758_v53 = vadd.f32 %v757_v50, %v727_v49  ;;  %v689_v58 = vadd.f32 %v2116_v27, %v688_v52 }
 0x1aa   : > { %v690_v0 = vrot.slane %v689_v58, 4  ;;  %v759_v1 = vadd.f32 %v758_v53, %v728_v62 }
 0x1ac   : > { %v691_v4 = vadd.f32 %v690_v0, %v689_v58  ;;  %v760_v8 = vrot.slane %v759_v1, 4 }
 0x1ae   : > { %v692_v9 = vrot.slane %v691_v4, 2  ;;  %v761_v10 = vadd.f32 %v760_v8, %v759_v1 }
 0x1b0   : > { %v693_v13 = vadd.f32 %v692_v9, %v691_v4  ;;  %v762_v14 = vrot.slane %v761_v10, 2 }
 0x1b2   : > { %v694_v15 = vrot.slane %v693_v13, 1  ;;  %v763_v18 = vadd.f32 %v762_v14, %v761_v10 }
 0x1b4   : > { %v695_v20 = vadd.f32 %v694_v15, %v693_v13  ;;  %v764_v22 = vrot.slane %v763_v18, 1 }
 0x1b6   : > { %v2169_v26 = vmul.f32 0.00390625, %v695_v20  ;;  %v765_v28 = vadd.f32 %v764_v22, %v763_v18 }
 0x1b8   : > { %v766_v30 = vmul.f32 0.00390625, %v765_v28  ;;  %v767_v32 = vmul.f32 %v2169_v26, %v2169_v26  ;;  %v799_v34 = vsub.f32 %v2109_v17, %v2169_v26  ;;  %v800_v35 = vsub.f32 %v2116_v27, %v2169_v26 }
 0x1b9   : > { %v781_v39 = vsub.f32 %v2093_v44, %v2169_v26  ;;  %v782_v40 = vsub.f32 %v2100_v56, %v2169_v26  ;;  %v783_v42 = vsub.f32 %v2107_v11, %v2169_v26  ;;  %v784_v45 = vsub.f32 %v2114_v24, %v2169_v26 }
 0x1ba   : > { %v768_v36 = vsub.f32 %v766_v30, %v767_v32  ;;  %v798_v17 = vsub.f32 %v2102_v60, %v2169_v26  ;;  %v769_v27 = vsub.f32 %v2009_v51, %v2169_v26  ;;  %v770_v46 = vsub.f32 %v2013_v57, %v2169_v26 }
 0x1bb   : > { %v771_v44 = vsub.f32 %v2017_v63, %v2169_v26  ;;  %v772_v56 = vsub.f32 %v2021_v5, %v2169_v26  ;;  %v773_v11 = vsub.f32 %v2027_v12, %v2169_v26  ;;  %v774_v24 = vsub.f32 %v2037_v21, %v2169_v26 }
 0x1bc   : > { %v801_v38 = vadd.f32 1e-05, %v768_v36  ;;  %v775_v47 = vsub.f32 %v2047_v33, %v2169_v26  ;;  %v776_v51 = vsub.f32 %v2052_v41, %v2169_v26  ;;  %v777_v57 = vsub.f32 %v2062_v54, %v2169_v26 }
 0x1bd   : > { %v778_v63 = vsub.f32 %v2068_v2, %v2169_v26  ;;  %v779_v5 = vsub.f32 %v2078_v19, %v2169_v26  ;;  %v780_v12 = vsub.f32 %v2085_v29, %v2169_v26  ;;  %v785_v21 = vsub.f32 %v2011_v55, %v2169_v26 }
 0x1be   : > { %1668 = vrsqrt.f32 %v801_v38  ;;  %v786_v33 = vsub.f32 %v2015_v59, %v2169_v26  ;;  %v787_v41 = vsub.f32 %v2019_v3, %v2169_v26  ;;  %v788_v54 = vsub.f32 %v2023_v7, %v2169_v26 }
 0x1bf   : > { %v789_v2 = vsub.f32 %v2029_v16, %v2169_v26  ;;  %v790_v19 = vsub.f32 %v2039_v23, %v2169_v26  ;;  %v791_v29 = vsub.f32 %v2049_v37, %v2169_v26  ;;  %v792_v55 = vsub.f32 %v2054_v43, %v2169_v26 }
 0x1c0   : > { %v793_v59 = vsub.f32 %v2064_v61, %v2169_v26  ;;  %v794_v49 = vsub.f32 %v2070_v6, %v2169_v26  ;;  %v795_v7 = vsub.f32 %v2080_v25, %v2169_v26  ;;  %v796_v16 = vsub.f32 %v2087_v31, %v2169_v26 }
 0x1c1   : > { %v797_v23 = vsub.f32 %v2095_v48, %v2169_v26 }
 0x1c8   : > { %v1669_v3 = vpop.eup %1668 }
 0x1c9   : > { %v833_v37 = vmul.f32 %v1669_v3, %v799_v34  ;;  %v834_v50 = vmul.f32 %v1669_v3, %v800_v35  ;;  %v2237_v52 = vmul.f32 %v1669_v3, %v769_v27  ;;  %v2239_v43 = vmul.f32 %v1669_v3, %v770_v46 }
 0x1ca   : > { %v2242_v61 = vmul.f32 %v1669_v3, %v771_v44  ;;  %v2244_v53 = vmul.f32 %v1669_v3, %v772_v56  ;;  %v2246_v6 = vmul.f32 %v1669_v3, %v773_v11  ;;  %v2248_v25 = vmul.f32 %v1669_v3, %v774_v24 }
 0x1cb   : > { %vm865_vm0 = vcmp.ge.f32.partialorder %v833_v37, 0.0  ;;  %vm866_vm1 = vcmp.ge.f32.partialorder %v834_v50, 0.0  ;;  %v897_v31 = vmul.f32 0.2, %v833_v37  ;;  %v898_v58 = vmul.f32 0.2, %v834_v50 }
 0x1cc   : > { %v2250_v48 = vmul.f32 %v1669_v3, %v775_v47  ;;  %v2252_v62 = vmul.f32 %v1669_v3, %v776_v51  ;;  %v2254_v0 = vmul.f32 %v1669_v3, %v777_v57  ;;  %v2256_v1 = vmul.f32 %v1669_v3, %v778_v63 }
 0x1cd   : > { %v929_v4 = vsel %vm865_vm0, %v833_v37, %v897_v31  ;;  %v930_v8 = vsel %vm866_vm1, %v834_v50, %v898_v58  ;;  %v2258_v9 = vmul.f32 %v1669_v3, %v779_v5  ;;  %v2260_v10 = vmul.f32 %v1669_v3, %v780_v12 }
 0x1ce   : > { %v1396_v13 = vpack.c.bf16 %v930_v8, %v929_v4  ;;  %v2262_v14 = vmul.f32 %v1669_v3, %v781_v39  ;;  %v2264_v15 = vmul.f32 %v1669_v3, %v782_v40  ;;  %v2266_v18 = vmul.f32 %v1669_v3, %v783_v42 }
 0x1cf   : > { %v2268_v20 = vmul.f32 %v1669_v3, %v784_v45  ;;  %v2270_v22 = vmul.f32 %v1669_v3, %v785_v21  ;;  %v2272_v28 = vmul.f32 %v1669_v3, %v786_v33  ;;  %v2274_v30 = vmul.f32 %v1669_v3, %v787_v41 }
 0x1d0   : > { %1412 = vst [vmem:[%s2276_s17 + $0x78] sm:$0xff] %v1396_v13   ;;  %v2279_v32 = vmul.f32 %v1669_v3, %v788_v54  ;;  %v2281_v34 = vmul.f32 %v1669_v3, %v789_v2  ;;  %v2283_v35 = vmul.f32 %v1669_v3, %v790_v19  ;;  %v2285_v36 = vmul.f32 %v1669_v3, %v791_v29 }
 0x1d1   : > { %v2287_v38 = vmul.f32 %v1669_v3, %v792_v55  ;;  %v2289_v39 = vmul.f32 %v1669_v3, %v793_v59  ;;  %v2291_v40 = vmul.f32 %v1669_v3, %v794_v49  ;;  %v2293_v42 = vmul.f32 %v1669_v3, %v795_v7 }
 0x1d2   : > { %v2295_v45 = vmul.f32 %v1669_v3, %v796_v16  ;;  %v2297_v27 = vmul.f32 %v1669_v3, %v797_v23  ;;  %v2302_v46 = vmul.f32 %v1669_v3, %v798_v17  ;;  %vm835_vm2 = vcmp.ge.f32.partialorder %v2237_v52, 0.0 }
 0x1d3   : > { %vm836_vm3 = vcmp.ge.f32.partialorder %v2239_v43, 0.0  ;;  %vm837_vm4 = vcmp.ge.f32.partialorder %v2242_v61, 0.0  ;;  %vm838_vm5 = vcmp.ge.f32.partialorder %v2244_v53, 0.0  ;;  %vm839_vm6 = vcmp.ge.f32.partialorder %v2246_v6, 0.0 }
 0x1d4   : > { %vm840_vm7 = vcmp.ge.f32.partialorder %v2248_v25, 0.0  ;;  %vm841_vm8 = vcmp.ge.f32.partialorder %v2250_v48, 0.0  ;;  %vm842_vm9 = vcmp.ge.f32.partialorder %v2252_v62, 0.0  ;;  %vm846_vm13 = vcmp.ge.f32.partialorder %v2260_v10, 0.0 }
 0x1d5   : > { %v867_v60 = vmul.f32 0.2, %v2237_v52  ;;  %v868_v26 = vmul.f32 0.2, %v2239_v43  ;;  %vm851_vm10 = vcmp.ge.f32.partialorder %v2270_v22, 0.0  ;;  %vm852_vm11 = vcmp.ge.f32.partialorder %v2272_v28, 0.0 }
 0x1d6   : > { %v869_v17 = vmul.f32 0.2, %v2242_v61  ;;  %v870_v44 = vmul.f32 0.2, %v2244_v53  ;;  %v871_v56 = vmul.f32 0.2, %v2246_v6 }
 0x1d7   : > { %vm857_vm1 = vcmp.ge.f32.partialorder %v2285_v36, 0.0  ;;  %v872_v11 = vmul.f32 0.2, %v2248_v25  ;;  %v873_v24 = vmul.f32 0.2, %v2250_v48  ;;  %v2338_v51 = vsel %vm835_vm2, %v2237_v52, %v867_v60 }
 0x1d8   : > { %v874_v47 = vmul.f32 0.2, %v2252_v62  ;;  %vm860_vm15 = vcmp.ge.f32.partialorder %v2291_v40, 0.0  ;;  %vm861_vm14 = vcmp.ge.f32.partialorder %v2293_v42, 0.0  ;;  %v875_v57 = vmul.f32 0.2, %v2254_v0 }
 0x1d9   : > { %v876_v63 = vmul.f32 0.2, %v2256_v1  ;;  %v877_v5 = vmul.f32 0.2, %v2258_v9  ;;  %v900_v12 = vsel %vm836_vm3, %v2239_v43, %v868_v26  ;;  %vm862_vm2 = vcmp.ge.f32.partialorder %v2295_v45, 0.0 }
 0x1da   : > { %vm863_vm12 = vcmp.ge.f32.partialorder %v2297_v27, 0.0  ;;  %vm864_vm0 = vcmp.ge.f32.partialorder %v2302_v46, 0.0  ;;  %v878_v21 = vmul.f32 0.2, %v2260_v10  ;;  %v879_v33 = vmul.f32 0.2, %v2262_v14 }
 0x1db   : > { %v880_v41 = vmul.f32 0.2, %v2264_v15  ;;  %v901_v54 = vsel %vm837_vm4, %v2242_v61, %v869_v17  ;;  %v881_v2 = vmul.f32 0.2, %v2266_v18  ;;  %v882_v19 = vmul.f32 0.2, %v2268_v20 }
 0x1dc   : > { %v883_v29 = vmul.f32 0.2, %v2270_v22  ;;  %v902_v55 = vsel %vm838_vm5, %v2244_v53, %v870_v44  ;;  %v884_v59 = vmul.f32 0.2, %v2272_v28  ;;  %v885_v3 = vmul.f32 0.2, %v2274_v30 }
 0x1dd   : > { %v886_v49 = vmul.f32 0.2, %v2279_v32  ;;  %v903_v7 = vsel %vm839_vm6, %v2246_v6, %v871_v56  ;;  %v887_v16 = vmul.f32 0.2, %v2281_v34  ;;  %v888_v23 = vmul.f32 0.2, %v2283_v35 }
 0x1de   : > { %v889_v37 = vmul.f32 0.2, %v2285_v36  ;;  %v904_v50 = vsel %vm840_vm7, %v2248_v25, %v872_v11  ;;  %v890_v52 = vmul.f32 0.2, %v2287_v38  ;;  %v891_v43 = vmul.f32 0.2, %v2289_v39 }
 0x1df   : > { %v892_v61 = vmul.f32 0.2, %v2291_v40  ;;  %v905_v53 = vsel %vm841_vm8, %v2250_v48, %v873_v24  ;;  %v893_v6 = vmul.f32 0.2, %v2293_v42  ;;  %v894_v31 = vmul.f32 0.2, %v2295_v45 }
 0x1e0   : > { %v895_v58 = vmul.f32 0.2, %v2297_v27  ;;  %v906_v25 = vsel %vm842_vm9, %v2252_v62, %v874_v47  ;;  %v896_v4 = vmul.f32 0.2, %v2302_v46  ;;  %vm2540_vm3 = vcmp.ge.f32.partialorder %v2254_v0, 0.0 }
 0x1e1   : > { %v907_v8 = vsel %vm2540_vm3, %v2254_v0, %v875_v57  ;;  %vm2541_vm4 = vcmp.ge.f32.partialorder %v2256_v1, 0.0  ;;  %vm2542_vm5 = vcmp.ge.f32.partialorder %v2258_v9, 0.0  ;;  %v910_v60 = vsel %vm846_vm13, %v2260_v10, %v878_v21 }
 0x1e2   : > { %v908_v48 = vsel %vm2541_vm4, %v2256_v1, %v876_v63  ;;  %v909_v13 = vsel %vm2542_vm5, %v2258_v9, %v877_v5  ;;  %vm2543_vm6 = vcmp.ge.f32.partialorder %v2262_v14, 0.0  ;;  %vm2544_vm7 = vcmp.ge.f32.partialorder %v2264_v15, 0.0 }
 0x1e3   : > { %v911_v62 = vsel %vm2543_vm6, %v2262_v14, %v879_v33  ;;  %v912_v0 = vsel %vm2544_vm7, %v2264_v15, %v880_v41  ;;  %vm2545_vm8 = vcmp.ge.f32.partialorder %v2266_v18, 0.0  ;;  %vm2546_vm9 = vcmp.ge.f32.partialorder %v2268_v20, 0.0 }
 0x1e4   : > { %v913_v1 = vsel %vm2545_vm8, %v2266_v18, %v881_v2  ;;  %v914_v9 = vsel %vm2546_vm9, %v2268_v20, %v882_v19  ;;  %v915_v10 = vsel %vm851_vm10, %v2270_v22, %v883_v29  ;;  %v916_v14 = vsel %vm852_vm11, %v2272_v28, %v884_v59 }
 0x1e5   : > { %vm2547_vm13 = vcmp.ge.f32.partialorder %v2274_v30, 0.0  ;;  %vm2548_vm3 = vcmp.ge.f32.partialorder %v2279_v32, 0.0  ;;  %vm2549_vm4 = vcmp.ge.f32.partialorder %v2281_v34, 0.0  ;;  %vm2550_vm10 = vcmp.ge.f32.partialorder %v2283_v35, 0.0 }
 0x1e6   : > { %v917_v15 = vsel %vm2547_vm13, %v2274_v30, %v885_v3  ;;  %v918_v18 = vsel %vm2548_vm3, %v2279_v32, %v886_v49  ;;  %v919_v20 = vsel %vm2549_vm4, %v2281_v34, %v887_v16  ;;  %v920_v22 = vsel %vm2550_vm10, %v2283_v35, %v888_v23 }
 0x1e7   : > { %v921_v28 = vsel %vm857_vm1, %v2285_v36, %v889_v37  ;;  %vm2551_vm11 = vcmp.ge.f32.partialorder %v2287_v38, 0.0  ;;  %vm2552_vm5 = vcmp.ge.f32.partialorder %v2289_v39, 0.0  ;;  %v924_v34 = vsel %vm860_vm15, %v2291_v40, %v892_v61 }
 0x1e8   : > { %v922_v30 = vsel %vm2551_vm11, %v2287_v38, %v890_v52  ;;  %v923_v32 = vsel %vm2552_vm5, %v2289_v39, %v891_v43  ;;  %v925_v35 = vsel %vm861_vm14, %v2293_v42, %v893_v6  ;;  %v926_v36 = vsel %vm862_vm2, %v2295_v45, %v894_v31 }
 0x1e9   : > { %v927_v38 = vsel %vm863_vm12, %v2297_v27, %v895_v58  ;;  %v928_v39 = vsel %vm864_vm0, %v2302_v46, %v896_v4  ;;  %v1321_v40 = vpack.c.bf16 %v900_v12, %v2338_v51  ;;  %v1326_v42 = vpack.c.bf16 %v902_v55, %v901_v54 }
 0x1ea   : > { %v1331_v26 = vpack.c.bf16 %v904_v50, %v903_v7  ;;  %v1336_v17 = vpack.c.bf16 %v906_v25, %v905_v53  ;;  %v1341_v44 = vpack.c.bf16 %v908_v48, %v907_v8  ;;  %v1346_v45 = vpack.c.bf16 %v910_v60, %v909_v13 }
 0x1eb   : > { %1322 = vst [vmem:[%s2276_s17] sm:$0xff] %v1321_v40   ;;  %v1351_v27 = vpack.c.bf16 %v912_v0, %v911_v62  ;;  %v1356_v56 = vpack.c.bf16 %v914_v9, %v913_v1  ;;  %v1361_v11 = vpack.c.bf16 %v916_v14, %v915_v10  ;;  %1398 = vst [vmem:[%s2276_s17 + $0x8] sm:$0xff] %v1326_v42  }
 0x1ec   : > { %1399 = vst [vmem:[%s2276_s17 + $0x10] sm:$0xff] %v1331_v26   ;;  %1400 = vst [vmem:[%s2276_s17 + $0x18] sm:$0xff] %v1336_v17   ;;  %v1366_v46 = vpack.c.bf16 %v918_v18, %v917_v15  ;;  %v1371_v24 = vpack.c.bf16 %v920_v22, %v919_v20  ;;  %v1376_v47 = vpack.c.bf16 %v922_v30, %v921_v28 }
 0x1ed   : > { %1401 = vst [vmem:[%s2276_s17 + $0x20] sm:$0xff] %v1341_v44   ;;  %v1381_v51 = vpack.c.bf16 %v924_v34, %v923_v32  ;;  %1402 = vst [vmem:[%s2276_s17 + $0x28] sm:$0xff] %v1346_v45   ;;  %v1386_v57 = vpack.c.bf16 %v926_v36, %v925_v35  ;;  %v1391_v63 = vpack.c.bf16 %v928_v39, %v927_v38 }
 0x1ee   : > { %1403 = vst [vmem:[%s2276_s17 + $0x30] sm:$0xff] %v1351_v27   ;;  %1404 = vst [vmem:[%s2276_s17 + $0x38] sm:$0xff] %v1356_v56  }
 0x1ef   : > { %1405 = vst [vmem:[%s2276_s17 + $0x40] sm:$0xff] %v1361_v11   ;;  %1406 = vst [vmem:[%s2276_s17 + $0x48] sm:$0xff] %v1366_v46  }
 0x1f0   : > { %1407 = vst [vmem:[%s2276_s17 + $0x50] sm:$0xff] %v1371_v24   ;;  %1408 = vst [vmem:[%s2276_s17 + $0x58] sm:$0xff] %v1376_v47  }
 0x1f1   : > { %1409 = vst [vmem:[%s2276_s17 + $0x60] sm:$0xff] %v1381_v51   ;;  %1410 = vst [vmem:[%s2276_s17 + $0x68] sm:$0xff] %v1386_v57  }
 0x1f2   : > { %1411 = vst [vmem:[%s2276_s17 + $0x70] sm:$0xff] %v1391_v63  }
 0x1f3   : > { %1741 = shalt.err (!%p1738_p7)
}
 0x1f4   : > { %s1742_s24 = scalar_lea.hbm %s2467_s28, 2048  ;;  %s1746_s26 = scalar_lea.hbm %s2525_s2, 4096 }
 0x1f5   : > { %p1743_p9 = scmp.ne.s32.totalorder %s2467_s28, %s1742_s24  ;;  %p1747_p5 = scmp.lt.u32.totalorder %s2467_s28, %s2525_s2 }
 0x1f6   : > { %p1748_p11 = scmp.lt.u32.totalorder %s1746_s26, %s1742_s24  ;;  %p1750_p4 = scmp.lt.u32.totalorder %s1742_s24, %s2467_s28 }
 0x1f7   : > { %p1744_p2 = pnand %p1743_p9, %p1915_p12 }
 0x1f8   : > { %p1749_p1 = por %p1748_p11, %p1747_p5 }
 0x1f9   : > { %p1745_p0 = pneg %p1744_p2 }
 0x1fa   : > { %p1751_p6 = por %p1750_p4, %p1749_p1 }
 0x1fc   : > { %p1752_p8 = pnand %p1751_p6, %p1745_p0 }
 0x1fe   : > { %1755 = shalt.err (!%p1752_p8)
}
 0x1ff   : > { %s1807_s3 = smov 64   ;;  %s1808_s15 = smov 4  }
 0x200   : > { %1547 = dma.vmem_to_hbm [thread:$0]  (%p1915_p12), %s2469_s22, 2048, %s2467_s28, %s1092_s4, %s1807_s3, %s1807_s3, %s1808_s15  }
 0x201 PF: > { %s1120_s17 = sand.u32 1, %s1786_s9   ;;  %p2553_p10 = scmp.ne.s32.totalorder %s2530_s16, 0 }
 0x202   : > { %p2554_p13 = scmp.ge.s32.totalorder %s1798_s12, 2  ;;  %s1121_s27 = scalar_lea.sflag [#allocation4], %s1120_s17 }
 0x204   : > { %p1558_p3 = pnand %p2554_p13, %p2553_p10 }
 0x206   : > { %1781 = dma.done.wait (!%p1558_p3), %s1121_s27, 2048  }
 0x207   : > { %1783 = vsyncadd (!%p1558_p3), %s1121_s27, 4294965248  ;;  %p16_p7 = scmp.ge.s32.totalorder %s1880_s21, 4   ;;  %s2555_s9 = smov %s1790_s10 }
 0x208   : > { %s2556_s10 = smov %s1794_s11  ;;  %s2557_s11 = smov %s1911_s8 }
 0x209   : > { %s2558_s12 = smov %s1880_s21  ;;  %18 = sbr.rel (!%p16_p7) target bundleno = 6 (0x6), region = 77 }
 0x210   :  { %1126 = vsyncpa [#allocation3], 1 }
 0x211   :  { %1128 = vsyncpa [#allocation3 + $0x1], 1 }
 0x212   :  { %1129 = vsyncpa [#allocation6], 1 }
 0x213   :  { %1130 = vsyncpa [#allocation4], 1 }
 0x214   :  { %1132 = vsyncpa [#allocation4 + $0x1], 1 }

// kernel: netc_forward.6
= control target key start
LH: loop header
LB: loop body
LE: loop exit
PB: predicated region body
PF: predicated region fallthrough
CT: control target
= control target key end

     0   :  { %7 = vsyncpa [#allocation3], 0  ;;  %s1262_s0 = inlined_call_operand.hbm [shape: bf16[2,64,256], index: 0, kind: input, shape index: {}]   ;;  %s1263_s1 = inlined_call_operand.hbm [shape: bf16[256,128], index: 1, kind: input, shape index: {}]   ;;  %s1264_s2 = inlined_call_operand.hbm [shape: bf16[2,64,128], index: 2, kind: output, shape index: {}]  }
   0x1   :  { %9 = vsyncpa [#allocation3 + $0x1], 0 }
   0x2   :  { %10 = vsyncpa [#allocation6], 0 }
   0x3   :  { %11 = vsyncpa [#allocation4], 0 }
   0x4   :  { %13 = vsyncpa [#allocation4 + $0x1], 0  ;;  %s1020_s9 = smov 0   ;;  %s1022_s10 = smov 0  }
   0x5   :  { %s1024_s11 = smov 0   ;;  %s1026_s12 = smov 0  }
   0x6 LB: > { %s1041_s13 = sadd.s32 4294967295, %s994_s12   ;;  %s636_s14 = sadd.s32 4294967294, %s994_s12   ;;  %s994_s12 = sphi %s1026_s12, %s1284_s12   ;;  %s990_s11 = sphi %s1024_s11, %s1283_s11   ;;  %s986_s10 = sphi %s1022_s10, %s1282_s10   ;;  %s982_s9 = sphi %s1020_s9, %s1281_s9  }
   0x7   : > { %p39_p0 = scmp.ne.s32.totalorder %s986_s10, %s982_s9  ;;  %p1265_p1 = scmp.eq.s32.totalorder %s1041_s13, 0 }
   0x8   : > { %p90_p3 = scmp.eq.s32.totalorder %s636_s14, 1  ;;  %p637_p5 = scmp.ge.s32.totalorder %s994_s12, 1 }
   0x9   : > { %p1050_p4 = por %p1265_p1, %p39_p0  ;;  %p97_p7 = scmp.lt.s32.totalorder %s994_s12, 3 }
   0xa   : > { %p1055_p6 = por %p90_p3, %p39_p0  ;;  %s996_s18 = smov [#allocation5]  }
   0xb   : > { %s1268_s15 = scalar_select %p1050_p4, 1, 0 }
   0xc   : > { %s1269_s16 = scalar_select %p1055_p6, 1, 0 }
   0xd   : > { %p1060_p8 = pnand %p637_p5, %p97_p7  ;;  %s109_s19 = sshll.u32 %s996_s18, 4  ;;  %s1064_s19 = int_to_ptr.vmem [resolvable:$true] %s109_s19 }
   0xe   : > { %s1076_s21 = sadd.s32 1, %s994_s12   ;;  %s26_s22 = sadd.s32 1, %s990_s11 }
   0xf   : > { %s1270_s17 = scalar_select %p1060_p8, 1, 0 }
  0x10   : > { %p781_p9 = pneg %p1060_p8  ;;  %s23_s23 = ssub.s32 %s994_s12, %s1076_s21 }
  0x11   : > { %s866_s26 = scalar_lea.hbm %s1263_s1, 2048 }
  0x12   : > { %p1071_p11 = pnand %p781_p9, %p1265_p1  ;;  %p867_p12 = scmp.ne.s32.totalorder %s1263_s1, %s866_s26 }
  0x13   : > { %p873_p5 = scmp.lt.u32.totalorder %s866_s26, %s1263_s1 }
  0x14   : > { %p868_p13 = pneg %p1071_p11 }
  0x16   : > { %p869_p0 = pnand %p868_p13, %p867_p12 }
  0x18   : > { %p870_p3 = pneg %p869_p0 }
  0x1a   : > { %p875_p7 = pnand %p873_p5, %p870_p3 }
  0x1c   : > { %878 = shalt.err (!%p875_p7)
}
  0x1d   : > { %s879_s3 = scalar_lea.vmem %s1064_s19, 2048  ;;  %p887_p2 = scmp.lt.s32.totalorder %s1064_s19, %s1064_s19 }
  0x1e   : > { %p880_p9 = scmp.ne.s32.totalorder %s1064_s19, %s879_s3  ;;  %p888_p6 = scmp.lt.s32.totalorder %s879_s3, %s879_s3 }
  0x20   : > { %p882_p10 = pnand %p880_p9, %p868_p13  ;;  %p889_p4 = por %p888_p6, %p887_p2 }
  0x22   : > { %p883_p1 = pneg %p882_p10 }
  0x24   : > { %p890_p8 = pnand %p889_p4, %p883_p1 }
  0x26   : > { %893 = shalt.err (!%p890_p8)
}
  0x27   : > { %s997_s4 = smov 64   ;;  %s998_s5 = smov 4  }
  0x28   : > { %784 = dma.hbm_to_vmem [thread:$0]  (!%p1071_p11), %s1263_s1, 2048, %s1064_s19, [#allocation6], %s997_s4, %s997_s4, %s998_s5  }
  0x29   : > { %p24_p2 = scmp.eq.s32.totalorder %s23_s23, 0  ;;  %p33_p1 = scmp.ne.s32.totalorder %s990_s11, %s986_s10 }
  0x2a   : > { %p34_p4 = scmp.eq.s32.totalorder %s994_s12, 0  ;;  %p794_p6 = scmp.lt.s32.totalorder %s994_s12, 2 }
  0x2b   : > { %s1107_s8 = scalar_select %p24_p2, %s990_s11, %s26_s22  }
  0x2c   : > { %p35_p8 = por %p34_p4, %p33_p1  ;;  %p1272_p10 = scmp.eq.s32.totalorder %s1041_s13, 1 }
  0x2d   : > { %s123_s18 = sand.u32 1, %s990_s11   ;;  %s684_s24 = sshll.u32 %s994_s12, 10 }
  0x2e   : > { %p1111_p12 = por %p1272_p10, %p33_p1  ;;  %s640_s25 = sshll.u32 %s123_s18, 6 }
  0x2f   : > { %s1120_s27 = scalar_lea.hbm %s1262_s0, %s684_s24  ;;  %s127_s19 = scalar_lea.vmem [#allocation2], %s640_s25 }
  0x30   : > { %s134_s22 = sshll.u32 %s127_s19, 4  ;;  %p1122_p11 = pnand %p794_p6, %p35_p8  ;;  %s1126_s22 = int_to_ptr.vmem [resolvable:$true] %s134_s22 }
  0x31   : > { %s1128_s28 = scalar_lea.sflag [#allocation3], %s123_s18  ;;  %s894_s29 = scalar_lea.hbm %s1120_s27, 1024 }
  0x32   : > { %p895_p13 = scmp.ne.s32.totalorder %s1120_s27, %s894_s29  ;;  %p896_p0 = pneg %p1122_p11 }
  0x33   : > { %s899_s4 = scalar_lea.hbm %s1262_s0, 2048  ;;  %p900_p7 = scmp.lt.u32.totalorder %s1120_s27, %s1262_s0 }
  0x34   : > { %p897_p3 = pnand %p896_p0, %p895_p13  ;;  %p901_p9 = scmp.lt.u32.totalorder %s899_s4, %s894_s29 }
  0x35   : > { %p903_p1 = scmp.lt.u32.totalorder %s894_s29, %s1120_s27 }
  0x36   : > { %p898_p5 = pneg %p897_p3  ;;  %p902_p2 = por %p901_p9, %p900_p7 }
  0x38   : > { %p904_p4 = por %p903_p1, %p902_p2 }
  0x3a   : > { %p905_p6 = pnand %p904_p4, %p898_p5 }
  0x3c   : > { %908 = shalt.err (!%p905_p6)
}
  0x3d   : > { %s909_s7 = scalar_lea.vmem %s1126_s22, 1024  ;;  %s999_s18 = smov [#allocation2]  }
  0x3e   : > { %p910_p8 = scmp.ne.s32.totalorder %s1126_s22, %s909_s7  ;;  %s914_s24 = sshll.u32 %s999_s18, 4  ;;  %s915_s24 = int_to_ptr.vmem [resolvable:$false] %s914_s24 }
  0x3f   : > { %s916_s25 = scalar_lea.vmem %s915_s24, 2048  ;;  %p917_p3 = scmp.lt.s32.totalorder %s1126_s22, %s915_s24 }
  0x40   : > { %p912_p10 = pnand %p910_p8, %p896_p0  ;;  %p918_p7 = scmp.lt.s32.totalorder %s916_s25, %s909_s7 }
  0x42   : > { %p913_p13 = pneg %p912_p10  ;;  %p919_p9 = por %p918_p7, %p917_p3 }
  0x44   : > { %p920_p2 = pnand %p919_p9, %p913_p13 }
  0x46   : > { %923 = shalt.err (!%p920_p2)
}
  0x47   : > { %s1000_s20 = smov 128   ;;  %s1001_s26 = smov 8  }
  0x48   : > { %788 = dma.hbm_to_vmem [thread:$0]  (!%p1122_p11), %s1120_s27, 1024, %s1126_s22, %s1128_s28, %s1000_s20, %s1000_s20, %s1001_s26  }
  0x49   : > { %p1275_p0 = scmp.ne.s32.totalorder %s1270_s17, 0 }
  0x4a   : > { %s1159_s19 = sand.u32 (!%p1275_p0), 1, %s986_s10   ;;  %p1276_p5 = scmp.ne.s32.totalorder (!%p1275_p0), %s1268_s15, 0 }
  0x4b   : > { %146 = sbr.rel (%p1275_p0) target bundleno = 411 (0x19b), region = 28  ;;  %s644_s29 = sshll.u32 (!%p1275_p0), %s1159_s19, 6 }
  0x4c   : > { %s149_s30 = scalar_lea.sflag (!%p1275_p0), [#allocation3], %s1159_s19  ;;  %s1163_s3 = scalar_lea.vmem (!%p1275_p0), [#allocation2], %s644_s29 }
  0x52   : > { %969 = dma.done.wait (%p1276_p5), %s149_s30, 1024  }
  0x53   : > { %971 = vsyncadd (%p1276_p5), %s149_s30, 4294966272  ;;  %p1277_p11 = scmp.eq.s32.totalorder %s1041_s13, 0 }
  0x55   : > { %973 = dma.done.wait (%p1277_p11), [#allocation6], 2048   ;;  %p1278_p1 = pmov %p1277_p11 }
  0x56   : > { %v836_v0 = vld [vmem:[#allocation5 + $0x40] sm:$0xff]   ;;  %v838_v2 = vld [vmem:[#allocation5 + $0x48] sm:$0xff]   ;;  %v840_v4 = vld [vmem:[#allocation5 + $0x50] sm:$0xff]   ;;  %s646_s15 = sshll.u32 %s1159_s19, 5  ;;  %s693_s17 = sshll.u32 %s1041_s13, 9 }
  0x57   : > { %975 = vsyncadd (%p1278_p1), [#allocation6], 4294965248  ;;  %v837_v1 = vld [vmem:[#allocation5] sm:$0xff]   ;;  %717 = vmatprep.subr.bf16.mxu0 %v836_v0  ;;  %757 = vmatprep.subr.bf16.mxu1 %v836_v0  ;;  %v839_v3 = vld [vmem:[#allocation5 + $0x8] sm:$0xff]   ;;  %s176_s27 = scalar_lea.vmem [#allocation7], %s646_s15  ;;  %s1216_s28 = scalar_lea.hbm %s1264_s2, %s693_s17 }
  0x58   : > { %718 = vmatpush3.bf16.msra.mxu0 %v837_v1  ;;  %765 = vmatpush3.bf16.msra.mxu1 %v837_v1  ;;  %v841_v5 = vld [vmem:[#allocation5 + $0x10] sm:$0xff]   ;;  %v842_v6 = vld [vmem:[#allocation5 + $0x58] sm:$0xff]   ;;  %v844_v8 = vld [vmem:[#allocation5 + $0x60] sm:$0xff]   ;;  %s553_s22 = sshll.u32 %s176_s27, 4  ;;  %s540_s4 = scalar_lea.sflag [#allocation4], %s1159_s19  ;;  %s1218_s22 = int_to_ptr.vmem [resolvable:$true] %s553_s22 }
  0x59   : > { %719 = vmatprep.subr.bf16.mxu0 %v838_v2  ;;  %758 = vmatprep.subr.bf16.mxu1 %v838_v2  ;;  %v843_v7 = vld [vmem:[#allocation5 + $0x18] sm:$0xff]   ;;  %v845_v9 = vld [vmem:[#allocation5 + $0x20] sm:$0xff]   ;;  %v846_v10 = vld [vmem:[#allocation5 + $0x68] sm:$0xff]   ;;  %s924_s5 = scalar_lea.vmem %s1218_s22, 512  ;;  %s1002_s6 = smov [#allocation7]  }
  0x5a   : > { %v854_v11 = vld [vmem:[%s1163_s3 + $0x4] ss:$8 sps:$4 sm:$0xff]   ;;  %v848_v14 = vld [vmem:[#allocation5 + $0x70] sm:$0xff]   ;;  %v850_v16 = vld [vmem:[#allocation5 + $0x78] sm:$0xff]   ;;  %p925_p4 = scmp.ne.s32.totalorder %s1218_s22, %s924_s5  ;;  %s928_s7 = sshll.u32 %s1002_s6, 4  ;;  %s929_s7 = int_to_ptr.vmem [resolvable:$false] %s928_s7 }
  0x5b   : > { %v857_v12 = vld [vmem:[%s1163_s3 + $0x24] ss:$8 sps:$4 sm:$0xff]   ;;  %386 = vmatprep.mubr.bf16.mxu0 %v854_v11  ;;  %v849_v15 = vld [vmem:[#allocation5 + $0x30] sm:$0xff]   ;;  %v851_v17 = vld [vmem:[#allocation5 + $0x38] sm:$0xff]   ;;  %s930_s18 = scalar_lea.vmem %s929_s7, 1024  ;;  %p931_p10 = scmp.lt.s32.totalorder %s1218_s22, %s929_s7 }
  0x5c   : > { %720 = vmatpush3.bf16.msra.mxu0 %v839_v3  ;;  %766 = vmatpush3.bf16.msra.mxu1 %v839_v3  ;;  %v847_v13 = vld [vmem:[#allocation5 + $0x28] sm:$0xff]   ;;  %v858_v20 = vld [vmem:[%s1163_s3 + $0x14] ss:$8 sps:$4 sm:$0xff]   ;;  %v860_v22 = vld [vmem:[%s1163_s3 + $0x10] ss:$8 sps:$4 sm:$0xff]   ;;  %p926_p6 = pnand %p925_p4, %p1111_p12  ;;  %p932_p13 = scmp.lt.s32.totalorder %s930_s18, %s924_s5 }
  0x5d   : > { %721 = vmatprep.subr.bf16.mxu0 %v840_v4  ;;  %759 = vmatprep.subr.bf16.mxu1 %v840_v4  ;;  %v852_v18 = vld [vmem:[%s1163_s3] ss:$8 sps:$4 sm:$0xff]   ;;  %v861_v21 = vld [vmem:[%s1163_s3 + $0x34] ss:$8 sps:$4 sm:$0xff]   ;;  %v863_v23 = vld [vmem:[%s1163_s3 + $0x30] ss:$8 sps:$4 sm:$0xff]  }
  0x5e   : > { %402 = vmatprep.mubr.bf16.mxu1 %v857_v12  ;;  %v855_v19 = vld [vmem:[%s1163_s3 + $0x20] ss:$8 sps:$4 sm:$0xff]   ;;  %p927_p8 = pneg %p926_p6  ;;  %p933_p3 = por %p932_p13, %p931_p10 }
  0x60   : > { %722 = vmatpush3.bf16.msra.mxu0 %v841_v5  ;;  %767 = vmatpush3.bf16.msra.mxu1 %v841_v5  ;;  %p934_p7 = pnand %p933_p3, %p927_p8 }
  0x61   : > { %723 = vmatprep.subr.bf16.mxu0 %v842_v6  ;;  %760 = vmatprep.subr.bf16.mxu1 %v842_v6 }
  0x64   : > { %724 = vmatpush3.bf16.msra.mxu0 %v843_v7  ;;  %768 = vmatpush3.bf16.msra.mxu1 %v843_v7 }
  0x65   : > { %725 = vmatprep.subr.bf16.mxu0 %v844_v8  ;;  %761 = vmatprep.subr.bf16.mxu1 %v844_v8 }
  0x68   : > { %726 = vmatpush3.bf16.msra.mxu0 %v845_v9  ;;  %769 = vmatpush3.bf16.msra.mxu1 %v845_v9 }
  0x69   : > { %727 = vmatprep.subr.bf16.mxu0 %v846_v10  ;;  %762 = vmatprep.subr.bf16.mxu1 %v846_v10 }
  0x6c   : > { %728 = vmatpush3.bf16.msra.mxu0 %v847_v13  ;;  %770 = vmatpush3.bf16.msra.mxu1 %v847_v13 }
  0x6d   : > { %729 = vmatprep.subr.bf16.mxu0 %v848_v14  ;;  %763 = vmatprep.subr.bf16.mxu1 %v848_v14 }
  0x70   : > { %730 = vmatpush3.bf16.msra.mxu0 %v849_v15  ;;  %771 = vmatpush3.bf16.msra.mxu1 %v849_v15 }
  0x71   : > { %731 = vmatprep.subr.bf16.mxu0 %v850_v16  ;;  %764 = vmatprep.subr.bf16.mxu1 %v850_v16 }
  0x74   : > { %732 = vmatpush3.bf16.msra.mxu0 %v851_v17  ;;  %772 = vmatpush3.bf16.msra.mxu1 %v851_v17 }
  0x77   : > { %387 = vmatmul.mubr.bf16.vlgmr.msra.gmra.mrb[0].mxu0 %v852_v18  ;;  %403 = vmatmul.mubr.bf16.vlgmr.msra.gmra.mrb[0].mxu1 %v855_v19 }
  0x78   : > { %394 = vmatprep.mubr.bf16.mxu0 %v858_v20  ;;  %410 = vmatprep.mubr.bf16.mxu1 %v861_v21 }
  0x7f   : > { %395 = vmatmul.mubr.bf16.gmra.mrb[4].mxu0 %v860_v22  ;;  %411 = vmatmul.mubr.bf16.gmra.mrb[4].mxu1 %v863_v23 }
 0x14a   : > { %v733_v24 = vpop.f32.mrb[0].mxu0  ;;  %v745_v25 = vpop.f32.mrb[0].mxu1 }
 0x14b   : > { %v734_v26 = vpop.f32.mrb[1].mxu0  ;;  %v746_v27 = vpop.f32.mrb[1].mxu1 }
 0x14c   : > { %v1181_v28 = vadd.f32 %v734_v26, %v733_v24  ;;  %v736_v29 = vpop.f32.mrb[2].mxu0  ;;  %v1183_v30 = vadd.f32 %v746_v27, %v745_v25  ;;  %v748_v31 = vpop.f32.mrb[2].mxu1 }
 0x14d   : > { %v737_v32 = vpop.f32.mrb[3].mxu0  ;;  %v749_v33 = vpop.f32.mrb[3].mxu1 }
 0x14e   : > { %v1185_v34 = vadd.f32 %v737_v32, %v736_v29  ;;  %v1187_v35 = vadd.f32 %v749_v33, %v748_v31  ;;  %v433_v36 = vmul.f32 %v1181_v28, %v1181_v28  ;;  %v437_v57 = vmul.f32 %v1183_v30, %v1183_v30 }
 0x150   : > { %v419_v37 = vadd.f32 %v1185_v34, %v1181_v28  ;;  %v434_v38 = vmul.f32 %v1185_v34, %v1185_v34  ;;  %v438_v60 = vmul.f32 %v1187_v35, %v1187_v35 }
 0x152   : > { %v441_v39 = vadd.f32 %v434_v38, %v433_v36  ;;  %v739_v40 = vpop.f32.mrb[4].mxu0  ;;  %v751_v41 = vpop.f32.mrb[4].mxu1 }
 0x153   : > { %v740_v42 = vpop.f32.mrb[5].mxu0  ;;  %v752_v43 = vpop.f32.mrb[5].mxu1 }
 0x154   : > { %v741_v44 = vadd.f32 %v740_v42, %v739_v40  ;;  %v742_v45 = vpop.f32.mrb[6].mxu0  ;;  %v753_v46 = vadd.f32 %v752_v43, %v751_v41  ;;  %v754_v47 = vpop.f32.mrb[6].mxu1 }
 0x155   : > { %v743_v48 = vpop.f32.mrb[7].mxu0  ;;  %v755_v49 = vpop.f32.mrb[7].mxu1 }
 0x156   : > { %v420_v50 = vadd.f32 %v741_v44, %v419_v37  ;;  %v435_v51 = vmul.f32 %v741_v44, %v741_v44  ;;  %v744_v52 = vadd.f32 %v743_v48, %v742_v45  ;;  %v756_v53 = vadd.f32 %v755_v49, %v754_v47 }
 0x157   : > { %v439_v63 = vmul.f32 %v753_v46, %v753_v46 }
 0x158   : > { %v442_v54 = vadd.f32 %v441_v39, %v435_v51  ;;  %v421_v55 = vadd.f32 %v744_v52, %v420_v50  ;;  %v436_v56 = vmul.f32 %v744_v52, %v744_v52  ;;  %v440_v4 = vmul.f32 %v756_v53, %v756_v53 }
 0x15a   : > { %v422_v58 = vadd.f32 %v1183_v30, %v421_v55  ;;  %v443_v59 = vadd.f32 %v442_v54, %v436_v56 }
 0x15c   : > { %v444_v61 = vadd.f32 %v443_v59, %v437_v57  ;;  %v423_v62 = vadd.f32 %v1187_v35, %v422_v58 }
 0x15e   : > { %v424_v0 = vadd.f32 %v753_v46, %v423_v62  ;;  %v445_v1 = vadd.f32 %v444_v61, %v438_v60 }
 0x160   : > { %v446_v2 = vadd.f32 %v445_v1, %v439_v63  ;;  %v425_v3 = vadd.f32 %v756_v53, %v424_v0 }
 0x162   : > { %v426_v5 = vrot.slane %v425_v3, 4  ;;  %v447_v6 = vadd.f32 %v446_v2, %v440_v4 }
 0x164   : > { %v427_v7 = vadd.f32 %v426_v5, %v425_v3  ;;  %v448_v8 = vrot.slane %v447_v6, 4 }
 0x166   : > { %v428_v9 = vrot.slane %v427_v7, 2  ;;  %v449_v10 = vadd.f32 %v448_v8, %v447_v6 }
 0x168   : > { %v429_v11 = vadd.f32 %v428_v9, %v427_v7  ;;  %v450_v12 = vrot.slane %v449_v10, 2 }
 0x16a   : > { %v430_v13 = vrot.slane %v429_v11, 1  ;;  %v451_v14 = vadd.f32 %v450_v12, %v449_v10 }
 0x16c   : > { %v431_v15 = vadd.f32 %v430_v13, %v429_v11  ;;  %v452_v16 = vrot.slane %v451_v14, 1 }
 0x16e   : > { %v432_v17 = vmul.f32 0.015625, %v431_v15  ;;  %v453_v18 = vadd.f32 %v452_v16, %v451_v14 }
 0x170   : > { %v454_v19 = vmul.f32 0.015625, %v453_v18  ;;  %v455_v20 = vmul.f32 %v432_v17, %v432_v17  ;;  %v463_v21 = vsub.f32 %v753_v46, %v432_v17  ;;  %v464_v22 = vsub.f32 %v756_v53, %v432_v17 }
 0x171   : > { %v457_v23 = vsub.f32 %v1181_v28, %v432_v17  ;;  %v458_v24 = vsub.f32 %v1185_v34, %v432_v17  ;;  %v459_v25 = vsub.f32 %v741_v44, %v432_v17  ;;  %v460_v26 = vsub.f32 %v744_v52, %v432_v17 }
 0x172   : > { %v456_v27 = vsub.f32 %v454_v19, %v455_v20  ;;  %v461_v29 = vsub.f32 %v1183_v30, %v432_v17  ;;  %v462_v31 = vsub.f32 %v1187_v35, %v432_v17 }
 0x174   : > { %v465_v32 = vadd.f32 1e-05, %v456_v27 }
 0x176   : > { %864 = vrsqrt.f32 %v465_v32 }
 0x180   : > { %v865_v33 = vpop.eup %864 }
 0x181   : > { %v473_v36 = vmul.f32 %v865_v33, %v463_v21  ;;  %v474_v37 = vmul.f32 %v865_v33, %v464_v22  ;;  %v467_v38 = vmul.f32 %v865_v33, %v457_v23  ;;  %v468_v39 = vmul.f32 %v865_v33, %v458_v24 }
 0x182   : > { %v469_v40 = vmul.f32 %v865_v33, %v459_v25  ;;  %v470_v28 = vmul.f32 %v865_v33, %v460_v26  ;;  %v471_v41 = vmul.f32 %v865_v33, %v461_v29  ;;  %v472_v34 = vmul.f32 %v865_v33, %v462_v31 }
 0x183   : > { %vm481_vm0 = vcmp.ge.f32.partialorder %v473_v36, 0.0  ;;  %vm482_vm1 = vcmp.ge.f32.partialorder %v474_v37, 0.0  ;;  %v489_v42 = vmul.f32 0.2, %v473_v36  ;;  %v490_v43 = vmul.f32 0.2, %v474_v37 }
 0x184   : > { %vm475_vm2 = vcmp.ge.f32.partialorder %v467_v38, 0.0  ;;  %vm476_vm3 = vcmp.ge.f32.partialorder %v468_v39, 0.0  ;;  %vm477_vm4 = vcmp.ge.f32.partialorder %v469_v40, 0.0  ;;  %vm478_vm5 = vcmp.ge.f32.partialorder %v470_v28, 0.0 }
 0x185   : > { %v497_v30 = vsel %vm481_vm0, %v473_v36, %v489_v42  ;;  %v498_v35 = vsel %vm482_vm1, %v474_v37, %v490_v43  ;;  %vm479_vm6 = vcmp.ge.f32.partialorder %v471_v41, 0.0  ;;  %vm480_vm7 = vcmp.ge.f32.partialorder %v472_v34, 0.0 }
 0x186   : > { %v712_v44 = vpack.c.bf16 %v498_v35, %v497_v30  ;;  %v483_v45 = vmul.f32 0.2, %v467_v38  ;;  %v484_v46 = vmul.f32 0.2, %v468_v39  ;;  %v485_v47 = vmul.f32 0.2, %v469_v40 }
 0x187   : > { %v486_v48 = vmul.f32 0.2, %v470_v28  ;;  %v487_v49 = vmul.f32 0.2, %v471_v41  ;;  %v488_v50 = vmul.f32 0.2, %v472_v34 }
 0x188   : > { %716 = vst [vmem:[%s176_s27 + $0x18] sm:$0xff] %v712_v44   ;;  %v491_v51 = vsel %vm475_vm2, %v467_v38, %v483_v45  ;;  %v492_v52 = vsel %vm476_vm3, %v468_v39, %v484_v46  ;;  %v493_v53 = vsel %vm477_vm4, %v469_v40, %v485_v47 }
 0x189   : > { %v494_v54 = vsel %vm478_vm5, %v470_v28, %v486_v48  ;;  %v495_v55 = vsel %vm479_vm6, %v471_v41, %v487_v49  ;;  %v496_v56 = vsel %vm480_vm7, %v472_v34, %v488_v50  ;;  %v697_v57 = vpack.c.bf16 %v492_v52, %v491_v51 }
 0x18a   : > { %v702_v58 = vpack.c.bf16 %v494_v54, %v493_v53  ;;  %v707_v59 = vpack.c.bf16 %v496_v56, %v495_v55 }
 0x18b   : > { %698 = vst [vmem:[%s176_s27] sm:$0xff] %v697_v57  }
 0x18c   : > { %714 = vst [vmem:[%s176_s27 + $0x8] sm:$0xff] %v702_v58   ;;  %715 = vst [vmem:[%s176_s27 + $0x10] sm:$0xff] %v707_v59  }
 0x18d   : > { %937 = shalt.err (!%p934_p7)
}
 0x18e   : > { %s938_s24 = scalar_lea.hbm %s1216_s28, 512  ;;  %s942_s26 = scalar_lea.hbm %s1264_s2, 1024 }
 0x18f   : > { %p939_p9 = scmp.ne.s32.totalorder %s1216_s28, %s938_s24  ;;  %p943_p5 = scmp.lt.u32.totalorder %s1216_s28, %s1264_s2 }
 0x190   : > { %p944_p11 = scmp.lt.u32.totalorder %s942_s26, %s938_s24  ;;  %p946_p4 = scmp.lt.u32.totalorder %s938_s24, %s1216_s28 }
 0x191   : > { %p940_p2 = pnand %p939_p9, %p1111_p12 }
 0x192   : > { %p945_p1 = por %p944_p11, %p943_p5 }
 0x193   : > { %p941_p0 = pneg %p940_p2 }
 0x194   : > { %p947_p6 = por %p946_p4, %p945_p1 }
 0x196   : > { %p948_p8 = pnand %p947_p6, %p941_p0 }
 0x198   : > { %951 = shalt.err (!%p948_p8)
}
 0x199   : > { %s1003_s3 = smov 64   ;;  %s1004_s15 = smov 4  }
 0x19a   : > { %779 = dma.vmem_to_hbm [thread:$0]  (%p1111_p12), %s1218_s22, 512, %s1216_s28, %s540_s4, %s1003_s3, %s1003_s3, %s1004_s15  }
 0x19b PF: > { %s568_s17 = sand.u32 1, %s982_s9   ;;  %p1279_p10 = scmp.ne.s32.totalorder %s1269_s16, 0 }
 0x19c   : > { %p1280_p13 = scmp.ge.s32.totalorder %s994_s12, 2  ;;  %s569_s27 = scalar_lea.sflag [#allocation4], %s568_s17 }
 0x19e   : > { %p790_p3 = pnand %p1280_p13, %p1279_p10 }
 0x1a0   : > { %977 = dma.done.wait (!%p790_p3), %s569_s27, 512  }
 0x1a1   : > { %979 = vsyncadd (!%p790_p3), %s569_s27, 4294966784  ;;  %p16_p7 = scmp.ge.s32.totalorder %s1076_s21, 4   ;;  %s1281_s9 = smov %s986_s10 }
 0x1a2   : > { %s1282_s10 = smov %s990_s11  ;;  %s1283_s11 = smov %s1107_s8 }
 0x1a3   : > { %s1284_s12 = smov %s1076_s21  ;;  %18 = sbr.rel (!%p16_p7) target bundleno = 6 (0x6), region = 77 }
 0x1aa   :  { %574 = vsyncpa [#allocation3], 1 }
 0x1ab   :  { %576 = vsyncpa [#allocation3 + $0x1], 1 }
 0x1ac   :  { %577 = vsyncpa [#allocation6], 1 }
 0x1ad   :  { %578 = vsyncpa [#allocation4], 1 }
 0x1ae   :  { %580 = vsyncpa [#allocation4 + $0x1], 1 }

// kernel: netc_forward.7
= control target key start
LH: loop header
LB: loop body
LE: loop exit
PB: predicated region body
PF: predicated region fallthrough
CT: control target
= control target key end

     0   :  { %12 = vsyncpa [#allocation3], 0  ;;  %s7434_s0 = inlined_call_operand.hbm [shape: bf16[2,8,8,32], index: 0, kind: input, shape index: {}]   ;;  %s7435_s1 = inlined_call_operand.hbm [shape: bf16[16,32,64], index: 1, kind: input, shape index: {}]   ;;  %s7436_s2 = inlined_call_operand.hbm [shape: bf16[16,64,64], index: 2, kind: input, shape index: {}]   ;;  %s7437_s3 = inlined_call_operand.hbm [shape: bf16[9,64,64], index: 3, kind: input, shape index: {}]   ;;  %s7438_s4 = inlined_call_operand.hbm [shape: bf16[2,16,64], index: 4, kind: output, shape index: {0}]   ;;  %s7439_s5 = inlined_call_operand.hbm [shape: bf16[2,4,64], index: 5, kind: output, shape index: {1}]   ;;  %s7440_s6 = inlined_call_operand.hbm [shape: bf16[2,1,64], index: 6, kind: output, shape index: {2}]  }
   0x1   :  { %13 = vsyncpa [#allocation6], 0 }
   0x2   :  { %14 = vsyncpa [#allocation9], 0 }
   0x3   :  { %15 = vsyncpa [#allocation4], 0 }
   0x4   :  { %16 = vsyncpa [#allocation12], 0  ;;  %s5488_s21 = smov [#allocation5]   ;;  %s5489_s23 = smov [#allocation2]  }
   0x5   :  { %s34_s22 = sshll.u32 %s5488_s21, 4  ;;  %s22_s24 = sshll.u32 %s5489_s23, 4  ;;  %s35_s22 = int_to_ptr.vmem [resolvable:$true] %s34_s22  ;;  %s5540_s24 = int_to_ptr.vmem [resolvable:$true] %s22_s24 }
   0x6   :  { %s5324_s27 = scalar_lea.hbm %s7435_s1, 4096 }
   0x7   :  { %p5325_p0 = scmp.ne.s32.totalorder %s7435_s1, %s5324_s27  ;;  %p5328_p1 = scmp.lt.u32.totalorder %s5324_s27, %s7435_s1 }
   0x9   :  { %p5330_p2 = pnand %p5328_p1, %p5325_p0 }
   0xb   :  { %5333 = shalt.err (!%p5330_p2)
}
   0xc   :  { %s5334_s8 = scalar_lea.vmem %s35_s22, 4096  ;;  %p5339_p4 = scmp.lt.s32.totalorder %s35_s22, %s35_s22 }
   0xd   :  { %p5335_p3 = scmp.ne.s32.totalorder %s35_s22, %s5334_s8  ;;  %p5340_p5 = scmp.lt.s32.totalorder %s5334_s8, %s5334_s8 }
   0xf   :  { %p5341_p6 = por %p5340_p5, %p5339_p4 }
  0x11   :  { %p5342_p7 = pnand %p5341_p6, %p5335_p3 }
  0x13   :  { %5345 = shalt.err (!%p5342_p7)
}
  0x14   :  { %s5490_s9 = smov 64   ;;  %s5491_s10 = smov 4  }
  0x15   :  { %40 = dma.hbm_to_vmem [thread:$0]  %s7435_s1, 4096, %s35_s22, [#allocation6], %s5490_s9, %s5490_s9, %s5491_s10  }
  0x16   :  { %s5346_s15 = scalar_lea.hbm %s7434_s0, 1024 }
  0x17   :  { %p5347_p8 = scmp.ne.s32.totalorder %s7434_s0, %s5346_s15  ;;  %p5350_p9 = scmp.lt.u32.totalorder %s5346_s15, %s7434_s0 }
  0x19   :  { %p5352_p10 = pnand %p5350_p9, %p5347_p8 }
  0x1b   :  { %5355 = shalt.err (!%p5352_p10)
}
  0x1c   :  { %s5356_s20 = scalar_lea.vmem %s5540_s24, 1024  ;;  %p5361_p12 = scmp.lt.s32.totalorder %s5540_s24, %s5540_s24 }
  0x1d   :  { %p5357_p11 = scmp.ne.s32.totalorder %s5540_s24, %s5356_s20  ;;  %p5362_p13 = scmp.lt.s32.totalorder %s5356_s20, %s5356_s20 }
  0x1f   :  { %p5363_p0 = por %p5362_p13, %p5361_p12 }
  0x21   :  { %p5364_p1 = pnand %p5363_p0, %p5357_p11 }
  0x23   :  { %5367 = shalt.err (!%p5364_p1)
}
  0x24   :  { %28 = dma.hbm_to_vmem [thread:$0]  %s7434_s0, 1024, %s5540_s24, [#allocation3], %s5490_s9, %s5490_s9, %s5491_s10  }
  0x25   :  { %s5492_s22 = smov [#allocation7]   ;;  %s5493_s25 = smov [#allocation8]  }
  0x26   :  { %s46_s23 = sshll.u32 %s5492_s22, 4  ;;  %s58_s26 = sshll.u32 %s5493_s25, 4  ;;  %s47_s23 = int_to_ptr.vmem [resolvable:$true] %s46_s23  ;;  %s5577_s26 = int_to_ptr.vmem [resolvable:$true] %s58_s26 }
  0x27   :  { %s5368_s29 = scalar_lea.hbm %s7436_s2, 8192 }
  0x28   :  { %p5369_p2 = scmp.ne.s32.totalorder %s7436_s2, %s5368_s29  ;;  %p5372_p3 = scmp.lt.u32.totalorder %s5368_s29, %s7436_s2 }
  0x2a   :  { %p5374_p4 = pnand %p5372_p3, %p5369_p2 }
  0x2c   :  { %5377 = shalt.err (!%p5374_p4)
}
  0x2d   :  { %s5378_s0 = scalar_lea.vmem %s47_s23, 8192  ;;  %p5383_p6 = scmp.lt.s32.totalorder %s47_s23, %s47_s23 }
  0x2e   :  { %p5379_p5 = scmp.ne.s32.totalorder %s47_s23, %s5378_s0  ;;  %p5384_p7 = scmp.lt.s32.totalorder %s5378_s0, %s5378_s0 }
  0x30   :  { %p5385_p8 = por %p5384_p7, %p5383_p6 }
  0x32   :  { %p5386_p9 = pnand %p5385_p8, %p5379_p5 }
  0x34   :  { %5389 = shalt.err (!%p5386_p9)
}
  0x35   :  { %52 = dma.hbm_to_vmem [thread:$0]  %s7436_s2, 8192, %s47_s23, [#allocation6], %s5490_s9, %s5490_s9, %s5491_s10  }
  0x36   :  { %s5390_s15 = scalar_lea.hbm %s7437_s3, 4608 }
  0x37   :  { %p5391_p10 = scmp.ne.s32.totalorder %s7437_s3, %s5390_s15  ;;  %p5394_p11 = scmp.lt.u32.totalorder %s5390_s15, %s7437_s3 }
  0x39   :  { %p5396_p12 = pnand %p5394_p11, %p5391_p10 }
  0x3b   :  { %5399 = shalt.err (!%p5396_p12)
}
  0x3c   :  { %s5400_s20 = scalar_lea.vmem %s5577_s26, 4608  ;;  %p5405_p0 = scmp.lt.s32.totalorder %s5577_s26, %s5577_s26 }
  0x3d   :  { %p5401_p13 = scmp.ne.s32.totalorder %s5577_s26, %s5400_s20  ;;  %p5406_p1 = scmp.lt.s32.totalorder %s5400_s20, %s5400_s20 }
  0x3f   :  { %p5407_p2 = por %p5406_p1, %p5405_p0 }
  0x41   :  { %p5408_p3 = pnand %p5407_p2, %p5401_p13 }
  0x43   :  { %5411 = shalt.err (!%p5408_p3)
}
  0x44   :  { %64 = dma.hbm_to_vmem [thread:$0]  %s7437_s3, 4608, %s5577_s26, [#allocation9], %s5490_s9, %s5490_s9, %s5491_s10  }
  0x45   :  { %5478 = dma.done.wait [#allocation3], 1024  }
  0x46   :  { %5479 = vsyncadd [#allocation3], 4294966272 }
  0x47   :  { %5480 = dma.done.wait [#allocation6], 12288  }
  0x48   :  { %5481 = vsyncadd [#allocation6], 4294955008 }
  0x49   :  { %5482 = dma.done.wait [#allocation9], 4608  }
  0x4a   :  { %5483 = vsyncadd [#allocation9], 4294962688  ;;  %v5200_v0 = vld [vmem:[#allocation5 + $0x10] sm:$0xff]   ;;  %v5201_v1 = vld [vmem:[#allocation5 + $0x18] sm:$0xff]   ;;  %vm148_vm0 = vcmask 1044480   ;;  %vm157_vm1 = vcmask 1040384  }
  0x4b   :  { %4686 = vmatprep.subr.bf16.mxu0 %v5200_v0  ;;  %v5614_v2 = vld [vmem:[#allocation2] sm:$0xff]   ;;  %v5616_v3 = vld [vmem:[#allocation2 + $0x8] sm:$0xff]   ;;  %v5618_v4 = vld [vmem:[#allocation2 + $0x10] sm:$0xff]   ;;  %vm166_vm2 = vcmask 1043456   ;;  %vm151_vm3 = vcmask 1045504   ;;  %vm154_vm4 = vcmask 1046528  }
  0x4c   :  { %4687 = vmatpush3.bf16.msra.mxu0 %v5200_v0  ;;  %v5621_v5 = vunpack.c.h.bf16 %v5614_v2  ;;  %v5624_v6 = vunpack.c.h.bf16 %v5616_v3  ;;  %v5627_v7 = vunpack.c.h.bf16 %v5618_v4  ;;  %v5629_v8 = vld [vmem:[#allocation5] sm:$0xff]   ;;  %vm160_vm5 = vcmask 1041408   ;;  %v5656_v18 = vld [vmem:[#allocation2 + $0x28] sm:$0xff]   ;;  %v5677_v26 = vld [vmem:[#allocation2 + $0x30] sm:$0xff]   ;;  %s5497_s3 = smov [#allocation11]  }
  0x4d   :  { %4688 = vmatprep.subr.bf16.mxu0 %v5201_v1  ;;  %vm163_vm6 = vcmask 1042432   ;;  %v5654_v17 = vld [vmem:[#allocation2 + $0x20] sm:$0xff]   ;;  %vm234_vm7 = vcmask 261120   ;;  %v5693_v32 = vunpack.c.h.bf16 %v5656_v18  ;;  %v5700_v35 = vunpack.c.h.bf16 %v5677_v26  ;;  %s4262_s21 = sshll.u32 %s5497_s3, 4  ;;  %s4263_s21 = int_to_ptr.vmem [resolvable:$true] %s4262_s21 }
  0x4e   :  { %v5632_v9 = vrot.slane %v5621_v5, 4  ;;  %v5635_v10 = vrot.slane %v5621_v5, 5  ;;  %v5638_v11 = vrot.slane %v5621_v5, 6  ;;  %v5641_v12 = vrot.slane %v5624_v6, 1  ;;  %s5412_s22 = scalar_lea.vmem %s4263_s21, 64  ;;  %p5417_p5 = scmp.lt.s32.totalorder %s4263_s21, %s4263_s21 }
  0x4f   :  { %v5644_v13 = vrot.slane %v5624_v6, 2  ;;  %v5647_v14 = vrot.slane %v5627_v7, 4  ;;  %v5650_v15 = vrot.slane %v5624_v6, 3  ;;  %v5659_v19 = vrot.slane %v5627_v7, 5  ;;  %p5413_p4 = scmp.ne.s32.totalorder %s4263_s21, %s5412_s22  ;;  %p5418_p6 = scmp.lt.s32.totalorder %s5412_s22, %s5412_s22 }
  0x50   :  { %4689 = vmatpush3.bf16.msra.mxu0 %v5201_v1  ;;  %v193_v16 = vsel %vm166_vm2, 0.0, %v5632_v9  ;;  %v5662_v20 = vrot.slane %v5621_v5, 7  ;;  %v201_v22 = vsel %vm157_vm1, %v5624_v6, %v5641_v12  ;;  %v5671_v23 = vrot.slane %v5627_v7, 6 }
  0x51   :  { %7449 = vst [vmem:[#allocation19_spill] sm:$0xff] %v5647_v14  ;;  %v195_v21 = vsel %vm148_vm0, %v193_v16, %v5635_v10  ;;  %4694 = vmatprep.subr.bf16.mxu0 %v5629_v8  ;;  %v203_v25 = vsel %vm160_vm5, %v201_v22, %v5644_v13  ;;  %v5680_v27 = vrot.slane %v5627_v7, 7  ;;  %v5685_v29 = vunpack.c.h.bf16 %v5654_v17  ;;  %p5419_p7 = por %p5418_p6, %p5417_p5 }
  0x52   :  { %v197_v24 = vsel %vm151_vm3, %v195_v21, %v5638_v11  ;;  %v205_v28 = vsel %vm163_vm6, %v203_v25, %v5650_v15  ;;  %v5690_v31 = vrot.slane %v5624_v6, 4  ;;  %v469_v38 = vsel %vm157_vm1, %v5644_v13, %v5650_v15 }
  0x53   :  { %v207_v30 = vsel %vm166_vm2, %v205_v28, %v5647_v14  ;;  %v199_v33 = vsel %vm154_vm4, %v197_v24, %v5662_v20  ;;  %v5703_v36 = vrot.slane %v5685_v29, 4  ;;  %v5711_v39 = vrot.slane %v5685_v29, 5  ;;  %p5420_p8 = pnand %p5419_p7, %p5413_p4 }
  0x54   :  { %v209_v34 = vsel %vm148_vm0, %v207_v30, %v5659_v19  ;;  %v5714_v40 = vrot.slane %v5685_v29, 6  ;;  %v127_v42 = vrot.slane %v5693_v32, 1  ;;  %v5720_v43 = vrot.slane %v5693_v32, 2 }
  0x55   :  { %7450 = vst [vmem:[#allocation20_spill] sm:$0xff] %v5703_v36  ;;  %v211_v37 = vsel %vm151_vm3, %v209_v34, %v5671_v23  ;;  %v5723_v44 = vrot.slane %v5700_v35, 4  ;;  %v5726_v46 = vrot.slane %v5700_v35, 5  ;;  %v5729_v47 = vrot.slane %v5700_v35, 6 }
  0x56   :  { %v213_v41 = vsel %vm154_vm4, %v211_v37, %v5680_v27  ;;  %v5732_v48 = vrot.slane %v5685_v29, 7  ;;  %v5735_v49 = vrot.slane %v5693_v32, 3  ;;  %v5738_v50 = vrot.slane %v5700_v35, 7 }
  0x57   :  { %7451 = vst [vmem:[#allocation21_spill] sm:$0xff] %v5723_v44  ;;  %v215_v45 = vpack.c.bf16 %v213_v41, %v199_v33  ;;  %v194_v51 = vsel %vm166_vm2, 0.0, %v5703_v36  ;;  %v202_v52 = vsel %vm157_vm1, %v5693_v32, %v127_v42  ;;  %v149_v55 = vsel %vm148_vm0, 0.0, %v5632_v9  ;;  %v5203_v41 = vld [vmem:[#allocation5 + $0x8] sm:$0xff]  }
  0x58   :  { %v196_v53 = vsel %vm148_vm0, %v194_v51, %v5711_v39  ;;  %v204_v54 = vsel %vm160_vm5, %v202_v52, %v5720_v43  ;;  %v158_v56 = vsel %vm157_vm1, 0.0, %v5624_v6  ;;  %v152_v59 = vsel %vm151_vm3, %v149_v55, %v5635_v10 }
  0x59   :  { %4690 = vmatprep.mubr.msk.bf16.mxu0 %vm234_vm7, %v215_v45  ;;  %v198_v57 = vsel %vm151_vm3, %v196_v53, %v5714_v40  ;;  %v206_v58 = vsel %vm163_vm6, %v204_v54, %v5735_v49  ;;  %v161_v60 = vsel %vm160_vm5, %v158_v56, %v5641_v12  ;;  %v471_v61 = vsel %vm160_vm5, %v469_v38, %v5690_v31 }
  0x5a   :  { %v208_v62 = vsel %vm166_vm2, %v206_v58, %v5723_v44  ;;  %v164_v63 = vsel %vm163_vm6, %v161_v60, %v5644_v13  ;;  %v200_v0 = vsel %vm154_vm4, %v198_v57, %v5732_v48  ;;  %v159_v21 = vsel %vm157_vm1, 0.0, %v5693_v32 }
  0x5b   :  { %v210_v1 = vsel %vm148_vm0, %v208_v62, %v5726_v46  ;;  %v167_v16 = vsel %vm166_vm2, %v164_v63, 0.0  ;;  %v155_v24 = vsel %vm154_vm4, %v152_v59, %v5638_v11  ;;  %v162_v28 = vsel %vm160_vm5, %v159_v21, %v127_v42 }
  0x5c   :  { %v212_v22 = vsel %vm151_vm3, %v210_v1, %v5729_v47  ;;  %v169_v25 = vsel %vm148_vm0, %v167_v16, %v5647_v14  ;;  %v150_v34 = vsel %vm148_vm0, 0.0, %v5703_v36  ;;  %v165_v37 = vsel %vm163_vm6, %v162_v28, %v5720_v43  ;;  %v5209_v36 = vld [vmem:[#allocation5 + $0x48] sm:$0xff]  }
  0x5d   :  { %v214_v30 = vsel %vm154_vm4, %v212_v22, %v5738_v50  ;;  %v171_v33 = vsel %vm151_vm3, %v169_v25, %v5659_v19  ;;  %v168_v51 = vsel %vm166_vm2, %v165_v37, 0.0  ;;  %v361_v52 = vsel %vm166_vm2, 0.0, %v5635_v10 }
  0x5e   :  { %v216_v38 = vpack.c.bf16 %v214_v30, %v200_v0  ;;  %v173_v45 = vsel %vm154_vm4, %v171_v33, %v5671_v23  ;;  %v170_v54 = vsel %vm148_vm0, %v168_v51, %v5723_v44  ;;  %v369_v55 = vsel %vm157_vm1, %v5641_v12, %v5644_v13  ;;  %v5204_v13 = vld [vmem:[#allocation5 + $0x20] sm:$0xff]   ;;  %v5880_v51 = vld [vmem:[#allocation2 + $0x18] sm:$0xff]  }
  0x5f   :  { %v175_v53 = vpack.c.bf16 %v173_v45, %v155_v24  ;;  %v363_v56 = vsel %vm148_vm0, %v361_v52, %v5638_v11  ;;  %v371_v57 = vsel %vm160_vm5, %v369_v55, %v5650_v15  ;;  %v5805_v58 = vrot.slane %v5693_v32, 4 }
  0x60   :  { %4691 = vmatmul.mubr.msk.bf16.vlgmr.msra.gmra.mrb[0].mxu0 %vm234_vm7, %v216_v38  ;;  %v461_v10 = vsel %vm166_vm2, 0.0, %v5638_v11  ;;  %v473_v59 = vsel %vm163_vm6, %v471_v61, 0.0  ;;  %v373_v12 = vsel %vm163_vm6, %v371_v57, %v5690_v31  ;;  %v153_v15 = vsel %vm151_vm3, %v150_v34, %v5711_v39  ;;  %v5206_v57 = vld [vmem:[#allocation5 + $0x30] sm:$0xff]  }
  0x61   :  { %4695 = vmatpush3.bf16.msra.mxu0 %v5629_v8  ;;  %4698 = vmatprep.mubr.msk.bf16.mxu0 %vm234_vm7, %v175_v53  ;;  %v172_v60 = vsel %vm151_vm3, %v170_v54, %v5726_v46  ;;  %v375_v11 = vsel %vm166_vm2, %v373_v12, %v5659_v19  ;;  %v370_v61 = vsel %vm157_vm1, %v127_v42, %v5720_v43  ;;  %v362_v1 = vsel %vm166_vm2, 0.0, %v5711_v39 }
  0x62   :  { %4696 = vmatprep.subr.bf16.mxu0 %v5203_v41  ;;  %v365_v8 = vsel %vm151_vm3, %v363_v56, %v5662_v20  ;;  %v377_v62 = vsel %vm148_vm0, %v375_v11, %v5671_v23  ;;  %v372_v63 = vsel %vm160_vm5, %v370_v61, %v5735_v49  ;;  %v5835_v42 = vunpack.c.l.bf16 %v5614_v2 }
  0x63   :  { %v379_v0 = vsel %vm151_vm3, %v377_v62, %v5680_v27  ;;  %v374_v19 = vsel %vm163_vm6, %v372_v63, %v5805_v58  ;;  %v463_v16 = vsel %vm148_vm0, %v461_v10, %v5662_v20  ;;  %v475_v21 = vsel %vm166_vm2, %v473_v59, %v5671_v23 }
  0x64   :  { %v156_v22 = vsel %vm154_vm4, %v153_v15, %v5714_v40  ;;  %v174_v24 = vsel %vm154_vm4, %v172_v60, %v5729_v47  ;;  %v367_v39 = vsel %vm154_vm4, %v365_v8, %v5621_v5  ;;  %v381_v2 = vsel %vm154_vm4, %v379_v0, %v5627_v7 }
  0x65   :  { %4697 = vmatpush3.bf16.msra.mxu0 %v5203_v41  ;;  %v376_v20 = vsel %vm166_vm2, %v374_v19, %v5726_v46  ;;  %v5852_v25 = vunpack.c.l.bf16 %v5618_v4  ;;  %v364_v23 = vsel %vm148_vm0, %v362_v1, %v5714_v40  ;;  %v462_v28 = vsel %vm166_vm2, 0.0, %v5714_v40 }
  0x66   :  { %4702 = vmatprep.subr.bf16.mxu0 %v5204_v13  ;;  %v470_v30 = vsel %vm157_vm1, %v5720_v43, %v5735_v49  ;;  %v477_v33 = vsel %vm148_vm0, %v475_v21, %v5680_v27  ;;  %v176_v34 = vpack.c.bf16 %v174_v24, %v156_v22  ;;  %v465_v46 = vsel %vm151_vm3, %v463_v16, %v5621_v5  ;;  %v5205_v43 = vld [vmem:[#allocation5 + $0x28] sm:$0xff]   ;;  %v5952_v24 = vld [vmem:[#allocation2 + $0x38] sm:$0xff]  }
  0x67   :  { %v472_v4 = vsel %vm160_vm5, %v470_v30, %v5805_v58  ;;  %v383_v37 = vpack.c.bf16 %v381_v2, %v367_v39  ;;  %v378_v38 = vsel %vm148_vm0, %v376_v20, %v5729_v47  ;;  %v5871_v41 = vrot.slane %v5835_v42, 1 }
  0x68   :  { %v474_v40 = vsel %vm163_vm6, %v472_v4, 0.0  ;;  %v366_v27 = vsel %vm151_vm3, %v364_v23, %v5732_v48  ;;  %v464_v49 = vsel %vm148_vm0, %v462_v28, %v5732_v48  ;;  %v5878_v45 = vunpack.c.l.bf16 %v5616_v3 }
  0x69   :  { %v5883_v52 = vsel %vm154_vm4, %v465_v46, 0.0  ;;  %v476_v53 = vsel %vm166_vm2, %v474_v40, %v5729_v47  ;;  %v5888_v54 = vrot.slane %v5835_v42, 2  ;;  %v5891_v55 = vrot.slane %v5852_v25, 1 }
  0x6a   :  { %v380_v3 = vsel %vm151_vm3, %v378_v38, %v5738_v50  ;;  %v479_v48 = vsel %vm151_vm3, %v477_v33, %v5627_v7  ;;  %v5899_v56 = vrot.slane %v5852_v25, 2  ;;  %v609_v47 = vsel %vm157_vm1, 0.0, %v5835_v42  ;;  %v5207_v38 = vld [vmem:[#allocation5 + $0x38] sm:$0xff]  }
  0x6b   :  { %v466_v10 = vsel %vm151_vm3, %v464_v49, %v5685_v29  ;;  %v5907_v59 = vunpack.c.l.bf16 %v5880_v51  ;;  %v611_v12 = vsel %vm160_vm5, %v609_v47, %v5871_v41  ;;  %v623_v15 = vsel %vm157_vm1, 0.0, %v5852_v25 }
  0x6c   :  { %4699 = vmatmul.mubr.msk.bf16.vlgmr.msra.gmra.mrb[0].mxu0 %vm234_vm7, %v176_v34  ;;  %v5914_v60 = vunpack.c.l.bf16 %v5677_v26  ;;  %v478_v11 = vsel %vm148_vm0, %v476_v53, %v5738_v50  ;;  %v625_v61 = vsel %vm160_vm5, %v623_v15, %v5891_v55  ;;  %v382_v8 = vsel %vm154_vm4, %v380_v3, %v5700_v35 }
  0x6d   :  { %4703 = vmatpush3.bf16.msra.mxu0 %v5204_v13  ;;  %4706 = vmatprep.mubr.msk.bf16.mxu0 %vm234_vm7, %v383_v37  ;;  %v368_v13 = vsel %vm154_vm4, %v366_v27, %v5685_v29  ;;  %v481_v62 = vsel %vm154_vm4, %v479_v48, 0.0  ;;  %v613_v63 = vsel %vm163_vm6, %v611_v12, %v5888_v54  ;;  %v5928_v26 = vunpack.c.l.bf16 %v5654_v17 }
  0x6e   :  { %4704 = vmatprep.subr.bf16.mxu0 %v5205_v43  ;;  %v5931_v0 = vsel %vm154_vm4, %v466_v10, 0.0  ;;  %v5934_v1 = vrot.slane %v5878_v45, 4  ;;  %v5937_v50 = vrot.slane %v5878_v45, 5  ;;  %v627_v19 = vsel %vm163_vm6, %v625_v61, %v5899_v56 }
  0x6f   :  { %v480_v16 = vsel %vm151_vm3, %v478_v11, %v5700_v35  ;;  %v5944_v21 = vrot.slane %v5878_v45, 6  ;;  %v5947_v17 = vrot.slane %v5907_v59, 4  ;;  %v5950_v22 = vunpack.c.l.bf16 %v5656_v18 }
  0x70   :  { %7452 = vst [vmem:[#allocation22_spill] sm:$0xff] %v5934_v1  ;;  %v384_v39 = vpack.c.bf16 %v382_v8, %v368_v13  ;;  %v483_v2 = vpack.c.bf16 %v481_v62, %v5883_v52  ;;  %v5956_v20 = vrot.slane %v5907_v59, 5  ;;  %v615_v23 = vsel %vm166_vm2, %v613_v63, 0.0  ;;  %v5208_v13 = vld [vmem:[#allocation5 + $0x40] sm:$0xff]  }
  0x71   :  { %4705 = vmatpush3.bf16.msra.mxu0 %v5205_v43  ;;  %v5960_v28 = vrot.slane %v5907_v59, 6  ;;  %v629_v30 = vsel %vm166_vm2, %v627_v19, 0.0  ;;  %v5964_v33 = vrot.slane %v5928_v26, 1  ;;  %v5967_v18 = vrot.slane %v5914_v60, 1 }
  0x72   :  { %4710 = vmatprep.subr.bf16.mxu0 %v5206_v57  ;;  %v5970_v34 = vsel %vm154_vm4, %v480_v16, 0.0  ;;  %v5973_v46 = vunpack.c.l.bf16 %v5952_v24  ;;  %v610_v4 = vsel %vm157_vm1, 0.0, %v5928_v26  ;;  %v624_v37 = vsel %vm157_vm1, 0.0, %v5914_v60 }
  0x73   :  { %v617_v40 = vsel %vm148_vm0, %v615_v23, %v5934_v1  ;;  %v5982_v43 = vrot.slane %v5928_v26, 2  ;;  %v5985_v27 = vrot.slane %v5950_v22, 4  ;;  %v5988_v49 = vrot.slane %v5950_v22, 5 }
  0x74   :  { %v631_v52 = vsel %vm148_vm0, %v629_v30, %v5947_v17  ;;  %v5993_v53 = vrot.slane %v5914_v60, 2  ;;  %v5996_v3 = vrot.slane %v5835_v42, 3  ;;  %v731_v48 = vsel %vm157_vm1, %v5835_v42, %v5871_v41 }
  0x75   :  { %v612_v47 = vsel %vm160_vm5, %v610_v4, %v5964_v33  ;;  %v626_v10 = vsel %vm160_vm5, %v624_v37, %v5967_v18  ;;  %v6006_v12 = vrot.slane %v5852_v25, 3  ;;  %v745_v15 = vsel %vm157_vm1, %v5852_v25, %v5891_v55 }
  0x76   :  { %v619_v11 = vsel %vm151_vm3, %v617_v40, %v5937_v50  ;;  %v6016_v61 = vrot.slane %v5950_v22, 6  ;;  %v6019_v8 = vrot.slane %v5973_v46, 4  ;;  %v733_v62 = vsel %vm160_vm5, %v731_v48, %v5888_v54 }
  0x77   :  { %v747_v63 = vsel %vm160_vm5, %v745_v15, %v5899_v56  ;;  %v633_v19 = vsel %vm151_vm3, %v631_v52, %v5956_v20  ;;  %v628_v16 = vsel %vm163_vm6, %v626_v10, %v5993_v53  ;;  %v6037_v23 = vrot.slane %v5973_v46, 6 }
  0x78   :  { %4707 = vmatmul.mubr.msk.bf16.vlgmr.msra.gmra.mrb[0].mxu0 %vm234_vm7, %v384_v39  ;;  %v621_v39 = vsel %vm154_vm4, %v619_v11, %v5944_v21  ;;  %v6040_v30 = vrot.slane %v5878_v45, 7  ;;  %v6043_v4 = vrot.slane %v5907_v59, 7  ;;  %v735_v37 = vsel %vm163_vm6, %v733_v62, %v5996_v3 }
  0x79   :  { %4711 = vmatpush3.bf16.msra.mxu0 %v5206_v57  ;;  %4714 = vmatprep.mubr.msk.bf16.mxu0 %vm234_vm7, %v483_v2  ;;  %v614_v57 = vsel %vm163_vm6, %v612_v47, %v5982_v43  ;;  %v6034_v2 = vrot.slane %v5973_v46, 5  ;;  %v749_v40 = vsel %vm163_vm6, %v747_v63, %v6006_v12  ;;  %v635_v52 = vsel %vm154_vm4, %v633_v19, %v5960_v28 }
  0x7a   :  { %4712 = vmatprep.subr.bf16.mxu0 %v5207_v38  ;;  %v616_v48 = vsel %vm166_vm2, %v614_v57, 0.0  ;;  %v630_v47 = vsel %vm166_vm2, %v628_v16, 0.0  ;;  %v732_v10 = vsel %vm157_vm1, %v5928_v26, %v5964_v33  ;;  %v6057_v15 = vrot.slane %v5928_v26, 3 }
  0x7b   :  { %v6060_v11 = vrot.slane %v5914_v60, 3  ;;  %v737_v62 = vsel %vm166_vm2, %v735_v37, %v5934_v1  ;;  %v751_v63 = vsel %vm166_vm2, %v749_v40, %v5947_v17  ;;  %v484_v19 = vpack.c.bf16 %v5970_v34, %v5931_v0 }
  0x7c   :  { %v637_v57 = vpack.c.bf16 %v635_v52, %v621_v39  ;;  %v618_v16 = vsel %vm148_vm0, %v616_v48, %v5985_v27  ;;  %v734_v44 = vsel %vm160_vm5, %v732_v10, %v5982_v43  ;;  %v632_v14 = vsel %vm148_vm0, %v630_v47, %v6019_v8  ;;  %v5210_v10 = vld [vmem:[#allocation5 + $0x50] sm:$0xff]  }
  0x7d   :  { %4713 = vmatpush3.bf16.msra.mxu0 %v5207_v38  ;;  %v746_v38 = vsel %vm157_vm1, %v5914_v60, %v5967_v18  ;;  %v837_v1 = vrot.slane %v5835_v42, 4  ;;  %v845_v0 = vsel %vm157_vm1, %v5871_v41, %v5888_v54  ;;  %v739_v34 = vsel %vm148_vm0, %v737_v62, %v5937_v50 }
  0x7e   :  { %4718 = vmatprep.subr.bf16.mxu0 %v5208_v13  ;;  %v748_v37 = vsel %vm160_vm5, %v746_v38, %v5993_v53  ;;  %v753_v39 = vsel %vm148_vm0, %v751_v63, %v5956_v20  ;;  %v859_v40 = vsel %vm157_vm1, %v5891_v55, %v5899_v56  ;;  %v620_v52 = vsel %vm151_vm3, %v618_v16, %v5988_v49 }
  0x7f   :  { %v736_v42 = vsel %vm163_vm6, %v734_v44, %v6057_v15  ;;  %v634_v41 = vsel %vm151_vm3, %v632_v14, %v6034_v2  ;;  %v750_v48 = vsel %vm163_vm6, %v748_v37, %v6060_v11  ;;  %v6100_v47 = vrot.slane %v5852_v25, 4 }
  0x80   :  { %v847_v55 = vsel %vm160_vm5, %v845_v0, %v5996_v3  ;;  %v741_v44 = vsel %vm151_vm3, %v739_v34, %v5944_v21  ;;  %v755_v38 = vsel %vm151_vm3, %v753_v39, %v5960_v28  ;;  %v861_v14 = vsel %vm160_vm5, %v859_v40, %v6006_v12 }
  0x81   :  { %v622_v62 = vsel %vm154_vm4, %v620_v52, %v6016_v61  ;;  %v738_v63 = vsel %vm166_vm2, %v736_v42, %v5985_v27  ;;  %v849_v16 = vsel %vm163_vm6, %v847_v55, %v837_v1  ;;  %v743_v0 = vsel %vm154_vm4, %v741_v44, %v6040_v30 }
  0x82   :  { %v757_v34 = vsel %vm154_vm4, %v755_v38, %v6043_v4  ;;  %v863_v39 = vsel %vm163_vm6, %v861_v14, %v6100_v47  ;;  %v6137_v40 = vrot.slane %v5973_v46, 7  ;;  %v6154_v38 = vrot.slane %v5914_v60, 4 }
  0x83   :  { %v865_v55 = vsel %vm166_vm2, %v863_v39, %v5956_v20  ;;  %vm5495_vm8 = vmmov 0   ;;  %vm1995_vm9 = vcmask 523264   ;;  %vm2084_vm14 = vcmask 519168  }
  0x84   :  { %4715 = vmatmul.mubr.msk.bf16.vlgmr.msra.gmra.mrb[0].mxu0 %vm234_vm7, %v484_v19  ;;  %v636_v19 = vsel %vm154_vm4, %v634_v41, %v6037_v23 }
  0x85   :  { %4719 = vmatpush3.bf16.msra.mxu0 %v5208_v13  ;;  %4722 = vmatprep.mubr.msk.bf16.mxu0 %vm234_vm7, %v637_v57  ;;  %v951_v13 = vsel %vm157_vm1, %v5888_v54, %v5996_v3  ;;  %v752_v57 = vsel %vm166_vm2, %v750_v48, %v6019_v8  ;;  %v965_v54 = vsel %vm157_vm1, %v5899_v56, %v6006_v12  ;;  %v6134_v3 = vrot.slane %v5950_v22, 7 }
  0x86   :  { %4720 = vmatprep.subr.bf16.mxu0 %v5209_v36  ;;  %v953_v37 = vsel %vm160_vm5, %v951_v13, %v837_v1  ;;  %v740_v1 = vsel %vm148_vm0, %v738_v63, %v5988_v49  ;;  %v967_v52 = vsel %vm160_vm5, %v965_v54, %v6100_v47  ;;  %v754_v42 = vsel %vm148_vm0, %v752_v57, %v6034_v2  ;;  %v5211_v13 = vld [vmem:[#allocation5 + $0x58] sm:$0xff]  }
  0x87   :  { %v851_v56 = vsel %vm166_vm2, %v849_v16, %v5937_v50  ;;  %v955_v12 = vsel %vm163_vm6, %v953_v37, 0.0  ;;  %v638_v41 = vpack.c.bf16 %v636_v19, %v622_v62  ;;  %v759_v48 = vpack.c.bf16 %v757_v34, %v743_v0 }
  0x88   :  { %v742_v44 = vsel %vm151_vm3, %v740_v1, %v6016_v61  ;;  %v969_v14 = vsel %vm163_vm6, %v967_v52, 0.0  ;;  %v952_v50 = vsel %vm157_vm1, %v5982_v43, %v6057_v15  ;;  %v853_v62 = vsel %vm148_vm0, %v851_v56, %v5944_v21  ;;  %v5212_v52 = vld [vmem:[#allocation5 + $0x60] sm:$0xff]  }
  0x89   :  { %4721 = vmatpush3.bf16.msra.mxu0 %v5209_v36  ;;  %v838_v36 = vrot.slane %v5928_v26, 4  ;;  %v756_v26 = vsel %vm151_vm3, %v754_v42, %v6037_v23  ;;  %v966_v63 = vsel %vm157_vm1, %v5993_v53, %v6060_v11  ;;  %v867_v19 = vsel %vm148_vm0, %v865_v55, %v5960_v28 }
  0x8a   :  { %4726 = vmatprep.subr.bf16.mxu0 %v5210_v10  ;;  %v957_v57 = vsel %vm166_vm2, %v955_v12, %v5944_v21  ;;  %v968_v37 = vsel %vm160_vm5, %v966_v63, %v6154_v38  ;;  %v846_v0 = vsel %vm157_vm1, %v5964_v33, %v5982_v43  ;;  %v860_v34 = vsel %vm157_vm1, %v5967_v18, %v5993_v53 }
  0x8b   :  { %v954_v20 = vsel %vm160_vm5, %v952_v50, %v838_v36  ;;  %v971_v39 = vsel %vm166_vm2, %v969_v14, %v5960_v28  ;;  %v970_v54 = vsel %vm163_vm6, %v968_v37, 0.0  ;;  %v744_v21 = vsel %vm154_vm4, %v742_v44, %v6134_v3 }
  0x8c   :  { %v956_v16 = vsel %vm163_vm6, %v954_v20, 0.0  ;;  %v758_v1 = vsel %vm154_vm4, %v756_v26, %v6137_v40  ;;  %v855_v33 = vsel %vm151_vm3, %v853_v62, %v6040_v30  ;;  %v869_v28 = vsel %vm151_vm3, %v867_v19, %v6043_v4 }
  0x8d   :  { %v958_v43 = vsel %vm166_vm2, %v956_v16, %v6016_v61  ;;  %v959_v18 = vsel %vm148_vm0, %v957_v57, %v6040_v30  ;;  %v972_v53 = vsel %vm166_vm2, %v970_v54, %v6037_v23  ;;  %v848_v42 = vsel %vm160_vm5, %v846_v0, %v6057_v15  ;;  %v5213_v0 = vld [vmem:[#allocation5 + $0x68] sm:$0xff]  }
  0x8e   :  { %v862_v56 = vsel %vm160_vm5, %v860_v34, %v6060_v11  ;;  %v6207_v12 = vrot.slane %v5621_v5, 1  ;;  %v857_v30 = vsel %vm154_vm4, %v855_v33, %v5878_v45  ;;  %v1095_v15 = vsel %vm157_vm1, 0.0, %v5621_v5 }
  0x8f   :  { %v871_v11 = vsel %vm154_vm4, %v869_v28, %v5907_v59  ;;  %v974_v55 = vsel %vm148_vm0, %v972_v53, %v6137_v40  ;;  %v1109_v44 = vsel %vm157_vm1, 0.0, %v5627_v7  ;;  %v850_v14 = vsel %vm163_vm6, %v848_v42, %v838_v36 }
  0x90   :  { %4723 = vmatmul.mubr.msk.bf16.vlgmr.msra.gmra.mrb[0].mxu0 %vm234_vm7, %v638_v41  ;;  %v960_v41 = vsel %vm148_vm0, %v958_v43, %v6134_v3  ;;  %v864_v50 = vsel %vm163_vm6, %v862_v56, %v6154_v38  ;;  %v6232_v62 = vrot.slane %v5621_v5, 2  ;;  %v6237_v63 = vunpack.c.h.bf16 %v5880_v51 }
  0x91   :  { %4727 = vmatpush3.bf16.msra.mxu0 %v5210_v10  ;;  %4730 = vmatprep.mubr.msk.bf16.mxu0 %vm234_vm7, %v759_v48  ;;  %v973_v10 = vsel %vm148_vm0, %v971_v39, %v6043_v4  ;;  %v6214_v48 = vrot.slane %v5627_v7, 1  ;;  %v961_v4 = vsel %vm151_vm3, %v959_v18, %v5878_v45  ;;  %v962_v20 = vsel %vm151_vm3, %v960_v41, %v5950_v22 }
  0x92   :  { %4728 = vmatprep.subr.bf16.mxu0 %v5211_v13  ;;  %v975_v26 = vsel %vm151_vm3, %v973_v10, %v5907_v59  ;;  %v1097_v36 = vsel %vm160_vm5, %v1095_v15, %v6207_v12  ;;  %v760_v19 = vpack.c.bf16 %v758_v1, %v744_v21  ;;  %v963_v57 = vsel %vm154_vm4, %v961_v4, 0.0  ;;  %v5214_v10 = vld [vmem:[#allocation5 + $0x70] sm:$0xff]  }
  0x93   :  { %v976_v16 = vsel %vm151_vm3, %v974_v55, %v5973_v46  ;;  %v1111_v37 = vsel %vm160_vm5, %v1109_v44, %v6214_v48  ;;  %v852_v51 = vsel %vm166_vm2, %v850_v14, %v5988_v49  ;;  %v866_v34 = vsel %vm166_vm2, %v864_v50, %v6034_v2 }
  0x94   :  { %v977_v39 = vsel %vm154_vm4, %v975_v26, 0.0  ;;  %v6255_v54 = vrot.slane %v5624_v6, 5  ;;  %v873_v21 = vpack.c.bf16 %v871_v11, %v857_v30  ;;  %v6258_v1 = vsel %vm154_vm4, %v962_v20, 0.0 }
  0x95   :  { %4729 = vmatpush3.bf16.msra.mxu0 %v5211_v13  ;;  %v6240_v13 = vrot.slane %v5627_v7, 2  ;;  %v6261_v33 = vrot.slane %v5624_v6, 6  ;;  %v1099_v43 = vsel %vm163_vm6, %v1097_v36, %v6232_v62  ;;  %v6266_v49 = vsel %vm154_vm4, %v976_v16, 0.0 }
  0x96   :  { %4734 = vmatprep.subr.bf16.mxu0 %v5212_v52  ;;  %v1083_v2 = vrot.slane %v6237_v63, 4  ;;  %v854_v18 = vsel %vm148_vm0, %v852_v51, %v6016_v61  ;;  %v868_v53 = vsel %vm148_vm0, %v866_v34, %v6037_v23  ;;  %v6276_v42 = vrot.slane %v6237_v63, 5  ;;  %v5216_v51 = vld [vmem:[#allocation5 + $0x80] sm:$0xff]  }
  0x97   :  { %v1113_v28 = vsel %vm163_vm6, %v1111_v37, %v6240_v13  ;;  %v6279_v56 = vrot.slane %v6237_v63, 6  ;;  %v1101_v30 = vsel %vm166_vm2, %v1099_v43, 0.0  ;;  %v6284_v41 = vrot.slane %v5685_v29, 1 }
  0x98   :  { %v6287_v15 = vrot.slane %v5685_v29, 2  ;;  %v6290_v61 = vrot.slane %v5693_v32, 5  ;;  %v1115_v23 = vsel %vm166_vm2, %v1113_v28, 0.0  ;;  %v6295_v11 = vunpack.c.h.bf16 %v5952_v24 }
  0x99   :  { %v6298_v4 = vrot.slane %v5693_v32, 6  ;;  %v856_v55 = vsel %vm151_vm3, %v854_v18, %v6134_v3  ;;  %v870_v44 = vsel %vm151_vm3, %v868_v53, %v6137_v40  ;;  %v6305_v14 = vrot.slane %v5700_v35, 1 }
  0x9a   :  { %v858_v24 = vsel %vm154_vm4, %v856_v55, %v5950_v22  ;;  %v872_v50 = vsel %vm154_vm4, %v870_v44, %v5973_v46  ;;  %v1084_v26 = vrot.slane %v6295_v11, 4  ;;  %v6316_v3 = vrot.slane %v6295_v11, 5 }
  0x9b   :  { %v1096_v40 = vsel %vm157_vm1, 0.0, %v5685_v29  ;;  %v1110_v20 = vsel %vm157_vm1, 0.0, %v5700_v35  ;;  %v874_v36 = vpack.c.bf16 %v872_v50, %v858_v24  ;;  %v979_v16 = vpack.c.bf16 %v977_v39, %v963_v57 }
  0x9c   :  { %4731 = vmatmul.mubr.msk.bf16.vlgmr.msra.gmra.mrb[0].mxu0 %vm234_vm7, %v760_v19  ;;  %v5215_v19 = vld [vmem:[#allocation5 + $0x78] sm:$0xff]   ;;  %v1103_v37 = vsel %vm148_vm0, %v1101_v30, %v5690_v31  ;;  %v1217_v34 = vsel %vm157_vm1, %v5621_v5, %v6207_v12  ;;  %v6338_v39 = vrot.slane %v5621_v5, 3  ;;  %v6341_v43 = vrot.slane %v5627_v7, 3 }
  0x9d   :  { %4735 = vmatpush3.bf16.msra.mxu0 %v5212_v52  ;;  %4738 = vmatprep.mubr.msk.bf16.mxu0 %vm234_vm7, %v873_v21  ;;  %v6308_v52 = vrot.slane %v5700_v35, 2  ;;  %v1231_v21 = vsel %vm157_vm1, %v5627_v7, %v6214_v48  ;;  %v1105_v57 = vsel %vm151_vm3, %v1103_v37, %v6255_v54  ;;  %v1098_v18 = vsel %vm160_vm5, %v1096_v40, %v6284_v41 }
  0x9e   :  { %4736 = vmatprep.subr.bf16.mxu0 %v5213_v0  ;;  %v1112_v53 = vsel %vm160_vm5, %v1110_v20, %v6305_v14  ;;  %v1233_v5 = vsel %vm160_vm5, %v1231_v21, %v6240_v13  ;;  %v1107_v7 = vsel %vm154_vm4, %v1105_v57, %v6261_v33  ;;  %v1100_v55 = vsel %vm163_vm6, %v1098_v18, %v6287_v15  ;;  %v5217_v20 = vld [vmem:[#allocation5 + $0x88] sm:$0xff]  }
  0x9f   :  { %v1114_v44 = vsel %vm163_vm6, %v1112_v53, %v6308_v52  ;;  %v1235_v50 = vsel %vm163_vm6, %v1233_v5, %v6341_v43  ;;  %v980_v40 = vpack.c.bf16 %v6266_v49, %v6258_v1  ;;  %v6373_v37 = vrot.slane %v5624_v6, 7 }
  0xa0   :  { %v1237_v21 = vsel %vm166_vm2, %v1235_v50, %v1083_v2  ;;  %v1218_v57 = vsel %vm157_vm1, %v5685_v29, %v6284_v41  ;;  %v1323_v18 = vsel %vm157_vm1, %v6207_v12, %v6232_v62  ;;  %v1337_v53 = vsel %vm157_vm1, %v6214_v48, %v6240_v13 }
  0xa1   :  { %4737 = vmatpush3.bf16.msra.mxu0 %v5213_v0  ;;  %v1117_v0 = vsel %vm148_vm0, %v1115_v23, %v1083_v2  ;;  %v6358_v23 = vrot.slane %v6295_v11, 6  ;;  %v1239_v2 = vsel %vm148_vm0, %v1237_v21, %v6276_v42  ;;  %v6410_v5 = vrot.slane %v5700_v35, 3 }
  0xa2   :  { %4742 = vmatprep.subr.bf16.mxu0 %v5214_v10  ;;  %v1119_v28 = vsel %vm151_vm3, %v1117_v0, %v6276_v42  ;;  %v6376_v0 = vrot.slane %v6237_v63, 7  ;;  %v1220_v48 = vsel %vm160_vm5, %v1218_v57, %v6287_v15 }
  0xa3   :  { %v1121_v30 = vsel %vm154_vm4, %v1119_v28, %v6279_v56  ;;  %v1232_v28 = vsel %vm157_vm1, %v5700_v35, %v6305_v14  ;;  %v1241_v35 = vsel %vm151_vm3, %v1239_v2, %v6279_v56 }
  0xa8   :  { %4739 = vmatmul.mubr.msk.bf16.vlgmr.msra.gmra.mrb[0].mxu0 %vm234_vm7, %v874_v36  ;;  %v1123_v36 = vpack.c.bf16 %v1121_v30, %v1107_v7  ;;  %v5218_v7 = vld [vmem:[#allocation5 + $0x90] sm:$0xff]  }
  0xa9   :  { %4743 = vmatpush3.bf16.msra.mxu0 %v5214_v10  ;;  %4746 = vmatprep.mubr.msk.bf16.mxu0 %vm234_vm7, %v979_v16  ;;  %v1219_v10 = vsel %vm160_vm5, %v1217_v34, %v6232_v62  ;;  %v1116_v16 = vsel %vm166_vm2, %v1114_v44, 0.0  ;;  %v1339_v44 = vsel %vm160_vm5, %v1337_v53, %v6341_v43 }
  0xaa   :  { %4744 = vmatprep.subr.bf16.mxu0 %v5215_v19  ;;  %v1221_v24 = vsel %vm163_vm6, %v1219_v10, %v6338_v39  ;;  %v1118_v49 = vsel %vm148_vm0, %v1116_v16, %v1084_v26  ;;  %v6407_v10 = vrot.slane %v5685_v29, 3  ;;  %v1243_v16 = vsel %vm154_vm4, %v1241_v35, %v6376_v0 }
  0xab   :  { %v1223_v34 = vsel %vm166_vm2, %v1221_v24, %v5690_v31  ;;  %v1120_v12 = vsel %vm151_vm3, %v1118_v49, %v6316_v3 }
  0xac   :  { %v1225_v31 = vsel %vm148_vm0, %v1223_v34, %v6255_v54  ;;  %v1122_v50 = vsel %vm154_vm4, %v1120_v12, %v6358_v23  ;;  %v7453_v34 = vld [vmem:[#allocation19_spill] sm:$0xff]  ;;  %v1429_v12 = vsel %vm157_vm1, %v6232_v62, %v6338_v39 }
  0xad   :  { %4745 = vmatpush3.bf16.msra.mxu0 %v5215_v19  ;;  %v1102_v19 = vsel %vm166_vm2, %v1100_v55, 0.0  ;;  %v1227_v29 = vsel %vm151_vm3, %v1225_v31, %v6261_v33  ;;  %v1325_v55 = vsel %vm160_vm5, %v1323_v18, %v6338_v39  ;;  %v1341_v21 = vsel %vm163_vm6, %v1339_v44, %v7453_v34  ;;  %v5219_v18 = vld [vmem:[#allocation5 + $0x98] sm:$0xff]  }
  0xae   :  { %4750 = vmatprep.subr.bf16.mxu0 %v5216_v51  ;;  %v1104_v1 = vsel %vm148_vm0, %v1102_v19, %v5805_v58  ;;  %v1229_v19 = vsel %vm154_vm4, %v1227_v29, %v6373_v37  ;;  %v1343_v2 = vsel %vm166_vm2, %v1341_v21, %v6276_v42  ;;  %v1431_v35 = vsel %vm160_vm5, %v1429_v12, %v5632_v9 }
  0xaf   :  { %v1106_v30 = vsel %vm151_vm3, %v1104_v1, %v6290_v61  ;;  %v1345_v42 = vsel %vm148_vm0, %v1343_v2, %v6279_v56  ;;  %v5221_v2 = vld [vmem:[#allocation5 + $0xa8] sm:$0xff]  }
  0xb0   :  { %v1108_v24 = vsel %vm154_vm4, %v1106_v30, %v6298_v4 }
  0xb1   :  { %v1124_v1 = vpack.c.bf16 %v1122_v50, %v1108_v24  ;;  %v7454_v50 = vld [vmem:[#allocation20_spill] sm:$0xff] }
  0xb4   :  { %4747 = vmatmul.mubr.msk.bf16.vlgmr.msra.gmra.mrb[0].mxu0 %vm234_vm7, %v980_v40  ;;  %v1222_v40 = vsel %vm163_vm6, %v1220_v48, %v6407_v10  ;;  %v6479_v48 = vrot.slane %v6295_v11, 7 }
  0xb5   :  { %4751 = vmatpush3.bf16.msra.mxu0 %v5216_v51  ;;  %4754 = vmatprep.mubr.msk.bf16.mxu0 %vm234_vm7, %v1123_v36  ;;  %v1234_v51 = vsel %vm160_vm5, %v1232_v28, %v6308_v52  ;;  %v1224_v49 = vsel %vm166_vm2, %v1222_v40, %v5805_v58  ;;  %v1245_v28 = vpack.c.bf16 %v1243_v16, %v1229_v19 }
  0xb6   :  { %4752 = vmatprep.subr.bf16.mxu0 %v5217_v20  ;;  %v1236_v36 = vsel %vm163_vm6, %v1234_v51, %v6410_v5  ;;  %v1226_v53 = vsel %vm148_vm0, %v1224_v49, %v6290_v61  ;;  %v1324_v58 = vsel %vm157_vm1, %v6284_v41, %v6287_v15  ;;  %v1443_v41 = vsel %vm157_vm1, %v6240_v13, %v6341_v43  ;;  %v5220_v51 = vld [vmem:[#allocation5 + $0xa0] sm:$0xff]  }
  0xb7   :  { %v1238_v57 = vsel %vm166_vm2, %v1236_v36, %v1084_v26  ;;  %v1338_v26 = vsel %vm157_vm1, %v6305_v14, %v6308_v52  ;;  %v6476_v14 = vrot.slane %v5693_v32, 7  ;;  %v1228_v29 = vsel %vm151_vm3, %v1226_v53, %v6298_v4  ;;  %v7455_v36 = vld [vmem:[#allocation21_spill] sm:$0xff] }
  0xb8   :  { %v1240_v30 = vsel %vm148_vm0, %v1238_v57, %v6316_v3  ;;  %v1326_v13 = vsel %vm160_vm5, %v1324_v58, %v6407_v10  ;;  %v1340_v39 = vsel %vm160_vm5, %v1338_v26, %v6410_v5  ;;  %v1444_v53 = vsel %vm157_vm1, %v6308_v52, %v6410_v5 }
  0xb9   :  { %4753 = vmatpush3.bf16.msra.mxu0 %v5217_v20  ;;  %v1327_v20 = vsel %vm163_vm6, %v1325_v55, %v5632_v9  ;;  %v1242_v62 = vsel %vm151_vm3, %v1240_v30, %v6358_v23  ;;  %v1445_v55 = vsel %vm160_vm5, %v1443_v41, %v7453_v34  ;;  %v1230_v44 = vsel %vm154_vm4, %v1228_v29, %v6476_v14 }
  0xba   :  { %4758 = vmatprep.subr.bf16.mxu0 %v5218_v7  ;;  %v1329_v31 = vsel %vm166_vm2, %v1327_v20, %v6255_v54  ;;  %v1244_v24 = vsel %vm154_vm4, %v1242_v62, %v6479_v48  ;;  %v1328_v40 = vsel %vm163_vm6, %v1326_v13, %v7454_v50  ;;  %v1342_v19 = vsel %vm163_vm6, %v1340_v39, %v7455_v36 }
  0xbb   :  { %v1331_v54 = vsel %vm148_vm0, %v1329_v31, %v6261_v33  ;;  %v1433_v20 = vsel %vm163_vm6, %v1431_v35, 0.0  ;;  %v1447_v34 = vsel %vm163_vm6, %v1445_v55, 0.0  ;;  %v1246_v21 = vpack.c.bf16 %v1244_v24, %v1230_v44 }
  0xbc   :  { %v1333_v43 = vsel %vm151_vm3, %v1331_v54, %v6373_v37  ;;  %v1344_v49 = vsel %vm166_vm2, %v1342_v19, %v6316_v3  ;;  %v1449_v31 = vsel %vm166_vm2, %v1447_v34, %v6279_v56  ;;  %v6533_v56 = vrot.slane %v5907_v59, 1  ;;  %v5223_v19 = vld [vmem:[#allocation5 + $0xb8] sm:$0xff]  }
  0xbd   :  { %v1335_v9 = vsel %vm154_vm4, %v1333_v43, %v5624_v6  ;;  %v1346_v3 = vsel %vm148_vm0, %v1344_v49, %v6358_v23  ;;  %v1451_v52 = vsel %vm148_vm0, %v1449_v31, %v6376_v0  ;;  %v1573_v5 = vsel %vm157_vm1, 0.0, %v5907_v59 }
  0xbe   :  { %v1446_v58 = vsel %vm160_vm5, %v1444_v53, %v7455_v36  ;;  %v1348_v26 = vsel %vm151_vm3, %v1346_v3, %v6479_v48  ;;  %v6554_v54 = vrot.slane %v5878_v45, 2  ;;  %v1453_v41 = vsel %vm151_vm3, %v1451_v52, %v6237_v63  ;;  %v5224_v53 = vld [vmem:[#allocation5 + $0xc0] sm:$0xff]  }
  0xbf   :  { %v1575_v29 = vsel %vm160_vm5, %v1573_v5, %v6533_v56  ;;  %v1448_v13 = vsel %vm163_vm6, %v1446_v58, 0.0  ;;  %v1455_v43 = vsel %vm154_vm4, %v1453_v41, 0.0  ;;  %v6599_v34 = vrot.slane %v5852_v25, 6 }
  0xc0   :  { %4755 = vmatmul.mubr.msk.bf16.vlgmr.msra.gmra.mrb[0].mxu0 %vm234_vm7, %v1124_v1  ;;  %v1330_v1 = vsel %vm166_vm2, %v1328_v40, %v6290_v61  ;;  %v1450_v44 = vsel %vm166_vm2, %v1448_v13, %v6358_v23  ;;  %v6596_v23 = vrot.slane %v5852_v25, 5 }
  0xc1   :  { %4759 = vmatpush3.bf16.msra.mxu0 %v5218_v7  ;;  %4762 = vmatprep.mubr.msk.bf16.mxu0 %vm234_vm7, %v1245_v28  ;;  %v1347_v7 = vsel %vm151_vm3, %v1345_v42, %v6376_v0  ;;  %v1435_v28 = vsel %vm166_vm2, %v1433_v20, %v6261_v33  ;;  %v1332_v61 = vsel %vm148_vm0, %v1330_v1, %v6298_v4  ;;  %v6530_v33 = vrot.slane %v5878_v45, 1 }
  0xc2   :  { %4760 = vmatprep.subr.bf16.mxu0 %v5219_v18  ;;  %v1349_v16 = vsel %vm154_vm4, %v1347_v7, %v6237_v63  ;;  %v1334_v0 = vsel %vm151_vm3, %v1332_v61, %v6476_v14  ;;  %v6557_v42 = vrot.slane %v5907_v59, 2  ;;  %v6590_v20 = vrot.slane %v5950_v22, 1 }
  0xc3   :  { %v1351_v57 = vpack.c.bf16 %v1349_v16, %v1335_v9  ;;  %v1336_v39 = vsel %vm154_vm4, %v1334_v0, %v5693_v32  ;;  %v1452_v16 = vsel %vm148_vm0, %v1450_v44, %v6479_v48  ;;  %v1677_v49 = vsel %vm157_vm1, %v5878_v45, %v6530_v33 }
  0xc4   :  { %v1577_v35 = vsel %vm163_vm6, %v1575_v29, %v6557_v42  ;;  %v1454_v31 = vsel %vm151_vm3, %v1452_v16, %v6295_v11 }
  0xc5   :  { %4761 = vmatpush3.bf16.msra.mxu0 %v5219_v18  ;;  %v1430_v18 = vsel %vm157_vm1, %v6287_v15, %v6407_v10  ;;  %v1437_v15 = vsel %vm148_vm0, %v1435_v28, %v6373_v37  ;;  %v1559_v10 = vsel %vm157_vm1, 0.0, %v5878_v45  ;;  %v5222_v37 = vld [vmem:[#allocation5 + $0xb0] sm:$0xff]   ;;  %v1579_v36 = vsel %vm166_vm2, %v1577_v35, 0.0 }
  0xc6   :  { %4766 = vmatprep.subr.bf16.mxu0 %v5220_v51  ;;  %v1432_v30 = vsel %vm160_vm5, %v1430_v18, %v7454_v50  ;;  %v1439_v12 = vsel %vm151_vm3, %v1437_v15, %v5624_v6  ;;  %v1350_v6 = vsel %vm154_vm4, %v1348_v26, %v6295_v11  ;;  %v1581_v1 = vsel %vm148_vm0, %v1579_v36, 0.0 }
  0xc7   :  { %v1434_v62 = vsel %vm163_vm6, %v1432_v30, 0.0  ;;  %v1441_v63 = vsel %vm154_vm4, %v1439_v12, 0.0  ;;  %v1352_v24 = vpack.c.bf16 %v1350_v6, %v1336_v39  ;;  %v6624_v18 = vrot.slane %v5973_v46, 2  ;;  %v5225_v6 = vld [vmem:[#allocation5 + $0xc8] sm:$0xff]  }
  0xc8   :  { %v1436_v55 = vsel %vm166_vm2, %v1434_v62, %v6298_v4  ;;  %v1457_v50 = vpack.c.bf16 %v1455_v43, %v1441_v63  ;;  %v6593_v4 = vrot.slane %v5973_v46, 1  ;;  %v6631_v15 = vrot.slane %v5878_v45, 3 }
  0xc9   :  { %v1438_v9 = vsel %vm148_vm0, %v1436_v55, %v6476_v14  ;;  %v1574_v14 = vsel %vm157_vm1, 0.0, %v5973_v46  ;;  %v1583_v52 = vsel %vm151_vm3, %v1581_v1, 0.0  ;;  %v1456_v45 = vsel %vm154_vm4, %v1454_v31, 0.0 }
  0xca   :  { %v1440_v28 = vsel %vm151_vm3, %v1438_v9, %v5693_v32  ;;  %v1576_v3 = vsel %vm160_vm5, %v1574_v14, %v6593_v4  ;;  %v6634_v32 = vrot.slane %v5907_v59, 3  ;;  %v1585_v0 = vsel %vm154_vm4, %v1583_v52, 0.0 }
  0xcb   :  { %v1442_v30 = vsel %vm154_vm4, %v1440_v28, 0.0  ;;  %v1578_v58 = vsel %vm163_vm6, %v1576_v3, %v6624_v18  ;;  %v6662_v63 = vrot.slane %v5914_v60, 5  ;;  %v1678_v35 = vsel %vm157_vm1, %v5950_v22, %v6590_v20  ;;  %v7456_v3 = vld [vmem:[#allocation22_spill] sm:$0xff] }
  0xcc   :  { %4763 = vmatmul.mubr.msk.bf16.vlgmr.msra.gmra.mrb[0].mxu0 %vm234_vm7, %v1246_v21  ;;  %v1560_v21 = vsel %vm157_vm1, 0.0, %v5950_v22  ;;  %v1458_v41 = vpack.c.bf16 %v1456_v45, %v1442_v30  ;;  %v1580_v29 = vsel %vm166_vm2, %v1578_v58, 0.0  ;;  %v1692_v55 = vsel %vm157_vm1, %v5973_v46, %v6593_v4 }
  0xcd   :  { %4767 = vmatpush3.bf16.msra.mxu0 %v5220_v51  ;;  %4770 = vmatprep.mubr.msk.bf16.mxu0 %vm234_vm7, %v1351_v57  ;;  %v1561_v51 = vsel %vm160_vm5, %v1559_v10, %v6530_v33  ;;  %v1691_v57 = vsel %vm157_vm1, %v5907_v59, %v6533_v56  ;;  %v1562_v61 = vsel %vm160_vm5, %v1560_v21, %v6590_v20  ;;  %v6688_v36 = vrot.slane %v5852_v25, 7 }
  0xce   :  { %4768 = vmatprep.subr.bf16.mxu0 %v5221_v2  ;;  %v1563_v7 = vsel %vm163_vm6, %v1561_v51, %v6554_v54  ;;  %v1679_v10 = vsel %vm160_vm5, %v1677_v49, %v6554_v54  ;;  %v1693_v5 = vsel %vm160_vm5, %v1691_v57, %v6557_v42  ;;  %v6694_v9 = vrot.slane %v5973_v46, 3 }
  0xcf   :  { %v1565_v40 = vsel %vm166_vm2, %v1563_v7, 0.0  ;;  %v1681_v26 = vsel %vm163_vm6, %v1679_v10, %v6631_v15  ;;  %v1695_v12 = vsel %vm163_vm6, %v1693_v5, %v6634_v32  ;;  %v1582_v7 = vsel %vm148_vm0, %v1580_v29, 0.0 }
  0xd0   :  { %v1567_v48 = vsel %vm148_vm0, %v1565_v40, %v6100_v47  ;;  %v1683_v13 = vsel %vm166_vm2, %v1681_v26, %v6100_v47  ;;  %v1697_v39 = vsel %vm166_vm2, %v1695_v12, 0.0  ;;  %v6685_v40 = vrot.slane %v5914_v60, 6 }
  0xd1   :  { %4769 = vmatpush3.bf16.msra.mxu0 %v5221_v2  ;;  %v6621_v2 = vrot.slane %v5950_v22, 2  ;;  %v1569_v11 = vsel %vm151_vm3, %v1567_v48, %v6596_v23  ;;  %v1685_v47 = vsel %vm148_vm0, %v1683_v13, %v6596_v23  ;;  %v1699_v44 = vsel %vm148_vm0, %v1697_v39, 0.0 }
  0xd2   :  { %4774 = vmatprep.subr.bf16.mxu0 %v5222_v37  ;;  %v1584_v16 = vsel %vm151_vm3, %v1582_v7, 0.0  ;;  %v1694_v14 = vsel %vm160_vm5, %v1692_v55, %v6624_v18  ;;  %v1701_v48 = vsel %vm151_vm3, %v1699_v44, 0.0  ;;  %v1903_v29 = vsel %vm157_vm1, %v6557_v42, %v6634_v32 }
  0xd3   :  { %v1564_v59 = vsel %vm163_vm6, %v1562_v61, %v6621_v2  ;;  %v1680_v21 = vsel %vm160_vm5, %v1678_v35, %v6621_v2  ;;  %v1586_v57 = vsel %vm154_vm4, %v1584_v16, 0.0  ;;  %v1696_v31 = vsel %vm163_vm6, %v1694_v14, %v6694_v9 }
  0xd4   :  { %v1566_v51 = vsel %vm166_vm2, %v1564_v59, 0.0  ;;  %v1703_v61 = vsel %vm154_vm4, %v1701_v48, 0.0  ;;  %v1698_v30 = vsel %vm166_vm2, %v1696_v31, 0.0  ;;  %v1784_v12 = vsel %vm157_vm1, %v6590_v20, %v6621_v2 }
  0xd5   :  { %v1568_v43 = vsel %vm148_vm0, %v1566_v51, %v6154_v38  ;;  %v1700_v26 = vsel %vm148_vm0, %v1698_v30, 0.0  ;;  %v1889_v51 = vsel %vm157_vm1, %v6554_v54, %v6631_v15  ;;  %v1670_v20 = vrot.slane %v5914_v60, 7 }
  0xd6   :  { %v1702_v13 = vsel %vm151_vm3, %v1700_v26, 0.0  ;;  %v5232_v26 = vld [vmem:[#allocation7 + $0x20] sm:$0xff]  }
  0xd7   :  { %v1704_v7 = vsel %vm154_vm4, %v1702_v13, 0.0 }
  0xd8   :  { %4771 = vmatmul.mubr.msk.bf16.vlgmr.msra.gmra.mrb[0].mxu0 %vm234_vm7, %v1352_v24  ;;  %v1783_v24 = vsel %vm157_vm1, %v6530_v33, %v6554_v54  ;;  %v5226_v33 = vld [vmem:[#allocation5 + $0xd0] sm:$0xff]  }
  0xd9   :  { %4775 = vmatpush3.bf16.msra.mxu0 %v5222_v37  ;;  %4778 = vmatprep.mubr.msk.bf16.mxu0 %vm234_vm7, %v1457_v50  ;;  %v1571_v37 = vsel %vm154_vm4, %v1569_v11, %v6599_v34  ;;  %v1797_v50 = vsel %vm157_vm1, %v6533_v56, %v6557_v42  ;;  %v1570_v56 = vsel %vm151_vm3, %v1568_v43, %v6662_v63 }
  0xda   :  { %4776 = vmatprep.subr.bf16.mxu0 %v5223_v19  ;;  %v1587_v62 = vpack.c.bf16 %v1585_v0, %v1571_v37  ;;  %v1785_v46 = vsel %vm160_vm5, %v1783_v24, %v6631_v15  ;;  %v1799_v1 = vsel %vm160_vm5, %v1797_v50, %v6634_v32  ;;  %v1572_v49 = vsel %vm154_vm4, %v1570_v56, %v6685_v40  ;;  %v5227_v37 = vld [vmem:[#allocation5 + $0xd8] sm:$0xff]  }
  0xdb   :  { %v1787_v11 = vsel %vm163_vm6, %v1785_v46, %v7456_v3  ;;  %v1801_v52 = vsel %vm163_vm6, %v1799_v1, %v5947_v17  ;;  %v1588_v10 = vpack.c.bf16 %v1586_v57, %v1572_v49  ;;  %v1891_v32 = vsel %vm160_vm5, %v1889_v51, %v7456_v3  ;;  %v5230_v57 = vld [vmem:[#allocation5 + $0xf0] sm:$0xff]  }
  0xdc   :  { %v1789_v59 = vsel %vm166_vm2, %v1787_v11, %v6596_v23  ;;  %v1803_v58 = vsel %vm166_vm2, %v1801_v52, 0.0  ;;  %v1893_v24 = vsel %vm163_vm6, %v1891_v32, 0.0  ;;  %v5237_v51 = vld [vmem:[#allocation7 + $0x50] sm:$0xff]  }
  0xdd   :  { %4777 = vmatpush3.bf16.msra.mxu0 %v5223_v19  ;;  %v6691_v19 = vrot.slane %v5950_v22, 3  ;;  %v1687_v22 = vsel %vm151_vm3, %v1685_v47, %v6599_v34  ;;  %v1791_v23 = vsel %vm148_vm0, %v1789_v59, %v6599_v34 }
  0xde   :  { %4782 = vmatprep.subr.bf16.mxu0 %v5224_v53  ;;  %v1793_v42 = vsel %vm151_vm3, %v1791_v23, %v6688_v36  ;;  %v5235_v23 = vld [vmem:[#allocation7 + $0x48] sm:$0xff]  }
  0xdf   :  { %v1682_v28 = vsel %vm163_vm6, %v1680_v21, %v6691_v19  ;;  %v1786_v39 = vsel %vm160_vm5, %v1784_v12, %v6691_v19  ;;  %v1795_v47 = vsel %vm154_vm4, %v1793_v42, %v5852_v25  ;;  %v1895_v21 = vsel %vm166_vm2, %v1893_v24, %v6599_v34  ;;  %v5233_v12 = vld [vmem:[#allocation7 + $0x40] sm:$0xff]  }
  0xe0   :  { %v1684_v5 = vsel %vm166_vm2, %v1682_v28, %v6154_v38  ;;  %v1798_v38 = vsel %vm157_vm1, %v6593_v4, %v6624_v18  ;;  %v5228_v4 = vld [vmem:[#allocation5 + $0xe0] sm:$0xff]   ;;  %v1788_v35 = vsel %vm163_vm6, %v1786_v39, %v5985_v27  ;;  %v1890_v1 = vsel %vm157_vm1, %v6621_v2, %v6691_v19 }
  0xe1   :  { %v1686_v0 = vsel %vm148_vm0, %v1684_v5, %v6662_v63  ;;  %v1800_v54 = vsel %vm160_vm5, %v1798_v38, %v6694_v9  ;;  %v1897_v34 = vsel %vm148_vm0, %v1895_v21, %v6688_v36  ;;  %v1892_v19 = vsel %vm160_vm5, %v1890_v1, %v5985_v27  ;;  %v5231_v5 = vld [vmem:[#allocation5 + $0xf8] sm:$0xff]  }
  0xe2   :  { %v1802_v55 = vsel %vm163_vm6, %v1800_v54, %v6019_v8  ;;  %v5494_v38 = vmov 0.0  }
  0xe3   :  { %v1804_v56 = vsel %vm166_vm2, %v1802_v55, 0.0  ;;  %4838 = vmatprep.subr.bf16.mxu1 %v5494_v38  ;;  %4846 = vmatprep.mubr.msk.bf16.mxu1 %vm5495_vm8, %v5494_v38 }
  0xe4   :  { %4779 = vmatmul.mubr.msk.bf16.vlgmr.msra.gmra.mrb[0].mxu0 %vm234_vm7, %v1458_v41  ;;  %v1805_v41 = vsel %vm148_vm0, %v1803_v58, 0.0  ;;  %v1806_v46 = vsel %vm148_vm0, %v1804_v56, 0.0  ;;  %4839 = vmatpush3.bf16.msra.mxu1 %v5233_v12 }
  0xe5   :  { %4783 = vmatpush3.bf16.msra.mxu0 %v5224_v53  ;;  %4786 = vmatprep.mubr.msk.bf16.mxu0 %vm234_vm7, %v1587_v62  ;;  %v1689_v53 = vsel %vm154_vm4, %v1687_v22, %v6688_v36  ;;  %v1688_v62 = vsel %vm151_vm3, %v1686_v0, %v6685_v40  ;;  %v1807_v15 = vsel %vm151_vm3, %v1805_v41, 0.0  ;;  %v5229_v22 = vld [vmem:[#allocation5 + $0xe8] sm:$0xff]   ;;  %v1808_v2 = vsel %vm151_vm3, %v1806_v46, 0.0  ;;  %v5236_v41 = vld [vmem:[#allocation7 + $0x30] sm:$0xff]  }
  0xe6   :  { %4784 = vmatprep.subr.bf16.mxu0 %v5225_v6  ;;  %v1705_v45 = vpack.c.bf16 %v1703_v61, %v1689_v53  ;;  %v1690_v43 = vsel %vm154_vm4, %v1688_v62, %v1670_v20  ;;  %v1809_v44 = vsel %vm154_vm4, %v1807_v15, 0.0  ;;  %v1899_v36 = vsel %vm151_vm3, %v1897_v34, %v5852_v25  ;;  %4840 = vmatprep.subr.bf16.mxu1 %v5494_v38 }
  0xe7   :  { %v1706_v50 = vpack.c.bf16 %v1704_v7, %v1690_v43  ;;  %v1811_v16 = vpack.c.bf16 %v1809_v44, %v1795_v47  ;;  %v1810_v53 = vsel %vm154_vm4, %v1808_v2, 0.0  ;;  %v1894_v61 = vsel %vm163_vm6, %v1892_v19, 0.0 }
  0xe8   :  { %v1901_v27 = vsel %vm154_vm4, %v1899_v36, 0.0  ;;  %v1896_v25 = vsel %vm166_vm2, %v1894_v61, %v6685_v40  ;;  %4841 = vmatpush3.bf16.msra.mxu1 %v5235_v23  ;;  %v2101_v23 = vlaneseq }
  0xe9   :  { %4785 = vmatpush3.bf16.msra.mxu0 %v5225_v6  ;;  %v1905_v6 = vsel %vm160_vm5, %v1903_v29, %v5947_v17  ;;  %v1898_v30 = vsel %vm148_vm0, %v1896_v25, %v1670_v20  ;;  %4842 = vmatprep.subr.bf16.mxu1 %v5494_v38  ;;  %v5238_v29 = vld [vmem:[#allocation7 + $0x38] sm:$0xff]  }
  0xea   :  { %4790 = vmatprep.subr.bf16.mxu0 %v5226_v33  ;;  %v1907_v17 = vsel %vm163_vm6, %v1905_v6, 0.0  ;;  %v1900_v59 = vsel %vm151_vm3, %v1898_v30, %v5914_v60 }
  0xeb   :  { %v1909_v14 = vsel %vm166_vm2, %v1907_v17, 0.0 }
  0xec   :  { %v1911_v49 = vsel %vm148_vm0, %v1909_v14, 0.0  ;;  %4843 = vmatpush3.bf16.msra.mxu1 %v5237_v51 }
  0xed   :  { %4844 = vmatprep.subr.bf16.mxu1 %v5494_v38 }
  0xf0   :  { %4787 = vmatmul.mubr.msk.bf16.vlgmr.msra.gmra.mrb[0].mxu0 %vm234_vm7, %v1588_v10 }
  0xf1   :  { %4791 = vmatpush3.bf16.msra.mxu0 %v5226_v33  ;;  %4794 = vmatprep.mubr.msk.bf16.mxu0 %vm234_vm7, %v1705_v45  ;;  %v1790_v33 = vsel %vm166_vm2, %v1788_v35, %v6662_v63  ;;  %v1904_v63 = vsel %vm157_vm1, %v6624_v18, %v6694_v9  ;;  %v1913_v9 = vsel %vm151_vm3, %v1911_v49, 0.0 }
  0xf2   :  { %4792 = vmatprep.subr.bf16.mxu0 %v5227_v37  ;;  %v1792_v48 = vsel %vm148_vm0, %v1790_v33, %v6685_v40  ;;  %v1906_v18 = vsel %vm160_vm5, %v1904_v63, %v6019_v8  ;;  %v1915_v8 = vsel %vm154_vm4, %v1913_v9, 0.0  ;;  %v1902_v40 = vsel %vm154_vm4, %v1900_v59, 0.0 }
  0xf3   :  { %v1794_v28 = vsel %vm151_vm3, %v1792_v48, %v1670_v20  ;;  %v1908_v3 = vsel %vm163_vm6, %v1906_v18, 0.0  ;;  %v1917_v10 = vpack.c.bf16 %v1915_v8, %v1901_v27  ;;  %v5239_v20 = vld [vmem:[#allocation7 + $0x58] sm:$0xff]  }
  0xf4   :  { %v1796_v31 = vsel %vm154_vm4, %v1794_v28, %v5914_v60  ;;  %v1910_v52 = vsel %vm166_vm2, %v1908_v3, 0.0  ;;  %v5234_v60 = vld [vmem:[#allocation7 + $0x28] sm:$0xff]   ;;  %4845 = vmatpush3.bf16.msra.mxu1 %v5239_v20  ;;  %vm3855_vm2 = vcmask 1041409  }
  0xf5   :  { %4793 = vmatpush3.bf16.msra.mxu0 %v5227_v37  ;;  %v1812_v11 = vpack.c.bf16 %v1810_v53, %v1796_v31  ;;  %v1912_v45 = vsel %vm148_vm0, %v1910_v52, 0.0  ;;  %4850 = vmatprep.subr.bf16.mxu1 %v5494_v38 }
  0xf6   :  { %4798 = vmatprep.subr.bf16.mxu0 %v5228_v4  ;;  %v1914_v58 = vsel %vm151_vm3, %v1912_v45, 0.0 }
  0xf7   :  { %v1916_v37 = vsel %vm154_vm4, %v1914_v58, 0.0 }
  0xf8   :  { %v1918_v0 = vpack.c.bf16 %v1916_v37, %v1902_v40 }
  0xfc   :  { %4795 = vmatmul.mubr.msk.bf16.vlgmr.msra.gmra.mrb[0].mxu0 %vm234_vm7, %v1706_v50 }
  0xfd   :  { %4799 = vmatpush3.bf16.msra.mxu0 %v5228_v4  ;;  %4802 = vmatprep.mubr.msk.bf16.mxu0 %vm234_vm7, %v1811_v16 }
  0xfe   :  { %4800 = vmatprep.subr.bf16.mxu0 %v5229_v22 }
 0x101   :  { %4801 = vmatpush3.bf16.msra.mxu0 %v5229_v22 }
 0x102   :  { %4806 = vmatprep.subr.bf16.mxu0 %v5230_v57 }
 0x108   :  { %4803 = vmatmul.mubr.msk.bf16.vlgmr.msra.gmra.mrb[0].mxu0 %vm234_vm7, %v1812_v11 }
 0x109   :  { %4807 = vmatpush3.bf16.msra.mxu0 %v5230_v57  ;;  %4810 = vmatprep.mubr.msk.bf16.mxu0 %vm234_vm7, %v1917_v10 }
 0x10a   :  { %4808 = vmatprep.subr.bf16.mxu0 %v5231_v5 }
 0x10d   :  { %4809 = vmatpush3.bf16.msra.mxu0 %v5231_v5 }
 0x10e   :  { %4814 = vmatprep.subr.bf16.mxu0 %v5494_v38 }
 0x114   :  { %4811 = vmatmul.mubr.msk.bf16.vlgmr.msra.gmra.mrb[0].mxu0 %vm234_vm7, %v1918_v0 }
 0x115   :  { %4815 = vmatpush3.bf16.msra.mxu0 %v5232_v26  ;;  %4822 = vmatprep.mubr.msk.bf16.mxu0 %vm5495_vm8, %v5494_v38 }
 0x116   :  { %4816 = vmatprep.subr.bf16.mxu0 %v5494_v38 }
 0x119   :  { %4817 = vmatpush3.bf16.msra.mxu0 %v5234_v60 }
 0x11a   :  { %4818 = vmatprep.subr.bf16.mxu0 %v5494_v38 }
 0x11d   :  { %4819 = vmatpush3.bf16.msra.mxu0 %v5236_v41  ;;  %v5496_v41 = vmov 1983009808  }
 0x11e   :  { %4820 = vmatprep.subr.bf16.mxu0 %v5494_v38  ;;  %v2162_v51 = vunpack.c.l.s4 %v5496_v41 }
 0x121   :  { %4821 = vmatpush3.bf16.msra.mxu0 %v5238_v29  ;;  %v6871_v29 = vshrl.u32 %v2101_v23, 7 }
 0x122   :  { %4826 = vmatprep.subr.bf16.mxu0 %v5494_v38 }
 0x1e7   :  { %v6839_v4 = vpop.f32.mrb[0].mxu0 }
 0x1e8   :  { %v2018_v62 = vmul.f32 %v6839_v4, %v6839_v4  ;;  %v6843_v13 = vpop.f32.mrb[1].mxu0  ;;  %v2005_v42 = vsel %vm1995_vm9, %v6839_v4, 0.0 }
 0x1e9   :  { %v2016_v39 = vmul.f32 %v6843_v13, %v6843_v13  ;;  %v6847_v54 = vpop.f32.mrb[2].mxu0  ;;  %v1996_v43 = vsel %vm1995_vm9, %v6843_v13, 0.0 }
 0x1ea   :  { %v2006_v15 = vsel %vm1995_vm9, %v6847_v54, 0.0  ;;  %v2019_v32 = vmul.f32 %v6847_v54, %v6847_v54  ;;  %v6855_v6 = vpop.f32.mrb[3].mxu0  ;;  %v2029_v47 = vsel %vm1995_vm9, %v2018_v62, 0.0 }
 0x1eb   :  { %v2007_v7 = vadd.f32 %v2006_v15, %v2005_v42  ;;  %v1997_v35 = vsel %vm1995_vm9, %v6855_v6, 0.0  ;;  %v2017_v55 = vmul.f32 %v6855_v6, %v6855_v6  ;;  %v2020_v17 = vsel %vm1995_vm9, %v2016_v39, 0.0 }
 0x1ec   :  { %v2030_v44 = vsel %vm1995_vm9, %v2019_v32, 0.0  ;;  %v1998_v24 = vadd.f32 %v1997_v35, %v1996_v43  ;;  %v6874_v15 = vsub.s32 0, %v6871_v29  ;;  %v6877_v32 = vsub.s32 1, %v6871_v29 }
 0x1ed   :  { %v2008_v50 = vrot.slane %v2007_v7, 4  ;;  %v2031_v33 = vadd.f32 %v2030_v44, %v2029_v47  ;;  %v2021_v56 = vsel %vm1995_vm9, %v2017_v55, 0.0  ;;  %v6884_v44 = vsub.s32 2, %v6871_v29 }
 0x1ee   :  { %v1999_v16 = vrot.slane %v1998_v24, 4  ;;  %v2022_v21 = vadd.f32 %v2021_v56, %v2020_v17 }
 0x1ef   :  { %v2009_v14 = vadd.f32 %v2008_v50, %v2007_v7  ;;  %v2032_v22 = vrot.slane %v2031_v33, 4 }
 0x1f0   :  { %v2000_v48 = vadd.f32 %v1999_v16, %v1998_v24  ;;  %v2023_v46 = vrot.slane %v2022_v21, 4 }
 0x1f1   :  { %v2010_v1 = vrot.slane %v2009_v14, 2  ;;  %v2033_v63 = vadd.f32 %v2032_v22, %v2031_v33 }
 0x1f2   :  { %v2001_v34 = vrot.slane %v2000_v48, 2  ;;  %v2024_v49 = vadd.f32 %v2023_v46, %v2022_v21 }
 0x1f3   :  { %v2011_v57 = vadd.f32 %v2010_v1, %v2009_v14  ;;  %v2034_v28 = vrot.slane %v2033_v63, 2 }
 0x1f4   :  { %v2002_v2 = vadd.f32 %v2001_v34, %v2000_v48  ;;  %v2025_v19 = vrot.slane %v2024_v49, 2 }
 0x1f5   :  { %v2012_v18 = vrot.slane %v2011_v57, 1  ;;  %v2035_v36 = vadd.f32 %v2034_v28, %v2033_v63 }
 0x1f6   :  { %v2003_v9 = vrot.slane %v2002_v2, 1  ;;  %v2026_v31 = vadd.f32 %v2025_v19, %v2024_v49 }
 0x1f7   :  { %v2013_v53 = vadd.f32 %v2012_v18, %v2011_v57  ;;  %v2036_v61 = vrot.slane %v2035_v36, 1 }
 0x1f8   :  { %v2004_v3 = vadd.f32 %v2003_v9, %v2002_v2  ;;  %v2027_v27 = vrot.slane %v2026_v31, 1 }
 0x1f9   :  { %v2015_v8 = vmul.f32 0.0625, %v2013_v53  ;;  %v2037_v11 = vadd.f32 %v2036_v61, %v2035_v36 }
 0x1fa   :  { %v2014_v25 = vmul.f32 0.0625, %v2004_v3  ;;  %v2028_v52 = vadd.f32 %v2027_v27, %v2026_v31 }
 0x1fb   :  { %v2039_v10 = vmul.f32 0.0625, %v2037_v11  ;;  %v2042_v5 = vsub.f32 %v6839_v4, %v2015_v8  ;;  %v2043_v30 = vsub.f32 %v6847_v54, %v2015_v8  ;;  %v2045_v45 = vmul.f32 %v2015_v8, %v2015_v8 }
 0x1fc   :  { %v2038_v59 = vmul.f32 0.0625, %v2028_v52  ;;  %v2040_v58 = vsub.f32 %v6843_v13, %v2014_v25  ;;  %v2041_v40 = vsub.f32 %v6855_v6, %v2014_v25  ;;  %v2044_v37 = vmul.f32 %v2014_v25, %v2014_v25 }
 0x1fd   :  { %v2047_v0 = vsub.f32 %v2039_v10, %v2045_v45  ;;  %v2163_v54 = vunpack.c.0.s8 %v2162_v51  ;;  %v5241_v45 = vld [vmem:[#allocation7 + $0x60] sm:$0xff]  }
 0x1fe   :  { %v2046_v26 = vsub.f32 %v2038_v59, %v2044_v37 }
 0x1ff   :  { %v2049_v12 = vadd.f32 1e-05, %v2047_v0  ;;  %v6887_v24 = vsub.s32 %v2163_v54, %v6871_v29  ;;  %v5243_v54 = vld [vmem:[#allocation7 + $0x68] sm:$0xff]  }
 0x200   :  { %v2048_v60 = vadd.f32 1e-05, %v2046_v26 }
 0x201   :  { %5312 = vrsqrt.f32 %v2049_v12 }
 0x202   :  { %5314 = vrsqrt.f32 %v2048_v60 }
 0x20b   :  { %v5313_v20 = vpop.eup %5312 }
 0x20c   :  { %v5315_v4 = vpop.eup %5314  ;;  %v2054_v62 = vmul.f32 %v5313_v20, %v2042_v5  ;;  %v2055_v39 = vmul.f32 %v5313_v20, %v2043_v30  ;;  %v5240_v30 = vld [vmem:[#allocation7] sm:$0xff]  }
 0x20d   :  { %v2052_v13 = vmul.f32 %v5315_v4, %v2040_v58  ;;  %v2053_v42 = vmul.f32 %v5315_v4, %v2041_v40 }
 0x20e   :  { %vm2058_vm10 = vcmp.ge.f32.partialorder %v2054_v62, 0.0  ;;  %vm2059_vm11 = vcmp.ge.f32.partialorder %v2055_v39, 0.0  ;;  %v2062_v6 = vmul.f32 0.2, %v2054_v62  ;;  %v2063_v43 = vmul.f32 0.2, %v2055_v39 }
 0x20f   :  { %vm2056_vm12 = vcmp.ge.f32.partialorder %v2052_v13, 0.0  ;;  %vm2057_vm13 = vcmp.ge.f32.partialorder %v2053_v42, 0.0  ;;  %v2060_v7 = vmul.f32 0.2, %v2052_v13  ;;  %v2061_v35 = vmul.f32 0.2, %v2053_v42 }
 0x210   :  { %v6879_v55 = vsel %vm2058_vm10, %v2054_v62, %v2062_v6  ;;  %v6881_v47 = vsel %vm2059_vm11, %v2055_v39, %v2063_v43  ;;  %v7002_v62 = vsub.s32 3, %v6871_v29  ;;  %v5242_v39 = vld [vmem:[#allocation7 + $0x8] sm:$0xff]  }
 0x211   :  { %v6891_v17 = vcombine.high %v6879_v55, %v6879_v55  ;;  %v6893_v50 = vsel %vm2056_vm12, %v2052_v13, %v2060_v7  ;;  %v6895_v33 = vsel %vm2057_vm13, %v2053_v42, %v2061_v35  ;;  %v6899_v56 = vrot.slane %v6881_v47, %v6877_v32 }
 0x212   :  { %v6903_v16 = vcombine.high %v6893_v50, %v6893_v50  ;;  %v6907_v21 = vrot.slane %v6895_v33, %v6877_v32  ;;  %v2508_v14 = vsel %vm157_vm1, 0.0, %v6893_v50  ;;  %v2509_v22 = vsel %vm157_vm1, 0.0, %v6879_v55 }
 0x213   :  { %v2130_v48 = vrot.slane %v6891_v17, %v6874_v15  ;;  %v6917_v46 = vrot.slane %v6891_v17, %v6884_v44  ;;  %v6921_v1 = vrot.slane %v6891_v17, %v6877_v32  ;;  %v2406_v63 = vsel %vm160_vm5, 0.0, %v6891_v17 }
 0x214   :  { %v2126_v34 = vrot.slane %v6903_v16, %v6874_v15  ;;  %v6929_v49 = vrot.slane %v6903_v16, %v6884_v44  ;;  %v6933_v57 = vrot.slane %v6903_v16, %v6877_v32  ;;  %v2405_v28 = vsel %vm160_vm5, 0.0, %v6903_v16 }
 0x215   :  { %v2144_v2 = vsel %vm160_vm5, 0.0, %v2130_v48  ;;  %v2313_v19 = vsel %vm160_vm5, 0.0, %v6921_v1  ;;  %v6942_v18 = vsel %vm163_vm6, 0.0, %v6921_v1  ;;  %v6945_v36 = vsel %vm163_vm6, %v2405_v28, 0.0 }
 0x216   :  { %v2143_v9 = vsel %vm160_vm5, 0.0, %v2126_v34  ;;  %v2146_v31 = vsel %vm163_vm6, %v2144_v2, %v6917_v46  ;;  %v2312_v53 = vsel %vm160_vm5, 0.0, %v6933_v57  ;;  %v2315_v61 = vsel %vm163_vm6, %v2313_v19, %v6891_v17 }
 0x217   :  { %v2145_v3 = vsel %vm163_vm6, %v2143_v9, %v6929_v49  ;;  %v2314_v27 = vsel %vm163_vm6, %v2312_v53, %v6903_v16  ;;  %v6960_v8 = vsel %vm163_vm6, 0.0, %v6933_v57  ;;  %v6963_v11 = vsel %vm163_vm6, %v2406_v63, 0.0  ;;  %v5245_v53 = vld [vmem:[#allocation7 + $0x70] sm:$0xff]  }
 0x218   :  { %v4363_v25 = vpack.c.bf16 %v2146_v31, %v2145_v3  ;;  %v4375_v52 = vpack.c.bf16 %v2315_v61, %v2314_v27  ;;  %v4369_v10 = vpack.c.bf16 %v6942_v18, %v6960_v8  ;;  %v4381_v5 = vpack.c.bf16 %v6963_v11, %v6945_v36  ;;  %v5244_v31 = vld [vmem:[#allocation7 + $0x10] sm:$0xff]  }
 0x219   :  { %v2510_v59 = vsel %vm160_vm5, %v2508_v14, 0.0  ;;  %v2511_v58 = vsel %vm160_vm5, %v2509_v22, 0.0  ;;  %v2606_v40 = vrot.slane %v6893_v50, %v6884_v44  ;;  %v2610_v37 = vrot.slane %v6879_v55, %v6884_v44 }
 0x21a   :  { %v2167_v0 = vrot.slane %v4363_v25, %v6887_v24  ;;  %v2336_v26 = vrot.slane %v4375_v52, %v6887_v24  ;;  %v6979_v12 = vsel %vm163_vm6, %v2510_v59, %v6907_v21  ;;  %v6983_v60 = vsel %vm163_vm6, %v2511_v58, %v6899_v56 }
 0x21b   :  { %v2616_v23 = vrot.slane %v6895_v33, %v6874_v15  ;;  %v2620_v41 = vrot.slane %v6881_v47, %v6874_v15  ;;  %v4387_v51 = vpack.c.bf16 %v6983_v60, %v6979_v12  ;;  %v6995_v20 = vrot.slane %v6895_v33, %v6884_v44  ;;  %v5256_v12 = vld [vmem:[#allocation7 + $0xc0] sm:$0xff]  }
 0x21c   :  { %4823 = vmatmul.mubr.msk.bf16.vlgmr.msra.gmra.mrb[4].mxu0 %vm1995_vm9, %v2167_v0  ;;  %4847 = vmatmul.mubr.msk.bf16.vlgmr.msra.gmra.mrb[0].mxu1 %vm1995_vm9, %v2336_v26  ;;  %v6999_v4 = vrot.slane %v6881_v47, %v6884_v44  ;;  %v2633_v13 = vsel %vm157_vm1, %v6893_v50, %v2606_v40  ;;  %v2634_v42 = vsel %vm157_vm1, %v6879_v55, %v2610_v37  ;;  %v2843_v43 = vsel %vm157_vm1, %v2606_v40, 0.0 }
 0x21d   :  { %4827 = vmatpush3.bf16.msra.mxu0 %v5240_v30  ;;  %4851 = vmatpush3.bf16.msra.mxu1 %v5241_v45  ;;  %v2731_v6 = vrot.slane %v6893_v50, %v6877_v32  ;;  %v2635_v7 = vsel %vm160_vm5, %v2633_v13, %v2616_v23  ;;  %v2636_v35 = vsel %vm160_vm5, %v2634_v42, %v2620_v41  ;;  %v2844_v14 = vsel %vm157_vm1, %v2610_v37, 0.0  ;;  %v5247_v13 = vld [vmem:[#allocation7 + $0x78] sm:$0xff]  }
 0x21e   :  { %4828 = vmatprep.subr.bf16.mxu0 %v5494_v38  ;;  %4852 = vmatprep.subr.bf16.mxu1 %v5494_v38  ;;  %v7022_v22 = vsel %vm163_vm6, %v2635_v7, %v6995_v20  ;;  %v7026_v48 = vsel %vm163_vm6, %v2636_v35, %v6999_v4  ;;  %v2735_v63 = vrot.slane %v6879_v55, %v6877_v32  ;;  %v2948_v34 = vsel %vm157_vm1, 0.0, %v6903_v16 }
 0x21f   :  { %4834 = vmatprep.mubr.msk.bf16.mxu0 %vm5495_vm8, %v5494_v38  ;;  %4858 = vmatprep.mubr.msk.bf16.mxu1 %vm5495_vm8, %v5494_v38  ;;  %v4393_v28 = vpack.c.bf16 %v7026_v48, %v7022_v22  ;;  %v2741_v2 = vrot.slane %v6893_v50, %v7002_v62  ;;  %v2745_v19 = vrot.slane %v6879_v55, %v7002_v62  ;;  %v2949_v59 = vsel %vm157_vm1, 0.0, %v6891_v17  ;;  %v5260_v22 = vld [vmem:[#allocation7 + $0xe0] sm:$0xff]  }
 0x220   :  { %v2845_v9 = vsel %vm160_vm5, %v2843_v43, %v6895_v33  ;;  %v2846_v61 = vsel %vm160_vm5, %v2844_v14, %v6881_v47  ;;  %v2094_v27 = vcombine.high %v6895_v33, %v6895_v33  ;;  %v2096_v25 = vcombine.high %v6881_v47, %v6881_v47 }
 0x221   :  { %4829 = vmatpush3.bf16.msra.mxu0 %v5242_v39  ;;  %4853 = vmatpush3.bf16.msra.mxu1 %v5243_v54  ;;  %v7043_v3 = vsel %vm163_vm6, %v2845_v9, 0.0  ;;  %v2748_v52 = vsel %vm157_vm1, %v2731_v6, %v2741_v2  ;;  %v2749_v30 = vsel %vm157_vm1, %v2735_v63, %v2745_v19  ;;  %v7054_v45 = vsel %vm163_vm6, %v2846_v61, 0.0  ;;  %v5246_v54 = vld [vmem:[#allocation7 + $0x18] sm:$0xff]   ;;  %v5248_v9 = vld [vmem:[#allocation7 + $0x80] sm:$0xff]  }
 0x222   :  { %4830 = vmatprep.subr.bf16.mxu0 %v5494_v38  ;;  %4854 = vmatprep.subr.bf16.mxu1 %v5494_v38  ;;  %v2750_v58 = vsel %vm160_vm5, %v2748_v52, %v6907_v21  ;;  %v2751_v40 = vsel %vm160_vm5, %v2749_v30, %v6899_v56  ;;  %v4405_v37 = vpack.c.bf16 %v7054_v45, %v7043_v3  ;;  %v2950_v39 = vsel %vm160_vm5, %v2948_v34, 0.0  ;;  %v5268_v3 = vld [vmem:[#allocation7 + $0x120] sm:$0xff]  }
 0x223   :  { %v2941_v0 = vrot.slane %v2094_v27, %v6877_v32  ;;  %v7067_v26 = vsel %vm163_vm6, %v2750_v58, %v6895_v33  ;;  %v7071_v23 = vsel %vm163_vm6, %v2751_v40, %v6881_v47  ;;  %v2945_v41 = vrot.slane %v2096_v25, %v6877_v32  ;;  %v5249_v58 = vld [vmem:[#allocation7 + $0x88] sm:$0xff]  }
 0x224   :  { %v2244_v42 = vrot.slane %v4369_v10, %v6887_v24  ;;  %v4399_v6 = vpack.c.bf16 %v7071_v23, %v7067_v26  ;;  %v2951_v43 = vsel %vm160_vm5, %v2949_v59, 0.0  ;;  %v3046_v35 = vrot.slane %v2094_v27, %v6874_v15  ;;  %v5264_v26 = vld [vmem:[#allocation7 + $0x100] sm:$0xff]  }
 0x225   :  { %4831 = vmatpush3.bf16.msra.mxu0 %v5244_v31  ;;  %4855 = vmatpush3.bf16.msra.mxu1 %v5245_v53  ;;  %v7083_v7 = vsel %vm163_vm6, %v2950_v39, %v2941_v0  ;;  %v7088_v32 = vsel %vm163_vm6, %v2951_v43, %v2945_v41  ;;  %v3050_v18 = vrot.slane %v2096_v25, %v6874_v15  ;;  %v3263_v63 = vsel %vm157_vm1, %v6929_v49, 0.0 }
 0x226   :  { %4832 = vmatprep.subr.bf16.mxu0 %v5494_v38  ;;  %4856 = vmatprep.subr.bf16.mxu1 %v5494_v38  ;;  %v4411_v8 = vpack.c.bf16 %v7088_v32, %v7083_v7  ;;  %v3056_v10 = vrot.slane %v2094_v27, %v6884_v44  ;;  %v3060_v14 = vrot.slane %v2096_v25, %v6884_v44  ;;  %v3264_v53 = vsel %vm157_vm1, %v6917_v46, 0.0  ;;  %v5272_v7 = vld [vmem:[#allocation7 + $0x140] sm:$0xff]  }
 0x227   :  { %v3063_v34 = vsel %vm157_vm1, %v6903_v16, %v6929_v49  ;;  %v3064_v2 = vsel %vm157_vm1, %v6891_v17, %v6917_v46  ;;  %v3161_v15 = vrot.slane %v6903_v16, %v7002_v62  ;;  %v3165_v19 = vrot.slane %v6891_v17, %v7002_v62 }
 0x228   :  { %v2429_v44 = vrot.slane %v4381_v5, %v6887_v24  ;;  %v3065_v49 = vsel %vm160_vm5, %v3063_v34, %v3046_v35  ;;  %v3066_v31 = vsel %vm160_vm5, %v3064_v2, %v3050_v18  ;;  %v3265_v52 = vsel %vm160_vm5, %v3263_v63, %v2094_v27 }
 0x229   :  { %4833 = vmatpush3.bf16.msra.mxu0 %v5246_v54  ;;  %4857 = vmatpush3.bf16.msra.mxu1 %v5247_v13  ;;  %v7118_v16 = vsel %vm163_vm6, %v3065_v49, %v3056_v10  ;;  %v7121_v17 = vsel %vm163_vm6, %v3066_v31, %v3060_v14  ;;  %v3168_v36 = vsel %vm157_vm1, %v6933_v57, %v3161_v15  ;;  %v7143_v59 = vsel %vm163_vm6, %v3265_v52, 0.0  ;;  %v5250_v14 = vld [vmem:[#allocation7 + $0x90] sm:$0xff]  }
 0x22a   :  { %4862 = vmatprep.subr.bf16.mxu1 %v5494_v38  ;;  %v3169_v11 = vsel %vm157_vm1, %v6921_v1, %v3165_v19  ;;  %v4417_v5 = vpack.c.bf16 %v7121_v17, %v7118_v16  ;;  %v3170_v61 = vsel %vm160_vm5, %v3168_v36, %v2941_v0  ;;  %5006 = vmatprep.subr.bf16.mxu0 %v5494_v38  ;;  %v3654_v49 = vsel %vm157_vm1, %v6999_v4, 0.0  ;;  %v5276_v16 = vld [vmem:[#allocation7 + $0x160] sm:$0xff]  }
 0x22b   :  { %v3171_v46 = vsel %vm160_vm5, %v3169_v11, %v2945_v41  ;;  %v7136_v57 = vsel %vm163_vm6, %v3170_v61, %v2094_v27  ;;  %v3266_v30 = vsel %vm160_vm5, %v3264_v53, %v2096_v25  ;;  %v3358_v27 = vsel %vm157_vm1, 0.0, %v6895_v33 }
 0x22c   :  { %4835 = vmatmul.mubr.msk.bf16.vlgmr.msra.gmra.mrb[4].mxu0 %vm1995_vm9, %v2244_v42  ;;  %4859 = vmatmul.mubr.msk.bf16.vlgmr.msra.gmra.mrb[0].mxu1 %vm1995_vm9, %v2429_v44  ;;  %v7139_v1 = vsel %vm163_vm6, %v3171_v46, %v2096_v25  ;;  %v7150_v0 = vsel %vm163_vm6, %v3266_v30, 0.0  ;;  %v3359_v41 = vsel %vm157_vm1, 0.0, %v6881_v47  ;;  %v3360_v39 = vsel %vm160_vm5, %v3358_v27, 0.0 }
 0x22d   :  { %4863 = vmatpush3.bf16.msra.mxu1 %v5248_v9  ;;  %4870 = vmatprep.mubr.msk.bf16.mxu1 %vm5495_vm8, %v5494_v38  ;;  %v4423_v40 = vpack.c.bf16 %v7139_v1, %v7136_v57  ;;  %v4429_v25 = vpack.c.bf16 %v7150_v0, %v7143_v59  ;;  %v3453_v54 = vsel %vm157_vm1, %v6895_v33, %v6995_v20  ;;  %v3361_v13 = vsel %vm160_vm5, %v3359_v41, 0.0  ;;  %v5280_v57 = vld [vmem:[#allocation7 + $0x180] sm:$0xff]  }
 0x22e   :  { %4864 = vmatprep.subr.bf16.mxu1 %v5494_v38  ;;  %5014 = vmatprep.mubr.msk.bf16.mxu0 %vm5495_vm8, %v5494_v38  ;;  %v7167_v42 = vsel %vm163_vm6, %v3360_v39, 0.0  ;;  %v3454_v43 = vsel %vm157_vm1, %v6881_v47, %v6999_v4  ;;  %v7173_v35 = vsel %vm163_vm6, %v3361_v13, 0.0  ;;  %v3455_v18 = vsel %vm160_vm5, %v3453_v54, 0.0  ;;  %v5252_v39 = vld [vmem:[#allocation7 + $0xa0] sm:$0xff]   ;;  %v5255_v54 = vld [vmem:[#allocation7 + $0xb8] sm:$0xff]   ;;  %v5258_v13 = vld [vmem:[#allocation7 + $0xd0] sm:$0xff]  }
 0x22f   :  { %v3456_v10 = vsel %vm160_vm5, %v3454_v43, 0.0  ;;  %v4435_v63 = vpack.c.bf16 %v7173_v35, %v7167_v42  ;;  %v7180_v34 = vsel %vm163_vm6, %v3455_v18, 0.0  ;;  %v3551_v15 = vrot.slane %v6895_v33, %v7002_v62  ;;  %v5259_v43 = vld [vmem:[#allocation7 + $0xd8] sm:$0xff]   ;;  %v5262_v18 = vld [vmem:[#allocation7 + $0xf0] sm:$0xff]   ;;  %v5284_v59 = vld [vmem:[#allocation7 + $0x1a0] sm:$0xff]  }
 0x230   :  { %v7183_v2 = vsel %vm163_vm6, %v3456_v10, 0.0  ;;  %v3555_v44 = vrot.slane %v6881_v47, %v7002_v62  ;;  %v3653_v9 = vsel %vm157_vm1, %v6995_v20, 0.0  ;;  %v3656_v36 = vsel %vm160_vm5, %v3654_v49, 0.0  ;;  %v5251_v20 = vld [vmem:[#allocation7 + $0x98] sm:$0xff]   ;;  %v5274_v49 = vld [vmem:[#allocation7 + $0x150] sm:$0xff]   ;;  %v5288_v42 = vld [vmem:[#allocation7 + $0x1c0] sm:$0xff]  }
 0x231   :  { %4865 = vmatpush3.bf16.msra.mxu1 %v5249_v58  ;;  %v4441_v19 = vpack.c.bf16 %v7183_v2, %v7180_v34  ;;  %v3558_v31 = vsel %vm157_vm1, %v6907_v21, %v3551_v15  ;;  %v3655_v53 = vsel %vm160_vm5, %v3653_v9, 0.0  ;;  %v7211_v21 = vsel %vm163_vm6, %v3656_v36, 0.0  ;;  %v5263_v10 = vld [vmem:[#allocation7 + $0xf8] sm:$0xff]   ;;  %v5292_v34 = vld [vmem:[#allocation7 + $0x1e0] sm:$0xff]  }
 0x232   :  { %4866 = vmatprep.subr.bf16.mxu1 %v5494_v38  ;;  %v3559_v11 = vsel %vm157_vm1, %v6899_v56, %v3555_v44  ;;  %v3560_v61 = vsel %vm160_vm5, %v3558_v31, 0.0  ;;  %v7204_v62 = vsel %vm163_vm6, %v3655_v53, 0.0  ;;  %v4479_v52 = vpack.c.bf16 %v6893_v50, %v6893_v50  ;;  %v5267_v15 = vld [vmem:[#allocation7 + $0x118] sm:$0xff]   ;;  %v5270_v44 = vld [vmem:[#allocation7 + $0x130] sm:$0xff]  }
 0x233   :  { %v3561_v4 = vsel %vm160_vm5, %v3559_v11, 0.0  ;;  %v7208_v46 = vsel %vm163_vm6, %v3560_v61, 0.0  ;;  %v4453_v30 = vpack.c.bf16 %v7211_v21, %v7204_v62  ;;  %v4480_v58 = vpack.c.bf16 %v6895_v33, %v6895_v33  ;;  %v5254_v33 = vld [vmem:[#allocation7 + $0xb0] sm:$0xff]   ;;  %v5271_v9 = vld [vmem:[#allocation7 + $0x138] sm:$0xff]  }
 0x234   :  { %v7217_v56 = vsel %vm163_vm6, %v3561_v4, 0.0  ;;  %v4481_v27 = vpack.c.bf16 %v6879_v55, %v6879_v55  ;;  %v4482_v50 = vpack.c.bf16 %v6881_v47, %v6881_v47  ;;  %2085 = vst.msk [vmem:[#allocation10] sm:$0xf] %vm2084_vm14, %v4479_v52  ;;  %v2534_v55 = vrot.slane %v4387_v51, %v6887_v24  ;;  %v5253_v47 = vld [vmem:[#allocation7 + $0xa8] sm:$0xff]   ;;  %v5275_v31 = vld [vmem:[#allocation7 + $0x158] sm:$0xff]   ;;  %v5278_v53 = vld [vmem:[#allocation7 + $0x170] sm:$0xff]  }
 0x235   :  { %4867 = vmatpush3.bf16.msra.mxu1 %v5250_v14  ;;  %v4447_v41 = vpack.c.bf16 %v7217_v56, %v7208_v46  ;;  %2086 = vst.msk [vmem:[#allocation10 + $0x4] sm:$0xf] %vm2084_vm14, %v4480_v58  ;;  %v2659_v60 = vrot.slane %v4393_v28, %v6887_v24  ;;  %v5257_v51 = vld [vmem:[#allocation7 + $0xc8] sm:$0xff]   ;;  %v2774_v48 = vrot.slane %v4399_v6, %v6887_v24  ;;  %v5266_v14 = vld [vmem:[#allocation7 + $0x110] sm:$0xff]   ;;  %v5279_v36 = vld [vmem:[#allocation7 + $0x178] sm:$0xff]   ;;  %vm3805_vm1 = vcmask 517120  }
 0x236   :  { %4868 = vmatprep.subr.bf16.mxu1 %v5494_v38  ;;  %2087 = vst.msk [vmem:[#allocation10 + $0x8] sm:$0xf] %vm2084_vm14, %v4481_v27  ;;  %2088 = vst.msk [vmem:[#allocation10 + $0xc] sm:$0xf] %vm2084_vm14, %v4482_v50  ;;  %v5261_v28 = vld [vmem:[#allocation7 + $0xe8] sm:$0xff]   ;;  %v2869_v23 = vrot.slane %v4405_v37, %v6887_v24  ;;  %v2974_v45 = vrot.slane %v4411_v8, %v6887_v24  ;;  %v3089_v32 = vrot.slane %v4417_v5, %v6887_v24  ;;  %v5282_v11 = vld [vmem:[#allocation7 + $0x190] sm:$0xff]  }
 0x237   :  { %v5265_v6 = vld [vmem:[#allocation7 + $0x108] sm:$0xff]   ;;  %v3194_v17 = vrot.slane %v4423_v40, %v6887_v24  ;;  %v3289_v1 = vrot.slane %v4429_v25, %v6887_v24  ;;  %v5283_v61 = vld [vmem:[#allocation7 + $0x198] sm:$0xff]   ;;  %v3384_v0 = vrot.slane %v4435_v63, %v6887_v24  ;;  %v3479_v35 = vrot.slane %v4441_v19, %v6887_v24  ;;  %v5290_v52 = vld [vmem:[#allocation7 + $0x1d0] sm:$0xff]  }
 0x238   :  { %v5269_v37 = vld [vmem:[#allocation7 + $0x128] sm:$0xff]   ;;  %v5287_v4 = vld [vmem:[#allocation7 + $0x1b8] sm:$0xff]   ;;  %v3584_v2 = vrot.slane %v4447_v41, %v6887_v24  ;;  %v5294_v27 = vld [vmem:[#allocation7 + $0x1f0] sm:$0xff]   ;;  %v3679_v46 = vrot.slane %v4453_v30, %v6887_v24 }
 0x239   :  { %4869 = vmatpush3.bf16.msra.mxu1 %v5251_v20  ;;  %v5273_v8 = vld [vmem:[#allocation7 + $0x148] sm:$0xff]   ;;  %v5286_v20 = vld [vmem:[#allocation7 + $0x1b0] sm:$0xff]   ;;  %v5291_v58 = vld [vmem:[#allocation7 + $0x1d8] sm:$0xff]  }
 0x23a   :  { %4874 = vmatprep.subr.bf16.mxu1 %v5494_v38  ;;  %v5277_v5 = vld [vmem:[#allocation7 + $0x168] sm:$0xff]   ;;  %v5295_v50 = vld [vmem:[#allocation7 + $0x1f8] sm:$0xff]  }
 0x23b   :  { %v5281_v40 = vld [vmem:[#allocation7 + $0x188] sm:$0xff]  }
 0x23c   :  { %4871 = vmatmul.mubr.msk.bf16.vlgmr.msra.gmra.mrb[0].mxu1 %vm1995_vm9, %v2534_v55  ;;  %v5285_v25 = vld [vmem:[#allocation7 + $0x1a8] sm:$0xff]  }
 0x23d   :  { %4875 = vmatpush3.bf16.msra.mxu1 %v5252_v39  ;;  %4882 = vmatprep.mubr.msk.bf16.mxu1 %vm5495_vm8, %v5494_v38  ;;  %v5289_v63 = vld [vmem:[#allocation7 + $0x1c8] sm:$0xff]  }
 0x23e   :  { %4876 = vmatprep.subr.bf16.mxu1 %v5494_v38  ;;  %v5293_v19 = vld [vmem:[#allocation7 + $0x1e8] sm:$0xff]  }
 0x241   :  { %4877 = vmatpush3.bf16.msra.mxu1 %v5253_v47  ;;  %v5296_v47 = vld [vmem:[#allocation8 + $0xa0] sm:$0xff]  }
 0x242   :  { %4878 = vmatprep.subr.bf16.mxu1 %v5494_v38  ;;  %5007 = vmatpush3.bf16.msra.mxu0 %v5296_v47 }
 0x243   :  { %5008 = vmatprep.subr.bf16.mxu0 %v5494_v38 }
 0x245   :  { %4879 = vmatpush3.bf16.msra.mxu1 %v5254_v33  ;;  %v5297_v33 = vld [vmem:[#allocation8 + $0xa8] sm:$0xff]  }
 0x246   :  { %4880 = vmatprep.subr.bf16.mxu1 %v5494_v38  ;;  %5009 = vmatpush3.bf16.msra.mxu0 %v5297_v33 }
 0x247   :  { %5010 = vmatprep.subr.bf16.mxu0 %v5494_v38 }
 0x249   :  { %4881 = vmatpush3.bf16.msra.mxu1 %v5255_v54  ;;  %v5298_v54 = vld [vmem:[#allocation8 + $0xb0] sm:$0xff]  }
 0x24a   :  { %4886 = vmatprep.subr.bf16.mxu1 %v5494_v38  ;;  %5011 = vmatpush3.bf16.msra.mxu0 %v5298_v54 }
 0x24b   :  { %5012 = vmatprep.subr.bf16.mxu0 %v5494_v38 }
 0x24c   :  { %4883 = vmatmul.mubr.msk.bf16.vlgmr.msra.gmra.mrb[0].mxu1 %vm1995_vm9, %v2659_v60 }
 0x24d   :  { %4887 = vmatpush3.bf16.msra.mxu1 %v5256_v12  ;;  %4894 = vmatprep.mubr.msk.bf16.mxu1 %vm5495_vm8, %v5494_v38  ;;  %v5299_v12 = vld [vmem:[#allocation8 + $0xb8] sm:$0xff]  }
 0x24e   :  { %4888 = vmatprep.subr.bf16.mxu1 %v5494_v38  ;;  %5013 = vmatpush3.bf16.msra.mxu0 %v5299_v12 }
 0x24f   :  { %5018 = vmatprep.subr.bf16.mxu0 %v5494_v38 }
 0x251   :  { %4889 = vmatpush3.bf16.msra.mxu1 %v5257_v51 }
 0x252   :  { %4890 = vmatprep.subr.bf16.mxu1 %v5494_v38 }
 0x255   :  { %4891 = vmatpush3.bf16.msra.mxu1 %v5258_v13 }
 0x256   :  { %4892 = vmatprep.subr.bf16.mxu1 %v5494_v38 }
 0x259   :  { %4893 = vmatpush3.bf16.msra.mxu1 %v5259_v43 }
 0x25a   :  { %4898 = vmatprep.subr.bf16.mxu1 %v5494_v38 }
 0x25c   :  { %4895 = vmatmul.mubr.msk.bf16.vlgmr.msra.gmra.mrb[0].mxu1 %vm1995_vm9, %v2774_v48 }
 0x25d   :  { %4899 = vmatpush3.bf16.msra.mxu1 %v5260_v22  ;;  %4906 = vmatprep.mubr.msk.bf16.mxu1 %vm5495_vm8, %v5494_v38 }
 0x25e   :  { %4900 = vmatprep.subr.bf16.mxu1 %v5494_v38 }
 0x261   :  { %4901 = vmatpush3.bf16.msra.mxu1 %v5261_v28 }
 0x262   :  { %4902 = vmatprep.subr.bf16.mxu1 %v5494_v38 }
 0x265   :  { %4903 = vmatpush3.bf16.msra.mxu1 %v5262_v18 }
 0x266   :  { %4904 = vmatprep.subr.bf16.mxu1 %v5494_v38 }
 0x269   :  { %4905 = vmatpush3.bf16.msra.mxu1 %v5263_v10 }
 0x26a   :  { %4910 = vmatprep.subr.bf16.mxu1 %v5494_v38 }
 0x26c   :  { %4907 = vmatmul.mubr.msk.bf16.vlgmr.msra.gmra.mrb[0].mxu1 %vm1995_vm9, %v2869_v23 }
 0x26d   :  { %4911 = vmatpush3.bf16.msra.mxu1 %v5264_v26  ;;  %4918 = vmatprep.mubr.msk.bf16.mxu1 %vm5495_vm8, %v5494_v38 }
 0x26e   :  { %4912 = vmatprep.subr.bf16.mxu1 %v5494_v38 }
 0x271   :  { %4913 = vmatpush3.bf16.msra.mxu1 %v5265_v6 }
 0x272   :  { %4914 = vmatprep.subr.bf16.mxu1 %v5494_v38 }
 0x275   :  { %4915 = vmatpush3.bf16.msra.mxu1 %v5266_v14 }
 0x276   :  { %4916 = vmatprep.subr.bf16.mxu1 %v5494_v38 }
 0x279   :  { %4917 = vmatpush3.bf16.msra.mxu1 %v5267_v15 }
 0x27a   :  { %4922 = vmatprep.subr.bf16.mxu1 %v5494_v38 }
 0x27c   :  { %4919 = vmatmul.mubr.msk.bf16.vlgmr.msra.gmra.mrb[0].mxu1 %vm1995_vm9, %v2974_v45 }
 0x27d   :  { %4923 = vmatpush3.bf16.msra.mxu1 %v5268_v3  ;;  %4930 = vmatprep.mubr.msk.bf16.mxu1 %vm5495_vm8, %v5494_v38 }
 0x27e   :  { %4924 = vmatprep.subr.bf16.mxu1 %v5494_v38 }
 0x281   :  { %4925 = vmatpush3.bf16.msra.mxu1 %v5269_v37 }
 0x282   :  { %4926 = vmatprep.subr.bf16.mxu1 %v5494_v38 }
 0x285   :  { %4927 = vmatpush3.bf16.msra.mxu1 %v5270_v44 }
 0x286   :  { %4928 = vmatprep.subr.bf16.mxu1 %v5494_v38 }
 0x289   :  { %4929 = vmatpush3.bf16.msra.mxu1 %v5271_v9 }
 0x28a   :  { %4934 = vmatprep.subr.bf16.mxu1 %v5494_v38 }
 0x28c   :  { %4931 = vmatmul.mubr.msk.bf16.vlgmr.msra.gmra.mrb[0].mxu1 %vm1995_vm9, %v3089_v32 }
 0x28d   :  { %4935 = vmatpush3.bf16.msra.mxu1 %v5272_v7  ;;  %4942 = vmatprep.mubr.msk.bf16.mxu1 %vm5495_vm8, %v5494_v38 }
 0x28e   :  { %4936 = vmatprep.subr.bf16.mxu1 %v5494_v38 }
 0x291   :  { %4937 = vmatpush3.bf16.msra.mxu1 %v5273_v8 }
 0x292   :  { %4938 = vmatprep.subr.bf16.mxu1 %v5494_v38 }
 0x295   :  { %4939 = vmatpush3.bf16.msra.mxu1 %v5274_v49 }
 0x296   :  { %4940 = vmatprep.subr.bf16.mxu1 %v5494_v38 }
 0x299   :  { %4941 = vmatpush3.bf16.msra.mxu1 %v5275_v31 }
 0x29a   :  { %4946 = vmatprep.subr.bf16.mxu1 %v5494_v38 }
 0x29c   :  { %4943 = vmatmul.mubr.msk.bf16.vlgmr.msra.gmra.mrb[0].mxu1 %vm1995_vm9, %v3194_v17 }
 0x29d   :  { %4947 = vmatpush3.bf16.msra.mxu1 %v5276_v16  ;;  %4954 = vmatprep.mubr.msk.bf16.mxu1 %vm5495_vm8, %v5494_v38 }
 0x29e   :  { %4948 = vmatprep.subr.bf16.mxu1 %v5494_v38 }
 0x2a1   :  { %4949 = vmatpush3.bf16.msra.mxu1 %v5277_v5 }
 0x2a2   :  { %4950 = vmatprep.subr.bf16.mxu1 %v5494_v38 }
 0x2a5   :  { %4951 = vmatpush3.bf16.msra.mxu1 %v5278_v53 }
 0x2a6   :  { %4952 = vmatprep.subr.bf16.mxu1 %v5494_v38 }
 0x2a9   :  { %4953 = vmatpush3.bf16.msra.mxu1 %v5279_v36 }
 0x2aa   :  { %4958 = vmatprep.subr.bf16.mxu1 %v5494_v38 }
 0x2ac   :  { %4955 = vmatmul.mubr.msk.bf16.vlgmr.msra.gmra.mrb[0].mxu1 %vm1995_vm9, %v3289_v1 }
 0x2ad   :  { %4959 = vmatpush3.bf16.msra.mxu1 %v5280_v57  ;;  %4966 = vmatprep.mubr.msk.bf16.mxu1 %vm5495_vm8, %v5494_v38 }
 0x2ae   :  { %4960 = vmatprep.subr.bf16.mxu1 %v5494_v38 }
 0x2b1   :  { %4961 = vmatpush3.bf16.msra.mxu1 %v5281_v40 }
 0x2b2   :  { %4962 = vmatprep.subr.bf16.mxu1 %v5494_v38 }
 0x2b5   :  { %4963 = vmatpush3.bf16.msra.mxu1 %v5282_v11 }
 0x2b6   :  { %4964 = vmatprep.subr.bf16.mxu1 %v5494_v38 }
 0x2b9   :  { %4965 = vmatpush3.bf16.msra.mxu1 %v5283_v61 }
 0x2ba   :  { %4970 = vmatprep.subr.bf16.mxu1 %v5494_v38 }
 0x2bc   :  { %4967 = vmatmul.mubr.msk.bf16.vlgmr.msra.gmra.mrb[0].mxu1 %vm1995_vm9, %v3384_v0 }
 0x2bd   :  { %4971 = vmatpush3.bf16.msra.mxu1 %v5284_v59  ;;  %4978 = vmatprep.mubr.msk.bf16.mxu1 %vm5495_vm8, %v5494_v38 }
 0x2be   :  { %4972 = vmatprep.subr.bf16.mxu1 %v5494_v38 }
 0x2c1   :  { %4973 = vmatpush3.bf16.msra.mxu1 %v5285_v25 }
 0x2c2   :  { %4974 = vmatprep.subr.bf16.mxu1 %v5494_v38 }
 0x2c5   :  { %4975 = vmatpush3.bf16.msra.mxu1 %v5286_v20 }
 0x2c6   :  { %4976 = vmatprep.subr.bf16.mxu1 %v5494_v38 }
 0x2c9   :  { %4977 = vmatpush3.bf16.msra.mxu1 %v5287_v4 }
 0x2ca   :  { %4982 = vmatprep.subr.bf16.mxu1 %v5494_v38 }
 0x2cc   :  { %4979 = vmatmul.mubr.msk.bf16.vlgmr.msra.gmra.mrb[0].mxu1 %vm1995_vm9, %v3479_v35 }
 0x2cd   :  { %4983 = vmatpush3.bf16.msra.mxu1 %v5288_v42  ;;  %4990 = vmatprep.mubr.msk.bf16.mxu1 %vm5495_vm8, %v5494_v38 }
 0x2ce   :  { %4984 = vmatprep.subr.bf16.mxu1 %v5494_v38 }
 0x2d1   :  { %4985 = vmatpush3.bf16.msra.mxu1 %v5289_v63 }
 0x2d2   :  { %4986 = vmatprep.subr.bf16.mxu1 %v5494_v38 }
 0x2d5   :  { %4987 = vmatpush3.bf16.msra.mxu1 %v5290_v52 }
 0x2d6   :  { %4988 = vmatprep.subr.bf16.mxu1 %v5494_v38 }
 0x2d9   :  { %4989 = vmatpush3.bf16.msra.mxu1 %v5291_v58 }
 0x2da   :  { %4994 = vmatprep.subr.bf16.mxu1 %v5494_v38 }
 0x2dc   :  { %4991 = vmatmul.mubr.msk.bf16.vlgmr.msra.gmra.mrb[0].mxu1 %vm1995_vm9, %v3584_v2 }
 0x2dd   :  { %4995 = vmatpush3.bf16.msra.mxu1 %v5292_v34  ;;  %5002 = vmatprep.mubr.msk.bf16.mxu1 %vm5495_vm8, %v5494_v38 }
 0x2de   :  { %4996 = vmatprep.subr.bf16.mxu1 %v5494_v38 }
 0x2e1   :  { %4997 = vmatpush3.bf16.msra.mxu1 %v5293_v19 }
 0x2e2   :  { %4998 = vmatprep.subr.bf16.mxu1 %v5494_v38 }
 0x2e5   :  { %4999 = vmatpush3.bf16.msra.mxu1 %v5294_v27 }
 0x2e6   :  { %5000 = vmatprep.subr.bf16.mxu1 %v5494_v38 }
 0x2e9   :  { %5001 = vmatpush3.bf16.msra.mxu1 %v5295_v50 }
 0x2ec   :  { %5003 = vmatmul.mubr.msk.bf16.vlgmr.msra.gmra.mrb[0].mxu1 %vm1995_vm9, %v3679_v46 }
 0x2ff   :  { %v2306_v56 = vpop.f32.mrb[4].mxu0 }
 0x300   :  { %v4836_v41 = vpop.f32.mrb[5].mxu0 }
 0x301   :  { %v2309_v39 = vpop.f32.mrb[6].mxu0 }
 0x302   :  { %v4837_v55 = vpop.f32.mrb[7].mxu0 }
 0x3bf   :  { %v3741_v62 = vpop.f32.mrb[0].mxu1 }
 0x3c0   :  { %v5054_v21 = vadd.f32 %v3741_v62, %v2306_v56  ;;  %v5004_v30 = vpop.f32.mrb[1].mxu1 }
 0x3c1   :  { %v3744_v60 = vpop.f32.mrb[2].mxu1 }
 0x3c2   :  { %v3749_v51 = vcombine.high %v5054_v21, %v5054_v21  ;;  %v3751_v13 = vsel %vm2084_vm14, %v5054_v21, 0.0  ;;  %v3767_v43 = vmul.f32 %v5054_v21, %v5054_v21  ;;  %v5005_v22 = vpop.f32.mrb[3].mxu1 }
 0x3c3   :  { %v3752_v48 = vrot.slane %v3751_v13, 4  ;;  %v5301_v22 = vld [vmem:[#allocation8 + $0x88] sm:$0xff]  }
 0x3c4   :  { %v3758_v28 = vsel %vm2084_vm14, %v3749_v51, 0.0  ;;  %v3768_v18 = vmul.f32 %v3749_v51, %v3749_v51  ;;  %v3769_v10 = vsel %vm2084_vm14, %v3767_v43, 0.0 }
 0x3c5   :  { %v3753_v26 = vadd.f32 %v3752_v48, %v3751_v13  ;;  %v3759_v23 = vrot.slane %v3758_v28, 4  ;;  %v3770_v6 = vrot.slane %v3769_v10, 4  ;;  %v5300_v13 = vld [vmem:[#allocation8 + $0x80] sm:$0xff]  }
 0x3c6   :  { %v3776_v14 = vsel %vm2084_vm14, %v3768_v18, 0.0 }
 0x3c7   :  { %v3754_v15 = vrot.slane %v3753_v26, 2  ;;  %v3760_v3 = vadd.f32 %v3759_v23, %v3758_v28  ;;  %v3771_v45 = vadd.f32 %v3770_v6, %v3769_v10  ;;  %v3777_v37 = vrot.slane %v3776_v14, 4  ;;  %v5303_v28 = vld [vmem:[#allocation8 + $0x98] sm:$0xff]  }
 0x3c9   :  { %v3755_v44 = vadd.f32 %v3754_v15, %v3753_v26  ;;  %v3761_v9 = vrot.slane %v3760_v3, 2  ;;  %v3772_v7 = vrot.slane %v3771_v45, 2  ;;  %v3778_v32 = vadd.f32 %v3777_v37, %v3776_v14  ;;  %v5304_v26 = vld [vmem:[#allocation8 + $0xe0] sm:$0xff]   ;;  %v5305_v14 = vld [vmem:[#allocation8 + $0xe8] sm:$0xff]  }
 0x3cb   :  { %v3756_v8 = vrot.slane %v3755_v44, 1  ;;  %v3762_v49 = vadd.f32 %v3761_v9, %v3760_v3  ;;  %v3773_v31 = vadd.f32 %v3772_v7, %v3771_v45  ;;  %v3779_v16 = vrot.slane %v3778_v32, 2  ;;  %v5306_v45 = vld [vmem:[#allocation8 + $0xf0] sm:$0xff]   ;;  %v5307_v9 = vld [vmem:[#allocation8 + $0xf8] sm:$0xff]  }
 0x3cd   :  { %v3757_v17 = vadd.f32 %v3756_v8, %v3755_v44  ;;  %v3763_v5 = vrot.slane %v3762_v49, 1  ;;  %v3774_v53 = vrot.slane %v3773_v31, 1  ;;  %v3780_v36 = vadd.f32 %v3779_v16, %v3778_v32  ;;  %v5308_v8 = vld [vmem:[#allocation8 + $0x100] sm:$0xff]   ;;  %v5310_v16 = vld [vmem:[#allocation8 + $0x110] sm:$0xff]  }
 0x3cf   :  { %v3764_v57 = vadd.f32 %v3763_v5, %v3762_v49  ;;  %v3765_v1 = vmul.f32 0.25, %v3757_v17  ;;  %v3775_v40 = vadd.f32 %v3774_v53, %v3773_v31  ;;  %v3781_v11 = vrot.slane %v3780_v36, 1  ;;  %v5309_v31 = vld [vmem:[#allocation8 + $0x108] sm:$0xff]   ;;  %v5311_v5 = vld [vmem:[#allocation8 + $0x118] sm:$0xff]  }
 0x3d1   :  { %v3766_v61 = vmul.f32 0.25, %v3764_v57  ;;  %v3782_v59 = vadd.f32 %v3781_v11, %v3780_v36  ;;  %v3783_v0 = vmul.f32 0.25, %v3775_v40  ;;  %v3787_v25 = vmul.f32 %v3765_v1, %v3765_v1 }
 0x3d2   :  { %v3785_v58 = vsub.f32 %v5054_v21, %v3765_v1 }
 0x3d3   :  { %v3784_v20 = vmul.f32 0.25, %v3782_v59  ;;  %v3788_v4 = vmul.f32 %v3766_v61, %v3766_v61  ;;  %v3789_v42 = vsub.f32 %v3783_v0, %v3787_v25  ;;  %v3786_v2 = vsub.f32 %v3749_v51, %v3766_v61 }
 0x3d5   :  { %v3790_v35 = vsub.f32 %v3784_v20, %v3788_v4  ;;  %v3791_v63 = vadd.f32 1e-05, %v3789_v42 }
 0x3d7   :  { %v3792_v52 = vadd.f32 1e-05, %v3790_v35  ;;  %5316 = vrsqrt.f32 %v3791_v63 }
 0x3d9   :  { %5318 = vrsqrt.f32 %v3792_v52 }
 0x3e1   :  { %v5317_v34 = vpop.eup %5316 }
 0x3e2   :  { %v3795_v27 = vmul.f32 %v5317_v34, %v3785_v58 }
 0x3e3   :  { %v5319_v19 = vpop.eup %5318 }
 0x3e4   :  { %v3796_v50 = vmul.f32 %v5319_v19, %v3786_v2  ;;  %vm3797_vm15 = vcmp.ge.f32.partialorder %v3795_v27, 0.0  ;;  %v3799_v46 = vmul.f32 0.2, %v3795_v27 }
 0x3e6   :  { %vm3798_vm0 = vcmp.ge.f32.partialorder %v3796_v50, 0.0  ;;  %v3800_v56 = vmul.f32 0.2, %v3796_v50  ;;  %v3801_v41 = vsel %vm3797_vm15, %v3795_v27, %v3799_v46 }
 0x3e7   :  { %v3816_v55 = vrot.slane %v3801_v41, %v6887_v24  ;;  %v3803_v47 = vpack.c.bf16 %v3801_v41, %v3801_v41 }
 0x3e8   :  { %v3802_v39 = vsel %vm3798_vm0, %v3796_v50, %v3800_v56 }
 0x3e9   :  { %v3824_v33 = vrot.slane %v3802_v39, %v6887_v24  ;;  %v3804_v54 = vpack.c.bf16 %v3802_v39, %v3802_v39  ;;  %v3830_v12 = vpack.c.bf16 %v3816_v55, %v3816_v55  ;;  %3806 = vst.msk [vmem:[#allocation11] sm:$0x3] %vm3805_vm1, %v3803_v47  ;;  %v5302_v24 = vld [vmem:[#allocation8 + $0x90] sm:$0xff]   ;;  %v3817_v15 = vcombine.high %v3816_v55, %v3816_v55 }
 0x3eb   :  { %v3831_v62 = vpack.c.bf16 %v3824_v33, %v3824_v33  ;;  %3807 = vst.msk [vmem:[#allocation11 + $0x2] sm:$0x3] %vm3805_vm1, %v3804_v54  ;;  %v3852_v21 = vunpack.c.l.b16 %v3830_v12  ;;  %v3825_v10 = vcombine.high %v3824_v33, %v3824_v33  ;;  %v3995_v37 = vpack.c.bf16 %v3817_v15, %v3817_v15 }
 0x3ed   :  { %v3853_v30 = vunpack.c.l.b16 %v3831_v62  ;;  %v3854_v60 = vrot.slane %v3852_v21, 1  ;;  %v3996_v6 = vpack.c.bf16 %v3825_v10, %v3825_v10  ;;  %v4008_v7 = vunpack.c.l.b16 %v3995_v37 }
 0x3ef   :  { %v3856_v51 = vsel %vm3855_vm2, %v3853_v30, %v3854_v60  ;;  %v3925_v48 = vrot.slane %v3853_v30, 7  ;;  %v4009_v3 = vunpack.c.l.b16 %v3996_v6  ;;  %v4090_v17 = vrot.slane %v4008_v7, 1 }
 0x3f0   :  { %v3857_v43 = vpack.c.b16 %v3856_v51, %v3856_v51 }
 0x3f1   :  { %v3926_v18 = vsel %vm3855_vm2, %v3925_v48, %v3852_v21  ;;  %v4010_v44 = vrot.slane %v4009_v3, 7  ;;  %v4091_v53 = vsel %vm3855_vm2, %v4009_v3, %v4090_v17 }
 0x3f2   :  { %5015 = vmatmul.mubr.msk.bf16.vlgmr.msra.gmra.mrb[8].mxu0 %vm1995_vm9, %v3857_v43  ;;  %v3927_v23 = vpack.c.b16 %v3926_v18, %v3926_v18  ;;  %v4092_v36 = vpack.c.b16 %v4091_v53, %v4091_v53 }
 0x3f3   :  { %5019 = vmatpush3.bf16.msra.mxu0 %v5300_v13  ;;  %5026 = vmatprep.mubr.msk.bf16.mxu0 %vm5495_vm8, %v5494_v38  ;;  %v4011_v32 = vsel %vm3855_vm2, %v4010_v44, %v4008_v7 }
 0x3f4   :  { %5020 = vmatprep.subr.bf16.mxu0 %v5494_v38  ;;  %v4012_v49 = vpack.c.b16 %v4011_v32, %v4011_v32 }
 0x3f7   :  { %5021 = vmatpush3.bf16.msra.mxu0 %v5301_v22 }
 0x3f8   :  { %5022 = vmatprep.subr.bf16.mxu0 %v5494_v38 }
 0x3fb   :  { %5023 = vmatpush3.bf16.msra.mxu0 %v5302_v24 }
 0x3fc   :  { %5024 = vmatprep.subr.bf16.mxu0 %v5494_v38 }
 0x3ff   :  { %5025 = vmatpush3.bf16.msra.mxu0 %v5303_v28 }
 0x400   :  { %5030 = vmatprep.subr.bf16.mxu0 %v5494_v38 }
 0x402   :  { %5027 = vmatmul.mubr.msk.bf16.vlgmr.msra.gmra.mrb[8].mxu0 %vm1995_vm9, %v3927_v23 }
 0x403   :  { %5031 = vmatpush3.bf16.msra.mxu0 %v5304_v26  ;;  %5038 = vmatprep.mubr.msk.bf16.mxu0 %vm5495_vm8, %v5494_v38 }
 0x404   :  { %5032 = vmatprep.subr.bf16.mxu0 %v5494_v38 }
 0x407   :  { %5033 = vmatpush3.bf16.msra.mxu0 %v5305_v14 }
 0x408   :  { %5034 = vmatprep.subr.bf16.mxu0 %v5494_v38 }
 0x40b   :  { %5035 = vmatpush3.bf16.msra.mxu0 %v5306_v45 }
 0x40c   :  { %5036 = vmatprep.subr.bf16.mxu0 %v5494_v38 }
 0x40f   :  { %5037 = vmatpush3.bf16.msra.mxu0 %v5307_v9 }
 0x410   :  { %5042 = vmatprep.subr.bf16.mxu0 %v5494_v38 }
 0x412   :  { %5039 = vmatmul.mubr.msk.bf16.vlgmr.msra.gmra.mrb[8].mxu0 %vm1995_vm9, %v4012_v49 }
 0x413   :  { %5043 = vmatpush3.bf16.msra.mxu0 %v5308_v8  ;;  %5050 = vmatprep.mubr.msk.bf16.mxu0 %vm5495_vm8, %v5494_v38 }
 0x414   :  { %5044 = vmatprep.subr.bf16.mxu0 %v5494_v38 }
 0x417   :  { %5045 = vmatpush3.bf16.msra.mxu0 %v5309_v31 }
 0x418   :  { %5046 = vmatprep.subr.bf16.mxu0 %v5494_v38 }
 0x41b   :  { %5047 = vmatpush3.bf16.msra.mxu0 %v5310_v16 }
 0x41c   :  { %5048 = vmatprep.subr.bf16.mxu0 %v5494_v38 }
 0x41f   :  { %5049 = vmatpush3.bf16.msra.mxu0 %v5311_v5 }
 0x422   :  { %5051 = vmatmul.mubr.msk.bf16.vlgmr.msra.gmra.mrb[8].mxu0 %vm1995_vm9, %v4092_v36 }
 0x423   :  { %5423 = shalt.err (!%p5420_p8)
}
 0x424   :  { %s5424_s26 = scalar_lea.hbm %s7439_s5, 64 }
 0x425   :  { %p5425_p9 = scmp.ne.s32.totalorder %s7439_s5, %s5424_s26  ;;  %p5428_p10 = scmp.lt.u32.totalorder %s5424_s26, %s7439_s5 }
 0x427   :  { %p5430_p11 = pnand %p5428_p10, %p5425_p9 }
 0x429   :  { %5433 = shalt.err (!%p5430_p11)
}
 0x42a   :  { %s5498_s7 = smov 32   ;;  %s5499_s8 = smov 2  }
 0x42b   :  { %4268 = dma.vmem_to_hbm [thread:$0]  %s4263_s21, 64, %s7439_s5, [#allocation12], %s5498_s7, %s5498_s7, %s5499_s8  }
 0x42c   :  { %s5500_s24 = smov [#allocation10]  }
 0x42d   :  { %s4250_s12 = sshll.u32 %s5500_s24, 4  ;;  %s4251_s12 = int_to_ptr.vmem [resolvable:$true] %s4250_s12 }
 0x42e   :  { %s5434_s13 = scalar_lea.vmem %s4251_s12, 256  ;;  %p5439_p13 = scmp.lt.s32.totalorder %s4251_s12, %s4251_s12 }
 0x42f   :  { %p5435_p12 = scmp.ne.s32.totalorder %s4251_s12, %s5434_s13  ;;  %p5440_p0 = scmp.lt.s32.totalorder %s5434_s13, %s5434_s13 }
 0x431   :  { %p5441_p1 = por %p5440_p0, %p5439_p13 }
 0x433   :  { %p5442_p2 = pnand %p5441_p1, %p5435_p12 }
 0x435   :  { %5445 = shalt.err (!%p5442_p2)
}
 0x436   :  { %s5446_s16 = scalar_lea.hbm %s7438_s4, 256 }
 0x437   :  { %p5447_p3 = scmp.ne.s32.totalorder %s7438_s4, %s5446_s16  ;;  %p5450_p4 = scmp.lt.u32.totalorder %s5446_s16, %s7438_s4 }
 0x439   :  { %p5452_p5 = pnand %p5450_p4, %p5447_p3 }
 0x43b   :  { %5455 = shalt.err (!%p5452_p5)
}
 0x43c   :  { %4256 = dma.vmem_to_hbm [thread:$0]  %s4251_s12, 256, %s7438_s4, [#allocation4], %s5490_s9, %s5490_s9, %s5491_s10   ;;  %v5501_v38 = vmov 1966171168   ;;  %vm4236_vm3 = vcmask 516096  }
 0x43d   :  { %v4163_v57 = vunpack.c.l.s4 %v5501_v38  ;;  %vm4237_vm4 = vsmask.f32 256  ;;  %v4239_v47 = vld [vmem:[#allocation13] sm:$0x1]  ;;  %s5502_s4 = smov [#allocation13]  }
 0x43e   :  { %vm4238_vm7 = vmand %vm4236_vm3, %vm4237_vm4  ;;  %s4274_s9 = sshll.u32 %s5502_s4, 4  ;;  %v4242_v12 = vld [vmem:[#allocation13 + $0x1] sm:$0x1]  ;;  %s4275_s9 = int_to_ptr.vmem [resolvable:$true] %s4274_s9 }
 0x43f   :  { %v4164_v1 = vunpack.c.0.s8 %v4163_v57  ;;  %s5456_s10 = scalar_lea.vmem %s4275_s9, 32  ;;  %p5461_p7 = scmp.lt.s32.totalorder %s4275_s9, %s4275_s9 }
 0x440   :  { %p5457_p6 = scmp.ne.s32.totalorder %s4275_s9, %s5456_s10  ;;  %p5462_p8 = scmp.lt.s32.totalorder %s5456_s10, %s5456_s10 }
 0x441   :  { %v4167_v40 = vsub.s32 %v4164_v1, %v6871_v29 }
 0x442   :  { %p5463_p9 = por %p5462_p8, %p5461_p7 }
 0x444   :  { %p5464_p10 = pnand %p5463_p9, %p5457_p6 }
 0x4f5   :  { %v4154_v11 = vpop.f32.mrb[8].mxu0 }
 0x4f6   :  { %v4168_v61 = vrot.slane %v4154_v11, %v4167_v40  ;;  %v5052_v59 = vpop.f32.mrb[9].mxu0 }
 0x4f7   :  { %v4157_v0 = vpop.f32.mrb[10].mxu0 }
 0x4f8   :  { %v4169_v25 = vcombine.high %v4168_v61, %v4168_v61  ;;  %v4176_v20 = vrot.slane %v4168_v61, %v4167_v40  ;;  %v5053_v4 = vpop.f32.mrb[11].mxu0 }
 0x4fa   :  { %v4183_v42 = vrot.slane %v4169_v25, %v4167_v40  ;;  %v4212_v35 = vmul.f32 %v4176_v20, %v4176_v20  ;;  %v4216_v19 = vsub.f32 %v4176_v20, %v4176_v20 }
 0x4fc   :  { %v4213_v63 = vmul.f32 %v4183_v42, %v4183_v42  ;;  %v4220_v52 = vsub.f32 %v4212_v35, %v4212_v35  ;;  %v4217_v50 = vsub.f32 %v4183_v42, %v4183_v42 }
 0x4fe   :  { %v4221_v58 = vsub.f32 %v4213_v63, %v4213_v63  ;;  %v4222_v34 = vadd.f32 1e-05, %v4220_v52 }
 0x500   :  { %v4223_v2 = vadd.f32 1e-05, %v4221_v58  ;;  %5320 = vrsqrt.f32 %v4222_v34 }
 0x502   :  { %5322 = vrsqrt.f32 %v4223_v2 }
 0x50a   :  { %v5321_v27 = vpop.eup %5320 }
 0x50b   :  { %v4226_v29 = vmul.f32 %v5321_v27, %v4216_v19 }
 0x50c   :  { %v5323_v46 = vpop.eup %5322 }
 0x50d   :  { %v4227_v56 = vmul.f32 %v5323_v46, %v4217_v50  ;;  %vm4228_vm5 = vcmp.ge.f32.partialorder %v4226_v29, 0.0  ;;  %v4230_v41 = vmul.f32 0.2, %v4226_v29 }
 0x50f   :  { %vm4229_vm6 = vcmp.ge.f32.partialorder %v4227_v56, 0.0  ;;  %v4231_v39 = vmul.f32 0.2, %v4227_v56  ;;  %v4232_v55 = vsel %vm4228_vm5, %v4226_v29, %v4230_v41 }
 0x510   :  { %v4234_v33 = vpack.c.bf16 %v4232_v55, %v4232_v55 }
 0x511   :  { %v4233_v54 = vsel %vm4229_vm6, %v4227_v56, %v4231_v39 }
 0x512   :  { %v4235_v62 = vpack.c.bf16 %v4233_v54, %v4233_v54  ;;  %v4240_v21 = vsel %vm4238_vm7, %v4234_v33, %v4239_v47 }
 0x513   :  { %4241 = vst [vmem:[#allocation13] sm:$0x1] %v4240_v21 }
 0x514   :  { %v4243_v30 = vsel %vm4238_vm7, %v4235_v62, %v4242_v12 }
 0x515   :  { %4244 = vst [vmem:[#allocation13 + $0x1] sm:$0x1] %v4243_v30 }
 0x516   :  { %5467 = shalt.err (!%p5464_p10)
}
 0x517   :  { %s5468_s21 = scalar_lea.hbm %s7440_s6, 32 }
 0x518   :  { %p5469_p11 = scmp.ne.s32.totalorder %s7440_s6, %s5468_s21  ;;  %p5472_p12 = scmp.lt.u32.totalorder %s5468_s21, %s7440_s6 }
 0x51a   :  { %p5474_p13 = pnand %p5472_p12, %p5469_p11 }
 0x51c   :  { %5477 = shalt.err (!%p5474_p13)
}
 0x51d   :  { %s5503_s27 = smov 16   ;;  %s5504_s28 = smov 1  }
 0x51e   :  { %4280 = dma.vmem_to_hbm [thread:$0]  %s4275_s9, 32, %s7440_s6, [#allocation12], %s5503_s27, %s5503_s27, %s5504_s28  }
 0x51f   :  { %5484 = dma.done.wait [#allocation4], 256  }
 0x520   :  { %5485 = vsyncadd [#allocation4], 4294967040 }
 0x521   :  { %5486 = dma.done.wait [#allocation12], 96  }
 0x522   :  { %5487 = vsyncadd [#allocation12], 4294967200 }
 0x523   :  { %4290 = vsyncpa [#allocation3], 1 }
 0x524   :  { %4291 = vsyncpa [#allocation6], 1 }
 0x525   :  { %4292 = vsyncpa [#allocation9], 1 }
 0x526   :  { %4293 = vsyncpa [#allocation4], 1 }
 0x527   :  { %4294 = vsyncpa [#allocation12], 1 }

</bundles_post_ra>
